<compile_context>
chip_gen: v5e
topology: v5e:2x2
jax: 0.10.0
libtpu: 0.0.40
codegen_flags: <defaults>
</compile_context>

<pallas_src>
import functools
import math

import jax
import jax.numpy as jnp
import numpy as np
from jax.experimental import pallas as pl
from jax.experimental.pallas import tpu as pltpu  # noqa: F401  (TPU backend)

# ----------------------------- model config ---------------------------------
VOCAB_SIZE = 32
D_MODEL = 32
N_LAYERS = 2
H_HEADS = 4
D_FF = 64
MAX_LEN = 16
BATCH = 2
SRC_LEN = 8
TGT_LEN = 8
LN_EPS = 1e-5


# ========================= in-kernel building blocks =========================
def _add_layernorm(x, res, gamma, beta, eps):
    """LayerNorm(x + res); gamma/beta are (1, D)."""
    y = x + res
    mu = jnp.mean(y, axis=-1, keepdims=True)
    yc = y - mu
    var = jnp.mean(yc * yc, axis=-1, keepdims=True)
    return yc * jax.lax.rsqrt(var + eps) * gamma + beta


def _ffn(x, w1, b1, w2, b2):
    h = jnp.dot(x, w1, preferred_element_type=jnp.float32) + b1
    h = jnp.maximum(h, 0.0)
    return jnp.dot(h, w2, preferred_element_type=jnp.float32) + b2


def _mha(q, k, v, mask, wo, *, b, sq, sk, d, h):
    """Multi-head attention core.

    q: (b*sq, d), k/v: (b*sk, d) — already projected, heads laid out along
    the feature axis. mask: (b, sq, sk) float (nonzero = keep).
    Per-(batch, head) score/softmax work is tiny (8x8); the expensive
    projections / Wo are full-width matmuls outside this loop.
    """
    dk = d // h
    scale = 1.0 / math.sqrt(dk)
    per_batch = []
    for bi in range(b):                          # static unroll, B=2
        q_b = q[bi * sq:(bi + 1) * sq]
        k_b = k[bi * sk:(bi + 1) * sk]
        v_b = v[bi * sk:(bi + 1) * sk]
        m_b = mask[bi]
        heads = []
        for hi in range(h):                      # static unroll, H=4
            q_h = q_b[:, hi * dk:(hi + 1) * dk]
            k_h = k_b[:, hi * dk:(hi + 1) * dk]
            v_h = v_b[:, hi * dk:(hi + 1) * dk]
            s = jax.lax.dot_general(
                q_h, k_h, (((1,), (1,)), ((), ())),
                preferred_element_type=jnp.float32) * scale
            s = jnp.where(m_b > 0, s, -1e30)
            mx = jnp.max(s, axis=-1, keepdims=True)
            e = jnp.exp(s - mx)
            p = e * pl.reciprocal(jnp.sum(e, axis=-1, keepdims=True), approx=True)
            heads.append(jnp.dot(p, v_h, preferred_element_type=jnp.float32))
        per_batch.append(jnp.concatenate(heads, axis=-1))   # (sq, d)
    attn = jnp.concatenate(per_batch, axis=0)                # (b*sq, d)
    return jnp.dot(attn, wo, preferred_element_type=jnp.float32)


def _self_attention(x, mask, wqkv, wo, *, b, s, d, h):
    qkv = jnp.dot(x, wqkv, preferred_element_type=jnp.float32)   # (b*s, 3d)
    return _mha(qkv[:, :d], qkv[:, d:2 * d], qkv[:, 2 * d:], mask, wo,
                b=b, sq=s, sk=s, d=d, h=h)


# ============================== fused kernel =================================
def transformer_kernel(
        src_ref, tgt_ref, enc_mask_ref, self_mask_ref, mem_mask_ref,
        e_wqkv_ref, e_wo_ref, e_ln1_ref, e_w1_ref, e_b1_ref,
        e_w2_ref, e_b2_ref, e_ln2_ref,
        dsa_wqkv_ref, dsa_wo_ref, d_ln1_ref,
        dca_wq_ref, dca_wkv_ref, dca_wo_ref, d_ln2_ref,
        d_w1_ref, d_b1_ref, d_w2_ref, d_b2_ref, d_ln3_ref,
        emb_t_ref,
        logits_ref,
        *, b, s, t, d, h, n_layers, eps):
    # ----------------------------- encoder -----------------------------------
    x = src_ref[...]                       # (b*s, d)
    enc_mask = enc_mask_ref[...]           # (b, s, s)
    for l in range(n_layers):
        attn = _self_attention(x, enc_mask, e_wqkv_ref[l], e_wo_ref[l],
                               b=b, s=s, d=d, h=h)
        ln = e_ln1_ref[l]                  # (2, d): row0=gamma, row1=beta
        x = _add_layernorm(x, attn, ln[0:1, :], ln[1:2, :], eps)
        ff = _ffn(x, e_w1_ref[l], e_b1_ref[l], e_w2_ref[l], e_b2_ref[l])
        ln = e_ln2_ref[l]
        x = _add_layernorm(x, ff, ln[0:1, :], ln[1:2, :], eps)
    enc_out = x                            # (b*s, d) stays VMEM-resident

    # ----------------------------- decoder -----------------------------------
    y = tgt_ref[...]                       # (b*t, d)
    self_mask = self_mask_ref[...]         # (b, t, t)
    mem_mask = mem_mask_ref[...]           # (b, t, s)
    for l in range(n_layers):
        sa = _self_attention(y, self_mask, dsa_wqkv_ref[l], dsa_wo_ref[l],
                             b=b, s=t, d=d, h=h)
        ln = d_ln1_ref[l]
        y = _add_layernorm(y, sa, ln[0:1, :], ln[1:2, :], eps)

        q = jnp.dot(y, dca_wq_ref[l], preferred_element_type=jnp.float32)
        kv = jnp.dot(enc_out, dca_wkv_ref[l], preferred_element_type=jnp.float32)
        ca = _mha(q, kv[:, :d], kv[:, d:], mem_mask, dca_wo_ref[l],
                  b=b, sq=t, sk=s, d=d, h=h)
        ln = d_ln2_ref[l]
        y = _add_layernorm(y, ca, ln[0:1, :], ln[1:2, :], eps)

        ff = _ffn(y, d_w1_ref[l], d_b1_ref[l], d_w2_ref[l], d_b2_ref[l])
        ln = d_ln3_ref[l]
        y = _add_layernorm(y, ff, ln[0:1, :], ln[1:2, :], eps)

    # tied-embedding output projection: logits = y @ E.T
    logits_ref[...] = jnp.dot(y, emb_t_ref[...],
                              preferred_element_type=jnp.float32
                              ).astype(logits_ref.dtype)


# ============================== parameters ===================================
def init_params(key):
    keys = list(jax.random.split(key, 256))
    it = iter(keys)

    def nrm(shape, scale=0.1):
        return jax.random.normal(next(it), shape, jnp.float32) * scale

    def mha_p():
        return dict(wq=nrm((D_MODEL, D_MODEL)), wk=nrm((D_MODEL, D_MODEL)),
                    wv=nrm((D_MODEL, D_MODEL)), wo=nrm((D_MODEL, D_MODEL)))

    def ffn_p():
        return dict(w1=nrm((D_MODEL, D_FF)), b1=nrm((1, D_FF)),
                    w2=nrm((D_FF, D_MODEL)), b2=nrm((1, D_MODEL)))

    def ln_p():
        return dict(g=jnp.ones((1, D_MODEL), jnp.float32),
                    b=jnp.zeros((1, D_MODEL), jnp.float32))

    params = {}
    params["emb"] = nrm((VOCAB_SIZE, D_MODEL), 1.0 / math.sqrt(D_MODEL))

    # sinusoidal positional encoding (same as PyTorch module)
    pos = np.arange(MAX_LEN, dtype=np.float32)[:, None]
    div = np.exp(np.arange(0, D_MODEL, 2, dtype=np.float32) *
                 (-math.log(10000.0) / D_MODEL))
    pe = np.zeros((MAX_LEN, D_MODEL), np.float32)
    pe[:, 0::2] = np.sin(pos * div)
    pe[:, 1::2] = np.cos(pos * div)
    params["pe"] = jnp.asarray(pe)

    params["enc_layers"] = [
        dict(attn=mha_p(), ffn=ffn_p(), ln1=ln_p(), ln2=ln_p())
        for _ in range(N_LAYERS)
    ]
    params["dec_layers"] = [
        dict(self_attn=mha_p(), cross_attn=mha_p(), ffn=ffn_p(),
             ln1=ln_p(), ln2=ln_p(), ln3=ln_p())
        for _ in range(N_LAYERS)
    ]
    return params


def pack_params(params):
    """Stack per-layer weights into lane-dense fused matrices for the kernel."""
    enc = params["enc_layers"]
    dec = params["dec_layers"]

    def stack(fn, layers):
        return jnp.stack([fn(p) for p in layers], axis=0)

    def cat_qkv(a):
        return jnp.concatenate([a["wq"], a["wk"], a["wv"]], axis=1)   # (D, 3D)

    def cat_kv(a):
        return jnp.concatenate([a["wk"], a["wv"]], axis=1)            # (D, 2D)

    def cat_ln(p):
        return jnp.concatenate([p["g"], p["b"]], axis=0)              # (2, D)

    return dict(
        e_wqkv=stack(lambda p: cat_qkv(p["attn"]), enc),
        e_wo=stack(lambda p: p["attn"]["wo"], enc),
        e_ln1=stack(lambda p: cat_ln(p["ln1"]), enc),
        e_w1=stack(lambda p: p["ffn"]["w1"], enc),
        e_b1=stack(lambda p: p["ffn"]["b1"], enc),
        e_w2=stack(lambda p: p["ffn"]["w2"], enc),
        e_b2=stack(lambda p: p["ffn"]["b2"], enc),
        e_ln2=stack(lambda p: cat_ln(p["ln2"]), enc),
        dsa_wqkv=stack(lambda p: cat_qkv(p["self_attn"]), dec),
        dsa_wo=stack(lambda p: p["self_attn"]["wo"], dec),
        d_ln1=stack(lambda p: cat_ln(p["ln1"]), dec),
        dca_wq=stack(lambda p: p["cross_attn"]["wq"], dec),
        dca_wkv=stack(lambda p: cat_kv(p["cross_attn"]), dec),
        dca_wo=stack(lambda p: p["cross_attn"]["wo"], dec),
        d_ln2=stack(lambda p: cat_ln(p["ln2"]), dec),
        d_w1=stack(lambda p: p["ffn"]["w1"], dec),
        d_b1=stack(lambda p: p["ffn"]["b1"], dec),
        d_w2=stack(lambda p: p["ffn"]["w2"], dec),
        d_b2=stack(lambda p: p["ffn"]["b2"], dec),
        d_ln3=stack(lambda p: cat_ln(p["ln3"]), dec),
        emb_t=params["emb"].T,                                        # (D, V)
    )


# ============================ forward (Pallas) ===============================
def _expand_mask(mask, b, q, k):
    # PyTorch masks are (B,1,K) or (1,Q,K); broadcast against scores (Q,K).
    return jnp.broadcast_to(mask, (b, q, k)).astype(jnp.float32)


def transformer_forward(params, src, tgt, src_mask, tgt_mask, memory_mask):
    B, S = src.shape
    T = tgt.shape[1]
    scale = math.sqrt(D_MODEL)

    # shared embedding + positional encoding (plain-JAX glue), batch folded
    # into sublanes: (B, S, D) -> (B*S, D)
    src_x = (params["emb"][src] * scale + params["pe"][:S][None]
             ).reshape(B * S, D_MODEL)
    tgt_x = (params["emb"][tgt] * scale + params["pe"][:T][None]
             ).reshape(B * T, D_MODEL)

    enc_mask = _expand_mask(src_mask, B, S, S)
    self_mask = _expand_mask(tgt_mask, B, T, T)
    mem_mask = _expand_mask(memory_mask, B, T, S)

    w = pack_params(params)

    kern = functools.partial(
        transformer_kernel, b=B, s=S, t=T, d=D_MODEL, h=H_HEADS,
        n_layers=N_LAYERS, eps=LN_EPS)

    # Single fused kernel: no grid, every operand is a full-array VMEM block
    # (~0.2 MiB total — far under any generation's VMEM budget).
    logits = pl.pallas_call(
        kern,
        out_shape=jax.ShapeDtypeStruct((B * T, VOCAB_SIZE), jnp.float32),
    )(src_x, tgt_x, enc_mask, self_mask, mem_mask,
      w["e_wqkv"], w["e_wo"], w["e_ln1"], w["e_w1"], w["e_b1"],
      w["e_w2"], w["e_b2"], w["e_ln2"],
      w["dsa_wqkv"], w["dsa_wo"], w["d_ln1"],
      w["dca_wq"], w["dca_wkv"], w["dca_wo"], w["d_ln2"],
      w["d_w1"], w["d_b1"], w["d_w2"], w["d_b2"], w["d_ln3"],
      w["emb_t"])
    return logits.reshape(B, T, VOCAB_SIZE)


# ========================== pure-JAX reference ===============================
def _ref_mha(q, k, v, mask_bqk, p):
    B, Sq, D = q.shape
    Sk = k.shape[1]
    dk = D // H_HEADS
    Q = (q @ p["wq"]).reshape(B, Sq, H_HEADS, dk).transpose(0, 2, 1, 3)
    K = (k @ p["wk"]).reshape(B, Sk, H_HEADS, dk).transpose(0, 2, 1, 3)
    V = (v @ p["wv"]).reshape(B, Sk, H_HEADS, dk).transpose(0, 2, 1, 3)
    scores = jnp.einsum("bhqd,bhkd->bhqk", Q, K) / math.sqrt(dk)
    scores = jnp.where(mask_bqk[:, None] == 0, -1e30, scores)
    w = jax.nn.softmax(scores, axis=-1)
    attn = jnp.einsum("bhqk,bhkd->bhqd", w, V)
    attn = attn.transpose(0, 2, 1, 3).reshape(B, Sq, D)
    return attn @ p["wo"]


def _ref_ln(x, p):
    mu = jnp.mean(x, axis=-1, keepdims=True)
    var = jnp.mean((x - mu) ** 2, axis=-1, keepdims=True)
    return (x - mu) / jnp.sqrt(var + LN_EPS) * p["g"] + p["b"]


def _ref_ffn(x, p):
    return jnp.maximum(x @ p["w1"] + p["b1"], 0.0) @ p["w2"] + p["b2"]


def reference_forward(params, src, tgt, src_mask, tgt_mask, memory_mask):
    B, S = src.shape
    T = tgt.shape[1]
    scale = math.sqrt(D_MODEL)
    x = params["emb"][src] * scale + params["pe"][:S][None]
    enc_mask = _expand_mask(src_mask, B, S, S)
    for lp in params["enc_layers"]:
        a = _ref_mha(x, x, x, enc_mask, lp["attn"])
        x = _ref_ln(x + a, lp["ln1"])
        f = _ref_ffn(x, lp["ffn"])
        x = _ref_ln(x + f, lp["ln2"])
    enc_out = x
    y = params["emb"][tgt] * scale + params["pe"][:T][None]
    self_mask = _expand_mask(tgt_mask, B, T, T)
    mem_mask = _expand_mask(memory_mask, B, T, S)
    for lp in params["dec_layers"]:
        a = _ref_mha(y, y, y, self_mask, lp["self_attn"])
        y = _ref_ln(y + a, lp["ln1"])
        c = _ref_mha(y, enc_out, enc_out, mem_mask, lp["cross_attn"])
        y = _ref_ln(y + c, lp["ln2"])
        f = _ref_ffn(y, lp["ffn"])
        y = _ref_ln(y + f, lp["ln3"])
    return y @ params["emb"].T


# ================================== main =====================================
if __name__ == "__main__":
    key = jax.random.PRNGKey(0)
    k_param, k_src, k_tgt = jax.random.split(key, 3)

    params = init_params(k_param)

    src = jax.random.randint(k_src, (BATCH, SRC_LEN), 0, VOCAB_SIZE, jnp.int32)
    tgt = jax.random.randint(k_tgt, (BATCH, TGT_LEN), 0, VOCAB_SIZE, jnp.int32)

    # masks matching the PyTorch module's conventions
    src_mask = jnp.ones((BATCH, 1, SRC_LEN), jnp.float32)
    tgt_mask = jnp.tril(jnp.ones((TGT_LEN, TGT_LEN), jnp.float32))[None]  # (1,T,T)
    memory_mask = jnp.ones((BATCH, 1, SRC_LEN), jnp.float32)

    fwd = jax.jit(transformer_forward)
    logits = fwd(params, src, tgt, src_mask, tgt_mask, memory_mask)
    logits = jax.block_until_ready(logits)

    assert logits.shape == (BATCH, TGT_LEN, VOCAB_SIZE)

    ref = reference_forward(params, src, tgt, src_mask, tgt_mask, memory_mask)
    ref = jax.block_until_ready(ref)
    np.testing.assert_allclose(np.asarray(logits), np.asarray(ref),
                               rtol=5e-2, atol=5e-2)

    print("KERNEL_OK")
</pallas_src>

<mosaic_0001>
module attributes {stable_mosaic.version = 11 : i64} {
  func.func @transformer_kernel(%arg0: memref<16x32xf32, #tpu.memory_space<vmem>>, %arg1: memref<16x32xf32, #tpu.memory_space<vmem>>, %arg2: memref<2x8x8xf32, #tpu.memory_space<vmem>>, %arg3: memref<2x8x8xf32, #tpu.memory_space<vmem>>, %arg4: memref<2x8x8xf32, #tpu.memory_space<vmem>>, %arg5: memref<2x32x96xf32, #tpu.memory_space<vmem>>, %arg6: memref<2x32x32xf32, #tpu.memory_space<vmem>>, %arg7: memref<2x2x32xf32, #tpu.memory_space<vmem>>, %arg8: memref<2x32x64xf32, #tpu.memory_space<vmem>>, %arg9: memref<2x1x64xf32, #tpu.memory_space<vmem>>, %arg10: memref<2x64x32xf32, #tpu.memory_space<vmem>>, %arg11: memref<2x1x32xf32, #tpu.memory_space<vmem>>, %arg12: memref<2x2x32xf32, #tpu.memory_space<vmem>>, %arg13: memref<2x32x96xf32, #tpu.memory_space<vmem>>, %arg14: memref<2x32x32xf32, #tpu.memory_space<vmem>>, %arg15: memref<2x2x32xf32, #tpu.memory_space<vmem>>, %arg16: memref<2x32x32xf32, #tpu.memory_space<vmem>>, %arg17: memref<2x32x64xf32, #tpu.memory_space<vmem>>, %arg18: memref<2x32x32xf32, #tpu.memory_space<vmem>>, %arg19: memref<2x2x32xf32, #tpu.memory_space<vmem>>, %arg20: memref<2x32x64xf32, #tpu.memory_space<vmem>>, %arg21: memref<2x1x64xf32, #tpu.memory_space<vmem>>, %arg22: memref<2x64x32xf32, #tpu.memory_space<vmem>>, %arg23: memref<2x1x32xf32, #tpu.memory_space<vmem>>, %arg24: memref<2x2x32xf32, #tpu.memory_space<vmem>>, %arg25: memref<32x32xf32, #tpu.memory_space<vmem>>, %arg26: memref<16x32xf32, #tpu.memory_space<vmem>>) attributes {dimension_semantics = [], scalar_prefetch = 0 : i64, scratch_operands = 0 : i64, tpu.core_type = #tpu.core_type<tc>} {
    %c0 = arith.constant 0 : index
    %c0_0 = arith.constant 0 : index
    %0 = vector.load %arg0[%c0, %c0_0] : memref<16x32xf32, #tpu.memory_space<vmem>>, vector<16x32xf32>
    %c0_1 = arith.constant 0 : index
    %c0_2 = arith.constant 0 : index
    %c0_3 = arith.constant 0 : index
    %1 = vector.load %arg2[%c0_1, %c0_2, %c0_3] : memref<2x8x8xf32, #tpu.memory_space<vmem>>, vector<2x8x8xf32>
    %c0_4 = arith.constant 0 : index
    %c0_5 = arith.constant 0 : index
    %c0_6 = arith.constant 0 : index
    %2 = vector.load %arg5[%c0_4, %c0_5, %c0_6] : memref<2x32x96xf32, #tpu.memory_space<vmem>>, vector<1x32x96xf32>
    %3 = vector.shape_cast %2 : vector<1x32x96xf32> to vector<32x96xf32>
    %c0_7 = arith.constant 0 : index
    %c0_8 = arith.constant 0 : index
    %c0_9 = arith.constant 0 : index
    %4 = vector.load %arg6[%c0_7, %c0_8, %c0_9] : memref<2x32x32xf32, #tpu.memory_space<vmem>>, vector<1x32x32xf32>
    %5 = vector.shape_cast %4 : vector<1x32x32xf32> to vector<32x32xf32>
    %cst = arith.constant dense<0.000000e+00> : vector<16x96xf32>
    %6 = tpu.matmul %0, %3, %cst {dimension_numbers = #tpu.dot_dimension_numbers<[1], [0], [0], [1], [0, 0, 1, 1], [], []>} : vector<16x32xf32>, vector<32x96xf32>, vector<16x96xf32> -> vector<16x96xf32>
    %7 = vector.extract_strided_slice %6 {offsets = [0, 0], sizes = [16, 32], strides = [1, 1]} : vector<16x96xf32> to vector<16x32xf32>
    %8 = vector.extract_strided_slice %6 {offsets = [0, 32], sizes = [16, 32], strides = [1, 1]} : vector<16x96xf32> to vector<16x32xf32>
    %9 = vector.extract_strided_slice %6 {offsets = [0, 64], sizes = [16, 32], strides = [1, 1]} : vector<16x96xf32> to vector<16x32xf32>
    %10 = vector.extract_strided_slice %7 {offsets = [0, 0], sizes = [8, 32], strides = [1, 1]} : vector<16x32xf32> to vector<8x32xf32>
    %11 = vector.extract_strided_slice %8 {offsets = [0, 0], sizes = [8, 32], strides = [1, 1]} : vector<16x32xf32> to vector<8x32xf32>
    %12 = vector.extract_strided_slice %9 {offsets = [0, 0], sizes = [8, 32], strides = [1, 1]} : vector<16x32xf32> to vector<8x32xf32>
    %13 = vector.extract_strided_slice %1 {offsets = [0, 0, 0], sizes = [1, 8, 8], strides = [1, 1, 1]} : vector<2x8x8xf32> to vector<1x8x8xf32>
    %14 = vector.shape_cast %13 : vector<1x8x8xf32> to vector<8x8xf32>
    %15 = vector.extract_strided_slice %10 {offsets = [0, 0], sizes = [8, 8], strides = [1, 1]} : vector<8x32xf32> to vector<8x8xf32>
    %16 = vector.extract_strided_slice %11 {offsets = [0, 0], sizes = [8, 8], strides = [1, 1]} : vector<8x32xf32> to vector<8x8xf32>
    %17 = vector.extract_strided_slice %12 {offsets = [0, 0], sizes = [8, 8], strides = [1, 1]} : vector<8x32xf32> to vector<8x8xf32>
    %cst_10 = arith.constant dense<0.000000e+00> : vector<8x8xf32>
    %18 = tpu.matmul %15, %16, %cst_10 {dimension_numbers = #tpu.dot_dimension_numbers<[1], [1], [0], [0], [0, 0, 1, 0], [], []>} : vector<8x8xf32>, vector<8x8xf32>, vector<8x8xf32> -> vector<8x8xf32>
    %cst_11 = arith.constant 0.353553385 : f32
    %19 = vector.broadcast %cst_11 : f32 to vector<8x8xf32>
    %20 = arith.mulf %18, %19 : vector<8x8xf32>
    %cst_12 = arith.constant 0.000000e+00 : f32
    %21 = vector.broadcast %cst_12 : f32 to vector<8x8xf32>
    %22 = arith.cmpf ogt, %14, %21 : vector<8x8xf32>
    %cst_13 = arith.constant -1.000000e+30 : f32
    %23 = vector.broadcast %cst_13 : f32 to vector<8x8xf32>
    %24 = arith.select %22, %20, %23 : vector<8x8xi1>, vector<8x8xf32>
    %cst_14 = arith.constant dense<0xFF800000> : vector<8xf32>
    %25 = vector.multi_reduction <maximumf>, %24, %cst_14 [1] : vector<8x8xf32> to vector<8xf32>
    %26 = vector.shape_cast %25 : vector<8xf32> to vector<8x1xf32>
    %27 = vector.broadcast %26 : vector<8x1xf32> to vector<8x8xf32>
    %28 = arith.subf %24, %27 : vector<8x8xf32>
    %29 = math.exp %28 : vector<8x8xf32>
    %cst_15 = arith.constant dense<0.000000e+00> : vector<8xf32>
    %30 = vector.multi_reduction <add>, %29, %cst_15 [1] : vector<8x8xf32> to vector<8xf32>
    %31 = vector.shape_cast %30 : vector<8xf32> to vector<8x1xf32>
    %32 = tpu.reciprocal %31 {approx = true} : vector<8x1xf32> -> vector<8x1xf32>
    %33 = vector.broadcast %32 : vector<8x1xf32> to vector<8x8xf32>
    %34 = arith.mulf %29, %33 : vector<8x8xf32>
    %cst_16 = arith.constant dense<0.000000e+00> : vector<8x8xf32>
    %35 = tpu.matmul %34, %17, %cst_16 {dimension_numbers = #tpu.dot_dimension_numbers<[1], [0], [0], [1], [0, 0, 1, 1], [], []>} : vector<8x8xf32>, vector<8x8xf32>, vector<8x8xf32> -> vector<8x8xf32>
    %36 = vector.extract_strided_slice %10 {offsets = [0, 8], sizes = [8, 8], strides = [1, 1]} : vector<8x32xf32> to vector<8x8xf32>
    %37 = vector.extract_strided_slice %11 {offsets = [0, 8], sizes = [8, 8], strides = [1, 1]} : vector<8x32xf32> to vector<8x8xf32>
    %38 = vector.extract_strided_slice %12 {offsets = [0, 8], sizes = [8, 8], strides = [1, 1]} : vector<8x32xf32> to vector<8x8xf32>
    %cst_17 = arith.constant dense<0.000000e+00> : vector<8x8xf32>
    %39 = tpu.matmul %36, %37, %cst_17 {dimension_numbers = #tpu.dot_dimension_numbers<[1], [1], [0], [0], [0, 0, 1, 0], [], []>} : vector<8x8xf32>, vector<8x8xf32>, vector<8x8xf32> -> vector<8x8xf32>
    %cst_18 = arith.constant 0.353553385 : f32
    %40 = vector.broadcast %cst_18 : f32 to vector<8x8xf32>
    %41 = arith.mulf %39, %40 : vector<8x8xf32>
    %cst_19 = arith.constant 0.000000e+00 : f32
    %42 = vector.broadcast %cst_19 : f32 to vector<8x8xf32>
    %43 = arith.cmpf ogt, %14, %42 : vector<8x8xf32>
    %cst_20 = arith.constant -1.000000e+30 : f32
    %44 = vector.broadcast %cst_20 : f32 to vector<8x8xf32>
    %45 = arith.select %43, %41, %44 : vector<8x8xi1>, vector<8x8xf32>
    %cst_21 = arith.constant dense<0xFF800000> : vector<8xf32>
    %46 = vector.multi_reduction <maximumf>, %45, %cst_21 [1] : vector<8x8xf32> to vector<8xf32>
    %47 = vector.shape_cast %46 : vector<8xf32> to vector<8x1xf32>
    %48 = vector.broadcast %47 : vector<8x1xf32> to vector<8x8xf32>
    %49 = arith.subf %45, %48 : vector<8x8xf32>
    %50 = math.exp %49 : vector<8x8xf32>
    %cst_22 = arith.constant dense<0.000000e+00> : vector<8xf32>
    %51 = vector.multi_reduction <add>, %50, %cst_22 [1] : vector<8x8xf32> to vector<8xf32>
    %52 = vector.shape_cast %51 : vector<8xf32> to vector<8x1xf32>
    %53 = tpu.reciprocal %52 {approx = true} : vector<8x1xf32> -> vector<8x1xf32>
    %54 = vector.broadcast %53 : vector<8x1xf32> to vector<8x8xf32>
    %55 = arith.mulf %50, %54 : vector<8x8xf32>
    %cst_23 = arith.constant dense<0.000000e+00> : vector<8x8xf32>
    %56 = tpu.matmul %55, %38, %cst_23 {dimension_numbers = #tpu.dot_dimension_numbers<[1], [0], [0], [1], [0, 0, 1, 1], [], []>} : vector<8x8xf32>, vector<8x8xf32>, vector<8x8xf32> -> vector<8x8xf32>
    %57 = vector.extract_strided_slice %10 {offsets = [0, 16], sizes = [8, 8], strides = [1, 1]} : vector<8x32xf32> to vector<8x8xf32>
    %58 = vector.extract_strided_slice %11 {offsets = [0, 16], sizes = [8, 8], strides = [1, 1]} : vector<8x32xf32> to vector<8x8xf32>
    %59 = vector.extract_strided_slice %12 {offsets = [0, 16], sizes = [8, 8], strides = [1, 1]} : vector<8x32xf32> to vector<8x8xf32>
    %cst_24 = arith.constant dense<0.000000e+00> : vector<8x8xf32>
    %60 = tpu.matmul %57, %58, %cst_24 {dimension_numbers = #tpu.dot_dimension_numbers<[1], [1], [0], [0], [0, 0, 1, 0], [], []>} : vector<8x8xf32>, vector<8x8xf32>, vector<8x8xf32> -> vector<8x8xf32>
    %cst_25 = arith.constant 0.353553385 : f32
    %61 = vector.broadcast %cst_25 : f32 to vector<8x8xf32>
    %62 = arith.mulf %60, %61 : vector<8x8xf32>
    %cst_26 = arith.constant 0.000000e+00 : f32
    %63 = vector.broadcast %cst_26 : f32 to vector<8x8xf32>
    %64 = arith.cmpf ogt, %14, %63 : vector<8x8xf32>
    %cst_27 = arith.constant -1.000000e+30 : f32
    %65 = vector.broadcast %cst_27 : f32 to vector<8x8xf32>
    %66 = arith.select %64, %62, %65 : vector<8x8xi1>, vector<8x8xf32>
    %cst_28 = arith.constant dense<0xFF800000> : vector<8xf32>
    %67 = vector.multi_reduction <maximumf>, %66, %cst_28 [1] : vector<8x8xf32> to vector<8xf32>
    %68 = vector.shape_cast %67 : vector<8xf32> to vector<8x1xf32>
    %69 = vector.broadcast %68 : vector<8x1xf32> to vector<8x8xf32>
    %70 = arith.subf %66, %69 : vector<8x8xf32>
    %71 = math.exp %70 : vector<8x8xf32>
    %cst_29 = arith.constant dense<0.000000e+00> : vector<8xf32>
    %72 = vector.multi_reduction <add>, %71, %cst_29 [1] : vector<8x8xf32> to vector<8xf32>
    %73 = vector.shape_cast %72 : vector<8xf32> to vector<8x1xf32>
    %74 = tpu.reciprocal %73 {approx = true} : vector<8x1xf32> -> vector<8x1xf32>
    %75 = vector.broadcast %74 : vector<8x1xf32> to vector<8x8xf32>
    %76 = arith.mulf %71, %75 : vector<8x8xf32>
    %cst_30 = arith.constant dense<0.000000e+00> : vector<8x8xf32>
    %77 = tpu.matmul %76, %59, %cst_30 {dimension_numbers = #tpu.dot_dimension_numbers<[1], [0], [0], [1], [0, 0, 1, 1], [], []>} : vector<8x8xf32>, vector<8x8xf32>, vector<8x8xf32> -> vector<8x8xf32>
    %78 = vector.extract_strided_slice %10 {offsets = [0, 24], sizes = [8, 8], strides = [1, 1]} : vector<8x32xf32> to vector<8x8xf32>
    %79 = vector.extract_strided_slice %11 {offsets = [0, 24], sizes = [8, 8], strides = [1, 1]} : vector<8x32xf32> to vector<8x8xf32>
    %80 = vector.extract_strided_slice %12 {offsets = [0, 24], sizes = [8, 8], strides = [1, 1]} : vector<8x32xf32> to vector<8x8xf32>
    %cst_31 = arith.constant dense<0.000000e+00> : vector<8x8xf32>
    %81 = tpu.matmul %78, %79, %cst_31 {dimension_numbers = #tpu.dot_dimension_numbers<[1], [1], [0], [0], [0, 0, 1, 0], [], []>} : vector<8x8xf32>, vector<8x8xf32>, vector<8x8xf32> -> vector<8x8xf32>
    %cst_32 = arith.constant 0.353553385 : f32
    %82 = vector.broadcast %cst_32 : f32 to vector<8x8xf32>
    %83 = arith.mulf %81, %82 : vector<8x8xf32>
    %cst_33 = arith.constant 0.000000e+00 : f32
    %84 = vector.broadcast %cst_33 : f32 to vector<8x8xf32>
    %85 = arith.cmpf ogt, %14, %84 : vector<8x8xf32>
    %cst_34 = arith.constant -1.000000e+30 : f32
    %86 = vector.broadcast %cst_34 : f32 to vector<8x8xf32>
    %87 = arith.select %85, %83, %86 : vector<8x8xi1>, vector<8x8xf32>
    %cst_35 = arith.constant dense<0xFF800000> : vector<8xf32>
    %88 = vector.multi_reduction <maximumf>, %87, %cst_35 [1] : vector<8x8xf32> to vector<8xf32>
    %89 = vector.shape_cast %88 : vector<8xf32> to vector<8x1xf32>
    %90 = vector.broadcast %89 : vector<8x1xf32> to vector<8x8xf32>
    %91 = arith.subf %87, %90 : vector<8x8xf32>
    %92 = math.exp %91 : vector<8x8xf32>
    %cst_36 = arith.constant dense<0.000000e+00> : vector<8xf32>
    %93 = vector.multi_reduction <add>, %92, %cst_36 [1] : vector<8x8xf32> to vector<8xf32>
    %94 = vector.shape_cast %93 : vector<8xf32> to vector<8x1xf32>
    %95 = tpu.reciprocal %94 {approx = true} : vector<8x1xf32> -> vector<8x1xf32>
    %96 = vector.broadcast %95 : vector<8x1xf32> to vector<8x8xf32>
    %97 = arith.mulf %92, %96 : vector<8x8xf32>
    %cst_37 = arith.constant dense<0.000000e+00> : vector<8x8xf32>
    %98 = tpu.matmul %97, %80, %cst_37 {dimension_numbers = #tpu.dot_dimension_numbers<[1], [0], [0], [1], [0, 0, 1, 1], [], []>} : vector<8x8xf32>, vector<8x8xf32>, vector<8x8xf32> -> vector<8x8xf32>
    %99 = tpu.concatenate %35, %56, %77, %98 in 1 : vector<8x8xf32>, vector<8x8xf32>, vector<8x8xf32>, vector<8x8xf32> -> vector<8x32xf32>
    %100 = vector.extract_strided_slice %7 {offsets = [8, 0], sizes = [8, 32], strides = [1, 1]} : vector<16x32xf32> to vector<8x32xf32>
    %101 = vector.extract_strided_slice %8 {offsets = [8, 0], sizes = [8, 32], strides = [1, 1]} : vector<16x32xf32> to vector<8x32xf32>
    %102 = vector.extract_strided_slice %9 {offsets = [8, 0], sizes = [8, 32], strides = [1, 1]} : vector<16x32xf32> to vector<8x32xf32>
    %103 = vector.extract_strided_slice %1 {offsets = [1, 0, 0], sizes = [1, 8, 8], strides = [1, 1, 1]} : vector<2x8x8xf32> to vector<1x8x8xf32>
    %104 = vector.shape_cast %103 : vector<1x8x8xf32> to vector<8x8xf32>
    %105 = vector.extract_strided_slice %100 {offsets = [0, 0], sizes = [8, 8], strides = [1, 1]} : vector<8x32xf32> to vector<8x8xf32>
    %106 = vector.extract_strided_slice %101 {offsets = [0, 0], sizes = [8, 8], strides = [1, 1]} : vector<8x32xf32> to vector<8x8xf32>
    %107 = vector.extract_strided_slice %102 {offsets = [0, 0], sizes = [8, 8], strides = [1, 1]} : vector<8x32xf32> to vector<8x8xf32>
    %cst_38 = arith.constant dense<0.000000e+00> : vector<8x8xf32>
    %108 = tpu.matmul %105, %106, %cst_38 {dimension_numbers = #tpu.dot_dimension_numbers<[1], [1], [0], [0], [0, 0, 1, 0], [], []>} : vector<8x8xf32>, vector<8x8xf32>, vector<8x8xf32> -> vector<8x8xf32>
    %cst_39 = arith.constant 0.353553385 : f32
    %109 = vector.broadcast %cst_39 : f32 to vector<8x8xf32>
    %110 = arith.mulf %108, %109 : vector<8x8xf32>
    %cst_40 = arith.constant 0.000000e+00 : f32
    %111 = vector.broadcast %cst_40 : f32 to vector<8x8xf32>
    %112 = arith.cmpf ogt, %104, %111 : vector<8x8xf32>
    %cst_41 = arith.constant -1.000000e+30 : f32
    %113 = vector.broadcast %cst_41 : f32 to vector<8x8xf32>
    %114 = arith.select %112, %110, %113 : vector<8x8xi1>, vector<8x8xf32>
    %cst_42 = arith.constant dense<0xFF800000> : vector<8xf32>
    %115 = vector.multi_reduction <maximumf>, %114, %cst_42 [1] : vector<8x8xf32> to vector<8xf32>
    %116 = vector.shape_cast %115 : vector<8xf32> to vector<8x1xf32>
    %117 = vector.broadcast %116 : vector<8x1xf32> to vector<8x8xf32>
    %118 = arith.subf %114, %117 : vector<8x8xf32>
    %119 = math.exp %118 : vector<8x8xf32>
    %cst_43 = arith.constant dense<0.000000e+00> : vector<8xf32>
    %120 = vector.multi_reduction <add>, %119, %cst_43 [1] : vector<8x8xf32> to vector<8xf32>
    %121 = vector.shape_cast %120 : vector<8xf32> to vector<8x1xf32>
    %122 = tpu.reciprocal %121 {approx = true} : vector<8x1xf32> -> vector<8x1xf32>
    %123 = vector.broadcast %122 : vector<8x1xf32> to vector<8x8xf32>
    %124 = arith.mulf %119, %123 : vector<8x8xf32>
    %cst_44 = arith.constant dense<0.000000e+00> : vector<8x8xf32>
    %125 = tpu.matmul %124, %107, %cst_44 {dimension_numbers = #tpu.dot_dimension_numbers<[1], [0], [0], [1], [0, 0, 1, 1], [], []>} : vector<8x8xf32>, vector<8x8xf32>, vector<8x8xf32> -> vector<8x8xf32>
    %126 = vector.extract_strided_slice %100 {offsets = [0, 8], sizes = [8, 8], strides = [1, 1]} : vector<8x32xf32> to vector<8x8xf32>
    %127 = vector.extract_strided_slice %101 {offsets = [0, 8], sizes = [8, 8], strides = [1, 1]} : vector<8x32xf32> to vector<8x8xf32>
    %128 = vector.extract_strided_slice %102 {offsets = [0, 8], sizes = [8, 8], strides = [1, 1]} : vector<8x32xf32> to vector<8x8xf32>
    %cst_45 = arith.constant dense<0.000000e+00> : vector<8x8xf32>
    %129 = tpu.matmul %126, %127, %cst_45 {dimension_numbers = #tpu.dot_dimension_numbers<[1], [1], [0], [0], [0, 0, 1, 0], [], []>} : vector<8x8xf32>, vector<8x8xf32>, vector<8x8xf32> -> vector<8x8xf32>
    %cst_46 = arith.constant 0.353553385 : f32
    %130 = vector.broadcast %cst_46 : f32 to vector<8x8xf32>
    %131 = arith.mulf %129, %130 : vector<8x8xf32>
    %cst_47 = arith.constant 0.000000e+00 : f32
    %132 = vector.broadcast %cst_47 : f32 to vector<8x8xf32>
    %133 = arith.cmpf ogt, %104, %132 : vector<8x8xf32>
    %cst_48 = arith.constant -1.000000e+30 : f32
    %134 = vector.broadcast %cst_48 : f32 to vector<8x8xf32>
    %135 = arith.select %133, %131, %134 : vector<8x8xi1>, vector<8x8xf32>
    %cst_49 = arith.constant dense<0xFF800000> : vector<8xf32>
    %136 = vector.multi_reduction <maximumf>, %135, %cst_49 [1] : vector<8x8xf32> to vector<8xf32>
    %137 = vector.shape_cast %136 : vector<8xf32> to vector<8x1xf32>
    %138 = vector.broadcast %137 : vector<8x1xf32> to vector<8x8xf32>
    %139 = arith.subf %135, %138 : vector<8x8xf32>
    %140 = math.exp %139 : vector<8x8xf32>
    %cst_50 = arith.constant dense<0.000000e+00> : vector<8xf32>
    %141 = vector.multi_reduction <add>, %140, %cst_50 [1] : vector<8x8xf32> to vector<8xf32>
    %142 = vector.shape_cast %141 : vector<8xf32> to vector<8x1xf32>
    %143 = tpu.reciprocal %142 {approx = true} : vector<8x1xf32> -> vector<8x1xf32>
    %144 = vector.broadcast %143 : vector<8x1xf32> to vector<8x8xf32>
    %145 = arith.mulf %140, %144 : vector<8x8xf32>
    %cst_51 = arith.constant dense<0.000000e+00> : vector<8x8xf32>
    %146 = tpu.matmul %145, %128, %cst_51 {dimension_numbers = #tpu.dot_dimension_numbers<[1], [0], [0], [1], [0, 0, 1, 1], [], []>} : vector<8x8xf32>, vector<8x8xf32>, vector<8x8xf32> -> vector<8x8xf32>
    %147 = vector.extract_strided_slice %100 {offsets = [0, 16], sizes = [8, 8], strides = [1, 1]} : vector<8x32xf32> to vector<8x8xf32>
    %148 = vector.extract_strided_slice %101 {offsets = [0, 16], sizes = [8, 8], strides = [1, 1]} : vector<8x32xf32> to vector<8x8xf32>
    %149 = vector.extract_strided_slice %102 {offsets = [0, 16], sizes = [8, 8], strides = [1, 1]} : vector<8x32xf32> to vector<8x8xf32>
    %cst_52 = arith.constant dense<0.000000e+00> : vector<8x8xf32>
    %150 = tpu.matmul %147, %148, %cst_52 {dimension_numbers = #tpu.dot_dimension_numbers<[1], [1], [0], [0], [0, 0, 1, 0], [], []>} : vector<8x8xf32>, vector<8x8xf32>, vector<8x8xf32> -> vector<8x8xf32>
    %cst_53 = arith.constant 0.353553385 : f32
    %151 = vector.broadcast %cst_53 : f32 to vector<8x8xf32>
    %152 = arith.mulf %150, %151 : vector<8x8xf32>
    %cst_54 = arith.constant 0.000000e+00 : f32
    %153 = vector.broadcast %cst_54 : f32 to vector<8x8xf32>
    %154 = arith.cmpf ogt, %104, %153 : vector<8x8xf32>
    %cst_55 = arith.constant -1.000000e+30 : f32
    %155 = vector.broadcast %cst_55 : f32 to vector<8x8xf32>
    %156 = arith.select %154, %152, %155 : vector<8x8xi1>, vector<8x8xf32>
    %cst_56 = arith.constant dense<0xFF800000> : vector<8xf32>
    %157 = vector.multi_reduction <maximumf>, %156, %cst_56 [1] : vector<8x8xf32> to vector<8xf32>
    %158 = vector.shape_cast %157 : vector<8xf32> to vector<8x1xf32>
    %159 = vector.broadcast %158 : vector<8x1xf32> to vector<8x8xf32>
    %160 = arith.subf %156, %159 : vector<8x8xf32>
    %161 = math.exp %160 : vector<8x8xf32>
    %cst_57 = arith.constant dense<0.000000e+00> : vector<8xf32>
    %162 = vector.multi_reduction <add>, %161, %cst_57 [1] : vector<8x8xf32> to vector<8xf32>
    %163 = vector.shape_cast %162 : vector<8xf32> to vector<8x1xf32>
    %164 = tpu.reciprocal %163 {approx = true} : vector<8x1xf32> -> vector<8x1xf32>
    %165 = vector.broadcast %164 : vector<8x1xf32> to vector<8x8xf32>
    %166 = arith.mulf %161, %165 : vector<8x8xf32>
    %cst_58 = arith.constant dense<0.000000e+00> : vector<8x8xf32>
    %167 = tpu.matmul %166, %149, %cst_58 {dimension_numbers = #tpu.dot_dimension_numbers<[1], [0], [0], [1], [0, 0, 1, 1], [], []>} : vector<8x8xf32>, vector<8x8xf32>, vector<8x8xf32> -> vector<8x8xf32>
    %168 = vector.extract_strided_slice %100 {offsets = [0, 24], sizes = [8, 8], strides = [1, 1]} : vector<8x32xf32> to vector<8x8xf32>
    %169 = vector.extract_strided_slice %101 {offsets = [0, 24], sizes = [8, 8], strides = [1, 1]} : vector<8x32xf32> to vector<8x8xf32>
    %170 = vector.extract_strided_slice %102 {offsets = [0, 24], sizes = [8, 8], strides = [1, 1]} : vector<8x32xf32> to vector<8x8xf32>
    %cst_59 = arith.constant dense<0.000000e+00> : vector<8x8xf32>
    %171 = tpu.matmul %168, %169, %cst_59 {dimension_numbers = #tpu.dot_dimension_numbers<[1], [1], [0], [0], [0, 0, 1, 0], [], []>} : vector<8x8xf32>, vector<8x8xf32>, vector<8x8xf32> -> vector<8x8xf32>
    %cst_60 = arith.constant 0.353553385 : f32
    %172 = vector.broadcast %cst_60 : f32 to vector<8x8xf32>
    %173 = arith.mulf %171, %172 : vector<8x8xf32>
    %cst_61 = arith.constant 0.000000e+00 : f32
    %174 = vector.broadcast %cst_61 : f32 to vector<8x8xf32>
    %175 = arith.cmpf ogt, %104, %174 : vector<8x8xf32>
    %cst_62 = arith.constant -1.000000e+30 : f32
    %176 = vector.broadcast %cst_62 : f32 to vector<8x8xf32>
    %177 = arith.select %175, %173, %176 : vector<8x8xi1>, vector<8x8xf32>
    %cst_63 = arith.constant dense<0xFF800000> : vector<8xf32>
    %178 = vector.multi_reduction <maximumf>, %177, %cst_63 [1] : vector<8x8xf32> to vector<8xf32>
    %179 = vector.shape_cast %178 : vector<8xf32> to vector<8x1xf32>
    %180 = vector.broadcast %179 : vector<8x1xf32> to vector<8x8xf32>
    %181 = arith.subf %177, %180 : vector<8x8xf32>
    %182 = math.exp %181 : vector<8x8xf32>
    %cst_64 = arith.constant dense<0.000000e+00> : vector<8xf32>
    %183 = vector.multi_reduction <add>, %182, %cst_64 [1] : vector<8x8xf32> to vector<8xf32>
    %184 = vector.shape_cast %183 : vector<8xf32> to vector<8x1xf32>
    %185 = tpu.reciprocal %184 {approx = true} : vector<8x1xf32> -> vector<8x1xf32>
    %186 = vector.broadcast %185 : vector<8x1xf32> to vector<8x8xf32>
    %187 = arith.mulf %182, %186 : vector<8x8xf32>
    %cst_65 = arith.constant dense<0.000000e+00> : vector<8x8xf32>
    %188 = tpu.matmul %187, %170, %cst_65 {dimension_numbers = #tpu.dot_dimension_numbers<[1], [0], [0], [1], [0, 0, 1, 1], [], []>} : vector<8x8xf32>, vector<8x8xf32>, vector<8x8xf32> -> vector<8x8xf32>
    %189 = tpu.concatenate %125, %146, %167, %188 in 1 : vector<8x8xf32>, vector<8x8xf32>, vector<8x8xf32>, vector<8x8xf32> -> vector<8x32xf32>
    %190 = tpu.concatenate %99, %189 in 0 : vector<8x32xf32>, vector<8x32xf32> -> vector<16x32xf32>
    %cst_66 = arith.constant dense<0.000000e+00> : vector<16x32xf32>
    %191 = tpu.matmul %190, %5, %cst_66 {dimension_numbers = #tpu.dot_dimension_numbers<[1], [0], [0], [1], [0, 0, 1, 1], [], []>} : vector<16x32xf32>, vector<32x32xf32>, vector<16x32xf32> -> vector<16x32xf32>
    %c0_67 = arith.constant 0 : index
    %c0_68 = arith.constant 0 : index
    %c0_69 = arith.constant 0 : index
    %192 = vector.load %arg7[%c0_67, %c0_68, %c0_69] : memref<2x2x32xf32, #tpu.memory_space<vmem>>, vector<1x2x32xf32>
    %193 = vector.shape_cast %192 : vector<1x2x32xf32> to vector<2x32xf32>
    %194 = vector.extract_strided_slice %193 {offsets = [0, 0], sizes = [1, 32], strides = [1, 1]} : vector<2x32xf32> to vector<1x32xf32>
    %195 = vector.extract_strided_slice %193 {offsets = [1, 0], sizes = [1, 32], strides = [1, 1]} : vector<2x32xf32> to vector<1x32xf32>
    %196 = arith.addf %0, %191 : vector<16x32xf32>
    %cst_70 = arith.constant dense<0.000000e+00> : vector<16xf32>
    %197 = vector.multi_reduction <add>, %196, %cst_70 [1] : vector<16x32xf32> to vector<16xf32>
    %198 = vector.shape_cast %197 : vector<16xf32> to vector<16x1xf32>
    %cst_71 = arith.constant 3.200000e+01 : f32
    %199 = vector.broadcast %cst_71 : f32 to vector<16x1xf32>
    %200 = arith.divf %198, %199 : vector<16x1xf32>
    %201 = vector.broadcast %200 : vector<16x1xf32> to vector<16x32xf32>
    %202 = arith.subf %196, %201 : vector<16x32xf32>
    %203 = arith.mulf %202, %202 : vector<16x32xf32>
    %cst_72 = arith.constant dense<0.000000e+00> : vector<16xf32>
    %204 = vector.multi_reduction <add>, %203, %cst_72 [1] : vector<16x32xf32> to vector<16xf32>
    %205 = vector.shape_cast %204 : vector<16xf32> to vector<16x1xf32>
    %cst_73 = arith.constant 3.200000e+01 : f32
    %206 = vector.broadcast %cst_73 : f32 to vector<16x1xf32>
    %207 = arith.divf %205, %206 : vector<16x1xf32>
    %cst_74 = arith.constant 9.99999974E-6 : f32
    %208 = vector.broadcast %cst_74 : f32 to vector<16x1xf32>
    %209 = arith.addf %207, %208 : vector<16x1xf32>
    %210 = math.rsqrt %209 : vector<16x1xf32>
    %211 = vector.broadcast %210 : vector<16x1xf32> to vector<16x32xf32>
    %212 = arith.mulf %202, %211 : vector<16x32xf32>
    %213 = vector.broadcast %194 : vector<1x32xf32> to vector<16x32xf32>
    %214 = arith.mulf %212, %213 : vector<16x32xf32>
    %215 = vector.broadcast %195 : vector<1x32xf32> to vector<16x32xf32>
    %216 = arith.addf %214, %215 : vector<16x32xf32>
    %c0_75 = arith.constant 0 : index
    %c0_76 = arith.constant 0 : index
    %c0_77 = arith.constant 0 : index
    %217 = vector.load %arg8[%c0_75, %c0_76, %c0_77] : memref<2x32x64xf32, #tpu.memory_space<vmem>>, vector<1x32x64xf32>
    %218 = vector.shape_cast %217 : vector<1x32x64xf32> to vector<32x64xf32>
    %c0_78 = arith.constant 0 : index
    %c0_79 = arith.constant 0 : index
    %c0_80 = arith.constant 0 : index
    %219 = vector.load %arg9[%c0_78, %c0_79, %c0_80] : memref<2x1x64xf32, #tpu.memory_space<vmem>>, vector<1x1x64xf32>
    %220 = vector.shape_cast %219 : vector<1x1x64xf32> to vector<1x64xf32>
    %c0_81 = arith.constant 0 : index
    %c0_82 = arith.constant 0 : index
    %c0_83 = arith.constant 0 : index
    %221 = vector.load %arg10[%c0_81, %c0_82, %c0_83] : memref<2x64x32xf32, #tpu.memory_space<vmem>>, vector<1x64x32xf32>
    %222 = vector.shape_cast %221 : vector<1x64x32xf32> to vector<64x32xf32>
    %c0_84 = arith.constant 0 : index
    %c0_85 = arith.constant 0 : index
    %c0_86 = arith.constant 0 : index
    %223 = vector.load %arg11[%c0_84, %c0_85, %c0_86] : memref<2x1x32xf32, #tpu.memory_space<vmem>>, vector<1x1x32xf32>
    %224 = vector.shape_cast %223 : vector<1x1x32xf32> to vector<1x32xf32>
    %cst_87 = arith.constant dense<0.000000e+00> : vector<16x64xf32>
    %225 = tpu.matmul %216, %218, %cst_87 {dimension_numbers = #tpu.dot_dimension_numbers<[1], [0], [0], [1], [0, 0, 1, 1], [], []>} : vector<16x32xf32>, vector<32x64xf32>, vector<16x64xf32> -> vector<16x64xf32>
    %226 = vector.broadcast %220 : vector<1x64xf32> to vector<16x64xf32>
    %227 = arith.addf %225, %226 : vector<16x64xf32>
    %cst_88 = arith.constant 0.000000e+00 : f32
    %228 = vector.broadcast %cst_88 : f32 to vector<16x64xf32>
    %229 = arith.maximumf %227, %228 : vector<16x64xf32>
    %cst_89 = arith.constant dense<0.000000e+00> : vector<16x32xf32>
    %230 = tpu.matmul %229, %222, %cst_89 {dimension_numbers = #tpu.dot_dimension_numbers<[1], [0], [0], [1], [0, 0, 1, 1], [], []>} : vector<16x64xf32>, vector<64x32xf32>, vector<16x32xf32> -> vector<16x32xf32>
    %231 = vector.broadcast %224 : vector<1x32xf32> to vector<16x32xf32>
    %232 = arith.addf %230, %231 : vector<16x32xf32>
    %c0_90 = arith.constant 0 : index
    %c0_91 = arith.constant 0 : index
    %c0_92 = arith.constant 0 : index
    %233 = vector.load %arg12[%c0_90, %c0_91, %c0_92] : memref<2x2x32xf32, #tpu.memory_space<vmem>>, vector<1x2x32xf32>
    %234 = vector.shape_cast %233 : vector<1x2x32xf32> to vector<2x32xf32>
    %235 = vector.extract_strided_slice %234 {offsets = [0, 0], sizes = [1, 32], strides = [1, 1]} : vector<2x32xf32> to vector<1x32xf32>
    %236 = vector.extract_strided_slice %234 {offsets = [1, 0], sizes = [1, 32], strides = [1, 1]} : vector<2x32xf32> to vector<1x32xf32>
    %237 = arith.addf %216, %232 : vector<16x32xf32>
    %cst_93 = arith.constant dense<0.000000e+00> : vector<16xf32>
    %238 = vector.multi_reduction <add>, %237, %cst_93 [1] : vector<16x32xf32> to vector<16xf32>
    %239 = vector.shape_cast %238 : vector<16xf32> to vector<16x1xf32>
    %cst_94 = arith.constant 3.200000e+01 : f32
    %240 = vector.broadcast %cst_94 : f32 to vector<16x1xf32>
    %241 = arith.divf %239, %240 : vector<16x1xf32>
    %242 = vector.broadcast %241 : vector<16x1xf32> to vector<16x32xf32>
    %243 = arith.subf %237, %242 : vector<16x32xf32>
    %244 = arith.mulf %243, %243 : vector<16x32xf32>
    %cst_95 = arith.constant dense<0.000000e+00> : vector<16xf32>
    %245 = vector.multi_reduction <add>, %244, %cst_95 [1] : vector<16x32xf32> to vector<16xf32>
    %246 = vector.shape_cast %245 : vector<16xf32> to vector<16x1xf32>
    %cst_96 = arith.constant 3.200000e+01 : f32
    %247 = vector.broadcast %cst_96 : f32 to vector<16x1xf32>
    %248 = arith.divf %246, %247 : vector<16x1xf32>
    %cst_97 = arith.constant 9.99999974E-6 : f32
    %249 = vector.broadcast %cst_97 : f32 to vector<16x1xf32>
    %250 = arith.addf %248, %249 : vector<16x1xf32>
    %251 = math.rsqrt %250 : vector<16x1xf32>
    %252 = vector.broadcast %251 : vector<16x1xf32> to vector<16x32xf32>
    %253 = arith.mulf %243, %252 : vector<16x32xf32>
    %254 = vector.broadcast %235 : vector<1x32xf32> to vector<16x32xf32>
    %255 = arith.mulf %253, %254 : vector<16x32xf32>
    %256 = vector.broadcast %236 : vector<1x32xf32> to vector<16x32xf32>
    %257 = arith.addf %255, %256 : vector<16x32xf32>
    %c1 = arith.constant 1 : index
    %c0_98 = arith.constant 0 : index
    %c0_99 = arith.constant 0 : index
    %258 = vector.load %arg5[%c1, %c0_98, %c0_99] : memref<2x32x96xf32, #tpu.memory_space<vmem>>, vector<1x32x96xf32>
    %259 = vector.shape_cast %258 : vector<1x32x96xf32> to vector<32x96xf32>
    %c1_100 = arith.constant 1 : index
    %c0_101 = arith.constant 0 : index
    %c0_102 = arith.constant 0 : index
    %260 = vector.load %arg6[%c1_100, %c0_101, %c0_102] : memref<2x32x32xf32, #tpu.memory_space<vmem>>, vector<1x32x32xf32>
    %261 = vector.shape_cast %260 : vector<1x32x32xf32> to vector<32x32xf32>
    %cst_103 = arith.constant dense<0.000000e+00> : vector<16x96xf32>
    %262 = tpu.matmul %257, %259, %cst_103 {dimension_numbers = #tpu.dot_dimension_numbers<[1], [0], [0], [1], [0, 0, 1, 1], [], []>} : vector<16x32xf32>, vector<32x96xf32>, vector<16x96xf32> -> vector<16x96xf32>
    %263 = vector.extract_strided_slice %262 {offsets = [0, 0], sizes = [16, 32], strides = [1, 1]} : vector<16x96xf32> to vector<16x32xf32>
    %264 = vector.extract_strided_slice %262 {offsets = [0, 32], sizes = [16, 32], strides = [1, 1]} : vector<16x96xf32> to vector<16x32xf32>
    %265 = vector.extract_strided_slice %262 {offsets = [0, 64], sizes = [16, 32], strides = [1, 1]} : vector<16x96xf32> to vector<16x32xf32>
    %266 = vector.extract_strided_slice %263 {offsets = [0, 0], sizes = [8, 32], strides = [1, 1]} : vector<16x32xf32> to vector<8x32xf32>
    %267 = vector.extract_strided_slice %264 {offsets = [0, 0], sizes = [8, 32], strides = [1, 1]} : vector<16x32xf32> to vector<8x32xf32>
    %268 = vector.extract_strided_slice %265 {offsets = [0, 0], sizes = [8, 32], strides = [1, 1]} : vector<16x32xf32> to vector<8x32xf32>
    %269 = vector.extract_strided_slice %1 {offsets = [0, 0, 0], sizes = [1, 8, 8], strides = [1, 1, 1]} : vector<2x8x8xf32> to vector<1x8x8xf32>
    %270 = vector.shape_cast %269 : vector<1x8x8xf32> to vector<8x8xf32>
    %271 = vector.extract_strided_slice %266 {offsets = [0, 0], sizes = [8, 8], strides = [1, 1]} : vector<8x32xf32> to vector<8x8xf32>
    %272 = vector.extract_strided_slice %267 {offsets = [0, 0], sizes = [8, 8], strides = [1, 1]} : vector<8x32xf32> to vector<8x8xf32>
    %273 = vector.extract_strided_slice %268 {offsets = [0, 0], sizes = [8, 8], strides = [1, 1]} : vector<8x32xf32> to vector<8x8xf32>
    %cst_104 = arith.constant dense<0.000000e+00> : vector<8x8xf32>
    %274 = tpu.matmul %271, %272, %cst_104 {dimension_numbers = #tpu.dot_dimension_numbers<[1], [1], [0], [0], [0, 0, 1, 0], [], []>} : vector<8x8xf32>, vector<8x8xf32>, vector<8x8xf32> -> vector<8x8xf32>
    %cst_105 = arith.constant 0.353553385 : f32
    %275 = vector.broadcast %cst_105 : f32 to vector<8x8xf32>
    %276 = arith.mulf %274, %275 : vector<8x8xf32>
    %cst_106 = arith.constant 0.000000e+00 : f32
    %277 = vector.broadcast %cst_106 : f32 to vector<8x8xf32>
    %278 = arith.cmpf ogt, %270, %277 : vector<8x8xf32>
    %cst_107 = arith.constant -1.000000e+30 : f32
    %279 = vector.broadcast %cst_107 : f32 to vector<8x8xf32>
    %280 = arith.select %278, %276, %279 : vector<8x8xi1>, vector<8x8xf32>
    %cst_108 = arith.constant dense<0xFF800000> : vector<8xf32>
    %281 = vector.multi_reduction <maximumf>, %280, %cst_108 [1] : vector<8x8xf32> to vector<8xf32>
    %282 = vector.shape_cast %281 : vector<8xf32> to vector<8x1xf32>
    %283 = vector.broadcast %282 : vector<8x1xf32> to vector<8x8xf32>
    %284 = arith.subf %280, %283 : vector<8x8xf32>
    %285 = math.exp %284 : vector<8x8xf32>
    %cst_109 = arith.constant dense<0.000000e+00> : vector<8xf32>
    %286 = vector.multi_reduction <add>, %285, %cst_109 [1] : vector<8x8xf32> to vector<8xf32>
    %287 = vector.shape_cast %286 : vector<8xf32> to vector<8x1xf32>
    %288 = tpu.reciprocal %287 {approx = true} : vector<8x1xf32> -> vector<8x1xf32>
    %289 = vector.broadcast %288 : vector<8x1xf32> to vector<8x8xf32>
    %290 = arith.mulf %285, %289 : vector<8x8xf32>
    %cst_110 = arith.constant dense<0.000000e+00> : vector<8x8xf32>
    %291 = tpu.matmul %290, %273, %cst_110 {dimension_numbers = #tpu.dot_dimension_numbers<[1], [0], [0], [1], [0, 0, 1, 1], [], []>} : vector<8x8xf32>, vector<8x8xf32>, vector<8x8xf32> -> vector<8x8xf32>
    %292 = vector.extract_strided_slice %266 {offsets = [0, 8], sizes = [8, 8], strides = [1, 1]} : vector<8x32xf32> to vector<8x8xf32>
    %293 = vector.extract_strided_slice %267 {offsets = [0, 8], sizes = [8, 8], strides = [1, 1]} : vector<8x32xf32> to vector<8x8xf32>
    %294 = vector.extract_strided_slice %268 {offsets = [0, 8], sizes = [8, 8], strides = [1, 1]} : vector<8x32xf32> to vector<8x8xf32>
    %cst_111 = arith.constant dense<0.000000e+00> : vector<8x8xf32>
    %295 = tpu.matmul %292, %293, %cst_111 {dimension_numbers = #tpu.dot_dimension_numbers<[1], [1], [0], [0], [0, 0, 1, 0], [], []>} : vector<8x8xf32>, vector<8x8xf32>, vector<8x8xf32> -> vector<8x8xf32>
    %cst_112 = arith.constant 0.353553385 : f32
    %296 = vector.broadcast %cst_112 : f32 to vector<8x8xf32>
    %297 = arith.mulf %295, %296 : vector<8x8xf32>
    %cst_113 = arith.constant 0.000000e+00 : f32
    %298 = vector.broadcast %cst_113 : f32 to vector<8x8xf32>
    %299 = arith.cmpf ogt, %270, %298 : vector<8x8xf32>
    %cst_114 = arith.constant -1.000000e+30 : f32
    %300 = vector.broadcast %cst_114 : f32 to vector<8x8xf32>
    %301 = arith.select %299, %297, %300 : vector<8x8xi1>, vector<8x8xf32>
    %cst_115 = arith.constant dense<0xFF800000> : vector<8xf32>
    %302 = vector.multi_reduction <maximumf>, %301, %cst_115 [1] : vector<8x8xf32> to vector<8xf32>
    %303 = vector.shape_cast %302 : vector<8xf32> to vector<8x1xf32>
    %304 = vector.broadcast %303 : vector<8x1xf32> to vector<8x8xf32>
    %305 = arith.subf %301, %304 : vector<8x8xf32>
    %306 = math.exp %305 : vector<8x8xf32>
    %cst_116 = arith.constant dense<0.000000e+00> : vector<8xf32>
    %307 = vector.multi_reduction <add>, %306, %cst_116 [1] : vector<8x8xf32> to vector<8xf32>
    %308 = vector.shape_cast %307 : vector<8xf32> to vector<8x1xf32>
    %309 = tpu.reciprocal %308 {approx = true} : vector<8x1xf32> -> vector<8x1xf32>
    %310 = vector.broadcast %309 : vector<8x1xf32> to vector<8x8xf32>
    %311 = arith.mulf %306, %310 : vector<8x8xf32>
    %cst_117 = arith.constant dense<0.000000e+00> : vector<8x8xf32>
    %312 = tpu.matmul %311, %294, %cst_117 {dimension_numbers = #tpu.dot_dimension_numbers<[1], [0], [0], [1], [0, 0, 1, 1], [], []>} : vector<8x8xf32>, vector<8x8xf32>, vector<8x8xf32> -> vector<8x8xf32>
    %313 = vector.extract_strided_slice %266 {offsets = [0, 16], sizes = [8, 8], strides = [1, 1]} : vector<8x32xf32> to vector<8x8xf32>
    %314 = vector.extract_strided_slice %267 {offsets = [0, 16], sizes = [8, 8], strides = [1, 1]} : vector<8x32xf32> to vector<8x8xf32>
    %315 = vector.extract_strided_slice %268 {offsets = [0, 16], sizes = [8, 8], strides = [1, 1]} : vector<8x32xf32> to vector<8x8xf32>
    %cst_118 = arith.constant dense<0.000000e+00> : vector<8x8xf32>
    %316 = tpu.matmul %313, %314, %cst_118 {dimension_numbers = #tpu.dot_dimension_numbers<[1], [1], [0], [0], [0, 0, 1, 0], [], []>} : vector<8x8xf32>, vector<8x8xf32>, vector<8x8xf32> -> vector<8x8xf32>
    %cst_119 = arith.constant 0.353553385 : f32
    %317 = vector.broadcast %cst_119 : f32 to vector<8x8xf32>
    %318 = arith.mulf %316, %317 : vector<8x8xf32>
    %cst_120 = arith.constant 0.000000e+00 : f32
    %319 = vector.broadcast %cst_120 : f32 to vector<8x8xf32>
    %320 = arith.cmpf ogt, %270, %319 : vector<8x8xf32>
    %cst_121 = arith.constant -1.000000e+30 : f32
    %321 = vector.broadcast %cst_121 : f32 to vector<8x8xf32>
    %322 = arith.select %320, %318, %321 : vector<8x8xi1>, vector<8x8xf32>
    %cst_122 = arith.constant dense<0xFF800000> : vector<8xf32>
    %323 = vector.multi_reduction <maximumf>, %322, %cst_122 [1] : vector<8x8xf32> to vector<8xf32>
    %324 = vector.shape_cast %323 : vector<8xf32> to vector<8x1xf32>
    %325 = vector.broadcast %324 : vector<8x1xf32> to vector<8x8xf32>
    %326 = arith.subf %322, %325 : vector<8x8xf32>
    %327 = math.exp %326 : vector<8x8xf32>
    %cst_123 = arith.constant dense<0.000000e+00> : vector<8xf32>
    %328 = vector.multi_reduction <add>, %327, %cst_123 [1] : vector<8x8xf32> to vector<8xf32>
    %329 = vector.shape_cast %328 : vector<8xf32> to vector<8x1xf32>
    %330 = tpu.reciprocal %329 {approx = true} : vector<8x1xf32> -> vector<8x1xf32>
    %331 = vector.broadcast %330 : vector<8x1xf32> to vector<8x8xf32>
    %332 = arith.mulf %327, %331 : vector<8x8xf32>
    %cst_124 = arith.constant dense<0.000000e+00> : vector<8x8xf32>
    %333 = tpu.matmul %332, %315, %cst_124 {dimension_numbers = #tpu.dot_dimension_numbers<[1], [0], [0], [1], [0, 0, 1, 1], [], []>} : vector<8x8xf32>, vector<8x8xf32>, vector<8x8xf32> -> vector<8x8xf32>
    %334 = vector.extract_strided_slice %266 {offsets = [0, 24], sizes = [8, 8], strides = [1, 1]} : vector<8x32xf32> to vector<8x8xf32>
    %335 = vector.extract_strided_slice %267 {offsets = [0, 24], sizes = [8, 8], strides = [1, 1]} : vector<8x32xf32> to vector<8x8xf32>
    %336 = vector.extract_strided_slice %268 {offsets = [0, 24], sizes = [8, 8], strides = [1, 1]} : vector<8x32xf32> to vector<8x8xf32>
    %cst_125 = arith.constant dense<0.000000e+00> : vector<8x8xf32>
    %337 = tpu.matmul %334, %335, %cst_125 {dimension_numbers = #tpu.dot_dimension_numbers<[1], [1], [0], [0], [0, 0, 1, 0], [], []>} : vector<8x8xf32>, vector<8x8xf32>, vector<8x8xf32> -> vector<8x8xf32>
    %cst_126 = arith.constant 0.353553385 : f32
    %338 = vector.broadcast %cst_126 : f32 to vector<8x8xf32>
    %339 = arith.mulf %337, %338 : vector<8x8xf32>
    %cst_127 = arith.constant 0.000000e+00 : f32
    %340 = vector.broadcast %cst_127 : f32 to vector<8x8xf32>
    %341 = arith.cmpf ogt, %270, %340 : vector<8x8xf32>
    %cst_128 = arith.constant -1.000000e+30 : f32
    %342 = vector.broadcast %cst_128 : f32 to vector<8x8xf32>
    %343 = arith.select %341, %339, %342 : vector<8x8xi1>, vector<8x8xf32>
    %cst_129 = arith.constant dense<0xFF800000> : vector<8xf32>
    %344 = vector.multi_reduction <maximumf>, %343, %cst_129 [1] : vector<8x8xf32> to vector<8xf32>
    %345 = vector.shape_cast %344 : vector<8xf32> to vector<8x1xf32>
    %346 = vector.broadcast %345 : vector<8x1xf32> to vector<8x8xf32>
    %347 = arith.subf %343, %346 : vector<8x8xf32>
    %348 = math.exp %347 : vector<8x8xf32>
    %cst_130 = arith.constant dense<0.000000e+00> : vector<8xf32>
    %349 = vector.multi_reduction <add>, %348, %cst_130 [1] : vector<8x8xf32> to vector<8xf32>
    %350 = vector.shape_cast %349 : vector<8xf32> to vector<8x1xf32>
    %351 = tpu.reciprocal %350 {approx = true} : vector<8x1xf32> -> vector<8x1xf32>
    %352 = vector.broadcast %351 : vector<8x1xf32> to vector<8x8xf32>
    %353 = arith.mulf %348, %352 : vector<8x8xf32>
    %cst_131 = arith.constant dense<0.000000e+00> : vector<8x8xf32>
    %354 = tpu.matmul %353, %336, %cst_131 {dimension_numbers = #tpu.dot_dimension_numbers<[1], [0], [0], [1], [0, 0, 1, 1], [], []>} : vector<8x8xf32>, vector<8x8xf32>, vector<8x8xf32> -> vector<8x8xf32>
    %355 = tpu.concatenate %291, %312, %333, %354 in 1 : vector<8x8xf32>, vector<8x8xf32>, vector<8x8xf32>, vector<8x8xf32> -> vector<8x32xf32>
    %356 = vector.extract_strided_slice %263 {offsets = [8, 0], sizes = [8, 32], strides = [1, 1]} : vector<16x32xf32> to vector<8x32xf32>
    %357 = vector.extract_strided_slice %264 {offsets = [8, 0], sizes = [8, 32], strides = [1, 1]} : vector<16x32xf32> to vector<8x32xf32>
    %358 = vector.extract_strided_slice %265 {offsets = [8, 0], sizes = [8, 32], strides = [1, 1]} : vector<16x32xf32> to vector<8x32xf32>
    %359 = vector.extract_strided_slice %1 {offsets = [1, 0, 0], sizes = [1, 8, 8], strides = [1, 1, 1]} : vector<2x8x8xf32> to vector<1x8x8xf32>
    %360 = vector.shape_cast %359 : vector<1x8x8xf32> to vector<8x8xf32>
    %361 = vector.extract_strided_slice %356 {offsets = [0, 0], sizes = [8, 8], strides = [1, 1]} : vector<8x32xf32> to vector<8x8xf32>
    %362 = vector.extract_strided_slice %357 {offsets = [0, 0], sizes = [8, 8], strides = [1, 1]} : vector<8x32xf32> to vector<8x8xf32>
    %363 = vector.extract_strided_slice %358 {offsets = [0, 0], sizes = [8, 8], strides = [1, 1]} : vector<8x32xf32> to vector<8x8xf32>
    %cst_132 = arith.constant dense<0.000000e+00> : vector<8x8xf32>
    %364 = tpu.matmul %361, %362, %cst_132 {dimension_numbers = #tpu.dot_dimension_numbers<[1], [1], [0], [0], [0, 0, 1, 0], [], []>} : vector<8x8xf32>, vector<8x8xf32>, vector<8x8xf32> -> vector<8x8xf32>
    %cst_133 = arith.constant 0.353553385 : f32
    %365 = vector.broadcast %cst_133 : f32 to vector<8x8xf32>
    %366 = arith.mulf %364, %365 : vector<8x8xf32>
    %cst_134 = arith.constant 0.000000e+00 : f32
    %367 = vector.broadcast %cst_134 : f32 to vector<8x8xf32>
    %368 = arith.cmpf ogt, %360, %367 : vector<8x8xf32>
    %cst_135 = arith.constant -1.000000e+30 : f32
    %369 = vector.broadcast %cst_135 : f32 to vector<8x8xf32>
    %370 = arith.select %368, %366, %369 : vector<8x8xi1>, vector<8x8xf32>
    %cst_136 = arith.constant dense<0xFF800000> : vector<8xf32>
    %371 = vector.multi_reduction <maximumf>, %370, %cst_136 [1] : vector<8x8xf32> to vector<8xf32>
    %372 = vector.shape_cast %371 : vector<8xf32> to vector<8x1xf32>
    %373 = vector.broadcast %372 : vector<8x1xf32> to vector<8x8xf32>
    %374 = arith.subf %370, %373 : vector<8x8xf32>
    %375 = math.exp %374 : vector<8x8xf32>
    %cst_137 = arith.constant dense<0.000000e+00> : vector<8xf32>
    %376 = vector.multi_reduction <add>, %375, %cst_137 [1] : vector<8x8xf32> to vector<8xf32>
    %377 = vector.shape_cast %376 : vector<8xf32> to vector<8x1xf32>
    %378 = tpu.reciprocal %377 {approx = true} : vector<8x1xf32> -> vector<8x1xf32>
    %379 = vector.broadcast %378 : vector<8x1xf32> to vector<8x8xf32>
    %380 = arith.mulf %375, %379 : vector<8x8xf32>
    %cst_138 = arith.constant dense<0.000000e+00> : vector<8x8xf32>
    %381 = tpu.matmul %380, %363, %cst_138 {dimension_numbers = #tpu.dot_dimension_numbers<[1], [0], [0], [1], [0, 0, 1, 1], [], []>} : vector<8x8xf32>, vector<8x8xf32>, vector<8x8xf32> -> vector<8x8xf32>
    %382 = vector.extract_strided_slice %356 {offsets = [0, 8], sizes = [8, 8], strides = [1, 1]} : vector<8x32xf32> to vector<8x8xf32>
    %383 = vector.extract_strided_slice %357 {offsets = [0, 8], sizes = [8, 8], strides = [1, 1]} : vector<8x32xf32> to vector<8x8xf32>
    %384 = vector.extract_strided_slice %358 {offsets = [0, 8], sizes = [8, 8], strides = [1, 1]} : vector<8x32xf32> to vector<8x8xf32>
    %cst_139 = arith.constant dense<0.000000e+00> : vector<8x8xf32>
    %385 = tpu.matmul %382, %383, %cst_139 {dimension_numbers = #tpu.dot_dimension_numbers<[1], [1], [0], [0], [0, 0, 1, 0], [], []>} : vector<8x8xf32>, vector<8x8xf32>, vector<8x8xf32> -> vector<8x8xf32>
    %cst_140 = arith.constant 0.353553385 : f32
    %386 = vector.broadcast %cst_140 : f32 to vector<8x8xf32>
    %387 = arith.mulf %385, %386 : vector<8x8xf32>
    %cst_141 = arith.constant 0.000000e+00 : f32
    %388 = vector.broadcast %cst_141 : f32 to vector<8x8xf32>
    %389 = arith.cmpf ogt, %360, %388 : vector<8x8xf32>
    %cst_142 = arith.constant -1.000000e+30 : f32
    %390 = vector.broadcast %cst_142 : f32 to vector<8x8xf32>
    %391 = arith.select %389, %387, %390 : vector<8x8xi1>, vector<8x8xf32>
    %cst_143 = arith.constant dense<0xFF800000> : vector<8xf32>
    %392 = vector.multi_reduction <maximumf>, %391, %cst_143 [1] : vector<8x8xf32> to vector<8xf32>
    %393 = vector.shape_cast %392 : vector<8xf32> to vector<8x1xf32>
    %394 = vector.broadcast %393 : vector<8x1xf32> to vector<8x8xf32>
    %395 = arith.subf %391, %394 : vector<8x8xf32>
    %396 = math.exp %395 : vector<8x8xf32>
    %cst_144 = arith.constant dense<0.000000e+00> : vector<8xf32>
    %397 = vector.multi_reduction <add>, %396, %cst_144 [1] : vector<8x8xf32> to vector<8xf32>
    %398 = vector.shape_cast %397 : vector<8xf32> to vector<8x1xf32>
    %399 = tpu.reciprocal %398 {approx = true} : vector<8x1xf32> -> vector<8x1xf32>
    %400 = vector.broadcast %399 : vector<8x1xf32> to vector<8x8xf32>
    %401 = arith.mulf %396, %400 : vector<8x8xf32>
    %cst_145 = arith.constant dense<0.000000e+00> : vector<8x8xf32>
    %402 = tpu.matmul %401, %384, %cst_145 {dimension_numbers = #tpu.dot_dimension_numbers<[1], [0], [0], [1], [0, 0, 1, 1], [], []>} : vector<8x8xf32>, vector<8x8xf32>, vector<8x8xf32> -> vector<8x8xf32>
    %403 = vector.extract_strided_slice %356 {offsets = [0, 16], sizes = [8, 8], strides = [1, 1]} : vector<8x32xf32> to vector<8x8xf32>
    %404 = vector.extract_strided_slice %357 {offsets = [0, 16], sizes = [8, 8], strides = [1, 1]} : vector<8x32xf32> to vector<8x8xf32>
    %405 = vector.extract_strided_slice %358 {offsets = [0, 16], sizes = [8, 8], strides = [1, 1]} : vector<8x32xf32> to vector<8x8xf32>
    %cst_146 = arith.constant dense<0.000000e+00> : vector<8x8xf32>
    %406 = tpu.matmul %403, %404, %cst_146 {dimension_numbers = #tpu.dot_dimension_numbers<[1], [1], [0], [0], [0, 0, 1, 0], [], []>} : vector<8x8xf32>, vector<8x8xf32>, vector<8x8xf32> -> vector<8x8xf32>
    %cst_147 = arith.constant 0.353553385 : f32
    %407 = vector.broadcast %cst_147 : f32 to vector<8x8xf32>
    %408 = arith.mulf %406, %407 : vector<8x8xf32>
    %cst_148 = arith.constant 0.000000e+00 : f32
    %409 = vector.broadcast %cst_148 : f32 to vector<8x8xf32>
    %410 = arith.cmpf ogt, %360, %409 : vector<8x8xf32>
    %cst_149 = arith.constant -1.000000e+30 : f32
    %411 = vector.broadcast %cst_149 : f32 to vector<8x8xf32>
    %412 = arith.select %410, %408, %411 : vector<8x8xi1>, vector<8x8xf32>
    %cst_150 = arith.constant dense<0xFF800000> : vector<8xf32>
    %413 = vector.multi_reduction <maximumf>, %412, %cst_150 [1] : vector<8x8xf32> to vector<8xf32>
    %414 = vector.shape_cast %413 : vector<8xf32> to vector<8x1xf32>
    %415 = vector.broadcast %414 : vector<8x1xf32> to vector<8x8xf32>
    %416 = arith.subf %412, %415 : vector<8x8xf32>
    %417 = math.exp %416 : vector<8x8xf32>
    %cst_151 = arith.constant dense<0.000000e+00> : vector<8xf32>
    %418 = vector.multi_reduction <add>, %417, %cst_151 [1] : vector<8x8xf32> to vector<8xf32>
    %419 = vector.shape_cast %418 : vector<8xf32> to vector<8x1xf32>
    %420 = tpu.reciprocal %419 {approx = true} : vector<8x1xf32> -> vector<8x1xf32>
    %421 = vector.broadcast %420 : vector<8x1xf32> to vector<8x8xf32>
    %422 = arith.mulf %417, %421 : vector<8x8xf32>
    %cst_152 = arith.constant dense<0.000000e+00> : vector<8x8xf32>
    %423 = tpu.matmul %422, %405, %cst_152 {dimension_numbers = #tpu.dot_dimension_numbers<[1], [0], [0], [1], [0, 0, 1, 1], [], []>} : vector<8x8xf32>, vector<8x8xf32>, vector<8x8xf32> -> vector<8x8xf32>
    %424 = vector.extract_strided_slice %356 {offsets = [0, 24], sizes = [8, 8], strides = [1, 1]} : vector<8x32xf32> to vector<8x8xf32>
    %425 = vector.extract_strided_slice %357 {offsets = [0, 24], sizes = [8, 8], strides = [1, 1]} : vector<8x32xf32> to vector<8x8xf32>
    %426 = vector.extract_strided_slice %358 {offsets = [0, 24], sizes = [8, 8], strides = [1, 1]} : vector<8x32xf32> to vector<8x8xf32>
    %cst_153 = arith.constant dense<0.000000e+00> : vector<8x8xf32>
    %427 = tpu.matmul %424, %425, %cst_153 {dimension_numbers = #tpu.dot_dimension_numbers<[1], [1], [0], [0], [0, 0, 1, 0], [], []>} : vector<8x8xf32>, vector<8x8xf32>, vector<8x8xf32> -> vector<8x8xf32>
    %cst_154 = arith.constant 0.353553385 : f32
    %428 = vector.broadcast %cst_154 : f32 to vector<8x8xf32>
    %429 = arith.mulf %427, %428 : vector<8x8xf32>
    %cst_155 = arith.constant 0.000000e+00 : f32
    %430 = vector.broadcast %cst_155 : f32 to vector<8x8xf32>
    %431 = arith.cmpf ogt, %360, %430 : vector<8x8xf32>
    %cst_156 = arith.constant -1.000000e+30 : f32
    %432 = vector.broadcast %cst_156 : f32 to vector<8x8xf32>
    %433 = arith.select %431, %429, %432 : vector<8x8xi1>, vector<8x8xf32>
    %cst_157 = arith.constant dense<0xFF800000> : vector<8xf32>
    %434 = vector.multi_reduction <maximumf>, %433, %cst_157 [1] : vector<8x8xf32> to vector<8xf32>
    %435 = vector.shape_cast %434 : vector<8xf32> to vector<8x1xf32>
    %436 = vector.broadcast %435 : vector<8x1xf32> to vector<8x8xf32>
    %437 = arith.subf %433, %436 : vector<8x8xf32>
    %438 = math.exp %437 : vector<8x8xf32>
    %cst_158 = arith.constant dense<0.000000e+00> : vector<8xf32>
    %439 = vector.multi_reduction <add>, %438, %cst_158 [1] : vector<8x8xf32> to vector<8xf32>
    %440 = vector.shape_cast %439 : vector<8xf32> to vector<8x1xf32>
    %441 = tpu.reciprocal %440 {approx = true} : vector<8x1xf32> -> vector<8x1xf32>
    %442 = vector.broadcast %441 : vector<8x1xf32> to vector<8x8xf32>
    %443 = arith.mulf %438, %442 : vector<8x8xf32>
    %cst_159 = arith.constant dense<0.000000e+00> : vector<8x8xf32>
    %444 = tpu.matmul %443, %426, %cst_159 {dimension_numbers = #tpu.dot_dimension_numbers<[1], [0], [0], [1], [0, 0, 1, 1], [], []>} : vector<8x8xf32>, vector<8x8xf32>, vector<8x8xf32> -> vector<8x8xf32>
    %445 = tpu.concatenate %381, %402, %423, %444 in 1 : vector<8x8xf32>, vector<8x8xf32>, vector<8x8xf32>, vector<8x8xf32> -> vector<8x32xf32>
    %446 = tpu.concatenate %355, %445 in 0 : vector<8x32xf32>, vector<8x32xf32> -> vector<16x32xf32>
    %cst_160 = arith.constant dense<0.000000e+00> : vector<16x32xf32>
    %447 = tpu.matmul %446, %261, %cst_160 {dimension_numbers = #tpu.dot_dimension_numbers<[1], [0], [0], [1], [0, 0, 1, 1], [], []>} : vector<16x32xf32>, vector<32x32xf32>, vector<16x32xf32> -> vector<16x32xf32>
    %c1_161 = arith.constant 1 : index
    %c0_162 = arith.constant 0 : index
    %c0_163 = arith.constant 0 : index
    %448 = vector.load %arg7[%c1_161, %c0_162, %c0_163] : memref<2x2x32xf32, #tpu.memory_space<vmem>>, vector<1x2x32xf32>
    %449 = vector.shape_cast %448 : vector<1x2x32xf32> to vector<2x32xf32>
    %450 = vector.extract_strided_slice %449 {offsets = [0, 0], sizes = [1, 32], strides = [1, 1]} : vector<2x32xf32> to vector<1x32xf32>
    %451 = vector.extract_strided_slice %449 {offsets = [1, 0], sizes = [1, 32], strides = [1, 1]} : vector<2x32xf32> to vector<1x32xf32>
    %452 = arith.addf %257, %447 : vector<16x32xf32>
    %cst_164 = arith.constant dense<0.000000e+00> : vector<16xf32>
    %453 = vector.multi_reduction <add>, %452, %cst_164 [1] : vector<16x32xf32> to vector<16xf32>
    %454 = vector.shape_cast %453 : vector<16xf32> to vector<16x1xf32>
    %cst_165 = arith.constant 3.200000e+01 : f32
    %455 = vector.broadcast %cst_165 : f32 to vector<16x1xf32>
    %456 = arith.divf %454, %455 : vector<16x1xf32>
    %457 = vector.broadcast %456 : vector<16x1xf32> to vector<16x32xf32>
    %458 = arith.subf %452, %457 : vector<16x32xf32>
    %459 = arith.mulf %458, %458 : vector<16x32xf32>
    %cst_166 = arith.constant dense<0.000000e+00> : vector<16xf32>
    %460 = vector.multi_reduction <add>, %459, %cst_166 [1] : vector<16x32xf32> to vector<16xf32>
    %461 = vector.shape_cast %460 : vector<16xf32> to vector<16x1xf32>
    %cst_167 = arith.constant 3.200000e+01 : f32
    %462 = vector.broadcast %cst_167 : f32 to vector<16x1xf32>
    %463 = arith.divf %461, %462 : vector<16x1xf32>
    %cst_168 = arith.constant 9.99999974E-6 : f32
    %464 = vector.broadcast %cst_168 : f32 to vector<16x1xf32>
    %465 = arith.addf %463, %464 : vector<16x1xf32>
    %466 = math.rsqrt %465 : vector<16x1xf32>
    %467 = vector.broadcast %466 : vector<16x1xf32> to vector<16x32xf32>
    %468 = arith.mulf %458, %467 : vector<16x32xf32>
    %469 = vector.broadcast %450 : vector<1x32xf32> to vector<16x32xf32>
    %470 = arith.mulf %468, %469 : vector<16x32xf32>
    %471 = vector.broadcast %451 : vector<1x32xf32> to vector<16x32xf32>
    %472 = arith.addf %470, %471 : vector<16x32xf32>
    %c1_169 = arith.constant 1 : index
    %c0_170 = arith.constant 0 : index
    %c0_171 = arith.constant 0 : index
    %473 = vector.load %arg8[%c1_169, %c0_170, %c0_171] : memref<2x32x64xf32, #tpu.memory_space<vmem>>, vector<1x32x64xf32>
    %474 = vector.shape_cast %473 : vector<1x32x64xf32> to vector<32x64xf32>
    %c1_172 = arith.constant 1 : index
    %c0_173 = arith.constant 0 : index
    %c0_174 = arith.constant 0 : index
    %475 = vector.load %arg9[%c1_172, %c0_173, %c0_174] : memref<2x1x64xf32, #tpu.memory_space<vmem>>, vector<1x1x64xf32>
    %476 = vector.shape_cast %475 : vector<1x1x64xf32> to vector<1x64xf32>
    %c1_175 = arith.constant 1 : index
    %c0_176 = arith.constant 0 : index
    %c0_177 = arith.constant 0 : index
    %477 = vector.load %arg10[%c1_175, %c0_176, %c0_177] : memref<2x64x32xf32, #tpu.memory_space<vmem>>, vector<1x64x32xf32>
    %478 = vector.shape_cast %477 : vector<1x64x32xf32> to vector<64x32xf32>
    %c1_178 = arith.constant 1 : index
    %c0_179 = arith.constant 0 : index
    %c0_180 = arith.constant 0 : index
    %479 = vector.load %arg11[%c1_178, %c0_179, %c0_180] : memref<2x1x32xf32, #tpu.memory_space<vmem>>, vector<1x1x32xf32>
    %480 = vector.shape_cast %479 : vector<1x1x32xf32> to vector<1x32xf32>
    %cst_181 = arith.constant dense<0.000000e+00> : vector<16x64xf32>
    %481 = tpu.matmul %472, %474, %cst_181 {dimension_numbers = #tpu.dot_dimension_numbers<[1], [0], [0], [1], [0, 0, 1, 1], [], []>} : vector<16x32xf32>, vector<32x64xf32>, vector<16x64xf32> -> vector<16x64xf32>
    %482 = vector.broadcast %476 : vector<1x64xf32> to vector<16x64xf32>
    %483 = arith.addf %481, %482 : vector<16x64xf32>
    %cst_182 = arith.constant 0.000000e+00 : f32
    %484 = vector.broadcast %cst_182 : f32 to vector<16x64xf32>
    %485 = arith.maximumf %483, %484 : vector<16x64xf32>
    %cst_183 = arith.constant dense<0.000000e+00> : vector<16x32xf32>
    %486 = tpu.matmul %485, %478, %cst_183 {dimension_numbers = #tpu.dot_dimension_numbers<[1], [0], [0], [1], [0, 0, 1, 1], [], []>} : vector<16x64xf32>, vector<64x32xf32>, vector<16x32xf32> -> vector<16x32xf32>
    %487 = vector.broadcast %480 : vector<1x32xf32> to vector<16x32xf32>
    %488 = arith.addf %486, %487 : vector<16x32xf32>
    %c1_184 = arith.constant 1 : index
    %c0_185 = arith.constant 0 : index
    %c0_186 = arith.constant 0 : index
    %489 = vector.load %arg12[%c1_184, %c0_185, %c0_186] : memref<2x2x32xf32, #tpu.memory_space<vmem>>, vector<1x2x32xf32>
    %490 = vector.shape_cast %489 : vector<1x2x32xf32> to vector<2x32xf32>
    %491 = vector.extract_strided_slice %490 {offsets = [0, 0], sizes = [1, 32], strides = [1, 1]} : vector<2x32xf32> to vector<1x32xf32>
    %492 = vector.extract_strided_slice %490 {offsets = [1, 0], sizes = [1, 32], strides = [1, 1]} : vector<2x32xf32> to vector<1x32xf32>
    %493 = arith.addf %472, %488 : vector<16x32xf32>
    %cst_187 = arith.constant dense<0.000000e+00> : vector<16xf32>
    %494 = vector.multi_reduction <add>, %493, %cst_187 [1] : vector<16x32xf32> to vector<16xf32>
    %495 = vector.shape_cast %494 : vector<16xf32> to vector<16x1xf32>
    %cst_188 = arith.constant 3.200000e+01 : f32
    %496 = vector.broadcast %cst_188 : f32 to vector<16x1xf32>
    %497 = arith.divf %495, %496 : vector<16x1xf32>
    %498 = vector.broadcast %497 : vector<16x1xf32> to vector<16x32xf32>
    %499 = arith.subf %493, %498 : vector<16x32xf32>
    %500 = arith.mulf %499, %499 : vector<16x32xf32>
    %cst_189 = arith.constant dense<0.000000e+00> : vector<16xf32>
    %501 = vector.multi_reduction <add>, %500, %cst_189 [1] : vector<16x32xf32> to vector<16xf32>
    %502 = vector.shape_cast %501 : vector<16xf32> to vector<16x1xf32>
    %cst_190 = arith.constant 3.200000e+01 : f32
    %503 = vector.broadcast %cst_190 : f32 to vector<16x1xf32>
    %504 = arith.divf %502, %503 : vector<16x1xf32>
    %cst_191 = arith.constant 9.99999974E-6 : f32
    %505 = vector.broadcast %cst_191 : f32 to vector<16x1xf32>
    %506 = arith.addf %504, %505 : vector<16x1xf32>
    %507 = math.rsqrt %506 : vector<16x1xf32>
    %508 = vector.broadcast %507 : vector<16x1xf32> to vector<16x32xf32>
    %509 = arith.mulf %499, %508 : vector<16x32xf32>
    %510 = vector.broadcast %491 : vector<1x32xf32> to vector<16x32xf32>
    %511 = arith.mulf %509, %510 : vector<16x32xf32>
    %512 = vector.broadcast %492 : vector<1x32xf32> to vector<16x32xf32>
    %513 = arith.addf %511, %512 : vector<16x32xf32>
    %c0_192 = arith.constant 0 : index
    %c0_193 = arith.constant 0 : index
    %514 = vector.load %arg1[%c0_192, %c0_193] : memref<16x32xf32, #tpu.memory_space<vmem>>, vector<16x32xf32>
    %c0_194 = arith.constant 0 : index
    %c0_195 = arith.constant 0 : index
    %c0_196 = arith.constant 0 : index
    %515 = vector.load %arg3[%c0_194, %c0_195, %c0_196] : memref<2x8x8xf32, #tpu.memory_space<vmem>>, vector<2x8x8xf32>
    %c0_197 = arith.constant 0 : index
    %c0_198 = arith.constant 0 : index
    %c0_199 = arith.constant 0 : index
    %516 = vector.load %arg4[%c0_197, %c0_198, %c0_199] : memref<2x8x8xf32, #tpu.memory_space<vmem>>, vector<2x8x8xf32>
    %c0_200 = arith.constant 0 : index
    %c0_201 = arith.constant 0 : index
    %c0_202 = arith.constant 0 : index
    %517 = vector.load %arg13[%c0_200, %c0_201, %c0_202] : memref<2x32x96xf32, #tpu.memory_space<vmem>>, vector<1x32x96xf32>
    %518 = vector.shape_cast %517 : vector<1x32x96xf32> to vector<32x96xf32>
    %c0_203 = arith.constant 0 : index
    %c0_204 = arith.constant 0 : index
    %c0_205 = arith.constant 0 : index
    %519 = vector.load %arg14[%c0_203, %c0_204, %c0_205] : memref<2x32x32xf32, #tpu.memory_space<vmem>>, vector<1x32x32xf32>
    %520 = vector.shape_cast %519 : vector<1x32x32xf32> to vector<32x32xf32>
    %cst_206 = arith.constant dense<0.000000e+00> : vector<16x96xf32>
    %521 = tpu.matmul %514, %518, %cst_206 {dimension_numbers = #tpu.dot_dimension_numbers<[1], [0], [0], [1], [0, 0, 1, 1], [], []>} : vector<16x32xf32>, vector<32x96xf32>, vector<16x96xf32> -> vector<16x96xf32>
    %522 = vector.extract_strided_slice %521 {offsets = [0, 0], sizes = [16, 32], strides = [1, 1]} : vector<16x96xf32> to vector<16x32xf32>
    %523 = vector.extract_strided_slice %521 {offsets = [0, 32], sizes = [16, 32], strides = [1, 1]} : vector<16x96xf32> to vector<16x32xf32>
    %524 = vector.extract_strided_slice %521 {offsets = [0, 64], sizes = [16, 32], strides = [1, 1]} : vector<16x96xf32> to vector<16x32xf32>
    %525 = vector.extract_strided_slice %522 {offsets = [0, 0], sizes = [8, 32], strides = [1, 1]} : vector<16x32xf32> to vector<8x32xf32>
    %526 = vector.extract_strided_slice %523 {offsets = [0, 0], sizes = [8, 32], strides = [1, 1]} : vector<16x32xf32> to vector<8x32xf32>
    %527 = vector.extract_strided_slice %524 {offsets = [0, 0], sizes = [8, 32], strides = [1, 1]} : vector<16x32xf32> to vector<8x32xf32>
    %528 = vector.extract_strided_slice %515 {offsets = [0, 0, 0], sizes = [1, 8, 8], strides = [1, 1, 1]} : vector<2x8x8xf32> to vector<1x8x8xf32>
    %529 = vector.shape_cast %528 : vector<1x8x8xf32> to vector<8x8xf32>
    %530 = vector.extract_strided_slice %525 {offsets = [0, 0], sizes = [8, 8], strides = [1, 1]} : vector<8x32xf32> to vector<8x8xf32>
    %531 = vector.extract_strided_slice %526 {offsets = [0, 0], sizes = [8, 8], strides = [1, 1]} : vector<8x32xf32> to vector<8x8xf32>
    %532 = vector.extract_strided_slice %527 {offsets = [0, 0], sizes = [8, 8], strides = [1, 1]} : vector<8x32xf32> to vector<8x8xf32>
    %cst_207 = arith.constant dense<0.000000e+00> : vector<8x8xf32>
    %533 = tpu.matmul %530, %531, %cst_207 {dimension_numbers = #tpu.dot_dimension_numbers<[1], [1], [0], [0], [0, 0, 1, 0], [], []>} : vector<8x8xf32>, vector<8x8xf32>, vector<8x8xf32> -> vector<8x8xf32>
    %cst_208 = arith.constant 0.353553385 : f32
    %534 = vector.broadcast %cst_208 : f32 to vector<8x8xf32>
    %535 = arith.mulf %533, %534 : vector<8x8xf32>
    %cst_209 = arith.constant 0.000000e+00 : f32
    %536 = vector.broadcast %cst_209 : f32 to vector<8x8xf32>
    %537 = arith.cmpf ogt, %529, %536 : vector<8x8xf32>
    %cst_210 = arith.constant -1.000000e+30 : f32
    %538 = vector.broadcast %cst_210 : f32 to vector<8x8xf32>
    %539 = arith.select %537, %535, %538 : vector<8x8xi1>, vector<8x8xf32>
    %cst_211 = arith.constant dense<0xFF800000> : vector<8xf32>
    %540 = vector.multi_reduction <maximumf>, %539, %cst_211 [1] : vector<8x8xf32> to vector<8xf32>
    %541 = vector.shape_cast %540 : vector<8xf32> to vector<8x1xf32>
    %542 = vector.broadcast %541 : vector<8x1xf32> to vector<8x8xf32>
    %543 = arith.subf %539, %542 : vector<8x8xf32>
    %544 = math.exp %543 : vector<8x8xf32>
    %cst_212 = arith.constant dense<0.000000e+00> : vector<8xf32>
    %545 = vector.multi_reduction <add>, %544, %cst_212 [1] : vector<8x8xf32> to vector<8xf32>
    %546 = vector.shape_cast %545 : vector<8xf32> to vector<8x1xf32>
    %547 = tpu.reciprocal %546 {approx = true} : vector<8x1xf32> -> vector<8x1xf32>
    %548 = vector.broadcast %547 : vector<8x1xf32> to vector<8x8xf32>
    %549 = arith.mulf %544, %548 : vector<8x8xf32>
    %cst_213 = arith.constant dense<0.000000e+00> : vector<8x8xf32>
    %550 = tpu.matmul %549, %532, %cst_213 {dimension_numbers = #tpu.dot_dimension_numbers<[1], [0], [0], [1], [0, 0, 1, 1], [], []>} : vector<8x8xf32>, vector<8x8xf32>, vector<8x8xf32> -> vector<8x8xf32>
    %551 = vector.extract_strided_slice %525 {offsets = [0, 8], sizes = [8, 8], strides = [1, 1]} : vector<8x32xf32> to vector<8x8xf32>
    %552 = vector.extract_strided_slice %526 {offsets = [0, 8], sizes = [8, 8], strides = [1, 1]} : vector<8x32xf32> to vector<8x8xf32>
    %553 = vector.extract_strided_slice %527 {offsets = [0, 8], sizes = [8, 8], strides = [1, 1]} : vector<8x32xf32> to vector<8x8xf32>
    %cst_214 = arith.constant dense<0.000000e+00> : vector<8x8xf32>
    %554 = tpu.matmul %551, %552, %cst_214 {dimension_numbers = #tpu.dot_dimension_numbers<[1], [1], [0], [0], [0, 0, 1, 0], [], []>} : vector<8x8xf32>, vector<8x8xf32>, vector<8x8xf32> -> vector<8x8xf32>
    %cst_215 = arith.constant 0.353553385 : f32
    %555 = vector.broadcast %cst_215 : f32 to vector<8x8xf32>
    %556 = arith.mulf %554, %555 : vector<8x8xf32>
    %cst_216 = arith.constant 0.000000e+00 : f32
    %557 = vector.broadcast %cst_216 : f32 to vector<8x8xf32>
    %558 = arith.cmpf ogt, %529, %557 : vector<8x8xf32>
    %cst_217 = arith.constant -1.000000e+30 : f32
    %559 = vector.broadcast %cst_217 : f32 to vector<8x8xf32>
    %560 = arith.select %558, %556, %559 : vector<8x8xi1>, vector<8x8xf32>
    %cst_218 = arith.constant dense<0xFF800000> : vector<8xf32>
    %561 = vector.multi_reduction <maximumf>, %560, %cst_218 [1] : vector<8x8xf32> to vector<8xf32>
    %562 = vector.shape_cast %561 : vector<8xf32> to vector<8x1xf32>
    %563 = vector.broadcast %562 : vector<8x1xf32> to vector<8x8xf32>
    %564 = arith.subf %560, %563 : vector<8x8xf32>
    %565 = math.exp %564 : vector<8x8xf32>
    %cst_219 = arith.constant dense<0.000000e+00> : vector<8xf32>
    %566 = vector.multi_reduction <add>, %565, %cst_219 [1] : vector<8x8xf32> to vector<8xf32>
    %567 = vector.shape_cast %566 : vector<8xf32> to vector<8x1xf32>
    %568 = tpu.reciprocal %567 {approx = true} : vector<8x1xf32> -> vector<8x1xf32>
    %569 = vector.broadcast %568 : vector<8x1xf32> to vector<8x8xf32>
    %570 = arith.mulf %565, %569 : vector<8x8xf32>
    %cst_220 = arith.constant dense<0.000000e+00> : vector<8x8xf32>
    %571 = tpu.matmul %570, %553, %cst_220 {dimension_numbers = #tpu.dot_dimension_numbers<[1], [0], [0], [1], [0, 0, 1, 1], [], []>} : vector<8x8xf32>, vector<8x8xf32>, vector<8x8xf32> -> vector<8x8xf32>
    %572 = vector.extract_strided_slice %525 {offsets = [0, 16], sizes = [8, 8], strides = [1, 1]} : vector<8x32xf32> to vector<8x8xf32>
    %573 = vector.extract_strided_slice %526 {offsets = [0, 16], sizes = [8, 8], strides = [1, 1]} : vector<8x32xf32> to vector<8x8xf32>
    %574 = vector.extract_strided_slice %527 {offsets = [0, 16], sizes = [8, 8], strides = [1, 1]} : vector<8x32xf32> to vector<8x8xf32>
    %cst_221 = arith.constant dense<0.000000e+00> : vector<8x8xf32>
    %575 = tpu.matmul %572, %573, %cst_221 {dimension_numbers = #tpu.dot_dimension_numbers<[1], [1], [0], [0], [0, 0, 1, 0], [], []>} : vector<8x8xf32>, vector<8x8xf32>, vector<8x8xf32> -> vector<8x8xf32>
    %cst_222 = arith.constant 0.353553385 : f32
    %576 = vector.broadcast %cst_222 : f32 to vector<8x8xf32>
    %577 = arith.mulf %575, %576 : vector<8x8xf32>
    %cst_223 = arith.constant 0.000000e+00 : f32
    %578 = vector.broadcast %cst_223 : f32 to vector<8x8xf32>
    %579 = arith.cmpf ogt, %529, %578 : vector<8x8xf32>
    %cst_224 = arith.constant -1.000000e+30 : f32
    %580 = vector.broadcast %cst_224 : f32 to vector<8x8xf32>
    %581 = arith.select %579, %577, %580 : vector<8x8xi1>, vector<8x8xf32>
    %cst_225 = arith.constant dense<0xFF800000> : vector<8xf32>
    %582 = vector.multi_reduction <maximumf>, %581, %cst_225 [1] : vector<8x8xf32> to vector<8xf32>
    %583 = vector.shape_cast %582 : vector<8xf32> to vector<8x1xf32>
    %584 = vector.broadcast %583 : vector<8x1xf32> to vector<8x8xf32>
    %585 = arith.subf %581, %584 : vector<8x8xf32>
    %586 = math.exp %585 : vector<8x8xf32>
    %cst_226 = arith.constant dense<0.000000e+00> : vector<8xf32>
    %587 = vector.multi_reduction <add>, %586, %cst_226 [1] : vector<8x8xf32> to vector<8xf32>
    %588 = vector.shape_cast %587 : vector<8xf32> to vector<8x1xf32>
    %589 = tpu.reciprocal %588 {approx = true} : vector<8x1xf32> -> vector<8x1xf32>
    %590 = vector.broadcast %589 : vector<8x1xf32> to vector<8x8xf32>
    %591 = arith.mulf %586, %590 : vector<8x8xf32>
    %cst_227 = arith.constant dense<0.000000e+00> : vector<8x8xf32>
    %592 = tpu.matmul %591, %574, %cst_227 {dimension_numbers = #tpu.dot_dimension_numbers<[1], [0], [0], [1], [0, 0, 1, 1], [], []>} : vector<8x8xf32>, vector<8x8xf32>, vector<8x8xf32> -> vector<8x8xf32>
    %593 = vector.extract_strided_slice %525 {offsets = [0, 24], sizes = [8, 8], strides = [1, 1]} : vector<8x32xf32> to vector<8x8xf32>
    %594 = vector.extract_strided_slice %526 {offsets = [0, 24], sizes = [8, 8], strides = [1, 1]} : vector<8x32xf32> to vector<8x8xf32>
    %595 = vector.extract_strided_slice %527 {offsets = [0, 24], sizes = [8, 8], strides = [1, 1]} : vector<8x32xf32> to vector<8x8xf32>
    %cst_228 = arith.constant dense<0.000000e+00> : vector<8x8xf32>
    %596 = tpu.matmul %593, %594, %cst_228 {dimension_numbers = #tpu.dot_dimension_numbers<[1], [1], [0], [0], [0, 0, 1, 0], [], []>} : vector<8x8xf32>, vector<8x8xf32>, vector<8x8xf32> -> vector<8x8xf32>
    %cst_229 = arith.constant 0.353553385 : f32
    %597 = vector.broadcast %cst_229 : f32 to vector<8x8xf32>
    %598 = arith.mulf %596, %597 : vector<8x8xf32>
    %cst_230 = arith.constant 0.000000e+00 : f32
    %599 = vector.broadcast %cst_230 : f32 to vector<8x8xf32>
    %600 = arith.cmpf ogt, %529, %599 : vector<8x8xf32>
    %cst_231 = arith.constant -1.000000e+30 : f32
    %601 = vector.broadcast %cst_231 : f32 to vector<8x8xf32>
    %602 = arith.select %600, %598, %601 : vector<8x8xi1>, vector<8x8xf32>
    %cst_232 = arith.constant dense<0xFF800000> : vector<8xf32>
    %603 = vector.multi_reduction <maximumf>, %602, %cst_232 [1] : vector<8x8xf32> to vector<8xf32>
    %604 = vector.shape_cast %603 : vector<8xf32> to vector<8x1xf32>
    %605 = vector.broadcast %604 : vector<8x1xf32> to vector<8x8xf32>
    %606 = arith.subf %602, %605 : vector<8x8xf32>
    %607 = math.exp %606 : vector<8x8xf32>
    %cst_233 = arith.constant dense<0.000000e+00> : vector<8xf32>
    %608 = vector.multi_reduction <add>, %607, %cst_233 [1] : vector<8x8xf32> to vector<8xf32>
    %609 = vector.shape_cast %608 : vector<8xf32> to vector<8x1xf32>
    %610 = tpu.reciprocal %609 {approx = true} : vector<8x1xf32> -> vector<8x1xf32>
    %611 = vector.broadcast %610 : vector<8x1xf32> to vector<8x8xf32>
    %612 = arith.mulf %607, %611 : vector<8x8xf32>
    %cst_234 = arith.constant dense<0.000000e+00> : vector<8x8xf32>
    %613 = tpu.matmul %612, %595, %cst_234 {dimension_numbers = #tpu.dot_dimension_numbers<[1], [0], [0], [1], [0, 0, 1, 1], [], []>} : vector<8x8xf32>, vector<8x8xf32>, vector<8x8xf32> -> vector<8x8xf32>
    %614 = tpu.concatenate %550, %571, %592, %613 in 1 : vector<8x8xf32>, vector<8x8xf32>, vector<8x8xf32>, vector<8x8xf32> -> vector<8x32xf32>
    %615 = vector.extract_strided_slice %522 {offsets = [8, 0], sizes = [8, 32], strides = [1, 1]} : vector<16x32xf32> to vector<8x32xf32>
    %616 = vector.extract_strided_slice %523 {offsets = [8, 0], sizes = [8, 32], strides = [1, 1]} : vector<16x32xf32> to vector<8x32xf32>
    %617 = vector.extract_strided_slice %524 {offsets = [8, 0], sizes = [8, 32], strides = [1, 1]} : vector<16x32xf32> to vector<8x32xf32>
    %618 = vector.extract_strided_slice %515 {offsets = [1, 0, 0], sizes = [1, 8, 8], strides = [1, 1, 1]} : vector<2x8x8xf32> to vector<1x8x8xf32>
    %619 = vector.shape_cast %618 : vector<1x8x8xf32> to vector<8x8xf32>
    %620 = vector.extract_strided_slice %615 {offsets = [0, 0], sizes = [8, 8], strides = [1, 1]} : vector<8x32xf32> to vector<8x8xf32>
    %621 = vector.extract_strided_slice %616 {offsets = [0, 0], sizes = [8, 8], strides = [1, 1]} : vector<8x32xf32> to vector<8x8xf32>
    %622 = vector.extract_strided_slice %617 {offsets = [0, 0], sizes = [8, 8], strides = [1, 1]} : vector<8x32xf32> to vector<8x8xf32>
    %cst_235 = arith.constant dense<0.000000e+00> : vector<8x8xf32>
    %623 = tpu.matmul %620, %621, %cst_235 {dimension_numbers = #tpu.dot_dimension_numbers<[1], [1], [0], [0], [0, 0, 1, 0], [], []>} : vector<8x8xf32>, vector<8x8xf32>, vector<8x8xf32> -> vector<8x8xf32>
    %cst_236 = arith.constant 0.353553385 : f32
    %624 = vector.broadcast %cst_236 : f32 to vector<8x8xf32>
    %625 = arith.mulf %623, %624 : vector<8x8xf32>
    %cst_237 = arith.constant 0.000000e+00 : f32
    %626 = vector.broadcast %cst_237 : f32 to vector<8x8xf32>
    %627 = arith.cmpf ogt, %619, %626 : vector<8x8xf32>
    %cst_238 = arith.constant -1.000000e+30 : f32
    %628 = vector.broadcast %cst_238 : f32 to vector<8x8xf32>
    %629 = arith.select %627, %625, %628 : vector<8x8xi1>, vector<8x8xf32>
    %cst_239 = arith.constant dense<0xFF800000> : vector<8xf32>
    %630 = vector.multi_reduction <maximumf>, %629, %cst_239 [1] : vector<8x8xf32> to vector<8xf32>
    %631 = vector.shape_cast %630 : vector<8xf32> to vector<8x1xf32>
    %632 = vector.broadcast %631 : vector<8x1xf32> to vector<8x8xf32>
    %633 = arith.subf %629, %632 : vector<8x8xf32>
    %634 = math.exp %633 : vector<8x8xf32>
    %cst_240 = arith.constant dense<0.000000e+00> : vector<8xf32>
    %635 = vector.multi_reduction <add>, %634, %cst_240 [1] : vector<8x8xf32> to vector<8xf32>
    %636 = vector.shape_cast %635 : vector<8xf32> to vector<8x1xf32>
    %637 = tpu.reciprocal %636 {approx = true} : vector<8x1xf32> -> vector<8x1xf32>
    %638 = vector.broadcast %637 : vector<8x1xf32> to vector<8x8xf32>
    %639 = arith.mulf %634, %638 : vector<8x8xf32>
    %cst_241 = arith.constant dense<0.000000e+00> : vector<8x8xf32>
    %640 = tpu.matmul %639, %622, %cst_241 {dimension_numbers = #tpu.dot_dimension_numbers<[1], [0], [0], [1], [0, 0, 1, 1], [], []>} : vector<8x8xf32>, vector<8x8xf32>, vector<8x8xf32> -> vector<8x8xf32>
    %641 = vector.extract_strided_slice %615 {offsets = [0, 8], sizes = [8, 8], strides = [1, 1]} : vector<8x32xf32> to vector<8x8xf32>
    %642 = vector.extract_strided_slice %616 {offsets = [0, 8], sizes = [8, 8], strides = [1, 1]} : vector<8x32xf32> to vector<8x8xf32>
    %643 = vector.extract_strided_slice %617 {offsets = [0, 8], sizes = [8, 8], strides = [1, 1]} : vector<8x32xf32> to vector<8x8xf32>
    %cst_242 = arith.constant dense<0.000000e+00> : vector<8x8xf32>
    %644 = tpu.matmul %641, %642, %cst_242 {dimension_numbers = #tpu.dot_dimension_numbers<[1], [1], [0], [0], [0, 0, 1, 0], [], []>} : vector<8x8xf32>, vector<8x8xf32>, vector<8x8xf32> -> vector<8x8xf32>
    %cst_243 = arith.constant 0.353553385 : f32
    %645 = vector.broadcast %cst_243 : f32 to vector<8x8xf32>
    %646 = arith.mulf %644, %645 : vector<8x8xf32>
    %cst_244 = arith.constant 0.000000e+00 : f32
    %647 = vector.broadcast %cst_244 : f32 to vector<8x8xf32>
    %648 = arith.cmpf ogt, %619, %647 : vector<8x8xf32>
    %cst_245 = arith.constant -1.000000e+30 : f32
    %649 = vector.broadcast %cst_245 : f32 to vector<8x8xf32>
    %650 = arith.select %648, %646, %649 : vector<8x8xi1>, vector<8x8xf32>
    %cst_246 = arith.constant dense<0xFF800000> : vector<8xf32>
    %651 = vector.multi_reduction <maximumf>, %650, %cst_246 [1] : vector<8x8xf32> to vector<8xf32>
    %652 = vector.shape_cast %651 : vector<8xf32> to vector<8x1xf32>
    %653 = vector.broadcast %652 : vector<8x1xf32> to vector<8x8xf32>
    %654 = arith.subf %650, %653 : vector<8x8xf32>
    %655 = math.exp %654 : vector<8x8xf32>
    %cst_247 = arith.constant dense<0.000000e+00> : vector<8xf32>
    %656 = vector.multi_reduction <add>, %655, %cst_247 [1] : vector<8x8xf32> to vector<8xf32>
    %657 = vector.shape_cast %656 : vector<8xf32> to vector<8x1xf32>
    %658 = tpu.reciprocal %657 {approx = true} : vector<8x1xf32> -> vector<8x1xf32>
    %659 = vector.broadcast %658 : vector<8x1xf32> to vector<8x8xf32>
    %660 = arith.mulf %655, %659 : vector<8x8xf32>
    %cst_248 = arith.constant dense<0.000000e+00> : vector<8x8xf32>
    %661 = tpu.matmul %660, %643, %cst_248 {dimension_numbers = #tpu.dot_dimension_numbers<[1], [0], [0], [1], [0, 0, 1, 1], [], []>} : vector<8x8xf32>, vector<8x8xf32>, vector<8x8xf32> -> vector<8x8xf32>
    %662 = vector.extract_strided_slice %615 {offsets = [0, 16], sizes = [8, 8], strides = [1, 1]} : vector<8x32xf32> to vector<8x8xf32>
    %663 = vector.extract_strided_slice %616 {offsets = [0, 16], sizes = [8, 8], strides = [1, 1]} : vector<8x32xf32> to vector<8x8xf32>
    %664 = vector.extract_strided_slice %617 {offsets = [0, 16], sizes = [8, 8], strides = [1, 1]} : vector<8x32xf32> to vector<8x8xf32>
    %cst_249 = arith.constant dense<0.000000e+00> : vector<8x8xf32>
    %665 = tpu.matmul %662, %663, %cst_249 {dimension_numbers = #tpu.dot_dimension_numbers<[1], [1], [0], [0], [0, 0, 1, 0], [], []>} : vector<8x8xf32>, vector<8x8xf32>, vector<8x8xf32> -> vector<8x8xf32>
    %cst_250 = arith.constant 0.353553385 : f32
    %666 = vector.broadcast %cst_250 : f32 to vector<8x8xf32>
    %667 = arith.mulf %665, %666 : vector<8x8xf32>
    %cst_251 = arith.constant 0.000000e+00 : f32
    %668 = vector.broadcast %cst_251 : f32 to vector<8x8xf32>
    %669 = arith.cmpf ogt, %619, %668 : vector<8x8xf32>
    %cst_252 = arith.constant -1.000000e+30 : f32
    %670 = vector.broadcast %cst_252 : f32 to vector<8x8xf32>
    %671 = arith.select %669, %667, %670 : vector<8x8xi1>, vector<8x8xf32>
    %cst_253 = arith.constant dense<0xFF800000> : vector<8xf32>
    %672 = vector.multi_reduction <maximumf>, %671, %cst_253 [1] : vector<8x8xf32> to vector<8xf32>
    %673 = vector.shape_cast %672 : vector<8xf32> to vector<8x1xf32>
    %674 = vector.broadcast %673 : vector<8x1xf32> to vector<8x8xf32>
    %675 = arith.subf %671, %674 : vector<8x8xf32>
    %676 = math.exp %675 : vector<8x8xf32>
    %cst_254 = arith.constant dense<0.000000e+00> : vector<8xf32>
    %677 = vector.multi_reduction <add>, %676, %cst_254 [1] : vector<8x8xf32> to vector<8xf32>
    %678 = vector.shape_cast %677 : vector<8xf32> to vector<8x1xf32>
    %679 = tpu.reciprocal %678 {approx = true} : vector<8x1xf32> -> vector<8x1xf32>
    %680 = vector.broadcast %679 : vector<8x1xf32> to vector<8x8xf32>
    %681 = arith.mulf %676, %680 : vector<8x8xf32>
    %cst_255 = arith.constant dense<0.000000e+00> : vector<8x8xf32>
    %682 = tpu.matmul %681, %664, %cst_255 {dimension_numbers = #tpu.dot_dimension_numbers<[1], [0], [0], [1], [0, 0, 1, 1], [], []>} : vector<8x8xf32>, vector<8x8xf32>, vector<8x8xf32> -> vector<8x8xf32>
    %683 = vector.extract_strided_slice %615 {offsets = [0, 24], sizes = [8, 8], strides = [1, 1]} : vector<8x32xf32> to vector<8x8xf32>
    %684 = vector.extract_strided_slice %616 {offsets = [0, 24], sizes = [8, 8], strides = [1, 1]} : vector<8x32xf32> to vector<8x8xf32>
    %685 = vector.extract_strided_slice %617 {offsets = [0, 24], sizes = [8, 8], strides = [1, 1]} : vector<8x32xf32> to vector<8x8xf32>
    %cst_256 = arith.constant dense<0.000000e+00> : vector<8x8xf32>
    %686 = tpu.matmul %683, %684, %cst_256 {dimension_numbers = #tpu.dot_dimension_numbers<[1], [1], [0], [0], [0, 0, 1, 0], [], []>} : vector<8x8xf32>, vector<8x8xf32>, vector<8x8xf32> -> vector<8x8xf32>
    %cst_257 = arith.constant 0.353553385 : f32
    %687 = vector.broadcast %cst_257 : f32 to vector<8x8xf32>
    %688 = arith.mulf %686, %687 : vector<8x8xf32>
    %cst_258 = arith.constant 0.000000e+00 : f32
    %689 = vector.broadcast %cst_258 : f32 to vector<8x8xf32>
    %690 = arith.cmpf ogt, %619, %689 : vector<8x8xf32>
    %cst_259 = arith.constant -1.000000e+30 : f32
    %691 = vector.broadcast %cst_259 : f32 to vector<8x8xf32>
    %692 = arith.select %690, %688, %691 : vector<8x8xi1>, vector<8x8xf32>
    %cst_260 = arith.constant dense<0xFF800000> : vector<8xf32>
    %693 = vector.multi_reduction <maximumf>, %692, %cst_260 [1] : vector<8x8xf32> to vector<8xf32>
    %694 = vector.shape_cast %693 : vector<8xf32> to vector<8x1xf32>
    %695 = vector.broadcast %694 : vector<8x1xf32> to vector<8x8xf32>
    %696 = arith.subf %692, %695 : vector<8x8xf32>
    %697 = math.exp %696 : vector<8x8xf32>
    %cst_261 = arith.constant dense<0.000000e+00> : vector<8xf32>
    %698 = vector.multi_reduction <add>, %697, %cst_261 [1] : vector<8x8xf32> to vector<8xf32>
    %699 = vector.shape_cast %698 : vector<8xf32> to vector<8x1xf32>
    %700 = tpu.reciprocal %699 {approx = true} : vector<8x1xf32> -> vector<8x1xf32>
    %701 = vector.broadcast %700 : vector<8x1xf32> to vector<8x8xf32>
    %702 = arith.mulf %697, %701 : vector<8x8xf32>
    %cst_262 = arith.constant dense<0.000000e+00> : vector<8x8xf32>
    %703 = tpu.matmul %702, %685, %cst_262 {dimension_numbers = #tpu.dot_dimension_numbers<[1], [0], [0], [1], [0, 0, 1, 1], [], []>} : vector<8x8xf32>, vector<8x8xf32>, vector<8x8xf32> -> vector<8x8xf32>
    %704 = tpu.concatenate %640, %661, %682, %703 in 1 : vector<8x8xf32>, vector<8x8xf32>, vector<8x8xf32>, vector<8x8xf32> -> vector<8x32xf32>
    %705 = tpu.concatenate %614, %704 in 0 : vector<8x32xf32>, vector<8x32xf32> -> vector<16x32xf32>
    %cst_263 = arith.constant dense<0.000000e+00> : vector<16x32xf32>
    %706 = tpu.matmul %705, %520, %cst_263 {dimension_numbers = #tpu.dot_dimension_numbers<[1], [0], [0], [1], [0, 0, 1, 1], [], []>} : vector<16x32xf32>, vector<32x32xf32>, vector<16x32xf32> -> vector<16x32xf32>
    %c0_264 = arith.constant 0 : index
    %c0_265 = arith.constant 0 : index
    %c0_266 = arith.constant 0 : index
    %707 = vector.load %arg15[%c0_264, %c0_265, %c0_266] : memref<2x2x32xf32, #tpu.memory_space<vmem>>, vector<1x2x32xf32>
    %708 = vector.shape_cast %707 : vector<1x2x32xf32> to vector<2x32xf32>
    %709 = vector.extract_strided_slice %708 {offsets = [0, 0], sizes = [1, 32], strides = [1, 1]} : vector<2x32xf32> to vector<1x32xf32>
    %710 = vector.extract_strided_slice %708 {offsets = [1, 0], sizes = [1, 32], strides = [1, 1]} : vector<2x32xf32> to vector<1x32xf32>
    %711 = arith.addf %514, %706 : vector<16x32xf32>
    %cst_267 = arith.constant dense<0.000000e+00> : vector<16xf32>
    %712 = vector.multi_reduction <add>, %711, %cst_267 [1] : vector<16x32xf32> to vector<16xf32>
    %713 = vector.shape_cast %712 : vector<16xf32> to vector<16x1xf32>
    %cst_268 = arith.constant 3.200000e+01 : f32
    %714 = vector.broadcast %cst_268 : f32 to vector<16x1xf32>
    %715 = arith.divf %713, %714 : vector<16x1xf32>
    %716 = vector.broadcast %715 : vector<16x1xf32> to vector<16x32xf32>
    %717 = arith.subf %711, %716 : vector<16x32xf32>
    %718 = arith.mulf %717, %717 : vector<16x32xf32>
    %cst_269 = arith.constant dense<0.000000e+00> : vector<16xf32>
    %719 = vector.multi_reduction <add>, %718, %cst_269 [1] : vector<16x32xf32> to vector<16xf32>
    %720 = vector.shape_cast %719 : vector<16xf32> to vector<16x1xf32>
    %cst_270 = arith.constant 3.200000e+01 : f32
    %721 = vector.broadcast %cst_270 : f32 to vector<16x1xf32>
    %722 = arith.divf %720, %721 : vector<16x1xf32>
    %cst_271 = arith.constant 9.99999974E-6 : f32
    %723 = vector.broadcast %cst_271 : f32 to vector<16x1xf32>
    %724 = arith.addf %722, %723 : vector<16x1xf32>
    %725 = math.rsqrt %724 : vector<16x1xf32>
    %726 = vector.broadcast %725 : vector<16x1xf32> to vector<16x32xf32>
    %727 = arith.mulf %717, %726 : vector<16x32xf32>
    %728 = vector.broadcast %709 : vector<1x32xf32> to vector<16x32xf32>
    %729 = arith.mulf %727, %728 : vector<16x32xf32>
    %730 = vector.broadcast %710 : vector<1x32xf32> to vector<16x32xf32>
    %731 = arith.addf %729, %730 : vector<16x32xf32>
    %c0_272 = arith.constant 0 : index
    %c0_273 = arith.constant 0 : index
    %c0_274 = arith.constant 0 : index
    %732 = vector.load %arg16[%c0_272, %c0_273, %c0_274] : memref<2x32x32xf32, #tpu.memory_space<vmem>>, vector<1x32x32xf32>
    %733 = vector.shape_cast %732 : vector<1x32x32xf32> to vector<32x32xf32>
    %cst_275 = arith.constant dense<0.000000e+00> : vector<16x32xf32>
    %734 = tpu.matmul %731, %733, %cst_275 {dimension_numbers = #tpu.dot_dimension_numbers<[1], [0], [0], [1], [0, 0, 1, 1], [], []>} : vector<16x32xf32>, vector<32x32xf32>, vector<16x32xf32> -> vector<16x32xf32>
    %c0_276 = arith.constant 0 : index
    %c0_277 = arith.constant 0 : index
    %c0_278 = arith.constant 0 : index
    %735 = vector.load %arg17[%c0_276, %c0_277, %c0_278] : memref<2x32x64xf32, #tpu.memory_space<vmem>>, vector<1x32x64xf32>
    %736 = vector.shape_cast %735 : vector<1x32x64xf32> to vector<32x64xf32>
    %cst_279 = arith.constant dense<0.000000e+00> : vector<16x64xf32>
    %737 = tpu.matmul %513, %736, %cst_279 {dimension_numbers = #tpu.dot_dimension_numbers<[1], [0], [0], [1], [0, 0, 1, 1], [], []>} : vector<16x32xf32>, vector<32x64xf32>, vector<16x64xf32> -> vector<16x64xf32>
    %738 = vector.extract_strided_slice %737 {offsets = [0, 0], sizes = [16, 32], strides = [1, 1]} : vector<16x64xf32> to vector<16x32xf32>
    %739 = vector.extract_strided_slice %737 {offsets = [0, 32], sizes = [16, 32], strides = [1, 1]} : vector<16x64xf32> to vector<16x32xf32>
    %c0_280 = arith.constant 0 : index
    %c0_281 = arith.constant 0 : index
    %c0_282 = arith.constant 0 : index
    %740 = vector.load %arg18[%c0_280, %c0_281, %c0_282] : memref<2x32x32xf32, #tpu.memory_space<vmem>>, vector<1x32x32xf32>
    %741 = vector.shape_cast %740 : vector<1x32x32xf32> to vector<32x32xf32>
    %742 = vector.extract_strided_slice %734 {offsets = [0, 0], sizes = [8, 32], strides = [1, 1]} : vector<16x32xf32> to vector<8x32xf32>
    %743 = vector.extract_strided_slice %738 {offsets = [0, 0], sizes = [8, 32], strides = [1, 1]} : vector<16x32xf32> to vector<8x32xf32>
    %744 = vector.extract_strided_slice %739 {offsets = [0, 0], sizes = [8, 32], strides = [1, 1]} : vector<16x32xf32> to vector<8x32xf32>
    %745 = vector.extract_strided_slice %516 {offsets = [0, 0, 0], sizes = [1, 8, 8], strides = [1, 1, 1]} : vector<2x8x8xf32> to vector<1x8x8xf32>
    %746 = vector.shape_cast %745 : vector<1x8x8xf32> to vector<8x8xf32>
    %747 = vector.extract_strided_slice %742 {offsets = [0, 0], sizes = [8, 8], strides = [1, 1]} : vector<8x32xf32> to vector<8x8xf32>
    %748 = vector.extract_strided_slice %743 {offsets = [0, 0], sizes = [8, 8], strides = [1, 1]} : vector<8x32xf32> to vector<8x8xf32>
    %749 = vector.extract_strided_slice %744 {offsets = [0, 0], sizes = [8, 8], strides = [1, 1]} : vector<8x32xf32> to vector<8x8xf32>
    %cst_283 = arith.constant dense<0.000000e+00> : vector<8x8xf32>
    %750 = tpu.matmul %747, %748, %cst_283 {dimension_numbers = #tpu.dot_dimension_numbers<[1], [1], [0], [0], [0, 0, 1, 0], [], []>} : vector<8x8xf32>, vector<8x8xf32>, vector<8x8xf32> -> vector<8x8xf32>
    %cst_284 = arith.constant 0.353553385 : f32
    %751 = vector.broadcast %cst_284 : f32 to vector<8x8xf32>
    %752 = arith.mulf %750, %751 : vector<8x8xf32>
    %cst_285 = arith.constant 0.000000e+00 : f32
    %753 = vector.broadcast %cst_285 : f32 to vector<8x8xf32>
    %754 = arith.cmpf ogt, %746, %753 : vector<8x8xf32>
    %cst_286 = arith.constant -1.000000e+30 : f32
    %755 = vector.broadcast %cst_286 : f32 to vector<8x8xf32>
    %756 = arith.select %754, %752, %755 : vector<8x8xi1>, vector<8x8xf32>
    %cst_287 = arith.constant dense<0xFF800000> : vector<8xf32>
    %757 = vector.multi_reduction <maximumf>, %756, %cst_287 [1] : vector<8x8xf32> to vector<8xf32>
    %758 = vector.shape_cast %757 : vector<8xf32> to vector<8x1xf32>
    %759 = vector.broadcast %758 : vector<8x1xf32> to vector<8x8xf32>
    %760 = arith.subf %756, %759 : vector<8x8xf32>
    %761 = math.exp %760 : vector<8x8xf32>
    %cst_288 = arith.constant dense<0.000000e+00> : vector<8xf32>
    %762 = vector.multi_reduction <add>, %761, %cst_288 [1] : vector<8x8xf32> to vector<8xf32>
    %763 = vector.shape_cast %762 : vector<8xf32> to vector<8x1xf32>
    %764 = tpu.reciprocal %763 {approx = true} : vector<8x1xf32> -> vector<8x1xf32>
    %765 = vector.broadcast %764 : vector<8x1xf32> to vector<8x8xf32>
    %766 = arith.mulf %761, %765 : vector<8x8xf32>
    %cst_289 = arith.constant dense<0.000000e+00> : vector<8x8xf32>
    %767 = tpu.matmul %766, %749, %cst_289 {dimension_numbers = #tpu.dot_dimension_numbers<[1], [0], [0], [1], [0, 0, 1, 1], [], []>} : vector<8x8xf32>, vector<8x8xf32>, vector<8x8xf32> -> vector<8x8xf32>
    %768 = vector.extract_strided_slice %742 {offsets = [0, 8], sizes = [8, 8], strides = [1, 1]} : vector<8x32xf32> to vector<8x8xf32>
    %769 = vector.extract_strided_slice %743 {offsets = [0, 8], sizes = [8, 8], strides = [1, 1]} : vector<8x32xf32> to vector<8x8xf32>
    %770 = vector.extract_strided_slice %744 {offsets = [0, 8], sizes = [8, 8], strides = [1, 1]} : vector<8x32xf32> to vector<8x8xf32>
    %cst_290 = arith.constant dense<0.000000e+00> : vector<8x8xf32>
    %771 = tpu.matmul %768, %769, %cst_290 {dimension_numbers = #tpu.dot_dimension_numbers<[1], [1], [0], [0], [0, 0, 1, 0], [], []>} : vector<8x8xf32>, vector<8x8xf32>, vector<8x8xf32> -> vector<8x8xf32>
    %cst_291 = arith.constant 0.353553385 : f32
    %772 = vector.broadcast %cst_291 : f32 to vector<8x8xf32>
    %773 = arith.mulf %771, %772 : vector<8x8xf32>
    %cst_292 = arith.constant 0.000000e+00 : f32
    %774 = vector.broadcast %cst_292 : f32 to vector<8x8xf32>
    %775 = arith.cmpf ogt, %746, %774 : vector<8x8xf32>
    %cst_293 = arith.constant -1.000000e+30 : f32
    %776 = vector.broadcast %cst_293 : f32 to vector<8x8xf32>
    %777 = arith.select %775, %773, %776 : vector<8x8xi1>, vector<8x8xf32>
    %cst_294 = arith.constant dense<0xFF800000> : vector<8xf32>
    %778 = vector.multi_reduction <maximumf>, %777, %cst_294 [1] : vector<8x8xf32> to vector<8xf32>
    %779 = vector.shape_cast %778 : vector<8xf32> to vector<8x1xf32>
    %780 = vector.broadcast %779 : vector<8x1xf32> to vector<8x8xf32>
    %781 = arith.subf %777, %780 : vector<8x8xf32>
    %782 = math.exp %781 : vector<8x8xf32>
    %cst_295 = arith.constant dense<0.000000e+00> : vector<8xf32>
    %783 = vector.multi_reduction <add>, %782, %cst_295 [1] : vector<8x8xf32> to vector<8xf32>
    %784 = vector.shape_cast %783 : vector<8xf32> to vector<8x1xf32>
    %785 = tpu.reciprocal %784 {approx = true} : vector<8x1xf32> -> vector<8x1xf32>
    %786 = vector.broadcast %785 : vector<8x1xf32> to vector<8x8xf32>
    %787 = arith.mulf %782, %786 : vector<8x8xf32>
    %cst_296 = arith.constant dense<0.000000e+00> : vector<8x8xf32>
    %788 = tpu.matmul %787, %770, %cst_296 {dimension_numbers = #tpu.dot_dimension_numbers<[1], [0], [0], [1], [0, 0, 1, 1], [], []>} : vector<8x8xf32>, vector<8x8xf32>, vector<8x8xf32> -> vector<8x8xf32>
    %789 = vector.extract_strided_slice %742 {offsets = [0, 16], sizes = [8, 8], strides = [1, 1]} : vector<8x32xf32> to vector<8x8xf32>
    %790 = vector.extract_strided_slice %743 {offsets = [0, 16], sizes = [8, 8], strides = [1, 1]} : vector<8x32xf32> to vector<8x8xf32>
    %791 = vector.extract_strided_slice %744 {offsets = [0, 16], sizes = [8, 8], strides = [1, 1]} : vector<8x32xf32> to vector<8x8xf32>
    %cst_297 = arith.constant dense<0.000000e+00> : vector<8x8xf32>
    %792 = tpu.matmul %789, %790, %cst_297 {dimension_numbers = #tpu.dot_dimension_numbers<[1], [1], [0], [0], [0, 0, 1, 0], [], []>} : vector<8x8xf32>, vector<8x8xf32>, vector<8x8xf32> -> vector<8x8xf32>
    %cst_298 = arith.constant 0.353553385 : f32
    %793 = vector.broadcast %cst_298 : f32 to vector<8x8xf32>
    %794 = arith.mulf %792, %793 : vector<8x8xf32>
    %cst_299 = arith.constant 0.000000e+00 : f32
    %795 = vector.broadcast %cst_299 : f32 to vector<8x8xf32>
    %796 = arith.cmpf ogt, %746, %795 : vector<8x8xf32>
    %cst_300 = arith.constant -1.000000e+30 : f32
    %797 = vector.broadcast %cst_300 : f32 to vector<8x8xf32>
    %798 = arith.select %796, %794, %797 : vector<8x8xi1>, vector<8x8xf32>
    %cst_301 = arith.constant dense<0xFF800000> : vector<8xf32>
    %799 = vector.multi_reduction <maximumf>, %798, %cst_301 [1] : vector<8x8xf32> to vector<8xf32>
    %800 = vector.shape_cast %799 : vector<8xf32> to vector<8x1xf32>
    %801 = vector.broadcast %800 : vector<8x1xf32> to vector<8x8xf32>
    %802 = arith.subf %798, %801 : vector<8x8xf32>
    %803 = math.exp %802 : vector<8x8xf32>
    %cst_302 = arith.constant dense<0.000000e+00> : vector<8xf32>
    %804 = vector.multi_reduction <add>, %803, %cst_302 [1] : vector<8x8xf32> to vector<8xf32>
    %805 = vector.shape_cast %804 : vector<8xf32> to vector<8x1xf32>
    %806 = tpu.reciprocal %805 {approx = true} : vector<8x1xf32> -> vector<8x1xf32>
    %807 = vector.broadcast %806 : vector<8x1xf32> to vector<8x8xf32>
    %808 = arith.mulf %803, %807 : vector<8x8xf32>
    %cst_303 = arith.constant dense<0.000000e+00> : vector<8x8xf32>
    %809 = tpu.matmul %808, %791, %cst_303 {dimension_numbers = #tpu.dot_dimension_numbers<[1], [0], [0], [1], [0, 0, 1, 1], [], []>} : vector<8x8xf32>, vector<8x8xf32>, vector<8x8xf32> -> vector<8x8xf32>
    %810 = vector.extract_strided_slice %742 {offsets = [0, 24], sizes = [8, 8], strides = [1, 1]} : vector<8x32xf32> to vector<8x8xf32>
    %811 = vector.extract_strided_slice %743 {offsets = [0, 24], sizes = [8, 8], strides = [1, 1]} : vector<8x32xf32> to vector<8x8xf32>
    %812 = vector.extract_strided_slice %744 {offsets = [0, 24], sizes = [8, 8], strides = [1, 1]} : vector<8x32xf32> to vector<8x8xf32>
    %cst_304 = arith.constant dense<0.000000e+00> : vector<8x8xf32>
    %813 = tpu.matmul %810, %811, %cst_304 {dimension_numbers = #tpu.dot_dimension_numbers<[1], [1], [0], [0], [0, 0, 1, 0], [], []>} : vector<8x8xf32>, vector<8x8xf32>, vector<8x8xf32> -> vector<8x8xf32>
    %cst_305 = arith.constant 0.353553385 : f32
    %814 = vector.broadcast %cst_305 : f32 to vector<8x8xf32>
    %815 = arith.mulf %813, %814 : vector<8x8xf32>
    %cst_306 = arith.constant 0.000000e+00 : f32
    %816 = vector.broadcast %cst_306 : f32 to vector<8x8xf32>
    %817 = arith.cmpf ogt, %746, %816 : vector<8x8xf32>
    %cst_307 = arith.constant -1.000000e+30 : f32
    %818 = vector.broadcast %cst_307 : f32 to vector<8x8xf32>
    %819 = arith.select %817, %815, %818 : vector<8x8xi1>, vector<8x8xf32>
    %cst_308 = arith.constant dense<0xFF800000> : vector<8xf32>
    %820 = vector.multi_reduction <maximumf>, %819, %cst_308 [1] : vector<8x8xf32> to vector<8xf32>
    %821 = vector.shape_cast %820 : vector<8xf32> to vector<8x1xf32>
    %822 = vector.broadcast %821 : vector<8x1xf32> to vector<8x8xf32>
    %823 = arith.subf %819, %822 : vector<8x8xf32>
    %824 = math.exp %823 : vector<8x8xf32>
    %cst_309 = arith.constant dense<0.000000e+00> : vector<8xf32>
    %825 = vector.multi_reduction <add>, %824, %cst_309 [1] : vector<8x8xf32> to vector<8xf32>
    %826 = vector.shape_cast %825 : vector<8xf32> to vector<8x1xf32>
    %827 = tpu.reciprocal %826 {approx = true} : vector<8x1xf32> -> vector<8x1xf32>
    %828 = vector.broadcast %827 : vector<8x1xf32> to vector<8x8xf32>
    %829 = arith.mulf %824, %828 : vector<8x8xf32>
    %cst_310 = arith.constant dense<0.000000e+00> : vector<8x8xf32>
    %830 = tpu.matmul %829, %812, %cst_310 {dimension_numbers = #tpu.dot_dimension_numbers<[1], [0], [0], [1], [0, 0, 1, 1], [], []>} : vector<8x8xf32>, vector<8x8xf32>, vector<8x8xf32> -> vector<8x8xf32>
    %831 = tpu.concatenate %767, %788, %809, %830 in 1 : vector<8x8xf32>, vector<8x8xf32>, vector<8x8xf32>, vector<8x8xf32> -> vector<8x32xf32>
    %832 = vector.extract_strided_slice %734 {offsets = [8, 0], sizes = [8, 32], strides = [1, 1]} : vector<16x32xf32> to vector<8x32xf32>
    %833 = vector.extract_strided_slice %738 {offsets = [8, 0], sizes = [8, 32], strides = [1, 1]} : vector<16x32xf32> to vector<8x32xf32>
    %834 = vector.extract_strided_slice %739 {offsets = [8, 0], sizes = [8, 32], strides = [1, 1]} : vector<16x32xf32> to vector<8x32xf32>
    %835 = vector.extract_strided_slice %516 {offsets = [1, 0, 0], sizes = [1, 8, 8], strides = [1, 1, 1]} : vector<2x8x8xf32> to vector<1x8x8xf32>
    %836 = vector.shape_cast %835 : vector<1x8x8xf32> to vector<8x8xf32>
    %837 = vector.extract_strided_slice %832 {offsets = [0, 0], sizes = [8, 8], strides = [1, 1]} : vector<8x32xf32> to vector<8x8xf32>
    %838 = vector.extract_strided_slice %833 {offsets = [0, 0], sizes = [8, 8], strides = [1, 1]} : vector<8x32xf32> to vector<8x8xf32>
    %839 = vector.extract_strided_slice %834 {offsets = [0, 0], sizes = [8, 8], strides = [1, 1]} : vector<8x32xf32> to vector<8x8xf32>
    %cst_311 = arith.constant dense<0.000000e+00> : vector<8x8xf32>
    %840 = tpu.matmul %837, %838, %cst_311 {dimension_numbers = #tpu.dot_dimension_numbers<[1], [1], [0], [0], [0, 0, 1, 0], [], []>} : vector<8x8xf32>, vector<8x8xf32>, vector<8x8xf32> -> vector<8x8xf32>
    %cst_312 = arith.constant 0.353553385 : f32
    %841 = vector.broadcast %cst_312 : f32 to vector<8x8xf32>
    %842 = arith.mulf %840, %841 : vector<8x8xf32>
    %cst_313 = arith.constant 0.000000e+00 : f32
    %843 = vector.broadcast %cst_313 : f32 to vector<8x8xf32>
    %844 = arith.cmpf ogt, %836, %843 : vector<8x8xf32>
    %cst_314 = arith.constant -1.000000e+30 : f32
    %845 = vector.broadcast %cst_314 : f32 to vector<8x8xf32>
    %846 = arith.select %844, %842, %845 : vector<8x8xi1>, vector<8x8xf32>
    %cst_315 = arith.constant dense<0xFF800000> : vector<8xf32>
    %847 = vector.multi_reduction <maximumf>, %846, %cst_315 [1] : vector<8x8xf32> to vector<8xf32>
    %848 = vector.shape_cast %847 : vector<8xf32> to vector<8x1xf32>
    %849 = vector.broadcast %848 : vector<8x1xf32> to vector<8x8xf32>
    %850 = arith.subf %846, %849 : vector<8x8xf32>
    %851 = math.exp %850 : vector<8x8xf32>
    %cst_316 = arith.constant dense<0.000000e+00> : vector<8xf32>
    %852 = vector.multi_reduction <add>, %851, %cst_316 [1] : vector<8x8xf32> to vector<8xf32>
    %853 = vector.shape_cast %852 : vector<8xf32> to vector<8x1xf32>
    %854 = tpu.reciprocal %853 {approx = true} : vector<8x1xf32> -> vector<8x1xf32>
    %855 = vector.broadcast %854 : vector<8x1xf32> to vector<8x8xf32>
    %856 = arith.mulf %851, %855 : vector<8x8xf32>
    %cst_317 = arith.constant dense<0.000000e+00> : vector<8x8xf32>
    %857 = tpu.matmul %856, %839, %cst_317 {dimension_numbers = #tpu.dot_dimension_numbers<[1], [0], [0], [1], [0, 0, 1, 1], [], []>} : vector<8x8xf32>, vector<8x8xf32>, vector<8x8xf32> -> vector<8x8xf32>
    %858 = vector.extract_strided_slice %832 {offsets = [0, 8], sizes = [8, 8], strides = [1, 1]} : vector<8x32xf32> to vector<8x8xf32>
    %859 = vector.extract_strided_slice %833 {offsets = [0, 8], sizes = [8, 8], strides = [1, 1]} : vector<8x32xf32> to vector<8x8xf32>
    %860 = vector.extract_strided_slice %834 {offsets = [0, 8], sizes = [8, 8], strides = [1, 1]} : vector<8x32xf32> to vector<8x8xf32>
    %cst_318 = arith.constant dense<0.000000e+00> : vector<8x8xf32>
    %861 = tpu.matmul %858, %859, %cst_318 {dimension_numbers = #tpu.dot_dimension_numbers<[1], [1], [0], [0], [0, 0, 1, 0], [], []>} : vector<8x8xf32>, vector<8x8xf32>, vector<8x8xf32> -> vector<8x8xf32>
    %cst_319 = arith.constant 0.353553385 : f32
    %862 = vector.broadcast %cst_319 : f32 to vector<8x8xf32>
    %863 = arith.mulf %861, %862 : vector<8x8xf32>
    %cst_320 = arith.constant 0.000000e+00 : f32
    %864 = vector.broadcast %cst_320 : f32 to vector<8x8xf32>
    %865 = arith.cmpf ogt, %836, %864 : vector<8x8xf32>
    %cst_321 = arith.constant -1.000000e+30 : f32
    %866 = vector.broadcast %cst_321 : f32 to vector<8x8xf32>
    %867 = arith.select %865, %863, %866 : vector<8x8xi1>, vector<8x8xf32>
    %cst_322 = arith.constant dense<0xFF800000> : vector<8xf32>
    %868 = vector.multi_reduction <maximumf>, %867, %cst_322 [1] : vector<8x8xf32> to vector<8xf32>
    %869 = vector.shape_cast %868 : vector<8xf32> to vector<8x1xf32>
    %870 = vector.broadcast %869 : vector<8x1xf32> to vector<8x8xf32>
    %871 = arith.subf %867, %870 : vector<8x8xf32>
    %872 = math.exp %871 : vector<8x8xf32>
    %cst_323 = arith.constant dense<0.000000e+00> : vector<8xf32>
    %873 = vector.multi_reduction <add>, %872, %cst_323 [1] : vector<8x8xf32> to vector<8xf32>
    %874 = vector.shape_cast %873 : vector<8xf32> to vector<8x1xf32>
    %875 = tpu.reciprocal %874 {approx = true} : vector<8x1xf32> -> vector<8x1xf32>
    %876 = vector.broadcast %875 : vector<8x1xf32> to vector<8x8xf32>
    %877 = arith.mulf %872, %876 : vector<8x8xf32>
    %cst_324 = arith.constant dense<0.000000e+00> : vector<8x8xf32>
    %878 = tpu.matmul %877, %860, %cst_324 {dimension_numbers = #tpu.dot_dimension_numbers<[1], [0], [0], [1], [0, 0, 1, 1], [], []>} : vector<8x8xf32>, vector<8x8xf32>, vector<8x8xf32> -> vector<8x8xf32>
    %879 = vector.extract_strided_slice %832 {offsets = [0, 16], sizes = [8, 8], strides = [1, 1]} : vector<8x32xf32> to vector<8x8xf32>
    %880 = vector.extract_strided_slice %833 {offsets = [0, 16], sizes = [8, 8], strides = [1, 1]} : vector<8x32xf32> to vector<8x8xf32>
    %881 = vector.extract_strided_slice %834 {offsets = [0, 16], sizes = [8, 8], strides = [1, 1]} : vector<8x32xf32> to vector<8x8xf32>
    %cst_325 = arith.constant dense<0.000000e+00> : vector<8x8xf32>
    %882 = tpu.matmul %879, %880, %cst_325 {dimension_numbers = #tpu.dot_dimension_numbers<[1], [1], [0], [0], [0, 0, 1, 0], [], []>} : vector<8x8xf32>, vector<8x8xf32>, vector<8x8xf32> -> vector<8x8xf32>
    %cst_326 = arith.constant 0.353553385 : f32
    %883 = vector.broadcast %cst_326 : f32 to vector<8x8xf32>
    %884 = arith.mulf %882, %883 : vector<8x8xf32>
    %cst_327 = arith.constant 0.000000e+00 : f32
    %885 = vector.broadcast %cst_327 : f32 to vector<8x8xf32>
    %886 = arith.cmpf ogt, %836, %885 : vector<8x8xf32>
    %cst_328 = arith.constant -1.000000e+30 : f32
    %887 = vector.broadcast %cst_328 : f32 to vector<8x8xf32>
    %888 = arith.select %886, %884, %887 : vector<8x8xi1>, vector<8x8xf32>
    %cst_329 = arith.constant dense<0xFF800000> : vector<8xf32>
    %889 = vector.multi_reduction <maximumf>, %888, %cst_329 [1] : vector<8x8xf32> to vector<8xf32>
    %890 = vector.shape_cast %889 : vector<8xf32> to vector<8x1xf32>
    %891 = vector.broadcast %890 : vector<8x1xf32> to vector<8x8xf32>
    %892 = arith.subf %888, %891 : vector<8x8xf32>
    %893 = math.exp %892 : vector<8x8xf32>
    %cst_330 = arith.constant dense<0.000000e+00> : vector<8xf32>
    %894 = vector.multi_reduction <add>, %893, %cst_330 [1] : vector<8x8xf32> to vector<8xf32>
    %895 = vector.shape_cast %894 : vector<8xf32> to vector<8x1xf32>
    %896 = tpu.reciprocal %895 {approx = true} : vector<8x1xf32> -> vector<8x1xf32>
    %897 = vector.broadcast %896 : vector<8x1xf32> to vector<8x8xf32>
    %898 = arith.mulf %893, %897 : vector<8x8xf32>
    %cst_331 = arith.constant dense<0.000000e+00> : vector<8x8xf32>
    %899 = tpu.matmul %898, %881, %cst_331 {dimension_numbers = #tpu.dot_dimension_numbers<[1], [0], [0], [1], [0, 0, 1, 1], [], []>} : vector<8x8xf32>, vector<8x8xf32>, vector<8x8xf32> -> vector<8x8xf32>
    %900 = vector.extract_strided_slice %832 {offsets = [0, 24], sizes = [8, 8], strides = [1, 1]} : vector<8x32xf32> to vector<8x8xf32>
    %901 = vector.extract_strided_slice %833 {offsets = [0, 24], sizes = [8, 8], strides = [1, 1]} : vector<8x32xf32> to vector<8x8xf32>
    %902 = vector.extract_strided_slice %834 {offsets = [0, 24], sizes = [8, 8], strides = [1, 1]} : vector<8x32xf32> to vector<8x8xf32>
    %cst_332 = arith.constant dense<0.000000e+00> : vector<8x8xf32>
    %903 = tpu.matmul %900, %901, %cst_332 {dimension_numbers = #tpu.dot_dimension_numbers<[1], [1], [0], [0], [0, 0, 1, 0], [], []>} : vector<8x8xf32>, vector<8x8xf32>, vector<8x8xf32> -> vector<8x8xf32>
    %cst_333 = arith.constant 0.353553385 : f32
    %904 = vector.broadcast %cst_333 : f32 to vector<8x8xf32>
    %905 = arith.mulf %903, %904 : vector<8x8xf32>
    %cst_334 = arith.constant 0.000000e+00 : f32
    %906 = vector.broadcast %cst_334 : f32 to vector<8x8xf32>
    %907 = arith.cmpf ogt, %836, %906 : vector<8x8xf32>
    %cst_335 = arith.constant -1.000000e+30 : f32
    %908 = vector.broadcast %cst_335 : f32 to vector<8x8xf32>
    %909 = arith.select %907, %905, %908 : vector<8x8xi1>, vector<8x8xf32>
    %cst_336 = arith.constant dense<0xFF800000> : vector<8xf32>
    %910 = vector.multi_reduction <maximumf>, %909, %cst_336 [1] : vector<8x8xf32> to vector<8xf32>
    %911 = vector.shape_cast %910 : vector<8xf32> to vector<8x1xf32>
    %912 = vector.broadcast %911 : vector<8x1xf32> to vector<8x8xf32>
    %913 = arith.subf %909, %912 : vector<8x8xf32>
    %914 = math.exp %913 : vector<8x8xf32>
    %cst_337 = arith.constant dense<0.000000e+00> : vector<8xf32>
    %915 = vector.multi_reduction <add>, %914, %cst_337 [1] : vector<8x8xf32> to vector<8xf32>
    %916 = vector.shape_cast %915 : vector<8xf32> to vector<8x1xf32>
    %917 = tpu.reciprocal %916 {approx = true} : vector<8x1xf32> -> vector<8x1xf32>
    %918 = vector.broadcast %917 : vector<8x1xf32> to vector<8x8xf32>
    %919 = arith.mulf %914, %918 : vector<8x8xf32>
    %cst_338 = arith.constant dense<0.000000e+00> : vector<8x8xf32>
    %920 = tpu.matmul %919, %902, %cst_338 {dimension_numbers = #tpu.dot_dimension_numbers<[1], [0], [0], [1], [0, 0, 1, 1], [], []>} : vector<8x8xf32>, vector<8x8xf32>, vector<8x8xf32> -> vector<8x8xf32>
    %921 = tpu.concatenate %857, %878, %899, %920 in 1 : vector<8x8xf32>, vector<8x8xf32>, vector<8x8xf32>, vector<8x8xf32> -> vector<8x32xf32>
    %922 = tpu.concatenate %831, %921 in 0 : vector<8x32xf32>, vector<8x32xf32> -> vector<16x32xf32>
    %cst_339 = arith.constant dense<0.000000e+00> : vector<16x32xf32>
    %923 = tpu.matmul %922, %741, %cst_339 {dimension_numbers = #tpu.dot_dimension_numbers<[1], [0], [0], [1], [0, 0, 1, 1], [], []>} : vector<16x32xf32>, vector<32x32xf32>, vector<16x32xf32> -> vector<16x32xf32>
    %c0_340 = arith.constant 0 : index
    %c0_341 = arith.constant 0 : index
    %c0_342 = arith.constant 0 : index
    %924 = vector.load %arg19[%c0_340, %c0_341, %c0_342] : memref<2x2x32xf32, #tpu.memory_space<vmem>>, vector<1x2x32xf32>
    %925 = vector.shape_cast %924 : vector<1x2x32xf32> to vector<2x32xf32>
    %926 = vector.extract_strided_slice %925 {offsets = [0, 0], sizes = [1, 32], strides = [1, 1]} : vector<2x32xf32> to vector<1x32xf32>
    %927 = vector.extract_strided_slice %925 {offsets = [1, 0], sizes = [1, 32], strides = [1, 1]} : vector<2x32xf32> to vector<1x32xf32>
    %928 = arith.addf %731, %923 : vector<16x32xf32>
    %cst_343 = arith.constant dense<0.000000e+00> : vector<16xf32>
    %929 = vector.multi_reduction <add>, %928, %cst_343 [1] : vector<16x32xf32> to vector<16xf32>
    %930 = vector.shape_cast %929 : vector<16xf32> to vector<16x1xf32>
    %cst_344 = arith.constant 3.200000e+01 : f32
    %931 = vector.broadcast %cst_344 : f32 to vector<16x1xf32>
    %932 = arith.divf %930, %931 : vector<16x1xf32>
    %933 = vector.broadcast %932 : vector<16x1xf32> to vector<16x32xf32>
    %934 = arith.subf %928, %933 : vector<16x32xf32>
    %935 = arith.mulf %934, %934 : vector<16x32xf32>
    %cst_345 = arith.constant dense<0.000000e+00> : vector<16xf32>
    %936 = vector.multi_reduction <add>, %935, %cst_345 [1] : vector<16x32xf32> to vector<16xf32>
    %937 = vector.shape_cast %936 : vector<16xf32> to vector<16x1xf32>
    %cst_346 = arith.constant 3.200000e+01 : f32
    %938 = vector.broadcast %cst_346 : f32 to vector<16x1xf32>
    %939 = arith.divf %937, %938 : vector<16x1xf32>
    %cst_347 = arith.constant 9.99999974E-6 : f32
    %940 = vector.broadcast %cst_347 : f32 to vector<16x1xf32>
    %941 = arith.addf %939, %940 : vector<16x1xf32>
    %942 = math.rsqrt %941 : vector<16x1xf32>
    %943 = vector.broadcast %942 : vector<16x1xf32> to vector<16x32xf32>
    %944 = arith.mulf %934, %943 : vector<16x32xf32>
    %945 = vector.broadcast %926 : vector<1x32xf32> to vector<16x32xf32>
    %946 = arith.mulf %944, %945 : vector<16x32xf32>
    %947 = vector.broadcast %927 : vector<1x32xf32> to vector<16x32xf32>
    %948 = arith.addf %946, %947 : vector<16x32xf32>
    %c0_348 = arith.constant 0 : index
    %c0_349 = arith.constant 0 : index
    %c0_350 = arith.constant 0 : index
    %949 = vector.load %arg20[%c0_348, %c0_349, %c0_350] : memref<2x32x64xf32, #tpu.memory_space<vmem>>, vector<1x32x64xf32>
    %950 = vector.shape_cast %949 : vector<1x32x64xf32> to vector<32x64xf32>
    %c0_351 = arith.constant 0 : index
    %c0_352 = arith.constant 0 : index
    %c0_353 = arith.constant 0 : index
    %951 = vector.load %arg21[%c0_351, %c0_352, %c0_353] : memref<2x1x64xf32, #tpu.memory_space<vmem>>, vector<1x1x64xf32>
    %952 = vector.shape_cast %951 : vector<1x1x64xf32> to vector<1x64xf32>
    %c0_354 = arith.constant 0 : index
    %c0_355 = arith.constant 0 : index
    %c0_356 = arith.constant 0 : index
    %953 = vector.load %arg22[%c0_354, %c0_355, %c0_356] : memref<2x64x32xf32, #tpu.memory_space<vmem>>, vector<1x64x32xf32>
    %954 = vector.shape_cast %953 : vector<1x64x32xf32> to vector<64x32xf32>
    %c0_357 = arith.constant 0 : index
    %c0_358 = arith.constant 0 : index
    %c0_359 = arith.constant 0 : index
    %955 = vector.load %arg23[%c0_357, %c0_358, %c0_359] : memref<2x1x32xf32, #tpu.memory_space<vmem>>, vector<1x1x32xf32>
    %956 = vector.shape_cast %955 : vector<1x1x32xf32> to vector<1x32xf32>
    %cst_360 = arith.constant dense<0.000000e+00> : vector<16x64xf32>
    %957 = tpu.matmul %948, %950, %cst_360 {dimension_numbers = #tpu.dot_dimension_numbers<[1], [0], [0], [1], [0, 0, 1, 1], [], []>} : vector<16x32xf32>, vector<32x64xf32>, vector<16x64xf32> -> vector<16x64xf32>
    %958 = vector.broadcast %952 : vector<1x64xf32> to vector<16x64xf32>
    %959 = arith.addf %957, %958 : vector<16x64xf32>
    %cst_361 = arith.constant 0.000000e+00 : f32
    %960 = vector.broadcast %cst_361 : f32 to vector<16x64xf32>
    %961 = arith.maximumf %959, %960 : vector<16x64xf32>
    %cst_362 = arith.constant dense<0.000000e+00> : vector<16x32xf32>
    %962 = tpu.matmul %961, %954, %cst_362 {dimension_numbers = #tpu.dot_dimension_numbers<[1], [0], [0], [1], [0, 0, 1, 1], [], []>} : vector<16x64xf32>, vector<64x32xf32>, vector<16x32xf32> -> vector<16x32xf32>
    %963 = vector.broadcast %956 : vector<1x32xf32> to vector<16x32xf32>
    %964 = arith.addf %962, %963 : vector<16x32xf32>
    %c0_363 = arith.constant 0 : index
    %c0_364 = arith.constant 0 : index
    %c0_365 = arith.constant 0 : index
    %965 = vector.load %arg24[%c0_363, %c0_364, %c0_365] : memref<2x2x32xf32, #tpu.memory_space<vmem>>, vector<1x2x32xf32>
    %966 = vector.shape_cast %965 : vector<1x2x32xf32> to vector<2x32xf32>
    %967 = vector.extract_strided_slice %966 {offsets = [0, 0], sizes = [1, 32], strides = [1, 1]} : vector<2x32xf32> to vector<1x32xf32>
    %968 = vector.extract_strided_slice %966 {offsets = [1, 0], sizes = [1, 32], strides = [1, 1]} : vector<2x32xf32> to vector<1x32xf32>
    %969 = arith.addf %948, %964 : vector<16x32xf32>
    %cst_366 = arith.constant dense<0.000000e+00> : vector<16xf32>
    %970 = vector.multi_reduction <add>, %969, %cst_366 [1] : vector<16x32xf32> to vector<16xf32>
    %971 = vector.shape_cast %970 : vector<16xf32> to vector<16x1xf32>
    %cst_367 = arith.constant 3.200000e+01 : f32
    %972 = vector.broadcast %cst_367 : f32 to vector<16x1xf32>
    %973 = arith.divf %971, %972 : vector<16x1xf32>
    %974 = vector.broadcast %973 : vector<16x1xf32> to vector<16x32xf32>
    %975 = arith.subf %969, %974 : vector<16x32xf32>
    %976 = arith.mulf %975, %975 : vector<16x32xf32>
    %cst_368 = arith.constant dense<0.000000e+00> : vector<16xf32>
    %977 = vector.multi_reduction <add>, %976, %cst_368 [1] : vector<16x32xf32> to vector<16xf32>
    %978 = vector.shape_cast %977 : vector<16xf32> to vector<16x1xf32>
    %cst_369 = arith.constant 3.200000e+01 : f32
    %979 = vector.broadcast %cst_369 : f32 to vector<16x1xf32>
    %980 = arith.divf %978, %979 : vector<16x1xf32>
    %cst_370 = arith.constant 9.99999974E-6 : f32
    %981 = vector.broadcast %cst_370 : f32 to vector<16x1xf32>
    %982 = arith.addf %980, %981 : vector<16x1xf32>
    %983 = math.rsqrt %982 : vector<16x1xf32>
    %984 = vector.broadcast %983 : vector<16x1xf32> to vector<16x32xf32>
    %985 = arith.mulf %975, %984 : vector<16x32xf32>
    %986 = vector.broadcast %967 : vector<1x32xf32> to vector<16x32xf32>
    %987 = arith.mulf %985, %986 : vector<16x32xf32>
    %988 = vector.broadcast %968 : vector<1x32xf32> to vector<16x32xf32>
    %989 = arith.addf %987, %988 : vector<16x32xf32>
    %c1_371 = arith.constant 1 : index
    %c0_372 = arith.constant 0 : index
    %c0_373 = arith.constant 0 : index
    %990 = vector.load %arg13[%c1_371, %c0_372, %c0_373] : memref<2x32x96xf32, #tpu.memory_space<vmem>>, vector<1x32x96xf32>
    %991 = vector.shape_cast %990 : vector<1x32x96xf32> to vector<32x96xf32>
    %c1_374 = arith.constant 1 : index
    %c0_375 = arith.constant 0 : index
    %c0_376 = arith.constant 0 : index
    %992 = vector.load %arg14[%c1_374, %c0_375, %c0_376] : memref<2x32x32xf32, #tpu.memory_space<vmem>>, vector<1x32x32xf32>
    %993 = vector.shape_cast %992 : vector<1x32x32xf32> to vector<32x32xf32>
    %cst_377 = arith.constant dense<0.000000e+00> : vector<16x96xf32>
    %994 = tpu.matmul %989, %991, %cst_377 {dimension_numbers = #tpu.dot_dimension_numbers<[1], [0], [0], [1], [0, 0, 1, 1], [], []>} : vector<16x32xf32>, vector<32x96xf32>, vector<16x96xf32> -> vector<16x96xf32>
    %995 = vector.extract_strided_slice %994 {offsets = [0, 0], sizes = [16, 32], strides = [1, 1]} : vector<16x96xf32> to vector<16x32xf32>
    %996 = vector.extract_strided_slice %994 {offsets = [0, 32], sizes = [16, 32], strides = [1, 1]} : vector<16x96xf32> to vector<16x32xf32>
    %997 = vector.extract_strided_slice %994 {offsets = [0, 64], sizes = [16, 32], strides = [1, 1]} : vector<16x96xf32> to vector<16x32xf32>
    %998 = vector.extract_strided_slice %995 {offsets = [0, 0], sizes = [8, 32], strides = [1, 1]} : vector<16x32xf32> to vector<8x32xf32>
    %999 = vector.extract_strided_slice %996 {offsets = [0, 0], sizes = [8, 32], strides = [1, 1]} : vector<16x32xf32> to vector<8x32xf32>
    %1000 = vector.extract_strided_slice %997 {offsets = [0, 0], sizes = [8, 32], strides = [1, 1]} : vector<16x32xf32> to vector<8x32xf32>
    %1001 = vector.extract_strided_slice %515 {offsets = [0, 0, 0], sizes = [1, 8, 8], strides = [1, 1, 1]} : vector<2x8x8xf32> to vector<1x8x8xf32>
    %1002 = vector.shape_cast %1001 : vector<1x8x8xf32> to vector<8x8xf32>
    %1003 = vector.extract_strided_slice %998 {offsets = [0, 0], sizes = [8, 8], strides = [1, 1]} : vector<8x32xf32> to vector<8x8xf32>
    %1004 = vector.extract_strided_slice %999 {offsets = [0, 0], sizes = [8, 8], strides = [1, 1]} : vector<8x32xf32> to vector<8x8xf32>
    %1005 = vector.extract_strided_slice %1000 {offsets = [0, 0], sizes = [8, 8], strides = [1, 1]} : vector<8x32xf32> to vector<8x8xf32>
    %cst_378 = arith.constant dense<0.000000e+00> : vector<8x8xf32>
    %1006 = tpu.matmul %1003, %1004, %cst_378 {dimension_numbers = #tpu.dot_dimension_numbers<[1], [1], [0], [0], [0, 0, 1, 0], [], []>} : vector<8x8xf32>, vector<8x8xf32>, vector<8x8xf32> -> vector<8x8xf32>
    %cst_379 = arith.constant 0.353553385 : f32
    %1007 = vector.broadcast %cst_379 : f32 to vector<8x8xf32>
    %1008 = arith.mulf %1006, %1007 : vector<8x8xf32>
    %cst_380 = arith.constant 0.000000e+00 : f32
    %1009 = vector.broadcast %cst_380 : f32 to vector<8x8xf32>
    %1010 = arith.cmpf ogt, %1002, %1009 : vector<8x8xf32>
    %cst_381 = arith.constant -1.000000e+30 : f32
    %1011 = vector.broadcast %cst_381 : f32 to vector<8x8xf32>
    %1012 = arith.select %1010, %1008, %1011 : vector<8x8xi1>, vector<8x8xf32>
    %cst_382 = arith.constant dense<0xFF800000> : vector<8xf32>
    %1013 = vector.multi_reduction <maximumf>, %1012, %cst_382 [1] : vector<8x8xf32> to vector<8xf32>
    %1014 = vector.shape_cast %1013 : vector<8xf32> to vector<8x1xf32>
    %1015 = vector.broadcast %1014 : vector<8x1xf32> to vector<8x8xf32>
    %1016 = arith.subf %1012, %1015 : vector<8x8xf32>
    %1017 = math.exp %1016 : vector<8x8xf32>
    %cst_383 = arith.constant dense<0.000000e+00> : vector<8xf32>
    %1018 = vector.multi_reduction <add>, %1017, %cst_383 [1] : vector<8x8xf32> to vector<8xf32>
    %1019 = vector.shape_cast %1018 : vector<8xf32> to vector<8x1xf32>
    %1020 = tpu.reciprocal %1019 {approx = true} : vector<8x1xf32> -> vector<8x1xf32>
    %1021 = vector.broadcast %1020 : vector<8x1xf32> to vector<8x8xf32>
    %1022 = arith.mulf %1017, %1021 : vector<8x8xf32>
    %cst_384 = arith.constant dense<0.000000e+00> : vector<8x8xf32>
    %1023 = tpu.matmul %1022, %1005, %cst_384 {dimension_numbers = #tpu.dot_dimension_numbers<[1], [0], [0], [1], [0, 0, 1, 1], [], []>} : vector<8x8xf32>, vector<8x8xf32>, vector<8x8xf32> -> vector<8x8xf32>
    %1024 = vector.extract_strided_slice %998 {offsets = [0, 8], sizes = [8, 8], strides = [1, 1]} : vector<8x32xf32> to vector<8x8xf32>
    %1025 = vector.extract_strided_slice %999 {offsets = [0, 8], sizes = [8, 8], strides = [1, 1]} : vector<8x32xf32> to vector<8x8xf32>
    %1026 = vector.extract_strided_slice %1000 {offsets = [0, 8], sizes = [8, 8], strides = [1, 1]} : vector<8x32xf32> to vector<8x8xf32>
    %cst_385 = arith.constant dense<0.000000e+00> : vector<8x8xf32>
    %1027 = tpu.matmul %1024, %1025, %cst_385 {dimension_numbers = #tpu.dot_dimension_numbers<[1], [1], [0], [0], [0, 0, 1, 0], [], []>} : vector<8x8xf32>, vector<8x8xf32>, vector<8x8xf32> -> vector<8x8xf32>
    %cst_386 = arith.constant 0.353553385 : f32
    %1028 = vector.broadcast %cst_386 : f32 to vector<8x8xf32>
    %1029 = arith.mulf %1027, %1028 : vector<8x8xf32>
    %cst_387 = arith.constant 0.000000e+00 : f32
    %1030 = vector.broadcast %cst_387 : f32 to vector<8x8xf32>
    %1031 = arith.cmpf ogt, %1002, %1030 : vector<8x8xf32>
    %cst_388 = arith.constant -1.000000e+30 : f32
    %1032 = vector.broadcast %cst_388 : f32 to vector<8x8xf32>
    %1033 = arith.select %1031, %1029, %1032 : vector<8x8xi1>, vector<8x8xf32>
    %cst_389 = arith.constant dense<0xFF800000> : vector<8xf32>
    %1034 = vector.multi_reduction <maximumf>, %1033, %cst_389 [1] : vector<8x8xf32> to vector<8xf32>
    %1035 = vector.shape_cast %1034 : vector<8xf32> to vector<8x1xf32>
    %1036 = vector.broadcast %1035 : vector<8x1xf32> to vector<8x8xf32>
    %1037 = arith.subf %1033, %1036 : vector<8x8xf32>
    %1038 = math.exp %1037 : vector<8x8xf32>
    %cst_390 = arith.constant dense<0.000000e+00> : vector<8xf32>
    %1039 = vector.multi_reduction <add>, %1038, %cst_390 [1] : vector<8x8xf32> to vector<8xf32>
    %1040 = vector.shape_cast %1039 : vector<8xf32> to vector<8x1xf32>
    %1041 = tpu.reciprocal %1040 {approx = true} : vector<8x1xf32> -> vector<8x1xf32>
    %1042 = vector.broadcast %1041 : vector<8x1xf32> to vector<8x8xf32>
    %1043 = arith.mulf %1038, %1042 : vector<8x8xf32>
    %cst_391 = arith.constant dense<0.000000e+00> : vector<8x8xf32>
    %1044 = tpu.matmul %1043, %1026, %cst_391 {dimension_numbers = #tpu.dot_dimension_numbers<[1], [0], [0], [1], [0, 0, 1, 1], [], []>} : vector<8x8xf32>, vector<8x8xf32>, vector<8x8xf32> -> vector<8x8xf32>
    %1045 = vector.extract_strided_slice %998 {offsets = [0, 16], sizes = [8, 8], strides = [1, 1]} : vector<8x32xf32> to vector<8x8xf32>
    %1046 = vector.extract_strided_slice %999 {offsets = [0, 16], sizes = [8, 8], strides = [1, 1]} : vector<8x32xf32> to vector<8x8xf32>
    %1047 = vector.extract_strided_slice %1000 {offsets = [0, 16], sizes = [8, 8], strides = [1, 1]} : vector<8x32xf32> to vector<8x8xf32>
    %cst_392 = arith.constant dense<0.000000e+00> : vector<8x8xf32>
    %1048 = tpu.matmul %1045, %1046, %cst_392 {dimension_numbers = #tpu.dot_dimension_numbers<[1], [1], [0], [0], [0, 0, 1, 0], [], []>} : vector<8x8xf32>, vector<8x8xf32>, vector<8x8xf32> -> vector<8x8xf32>
    %cst_393 = arith.constant 0.353553385 : f32
    %1049 = vector.broadcast %cst_393 : f32 to vector<8x8xf32>
    %1050 = arith.mulf %1048, %1049 : vector<8x8xf32>
    %cst_394 = arith.constant 0.000000e+00 : f32
    %1051 = vector.broadcast %cst_394 : f32 to vector<8x8xf32>
    %1052 = arith.cmpf ogt, %1002, %1051 : vector<8x8xf32>
    %cst_395 = arith.constant -1.000000e+30 : f32
    %1053 = vector.broadcast %cst_395 : f32 to vector<8x8xf32>
    %1054 = arith.select %1052, %1050, %1053 : vector<8x8xi1>, vector<8x8xf32>
    %cst_396 = arith.constant dense<0xFF800000> : vector<8xf32>
    %1055 = vector.multi_reduction <maximumf>, %1054, %cst_396 [1] : vector<8x8xf32> to vector<8xf32>
    %1056 = vector.shape_cast %1055 : vector<8xf32> to vector<8x1xf32>
    %1057 = vector.broadcast %1056 : vector<8x1xf32> to vector<8x8xf32>
    %1058 = arith.subf %1054, %1057 : vector<8x8xf32>
    %1059 = math.exp %1058 : vector<8x8xf32>
    %cst_397 = arith.constant dense<0.000000e+00> : vector<8xf32>
    %1060 = vector.multi_reduction <add>, %1059, %cst_397 [1] : vector<8x8xf32> to vector<8xf32>
    %1061 = vector.shape_cast %1060 : vector<8xf32> to vector<8x1xf32>
    %1062 = tpu.reciprocal %1061 {approx = true} : vector<8x1xf32> -> vector<8x1xf32>
    %1063 = vector.broadcast %1062 : vector<8x1xf32> to vector<8x8xf32>
    %1064 = arith.mulf %1059, %1063 : vector<8x8xf32>
    %cst_398 = arith.constant dense<0.000000e+00> : vector<8x8xf32>
    %1065 = tpu.matmul %1064, %1047, %cst_398 {dimension_numbers = #tpu.dot_dimension_numbers<[1], [0], [0], [1], [0, 0, 1, 1], [], []>} : vector<8x8xf32>, vector<8x8xf32>, vector<8x8xf32> -> vector<8x8xf32>
    %1066 = vector.extract_strided_slice %998 {offsets = [0, 24], sizes = [8, 8], strides = [1, 1]} : vector<8x32xf32> to vector<8x8xf32>
    %1067 = vector.extract_strided_slice %999 {offsets = [0, 24], sizes = [8, 8], strides = [1, 1]} : vector<8x32xf32> to vector<8x8xf32>
    %1068 = vector.extract_strided_slice %1000 {offsets = [0, 24], sizes = [8, 8], strides = [1, 1]} : vector<8x32xf32> to vector<8x8xf32>
    %cst_399 = arith.constant dense<0.000000e+00> : vector<8x8xf32>
    %1069 = tpu.matmul %1066, %1067, %cst_399 {dimension_numbers = #tpu.dot_dimension_numbers<[1], [1], [0], [0], [0, 0, 1, 0], [], []>} : vector<8x8xf32>, vector<8x8xf32>, vector<8x8xf32> -> vector<8x8xf32>
    %cst_400 = arith.constant 0.353553385 : f32
    %1070 = vector.broadcast %cst_400 : f32 to vector<8x8xf32>
    %1071 = arith.mulf %1069, %1070 : vector<8x8xf32>
    %cst_401 = arith.constant 0.000000e+00 : f32
    %1072 = vector.broadcast %cst_401 : f32 to vector<8x8xf32>
    %1073 = arith.cmpf ogt, %1002, %1072 : vector<8x8xf32>
    %cst_402 = arith.constant -1.000000e+30 : f32
    %1074 = vector.broadcast %cst_402 : f32 to vector<8x8xf32>
    %1075 = arith.select %1073, %1071, %1074 : vector<8x8xi1>, vector<8x8xf32>
    %cst_403 = arith.constant dense<0xFF800000> : vector<8xf32>
    %1076 = vector.multi_reduction <maximumf>, %1075, %cst_403 [1] : vector<8x8xf32> to vector<8xf32>
    %1077 = vector.shape_cast %1076 : vector<8xf32> to vector<8x1xf32>
    %1078 = vector.broadcast %1077 : vector<8x1xf32> to vector<8x8xf32>
    %1079 = arith.subf %1075, %1078 : vector<8x8xf32>
    %1080 = math.exp %1079 : vector<8x8xf32>
    %cst_404 = arith.constant dense<0.000000e+00> : vector<8xf32>
    %1081 = vector.multi_reduction <add>, %1080, %cst_404 [1] : vector<8x8xf32> to vector<8xf32>
    %1082 = vector.shape_cast %1081 : vector<8xf32> to vector<8x1xf32>
    %1083 = tpu.reciprocal %1082 {approx = true} : vector<8x1xf32> -> vector<8x1xf32>
    %1084 = vector.broadcast %1083 : vector<8x1xf32> to vector<8x8xf32>
    %1085 = arith.mulf %1080, %1084 : vector<8x8xf32>
    %cst_405 = arith.constant dense<0.000000e+00> : vector<8x8xf32>
    %1086 = tpu.matmul %1085, %1068, %cst_405 {dimension_numbers = #tpu.dot_dimension_numbers<[1], [0], [0], [1], [0, 0, 1, 1], [], []>} : vector<8x8xf32>, vector<8x8xf32>, vector<8x8xf32> -> vector<8x8xf32>
    %1087 = tpu.concatenate %1023, %1044, %1065, %1086 in 1 : vector<8x8xf32>, vector<8x8xf32>, vector<8x8xf32>, vector<8x8xf32> -> vector<8x32xf32>
    %1088 = vector.extract_strided_slice %995 {offsets = [8, 0], sizes = [8, 32], strides = [1, 1]} : vector<16x32xf32> to vector<8x32xf32>
    %1089 = vector.extract_strided_slice %996 {offsets = [8, 0], sizes = [8, 32], strides = [1, 1]} : vector<16x32xf32> to vector<8x32xf32>
    %1090 = vector.extract_strided_slice %997 {offsets = [8, 0], sizes = [8, 32], strides = [1, 1]} : vector<16x32xf32> to vector<8x32xf32>
    %1091 = vector.extract_strided_slice %515 {offsets = [1, 0, 0], sizes = [1, 8, 8], strides = [1, 1, 1]} : vector<2x8x8xf32> to vector<1x8x8xf32>
    %1092 = vector.shape_cast %1091 : vector<1x8x8xf32> to vector<8x8xf32>
    %1093 = vector.extract_strided_slice %1088 {offsets = [0, 0], sizes = [8, 8], strides = [1, 1]} : vector<8x32xf32> to vector<8x8xf32>
    %1094 = vector.extract_strided_slice %1089 {offsets = [0, 0], sizes = [8, 8], strides = [1, 1]} : vector<8x32xf32> to vector<8x8xf32>
    %1095 = vector.extract_strided_slice %1090 {offsets = [0, 0], sizes = [8, 8], strides = [1, 1]} : vector<8x32xf32> to vector<8x8xf32>
    %cst_406 = arith.constant dense<0.000000e+00> : vector<8x8xf32>
    %1096 = tpu.matmul %1093, %1094, %cst_406 {dimension_numbers = #tpu.dot_dimension_numbers<[1], [1], [0], [0], [0, 0, 1, 0], [], []>} : vector<8x8xf32>, vector<8x8xf32>, vector<8x8xf32> -> vector<8x8xf32>
    %cst_407 = arith.constant 0.353553385 : f32
    %1097 = vector.broadcast %cst_407 : f32 to vector<8x8xf32>
    %1098 = arith.mulf %1096, %1097 : vector<8x8xf32>
    %cst_408 = arith.constant 0.000000e+00 : f32
    %1099 = vector.broadcast %cst_408 : f32 to vector<8x8xf32>
    %1100 = arith.cmpf ogt, %1092, %1099 : vector<8x8xf32>
    %cst_409 = arith.constant -1.000000e+30 : f32
    %1101 = vector.broadcast %cst_409 : f32 to vector<8x8xf32>
    %1102 = arith.select %1100, %1098, %1101 : vector<8x8xi1>, vector<8x8xf32>
    %cst_410 = arith.constant dense<0xFF800000> : vector<8xf32>
    %1103 = vector.multi_reduction <maximumf>, %1102, %cst_410 [1] : vector<8x8xf32> to vector<8xf32>
    %1104 = vector.shape_cast %1103 : vector<8xf32> to vector<8x1xf32>
    %1105 = vector.broadcast %1104 : vector<8x1xf32> to vector<8x8xf32>
    %1106 = arith.subf %1102, %1105 : vector<8x8xf32>
    %1107 = math.exp %1106 : vector<8x8xf32>
    %cst_411 = arith.constant dense<0.000000e+00> : vector<8xf32>
    %1108 = vector.multi_reduction <add>, %1107, %cst_411 [1] : vector<8x8xf32> to vector<8xf32>
    %1109 = vector.shape_cast %1108 : vector<8xf32> to vector<8x1xf32>
    %1110 = tpu.reciprocal %1109 {approx = true} : vector<8x1xf32> -> vector<8x1xf32>
    %1111 = vector.broadcast %1110 : vector<8x1xf32> to vector<8x8xf32>
    %1112 = arith.mulf %1107, %1111 : vector<8x8xf32>
    %cst_412 = arith.constant dense<0.000000e+00> : vector<8x8xf32>
    %1113 = tpu.matmul %1112, %1095, %cst_412 {dimension_numbers = #tpu.dot_dimension_numbers<[1], [0], [0], [1], [0, 0, 1, 1], [], []>} : vector<8x8xf32>, vector<8x8xf32>, vector<8x8xf32> -> vector<8x8xf32>
    %1114 = vector.extract_strided_slice %1088 {offsets = [0, 8], sizes = [8, 8], strides = [1, 1]} : vector<8x32xf32> to vector<8x8xf32>
    %1115 = vector.extract_strided_slice %1089 {offsets = [0, 8], sizes = [8, 8], strides = [1, 1]} : vector<8x32xf32> to vector<8x8xf32>
    %1116 = vector.extract_strided_slice %1090 {offsets = [0, 8], sizes = [8, 8], strides = [1, 1]} : vector<8x32xf32> to vector<8x8xf32>
    %cst_413 = arith.constant dense<0.000000e+00> : vector<8x8xf32>
    %1117 = tpu.matmul %1114, %1115, %cst_413 {dimension_numbers = #tpu.dot_dimension_numbers<[1], [1], [0], [0], [0, 0, 1, 0], [], []>} : vector<8x8xf32>, vector<8x8xf32>, vector<8x8xf32> -> vector<8x8xf32>
    %cst_414 = arith.constant 0.353553385 : f32
    %1118 = vector.broadcast %cst_414 : f32 to vector<8x8xf32>
    %1119 = arith.mulf %1117, %1118 : vector<8x8xf32>
    %cst_415 = arith.constant 0.000000e+00 : f32
    %1120 = vector.broadcast %cst_415 : f32 to vector<8x8xf32>
    %1121 = arith.cmpf ogt, %1092, %1120 : vector<8x8xf32>
    %cst_416 = arith.constant -1.000000e+30 : f32
    %1122 = vector.broadcast %cst_416 : f32 to vector<8x8xf32>
    %1123 = arith.select %1121, %1119, %1122 : vector<8x8xi1>, vector<8x8xf32>
    %cst_417 = arith.constant dense<0xFF800000> : vector<8xf32>
    %1124 = vector.multi_reduction <maximumf>, %1123, %cst_417 [1] : vector<8x8xf32> to vector<8xf32>
    %1125 = vector.shape_cast %1124 : vector<8xf32> to vector<8x1xf32>
    %1126 = vector.broadcast %1125 : vector<8x1xf32> to vector<8x8xf32>
    %1127 = arith.subf %1123, %1126 : vector<8x8xf32>
    %1128 = math.exp %1127 : vector<8x8xf32>
    %cst_418 = arith.constant dense<0.000000e+00> : vector<8xf32>
    %1129 = vector.multi_reduction <add>, %1128, %cst_418 [1] : vector<8x8xf32> to vector<8xf32>
    %1130 = vector.shape_cast %1129 : vector<8xf32> to vector<8x1xf32>
    %1131 = tpu.reciprocal %1130 {approx = true} : vector<8x1xf32> -> vector<8x1xf32>
    %1132 = vector.broadcast %1131 : vector<8x1xf32> to vector<8x8xf32>
    %1133 = arith.mulf %1128, %1132 : vector<8x8xf32>
    %cst_419 = arith.constant dense<0.000000e+00> : vector<8x8xf32>
    %1134 = tpu.matmul %1133, %1116, %cst_419 {dimension_numbers = #tpu.dot_dimension_numbers<[1], [0], [0], [1], [0, 0, 1, 1], [], []>} : vector<8x8xf32>, vector<8x8xf32>, vector<8x8xf32> -> vector<8x8xf32>
    %1135 = vector.extract_strided_slice %1088 {offsets = [0, 16], sizes = [8, 8], strides = [1, 1]} : vector<8x32xf32> to vector<8x8xf32>
    %1136 = vector.extract_strided_slice %1089 {offsets = [0, 16], sizes = [8, 8], strides = [1, 1]} : vector<8x32xf32> to vector<8x8xf32>
    %1137 = vector.extract_strided_slice %1090 {offsets = [0, 16], sizes = [8, 8], strides = [1, 1]} : vector<8x32xf32> to vector<8x8xf32>
    %cst_420 = arith.constant dense<0.000000e+00> : vector<8x8xf32>
    %1138 = tpu.matmul %1135, %1136, %cst_420 {dimension_numbers = #tpu.dot_dimension_numbers<[1], [1], [0], [0], [0, 0, 1, 0], [], []>} : vector<8x8xf32>, vector<8x8xf32>, vector<8x8xf32> -> vector<8x8xf32>
    %cst_421 = arith.constant 0.353553385 : f32
    %1139 = vector.broadcast %cst_421 : f32 to vector<8x8xf32>
    %1140 = arith.mulf %1138, %1139 : vector<8x8xf32>
    %cst_422 = arith.constant 0.000000e+00 : f32
    %1141 = vector.broadcast %cst_422 : f32 to vector<8x8xf32>
    %1142 = arith.cmpf ogt, %1092, %1141 : vector<8x8xf32>
    %cst_423 = arith.constant -1.000000e+30 : f32
    %1143 = vector.broadcast %cst_423 : f32 to vector<8x8xf32>
    %1144 = arith.select %1142, %1140, %1143 : vector<8x8xi1>, vector<8x8xf32>
    %cst_424 = arith.constant dense<0xFF800000> : vector<8xf32>
    %1145 = vector.multi_reduction <maximumf>, %1144, %cst_424 [1] : vector<8x8xf32> to vector<8xf32>
    %1146 = vector.shape_cast %1145 : vector<8xf32> to vector<8x1xf32>
    %1147 = vector.broadcast %1146 : vector<8x1xf32> to vector<8x8xf32>
    %1148 = arith.subf %1144, %1147 : vector<8x8xf32>
    %1149 = math.exp %1148 : vector<8x8xf32>
    %cst_425 = arith.constant dense<0.000000e+00> : vector<8xf32>
    %1150 = vector.multi_reduction <add>, %1149, %cst_425 [1] : vector<8x8xf32> to vector<8xf32>
    %1151 = vector.shape_cast %1150 : vector<8xf32> to vector<8x1xf32>
    %1152 = tpu.reciprocal %1151 {approx = true} : vector<8x1xf32> -> vector<8x1xf32>
    %1153 = vector.broadcast %1152 : vector<8x1xf32> to vector<8x8xf32>
    %1154 = arith.mulf %1149, %1153 : vector<8x8xf32>
    %cst_426 = arith.constant dense<0.000000e+00> : vector<8x8xf32>
    %1155 = tpu.matmul %1154, %1137, %cst_426 {dimension_numbers = #tpu.dot_dimension_numbers<[1], [0], [0], [1], [0, 0, 1, 1], [], []>} : vector<8x8xf32>, vector<8x8xf32>, vector<8x8xf32> -> vector<8x8xf32>
    %1156 = vector.extract_strided_slice %1088 {offsets = [0, 24], sizes = [8, 8], strides = [1, 1]} : vector<8x32xf32> to vector<8x8xf32>
    %1157 = vector.extract_strided_slice %1089 {offsets = [0, 24], sizes = [8, 8], strides = [1, 1]} : vector<8x32xf32> to vector<8x8xf32>
    %1158 = vector.extract_strided_slice %1090 {offsets = [0, 24], sizes = [8, 8], strides = [1, 1]} : vector<8x32xf32> to vector<8x8xf32>
    %cst_427 = arith.constant dense<0.000000e+00> : vector<8x8xf32>
    %1159 = tpu.matmul %1156, %1157, %cst_427 {dimension_numbers = #tpu.dot_dimension_numbers<[1], [1], [0], [0], [0, 0, 1, 0], [], []>} : vector<8x8xf32>, vector<8x8xf32>, vector<8x8xf32> -> vector<8x8xf32>
    %cst_428 = arith.constant 0.353553385 : f32
    %1160 = vector.broadcast %cst_428 : f32 to vector<8x8xf32>
    %1161 = arith.mulf %1159, %1160 : vector<8x8xf32>
    %cst_429 = arith.constant 0.000000e+00 : f32
    %1162 = vector.broadcast %cst_429 : f32 to vector<8x8xf32>
    %1163 = arith.cmpf ogt, %1092, %1162 : vector<8x8xf32>
    %cst_430 = arith.constant -1.000000e+30 : f32
    %1164 = vector.broadcast %cst_430 : f32 to vector<8x8xf32>
    %1165 = arith.select %1163, %1161, %1164 : vector<8x8xi1>, vector<8x8xf32>
    %cst_431 = arith.constant dense<0xFF800000> : vector<8xf32>
    %1166 = vector.multi_reduction <maximumf>, %1165, %cst_431 [1] : vector<8x8xf32> to vector<8xf32>
    %1167 = vector.shape_cast %1166 : vector<8xf32> to vector<8x1xf32>
    %1168 = vector.broadcast %1167 : vector<8x1xf32> to vector<8x8xf32>
    %1169 = arith.subf %1165, %1168 : vector<8x8xf32>
    %1170 = math.exp %1169 : vector<8x8xf32>
    %cst_432 = arith.constant dense<0.000000e+00> : vector<8xf32>
    %1171 = vector.multi_reduction <add>, %1170, %cst_432 [1] : vector<8x8xf32> to vector<8xf32>
    %1172 = vector.shape_cast %1171 : vector<8xf32> to vector<8x1xf32>
    %1173 = tpu.reciprocal %1172 {approx = true} : vector<8x1xf32> -> vector<8x1xf32>
    %1174 = vector.broadcast %1173 : vector<8x1xf32> to vector<8x8xf32>
    %1175 = arith.mulf %1170, %1174 : vector<8x8xf32>
    %cst_433 = arith.constant dense<0.000000e+00> : vector<8x8xf32>
    %1176 = tpu.matmul %1175, %1158, %cst_433 {dimension_numbers = #tpu.dot_dimension_numbers<[1], [0], [0], [1], [0, 0, 1, 1], [], []>} : vector<8x8xf32>, vector<8x8xf32>, vector<8x8xf32> -> vector<8x8xf32>
    %1177 = tpu.concatenate %1113, %1134, %1155, %1176 in 1 : vector<8x8xf32>, vector<8x8xf32>, vector<8x8xf32>, vector<8x8xf32> -> vector<8x32xf32>
    %1178 = tpu.concatenate %1087, %1177 in 0 : vector<8x32xf32>, vector<8x32xf32> -> vector<16x32xf32>
    %cst_434 = arith.constant dense<0.000000e+00> : vector<16x32xf32>
    %1179 = tpu.matmul %1178, %993, %cst_434 {dimension_numbers = #tpu.dot_dimension_numbers<[1], [0], [0], [1], [0, 0, 1, 1], [], []>} : vector<16x32xf32>, vector<32x32xf32>, vector<16x32xf32> -> vector<16x32xf32>
    %c1_435 = arith.constant 1 : index
    %c0_436 = arith.constant 0 : index
    %c0_437 = arith.constant 0 : index
    %1180 = vector.load %arg15[%c1_435, %c0_436, %c0_437] : memref<2x2x32xf32, #tpu.memory_space<vmem>>, vector<1x2x32xf32>
    %1181 = vector.shape_cast %1180 : vector<1x2x32xf32> to vector<2x32xf32>
    %1182 = vector.extract_strided_slice %1181 {offsets = [0, 0], sizes = [1, 32], strides = [1, 1]} : vector<2x32xf32> to vector<1x32xf32>
    %1183 = vector.extract_strided_slice %1181 {offsets = [1, 0], sizes = [1, 32], strides = [1, 1]} : vector<2x32xf32> to vector<1x32xf32>
    %1184 = arith.addf %989, %1179 : vector<16x32xf32>
    %cst_438 = arith.constant dense<0.000000e+00> : vector<16xf32>
    %1185 = vector.multi_reduction <add>, %1184, %cst_438 [1] : vector<16x32xf32> to vector<16xf32>
    %1186 = vector.shape_cast %1185 : vector<16xf32> to vector<16x1xf32>
    %cst_439 = arith.constant 3.200000e+01 : f32
    %1187 = vector.broadcast %cst_439 : f32 to vector<16x1xf32>
    %1188 = arith.divf %1186, %1187 : vector<16x1xf32>
    %1189 = vector.broadcast %1188 : vector<16x1xf32> to vector<16x32xf32>
    %1190 = arith.subf %1184, %1189 : vector<16x32xf32>
    %1191 = arith.mulf %1190, %1190 : vector<16x32xf32>
    %cst_440 = arith.constant dense<0.000000e+00> : vector<16xf32>
    %1192 = vector.multi_reduction <add>, %1191, %cst_440 [1] : vector<16x32xf32> to vector<16xf32>
    %1193 = vector.shape_cast %1192 : vector<16xf32> to vector<16x1xf32>
    %cst_441 = arith.constant 3.200000e+01 : f32
    %1194 = vector.broadcast %cst_441 : f32 to vector<16x1xf32>
    %1195 = arith.divf %1193, %1194 : vector<16x1xf32>
    %cst_442 = arith.constant 9.99999974E-6 : f32
    %1196 = vector.broadcast %cst_442 : f32 to vector<16x1xf32>
    %1197 = arith.addf %1195, %1196 : vector<16x1xf32>
    %1198 = math.rsqrt %1197 : vector<16x1xf32>
    %1199 = vector.broadcast %1198 : vector<16x1xf32> to vector<16x32xf32>
    %1200 = arith.mulf %1190, %1199 : vector<16x32xf32>
    %1201 = vector.broadcast %1182 : vector<1x32xf32> to vector<16x32xf32>
    %1202 = arith.mulf %1200, %1201 : vector<16x32xf32>
    %1203 = vector.broadcast %1183 : vector<1x32xf32> to vector<16x32xf32>
    %1204 = arith.addf %1202, %1203 : vector<16x32xf32>
    %c1_443 = arith.constant 1 : index
    %c0_444 = arith.constant 0 : index
    %c0_445 = arith.constant 0 : index
    %1205 = vector.load %arg16[%c1_443, %c0_444, %c0_445] : memref<2x32x32xf32, #tpu.memory_space<vmem>>, vector<1x32x32xf32>
    %1206 = vector.shape_cast %1205 : vector<1x32x32xf32> to vector<32x32xf32>
    %cst_446 = arith.constant dense<0.000000e+00> : vector<16x32xf32>
    %1207 = tpu.matmul %1204, %1206, %cst_446 {dimension_numbers = #tpu.dot_dimension_numbers<[1], [0], [0], [1], [0, 0, 1, 1], [], []>} : vector<16x32xf32>, vector<32x32xf32>, vector<16x32xf32> -> vector<16x32xf32>
    %c1_447 = arith.constant 1 : index
    %c0_448 = arith.constant 0 : index
    %c0_449 = arith.constant 0 : index
    %1208 = vector.load %arg17[%c1_447, %c0_448, %c0_449] : memref<2x32x64xf32, #tpu.memory_space<vmem>>, vector<1x32x64xf32>
    %1209 = vector.shape_cast %1208 : vector<1x32x64xf32> to vector<32x64xf32>
    %cst_450 = arith.constant dense<0.000000e+00> : vector<16x64xf32>
    %1210 = tpu.matmul %513, %1209, %cst_450 {dimension_numbers = #tpu.dot_dimension_numbers<[1], [0], [0], [1], [0, 0, 1, 1], [], []>} : vector<16x32xf32>, vector<32x64xf32>, vector<16x64xf32> -> vector<16x64xf32>
    %1211 = vector.extract_strided_slice %1210 {offsets = [0, 0], sizes = [16, 32], strides = [1, 1]} : vector<16x64xf32> to vector<16x32xf32>
    %1212 = vector.extract_strided_slice %1210 {offsets = [0, 32], sizes = [16, 32], strides = [1, 1]} : vector<16x64xf32> to vector<16x32xf32>
    %c1_451 = arith.constant 1 : index
    %c0_452 = arith.constant 0 : index
    %c0_453 = arith.constant 0 : index
    %1213 = vector.load %arg18[%c1_451, %c0_452, %c0_453] : memref<2x32x32xf32, #tpu.memory_space<vmem>>, vector<1x32x32xf32>
    %1214 = vector.shape_cast %1213 : vector<1x32x32xf32> to vector<32x32xf32>
    %1215 = vector.extract_strided_slice %1207 {offsets = [0, 0], sizes = [8, 32], strides = [1, 1]} : vector<16x32xf32> to vector<8x32xf32>
    %1216 = vector.extract_strided_slice %1211 {offsets = [0, 0], sizes = [8, 32], strides = [1, 1]} : vector<16x32xf32> to vector<8x32xf32>
    %1217 = vector.extract_strided_slice %1212 {offsets = [0, 0], sizes = [8, 32], strides = [1, 1]} : vector<16x32xf32> to vector<8x32xf32>
    %1218 = vector.extract_strided_slice %516 {offsets = [0, 0, 0], sizes = [1, 8, 8], strides = [1, 1, 1]} : vector<2x8x8xf32> to vector<1x8x8xf32>
    %1219 = vector.shape_cast %1218 : vector<1x8x8xf32> to vector<8x8xf32>
    %1220 = vector.extract_strided_slice %1215 {offsets = [0, 0], sizes = [8, 8], strides = [1, 1]} : vector<8x32xf32> to vector<8x8xf32>
    %1221 = vector.extract_strided_slice %1216 {offsets = [0, 0], sizes = [8, 8], strides = [1, 1]} : vector<8x32xf32> to vector<8x8xf32>
    %1222 = vector.extract_strided_slice %1217 {offsets = [0, 0], sizes = [8, 8], strides = [1, 1]} : vector<8x32xf32> to vector<8x8xf32>
    %cst_454 = arith.constant dense<0.000000e+00> : vector<8x8xf32>
    %1223 = tpu.matmul %1220, %1221, %cst_454 {dimension_numbers = #tpu.dot_dimension_numbers<[1], [1], [0], [0], [0, 0, 1, 0], [], []>} : vector<8x8xf32>, vector<8x8xf32>, vector<8x8xf32> -> vector<8x8xf32>
    %cst_455 = arith.constant 0.353553385 : f32
    %1224 = vector.broadcast %cst_455 : f32 to vector<8x8xf32>
    %1225 = arith.mulf %1223, %1224 : vector<8x8xf32>
    %cst_456 = arith.constant 0.000000e+00 : f32
    %1226 = vector.broadcast %cst_456 : f32 to vector<8x8xf32>
    %1227 = arith.cmpf ogt, %1219, %1226 : vector<8x8xf32>
    %cst_457 = arith.constant -1.000000e+30 : f32
    %1228 = vector.broadcast %cst_457 : f32 to vector<8x8xf32>
    %1229 = arith.select %1227, %1225, %1228 : vector<8x8xi1>, vector<8x8xf32>
    %cst_458 = arith.constant dense<0xFF800000> : vector<8xf32>
    %1230 = vector.multi_reduction <maximumf>, %1229, %cst_458 [1] : vector<8x8xf32> to vector<8xf32>
    %1231 = vector.shape_cast %1230 : vector<8xf32> to vector<8x1xf32>
    %1232 = vector.broadcast %1231 : vector<8x1xf32> to vector<8x8xf32>
    %1233 = arith.subf %1229, %1232 : vector<8x8xf32>
    %1234 = math.exp %1233 : vector<8x8xf32>
    %cst_459 = arith.constant dense<0.000000e+00> : vector<8xf32>
    %1235 = vector.multi_reduction <add>, %1234, %cst_459 [1] : vector<8x8xf32> to vector<8xf32>
    %1236 = vector.shape_cast %1235 : vector<8xf32> to vector<8x1xf32>
    %1237 = tpu.reciprocal %1236 {approx = true} : vector<8x1xf32> -> vector<8x1xf32>
    %1238 = vector.broadcast %1237 : vector<8x1xf32> to vector<8x8xf32>
    %1239 = arith.mulf %1234, %1238 : vector<8x8xf32>
    %cst_460 = arith.constant dense<0.000000e+00> : vector<8x8xf32>
    %1240 = tpu.matmul %1239, %1222, %cst_460 {dimension_numbers = #tpu.dot_dimension_numbers<[1], [0], [0], [1], [0, 0, 1, 1], [], []>} : vector<8x8xf32>, vector<8x8xf32>, vector<8x8xf32> -> vector<8x8xf32>
    %1241 = vector.extract_strided_slice %1215 {offsets = [0, 8], sizes = [8, 8], strides = [1, 1]} : vector<8x32xf32> to vector<8x8xf32>
    %1242 = vector.extract_strided_slice %1216 {offsets = [0, 8], sizes = [8, 8], strides = [1, 1]} : vector<8x32xf32> to vector<8x8xf32>
    %1243 = vector.extract_strided_slice %1217 {offsets = [0, 8], sizes = [8, 8], strides = [1, 1]} : vector<8x32xf32> to vector<8x8xf32>
    %cst_461 = arith.constant dense<0.000000e+00> : vector<8x8xf32>
    %1244 = tpu.matmul %1241, %1242, %cst_461 {dimension_numbers = #tpu.dot_dimension_numbers<[1], [1], [0], [0], [0, 0, 1, 0], [], []>} : vector<8x8xf32>, vector<8x8xf32>, vector<8x8xf32> -> vector<8x8xf32>
    %cst_462 = arith.constant 0.353553385 : f32
    %1245 = vector.broadcast %cst_462 : f32 to vector<8x8xf32>
    %1246 = arith.mulf %1244, %1245 : vector<8x8xf32>
    %cst_463 = arith.constant 0.000000e+00 : f32
    %1247 = vector.broadcast %cst_463 : f32 to vector<8x8xf32>
    %1248 = arith.cmpf ogt, %1219, %1247 : vector<8x8xf32>
    %cst_464 = arith.constant -1.000000e+30 : f32
    %1249 = vector.broadcast %cst_464 : f32 to vector<8x8xf32>
    %1250 = arith.select %1248, %1246, %1249 : vector<8x8xi1>, vector<8x8xf32>
    %cst_465 = arith.constant dense<0xFF800000> : vector<8xf32>
    %1251 = vector.multi_reduction <maximumf>, %1250, %cst_465 [1] : vector<8x8xf32> to vector<8xf32>
    %1252 = vector.shape_cast %1251 : vector<8xf32> to vector<8x1xf32>
    %1253 = vector.broadcast %1252 : vector<8x1xf32> to vector<8x8xf32>
    %1254 = arith.subf %1250, %1253 : vector<8x8xf32>
    %1255 = math.exp %1254 : vector<8x8xf32>
    %cst_466 = arith.constant dense<0.000000e+00> : vector<8xf32>
    %1256 = vector.multi_reduction <add>, %1255, %cst_466 [1] : vector<8x8xf32> to vector<8xf32>
    %1257 = vector.shape_cast %1256 : vector<8xf32> to vector<8x1xf32>
    %1258 = tpu.reciprocal %1257 {approx = true} : vector<8x1xf32> -> vector<8x1xf32>
    %1259 = vector.broadcast %1258 : vector<8x1xf32> to vector<8x8xf32>
    %1260 = arith.mulf %1255, %1259 : vector<8x8xf32>
    %cst_467 = arith.constant dense<0.000000e+00> : vector<8x8xf32>
    %1261 = tpu.matmul %1260, %1243, %cst_467 {dimension_numbers = #tpu.dot_dimension_numbers<[1], [0], [0], [1], [0, 0, 1, 1], [], []>} : vector<8x8xf32>, vector<8x8xf32>, vector<8x8xf32> -> vector<8x8xf32>
    %1262 = vector.extract_strided_slice %1215 {offsets = [0, 16], sizes = [8, 8], strides = [1, 1]} : vector<8x32xf32> to vector<8x8xf32>
    %1263 = vector.extract_strided_slice %1216 {offsets = [0, 16], sizes = [8, 8], strides = [1, 1]} : vector<8x32xf32> to vector<8x8xf32>
    %1264 = vector.extract_strided_slice %1217 {offsets = [0, 16], sizes = [8, 8], strides = [1, 1]} : vector<8x32xf32> to vector<8x8xf32>
    %cst_468 = arith.constant dense<0.000000e+00> : vector<8x8xf32>
    %1265 = tpu.matmul %1262, %1263, %cst_468 {dimension_numbers = #tpu.dot_dimension_numbers<[1], [1], [0], [0], [0, 0, 1, 0], [], []>} : vector<8x8xf32>, vector<8x8xf32>, vector<8x8xf32> -> vector<8x8xf32>
    %cst_469 = arith.constant 0.353553385 : f32
    %1266 = vector.broadcast %cst_469 : f32 to vector<8x8xf32>
    %1267 = arith.mulf %1265, %1266 : vector<8x8xf32>
    %cst_470 = arith.constant 0.000000e+00 : f32
    %1268 = vector.broadcast %cst_470 : f32 to vector<8x8xf32>
    %1269 = arith.cmpf ogt, %1219, %1268 : vector<8x8xf32>
    %cst_471 = arith.constant -1.000000e+30 : f32
    %1270 = vector.broadcast %cst_471 : f32 to vector<8x8xf32>
    %1271 = arith.select %1269, %1267, %1270 : vector<8x8xi1>, vector<8x8xf32>
    %cst_472 = arith.constant dense<0xFF800000> : vector<8xf32>
    %1272 = vector.multi_reduction <maximumf>, %1271, %cst_472 [1] : vector<8x8xf32> to vector<8xf32>
    %1273 = vector.shape_cast %1272 : vector<8xf32> to vector<8x1xf32>
    %1274 = vector.broadcast %1273 : vector<8x1xf32> to vector<8x8xf32>
    %1275 = arith.subf %1271, %1274 : vector<8x8xf32>
    %1276 = math.exp %1275 : vector<8x8xf32>
    %cst_473 = arith.constant dense<0.000000e+00> : vector<8xf32>
    %1277 = vector.multi_reduction <add>, %1276, %cst_473 [1] : vector<8x8xf32> to vector<8xf32>
    %1278 = vector.shape_cast %1277 : vector<8xf32> to vector<8x1xf32>
    %1279 = tpu.reciprocal %1278 {approx = true} : vector<8x1xf32> -> vector<8x1xf32>
    %1280 = vector.broadcast %1279 : vector<8x1xf32> to vector<8x8xf32>
    %1281 = arith.mulf %1276, %1280 : vector<8x8xf32>
    %cst_474 = arith.constant dense<0.000000e+00> : vector<8x8xf32>
    %1282 = tpu.matmul %1281, %1264, %cst_474 {dimension_numbers = #tpu.dot_dimension_numbers<[1], [0], [0], [1], [0, 0, 1, 1], [], []>} : vector<8x8xf32>, vector<8x8xf32>, vector<8x8xf32> -> vector<8x8xf32>
    %1283 = vector.extract_strided_slice %1215 {offsets = [0, 24], sizes = [8, 8], strides = [1, 1]} : vector<8x32xf32> to vector<8x8xf32>
    %1284 = vector.extract_strided_slice %1216 {offsets = [0, 24], sizes = [8, 8], strides = [1, 1]} : vector<8x32xf32> to vector<8x8xf32>
    %1285 = vector.extract_strided_slice %1217 {offsets = [0, 24], sizes = [8, 8], strides = [1, 1]} : vector<8x32xf32> to vector<8x8xf32>
    %cst_475 = arith.constant dense<0.000000e+00> : vector<8x8xf32>
    %1286 = tpu.matmul %1283, %1284, %cst_475 {dimension_numbers = #tpu.dot_dimension_numbers<[1], [1], [0], [0], [0, 0, 1, 0], [], []>} : vector<8x8xf32>, vector<8x8xf32>, vector<8x8xf32> -> vector<8x8xf32>
    %cst_476 = arith.constant 0.353553385 : f32
    %1287 = vector.broadcast %cst_476 : f32 to vector<8x8xf32>
    %1288 = arith.mulf %1286, %1287 : vector<8x8xf32>
    %cst_477 = arith.constant 0.000000e+00 : f32
    %1289 = vector.broadcast %cst_477 : f32 to vector<8x8xf32>
    %1290 = arith.cmpf ogt, %1219, %1289 : vector<8x8xf32>
    %cst_478 = arith.constant -1.000000e+30 : f32
    %1291 = vector.broadcast %cst_478 : f32 to vector<8x8xf32>
    %1292 = arith.select %1290, %1288, %1291 : vector<8x8xi1>, vector<8x8xf32>
    %cst_479 = arith.constant dense<0xFF800000> : vector<8xf32>
    %1293 = vector.multi_reduction <maximumf>, %1292, %cst_479 [1] : vector<8x8xf32> to vector<8xf32>
    %1294 = vector.shape_cast %1293 : vector<8xf32> to vector<8x1xf32>
    %1295 = vector.broadcast %1294 : vector<8x1xf32> to vector<8x8xf32>
    %1296 = arith.subf %1292, %1295 : vector<8x8xf32>
    %1297 = math.exp %1296 : vector<8x8xf32>
    %cst_480 = arith.constant dense<0.000000e+00> : vector<8xf32>
    %1298 = vector.multi_reduction <add>, %1297, %cst_480 [1] : vector<8x8xf32> to vector<8xf32>
    %1299 = vector.shape_cast %1298 : vector<8xf32> to vector<8x1xf32>
    %1300 = tpu.reciprocal %1299 {approx = true} : vector<8x1xf32> -> vector<8x1xf32>
    %1301 = vector.broadcast %1300 : vector<8x1xf32> to vector<8x8xf32>
    %1302 = arith.mulf %1297, %1301 : vector<8x8xf32>
    %cst_481 = arith.constant dense<0.000000e+00> : vector<8x8xf32>
    %1303 = tpu.matmul %1302, %1285, %cst_481 {dimension_numbers = #tpu.dot_dimension_numbers<[1], [0], [0], [1], [0, 0, 1, 1], [], []>} : vector<8x8xf32>, vector<8x8xf32>, vector<8x8xf32> -> vector<8x8xf32>
    %1304 = tpu.concatenate %1240, %1261, %1282, %1303 in 1 : vector<8x8xf32>, vector<8x8xf32>, vector<8x8xf32>, vector<8x8xf32> -> vector<8x32xf32>
    %1305 = vector.extract_strided_slice %1207 {offsets = [8, 0], sizes = [8, 32], strides = [1, 1]} : vector<16x32xf32> to vector<8x32xf32>
    %1306 = vector.extract_strided_slice %1211 {offsets = [8, 0], sizes = [8, 32], strides = [1, 1]} : vector<16x32xf32> to vector<8x32xf32>
    %1307 = vector.extract_strided_slice %1212 {offsets = [8, 0], sizes = [8, 32], strides = [1, 1]} : vector<16x32xf32> to vector<8x32xf32>
    %1308 = vector.extract_strided_slice %516 {offsets = [1, 0, 0], sizes = [1, 8, 8], strides = [1, 1, 1]} : vector<2x8x8xf32> to vector<1x8x8xf32>
    %1309 = vector.shape_cast %1308 : vector<1x8x8xf32> to vector<8x8xf32>
    %1310 = vector.extract_strided_slice %1305 {offsets = [0, 0], sizes = [8, 8], strides = [1, 1]} : vector<8x32xf32> to vector<8x8xf32>
    %1311 = vector.extract_strided_slice %1306 {offsets = [0, 0], sizes = [8, 8], strides = [1, 1]} : vector<8x32xf32> to vector<8x8xf32>
    %1312 = vector.extract_strided_slice %1307 {offsets = [0, 0], sizes = [8, 8], strides = [1, 1]} : vector<8x32xf32> to vector<8x8xf32>
    %cst_482 = arith.constant dense<0.000000e+00> : vector<8x8xf32>
    %1313 = tpu.matmul %1310, %1311, %cst_482 {dimension_numbers = #tpu.dot_dimension_numbers<[1], [1], [0], [0], [0, 0, 1, 0], [], []>} : vector<8x8xf32>, vector<8x8xf32>, vector<8x8xf32> -> vector<8x8xf32>
    %cst_483 = arith.constant 0.353553385 : f32
    %1314 = vector.broadcast %cst_483 : f32 to vector<8x8xf32>
    %1315 = arith.mulf %1313, %1314 : vector<8x8xf32>
    %cst_484 = arith.constant 0.000000e+00 : f32
    %1316 = vector.broadcast %cst_484 : f32 to vector<8x8xf32>
    %1317 = arith.cmpf ogt, %1309, %1316 : vector<8x8xf32>
    %cst_485 = arith.constant -1.000000e+30 : f32
    %1318 = vector.broadcast %cst_485 : f32 to vector<8x8xf32>
    %1319 = arith.select %1317, %1315, %1318 : vector<8x8xi1>, vector<8x8xf32>
    %cst_486 = arith.constant dense<0xFF800000> : vector<8xf32>
    %1320 = vector.multi_reduction <maximumf>, %1319, %cst_486 [1] : vector<8x8xf32> to vector<8xf32>
    %1321 = vector.shape_cast %1320 : vector<8xf32> to vector<8x1xf32>
    %1322 = vector.broadcast %1321 : vector<8x1xf32> to vector<8x8xf32>
    %1323 = arith.subf %1319, %1322 : vector<8x8xf32>
    %1324 = math.exp %1323 : vector<8x8xf32>
    %cst_487 = arith.constant dense<0.000000e+00> : vector<8xf32>
    %1325 = vector.multi_reduction <add>, %1324, %cst_487 [1] : vector<8x8xf32> to vector<8xf32>
    %1326 = vector.shape_cast %1325 : vector<8xf32> to vector<8x1xf32>
    %1327 = tpu.reciprocal %1326 {approx = true} : vector<8x1xf32> -> vector<8x1xf32>
    %1328 = vector.broadcast %1327 : vector<8x1xf32> to vector<8x8xf32>
    %1329 = arith.mulf %1324, %1328 : vector<8x8xf32>
    %cst_488 = arith.constant dense<0.000000e+00> : vector<8x8xf32>
    %1330 = tpu.matmul %1329, %1312, %cst_488 {dimension_numbers = #tpu.dot_dimension_numbers<[1], [0], [0], [1], [0, 0, 1, 1], [], []>} : vector<8x8xf32>, vector<8x8xf32>, vector<8x8xf32> -> vector<8x8xf32>
    %1331 = vector.extract_strided_slice %1305 {offsets = [0, 8], sizes = [8, 8], strides = [1, 1]} : vector<8x32xf32> to vector<8x8xf32>
    %1332 = vector.extract_strided_slice %1306 {offsets = [0, 8], sizes = [8, 8], strides = [1, 1]} : vector<8x32xf32> to vector<8x8xf32>
    %1333 = vector.extract_strided_slice %1307 {offsets = [0, 8], sizes = [8, 8], strides = [1, 1]} : vector<8x32xf32> to vector<8x8xf32>
    %cst_489 = arith.constant dense<0.000000e+00> : vector<8x8xf32>
    %1334 = tpu.matmul %1331, %1332, %cst_489 {dimension_numbers = #tpu.dot_dimension_numbers<[1], [1], [0], [0], [0, 0, 1, 0], [], []>} : vector<8x8xf32>, vector<8x8xf32>, vector<8x8xf32> -> vector<8x8xf32>
    %cst_490 = arith.constant 0.353553385 : f32
    %1335 = vector.broadcast %cst_490 : f32 to vector<8x8xf32>
    %1336 = arith.mulf %1334, %1335 : vector<8x8xf32>
    %cst_491 = arith.constant 0.000000e+00 : f32
    %1337 = vector.broadcast %cst_491 : f32 to vector<8x8xf32>
    %1338 = arith.cmpf ogt, %1309, %1337 : vector<8x8xf32>
    %cst_492 = arith.constant -1.000000e+30 : f32
    %1339 = vector.broadcast %cst_492 : f32 to vector<8x8xf32>
    %1340 = arith.select %1338, %1336, %1339 : vector<8x8xi1>, vector<8x8xf32>
    %cst_493 = arith.constant dense<0xFF800000> : vector<8xf32>
    %1341 = vector.multi_reduction <maximumf>, %1340, %cst_493 [1] : vector<8x8xf32> to vector<8xf32>
    %1342 = vector.shape_cast %1341 : vector<8xf32> to vector<8x1xf32>
    %1343 = vector.broadcast %1342 : vector<8x1xf32> to vector<8x8xf32>
    %1344 = arith.subf %1340, %1343 : vector<8x8xf32>
    %1345 = math.exp %1344 : vector<8x8xf32>
    %cst_494 = arith.constant dense<0.000000e+00> : vector<8xf32>
    %1346 = vector.multi_reduction <add>, %1345, %cst_494 [1] : vector<8x8xf32> to vector<8xf32>
    %1347 = vector.shape_cast %1346 : vector<8xf32> to vector<8x1xf32>
    %1348 = tpu.reciprocal %1347 {approx = true} : vector<8x1xf32> -> vector<8x1xf32>
    %1349 = vector.broadcast %1348 : vector<8x1xf32> to vector<8x8xf32>
    %1350 = arith.mulf %1345, %1349 : vector<8x8xf32>
    %cst_495 = arith.constant dense<0.000000e+00> : vector<8x8xf32>
    %1351 = tpu.matmul %1350, %1333, %cst_495 {dimension_numbers = #tpu.dot_dimension_numbers<[1], [0], [0], [1], [0, 0, 1, 1], [], []>} : vector<8x8xf32>, vector<8x8xf32>, vector<8x8xf32> -> vector<8x8xf32>
    %1352 = vector.extract_strided_slice %1305 {offsets = [0, 16], sizes = [8, 8], strides = [1, 1]} : vector<8x32xf32> to vector<8x8xf32>
    %1353 = vector.extract_strided_slice %1306 {offsets = [0, 16], sizes = [8, 8], strides = [1, 1]} : vector<8x32xf32> to vector<8x8xf32>
    %1354 = vector.extract_strided_slice %1307 {offsets = [0, 16], sizes = [8, 8], strides = [1, 1]} : vector<8x32xf32> to vector<8x8xf32>
    %cst_496 = arith.constant dense<0.000000e+00> : vector<8x8xf32>
    %1355 = tpu.matmul %1352, %1353, %cst_496 {dimension_numbers = #tpu.dot_dimension_numbers<[1], [1], [0], [0], [0, 0, 1, 0], [], []>} : vector<8x8xf32>, vector<8x8xf32>, vector<8x8xf32> -> vector<8x8xf32>
    %cst_497 = arith.constant 0.353553385 : f32
    %1356 = vector.broadcast %cst_497 : f32 to vector<8x8xf32>
    %1357 = arith.mulf %1355, %1356 : vector<8x8xf32>
    %cst_498 = arith.constant 0.000000e+00 : f32
    %1358 = vector.broadcast %cst_498 : f32 to vector<8x8xf32>
    %1359 = arith.cmpf ogt, %1309, %1358 : vector<8x8xf32>
    %cst_499 = arith.constant -1.000000e+30 : f32
    %1360 = vector.broadcast %cst_499 : f32 to vector<8x8xf32>
    %1361 = arith.select %1359, %1357, %1360 : vector<8x8xi1>, vector<8x8xf32>
    %cst_500 = arith.constant dense<0xFF800000> : vector<8xf32>
    %1362 = vector.multi_reduction <maximumf>, %1361, %cst_500 [1] : vector<8x8xf32> to vector<8xf32>
    %1363 = vector.shape_cast %1362 : vector<8xf32> to vector<8x1xf32>
    %1364 = vector.broadcast %1363 : vector<8x1xf32> to vector<8x8xf32>
    %1365 = arith.subf %1361, %1364 : vector<8x8xf32>
    %1366 = math.exp %1365 : vector<8x8xf32>
    %cst_501 = arith.constant dense<0.000000e+00> : vector<8xf32>
    %1367 = vector.multi_reduction <add>, %1366, %cst_501 [1] : vector<8x8xf32> to vector<8xf32>
    %1368 = vector.shape_cast %1367 : vector<8xf32> to vector<8x1xf32>
    %1369 = tpu.reciprocal %1368 {approx = true} : vector<8x1xf32> -> vector<8x1xf32>
    %1370 = vector.broadcast %1369 : vector<8x1xf32> to vector<8x8xf32>
    %1371 = arith.mulf %1366, %1370 : vector<8x8xf32>
    %cst_502 = arith.constant dense<0.000000e+00> : vector<8x8xf32>
    %1372 = tpu.matmul %1371, %1354, %cst_502 {dimension_numbers = #tpu.dot_dimension_numbers<[1], [0], [0], [1], [0, 0, 1, 1], [], []>} : vector<8x8xf32>, vector<8x8xf32>, vector<8x8xf32> -> vector<8x8xf32>
    %1373 = vector.extract_strided_slice %1305 {offsets = [0, 24], sizes = [8, 8], strides = [1, 1]} : vector<8x32xf32> to vector<8x8xf32>
    %1374 = vector.extract_strided_slice %1306 {offsets = [0, 24], sizes = [8, 8], strides = [1, 1]} : vector<8x32xf32> to vector<8x8xf32>
    %1375 = vector.extract_strided_slice %1307 {offsets = [0, 24], sizes = [8, 8], strides = [1, 1]} : vector<8x32xf32> to vector<8x8xf32>
    %cst_503 = arith.constant dense<0.000000e+00> : vector<8x8xf32>
    %1376 = tpu.matmul %1373, %1374, %cst_503 {dimension_numbers = #tpu.dot_dimension_numbers<[1], [1], [0], [0], [0, 0, 1, 0], [], []>} : vector<8x8xf32>, vector<8x8xf32>, vector<8x8xf32> -> vector<8x8xf32>
    %cst_504 = arith.constant 0.353553385 : f32
    %1377 = vector.broadcast %cst_504 : f32 to vector<8x8xf32>
    %1378 = arith.mulf %1376, %1377 : vector<8x8xf32>
    %cst_505 = arith.constant 0.000000e+00 : f32
    %1379 = vector.broadcast %cst_505 : f32 to vector<8x8xf32>
    %1380 = arith.cmpf ogt, %1309, %1379 : vector<8x8xf32>
    %cst_506 = arith.constant -1.000000e+30 : f32
    %1381 = vector.broadcast %cst_506 : f32 to vector<8x8xf32>
    %1382 = arith.select %1380, %1378, %1381 : vector<8x8xi1>, vector<8x8xf32>
    %cst_507 = arith.constant dense<0xFF800000> : vector<8xf32>
    %1383 = vector.multi_reduction <maximumf>, %1382, %cst_507 [1] : vector<8x8xf32> to vector<8xf32>
    %1384 = vector.shape_cast %1383 : vector<8xf32> to vector<8x1xf32>
    %1385 = vector.broadcast %1384 : vector<8x1xf32> to vector<8x8xf32>
    %1386 = arith.subf %1382, %1385 : vector<8x8xf32>
    %1387 = math.exp %1386 : vector<8x8xf32>
    %cst_508 = arith.constant dense<0.000000e+00> : vector<8xf32>
    %1388 = vector.multi_reduction <add>, %1387, %cst_508 [1] : vector<8x8xf32> to vector<8xf32>
    %1389 = vector.shape_cast %1388 : vector<8xf32> to vector<8x1xf32>
    %1390 = tpu.reciprocal %1389 {approx = true} : vector<8x1xf32> -> vector<8x1xf32>
    %1391 = vector.broadcast %1390 : vector<8x1xf32> to vector<8x8xf32>
    %1392 = arith.mulf %1387, %1391 : vector<8x8xf32>
    %cst_509 = arith.constant dense<0.000000e+00> : vector<8x8xf32>
    %1393 = tpu.matmul %1392, %1375, %cst_509 {dimension_numbers = #tpu.dot_dimension_numbers<[1], [0], [0], [1], [0, 0, 1, 1], [], []>} : vector<8x8xf32>, vector<8x8xf32>, vector<8x8xf32> -> vector<8x8xf32>
    %1394 = tpu.concatenate %1330, %1351, %1372, %1393 in 1 : vector<8x8xf32>, vector<8x8xf32>, vector<8x8xf32>, vector<8x8xf32> -> vector<8x32xf32>
    %1395 = tpu.concatenate %1304, %1394 in 0 : vector<8x32xf32>, vector<8x32xf32> -> vector<16x32xf32>
    %cst_510 = arith.constant dense<0.000000e+00> : vector<16x32xf32>
    %1396 = tpu.matmul %1395, %1214, %cst_510 {dimension_numbers = #tpu.dot_dimension_numbers<[1], [0], [0], [1], [0, 0, 1, 1], [], []>} : vector<16x32xf32>, vector<32x32xf32>, vector<16x32xf32> -> vector<16x32xf32>
    %c1_511 = arith.constant 1 : index
    %c0_512 = arith.constant 0 : index
    %c0_513 = arith.constant 0 : index
    %1397 = vector.load %arg19[%c1_511, %c0_512, %c0_513] : memref<2x2x32xf32, #tpu.memory_space<vmem>>, vector<1x2x32xf32>
    %1398 = vector.shape_cast %1397 : vector<1x2x32xf32> to vector<2x32xf32>
    %1399 = vector.extract_strided_slice %1398 {offsets = [0, 0], sizes = [1, 32], strides = [1, 1]} : vector<2x32xf32> to vector<1x32xf32>
    %1400 = vector.extract_strided_slice %1398 {offsets = [1, 0], sizes = [1, 32], strides = [1, 1]} : vector<2x32xf32> to vector<1x32xf32>
    %1401 = arith.addf %1204, %1396 : vector<16x32xf32>
    %cst_514 = arith.constant dense<0.000000e+00> : vector<16xf32>
    %1402 = vector.multi_reduction <add>, %1401, %cst_514 [1] : vector<16x32xf32> to vector<16xf32>
    %1403 = vector.shape_cast %1402 : vector<16xf32> to vector<16x1xf32>
    %cst_515 = arith.constant 3.200000e+01 : f32
    %1404 = vector.broadcast %cst_515 : f32 to vector<16x1xf32>
    %1405 = arith.divf %1403, %1404 : vector<16x1xf32>
    %1406 = vector.broadcast %1405 : vector<16x1xf32> to vector<16x32xf32>
    %1407 = arith.subf %1401, %1406 : vector<16x32xf32>
    %1408 = arith.mulf %1407, %1407 : vector<16x32xf32>
    %cst_516 = arith.constant dense<0.000000e+00> : vector<16xf32>
    %1409 = vector.multi_reduction <add>, %1408, %cst_516 [1] : vector<16x32xf32> to vector<16xf32>
    %1410 = vector.shape_cast %1409 : vector<16xf32> to vector<16x1xf32>
    %cst_517 = arith.constant 3.200000e+01 : f32
    %1411 = vector.broadcast %cst_517 : f32 to vector<16x1xf32>
    %1412 = arith.divf %1410, %1411 : vector<16x1xf32>
    %cst_518 = arith.constant 9.99999974E-6 : f32
    %1413 = vector.broadcast %cst_518 : f32 to vector<16x1xf32>
    %1414 = arith.addf %1412, %1413 : vector<16x1xf32>
    %1415 = math.rsqrt %1414 : vector<16x1xf32>
    %1416 = vector.broadcast %1415 : vector<16x1xf32> to vector<16x32xf32>
    %1417 = arith.mulf %1407, %1416 : vector<16x32xf32>
    %1418 = vector.broadcast %1399 : vector<1x32xf32> to vector<16x32xf32>
    %1419 = arith.mulf %1417, %1418 : vector<16x32xf32>
    %1420 = vector.broadcast %1400 : vector<1x32xf32> to vector<16x32xf32>
    %1421 = arith.addf %1419, %1420 : vector<16x32xf32>
    %c1_519 = arith.constant 1 : index
    %c0_520 = arith.constant 0 : index
    %c0_521 = arith.constant 0 : index
    %1422 = vector.load %arg20[%c1_519, %c0_520, %c0_521] : memref<2x32x64xf32, #tpu.memory_space<vmem>>, vector<1x32x64xf32>
    %1423 = vector.shape_cast %1422 : vector<1x32x64xf32> to vector<32x64xf32>
    %c1_522 = arith.constant 1 : index
    %c0_523 = arith.constant 0 : index
    %c0_524 = arith.constant 0 : index
    %1424 = vector.load %arg21[%c1_522, %c0_523, %c0_524] : memref<2x1x64xf32, #tpu.memory_space<vmem>>, vector<1x1x64xf32>
    %1425 = vector.shape_cast %1424 : vector<1x1x64xf32> to vector<1x64xf32>
    %c1_525 = arith.constant 1 : index
    %c0_526 = arith.constant 0 : index
    %c0_527 = arith.constant 0 : index
    %1426 = vector.load %arg22[%c1_525, %c0_526, %c0_527] : memref<2x64x32xf32, #tpu.memory_space<vmem>>, vector<1x64x32xf32>
    %1427 = vector.shape_cast %1426 : vector<1x64x32xf32> to vector<64x32xf32>
    %c1_528 = arith.constant 1 : index
    %c0_529 = arith.constant 0 : index
    %c0_530 = arith.constant 0 : index
    %1428 = vector.load %arg23[%c1_528, %c0_529, %c0_530] : memref<2x1x32xf32, #tpu.memory_space<vmem>>, vector<1x1x32xf32>
    %1429 = vector.shape_cast %1428 : vector<1x1x32xf32> to vector<1x32xf32>
    %cst_531 = arith.constant dense<0.000000e+00> : vector<16x64xf32>
    %1430 = tpu.matmul %1421, %1423, %cst_531 {dimension_numbers = #tpu.dot_dimension_numbers<[1], [0], [0], [1], [0, 0, 1, 1], [], []>} : vector<16x32xf32>, vector<32x64xf32>, vector<16x64xf32> -> vector<16x64xf32>
    %1431 = vector.broadcast %1425 : vector<1x64xf32> to vector<16x64xf32>
    %1432 = arith.addf %1430, %1431 : vector<16x64xf32>
    %cst_532 = arith.constant 0.000000e+00 : f32
    %1433 = vector.broadcast %cst_532 : f32 to vector<16x64xf32>
    %1434 = arith.maximumf %1432, %1433 : vector<16x64xf32>
    %cst_533 = arith.constant dense<0.000000e+00> : vector<16x32xf32>
    %1435 = tpu.matmul %1434, %1427, %cst_533 {dimension_numbers = #tpu.dot_dimension_numbers<[1], [0], [0], [1], [0, 0, 1, 1], [], []>} : vector<16x64xf32>, vector<64x32xf32>, vector<16x32xf32> -> vector<16x32xf32>
    %1436 = vector.broadcast %1429 : vector<1x32xf32> to vector<16x32xf32>
    %1437 = arith.addf %1435, %1436 : vector<16x32xf32>
    %c1_534 = arith.constant 1 : index
    %c0_535 = arith.constant 0 : index
    %c0_536 = arith.constant 0 : index
    %1438 = vector.load %arg24[%c1_534, %c0_535, %c0_536] : memref<2x2x32xf32, #tpu.memory_space<vmem>>, vector<1x2x32xf32>
    %1439 = vector.shape_cast %1438 : vector<1x2x32xf32> to vector<2x32xf32>
    %1440 = vector.extract_strided_slice %1439 {offsets = [0, 0], sizes = [1, 32], strides = [1, 1]} : vector<2x32xf32> to vector<1x32xf32>
    %1441 = vector.extract_strided_slice %1439 {offsets = [1, 0], sizes = [1, 32], strides = [1, 1]} : vector<2x32xf32> to vector<1x32xf32>
    %1442 = arith.addf %1421, %1437 : vector<16x32xf32>
    %cst_537 = arith.constant dense<0.000000e+00> : vector<16xf32>
    %1443 = vector.multi_reduction <add>, %1442, %cst_537 [1] : vector<16x32xf32> to vector<16xf32>
    %1444 = vector.shape_cast %1443 : vector<16xf32> to vector<16x1xf32>
    %cst_538 = arith.constant 3.200000e+01 : f32
    %1445 = vector.broadcast %cst_538 : f32 to vector<16x1xf32>
    %1446 = arith.divf %1444, %1445 : vector<16x1xf32>
    %1447 = vector.broadcast %1446 : vector<16x1xf32> to vector<16x32xf32>
    %1448 = arith.subf %1442, %1447 : vector<16x32xf32>
    %1449 = arith.mulf %1448, %1448 : vector<16x32xf32>
    %cst_539 = arith.constant dense<0.000000e+00> : vector<16xf32>
    %1450 = vector.multi_reduction <add>, %1449, %cst_539 [1] : vector<16x32xf32> to vector<16xf32>
    %1451 = vector.shape_cast %1450 : vector<16xf32> to vector<16x1xf32>
    %cst_540 = arith.constant 3.200000e+01 : f32
    %1452 = vector.broadcast %cst_540 : f32 to vector<16x1xf32>
    %1453 = arith.divf %1451, %1452 : vector<16x1xf32>
    %cst_541 = arith.constant 9.99999974E-6 : f32
    %1454 = vector.broadcast %cst_541 : f32 to vector<16x1xf32>
    %1455 = arith.addf %1453, %1454 : vector<16x1xf32>
    %1456 = math.rsqrt %1455 : vector<16x1xf32>
    %1457 = vector.broadcast %1456 : vector<16x1xf32> to vector<16x32xf32>
    %1458 = arith.mulf %1448, %1457 : vector<16x32xf32>
    %1459 = vector.broadcast %1440 : vector<1x32xf32> to vector<16x32xf32>
    %1460 = arith.mulf %1458, %1459 : vector<16x32xf32>
    %1461 = vector.broadcast %1441 : vector<1x32xf32> to vector<16x32xf32>
    %1462 = arith.addf %1460, %1461 : vector<16x32xf32>
    %c0_542 = arith.constant 0 : index
    %c0_543 = arith.constant 0 : index
    %1463 = vector.load %arg25[%c0_542, %c0_543] : memref<32x32xf32, #tpu.memory_space<vmem>>, vector<32x32xf32>
    %cst_544 = arith.constant dense<0.000000e+00> : vector<16x32xf32>
    %1464 = tpu.matmul %1462, %1463, %cst_544 {dimension_numbers = #tpu.dot_dimension_numbers<[1], [0], [0], [1], [0, 0, 1, 1], [], []>} : vector<16x32xf32>, vector<32x32xf32>, vector<16x32xf32> -> vector<16x32xf32>
    %c0_545 = arith.constant 0 : index
    %c0_546 = arith.constant 0 : index
    %1465 = vector.load %arg26[%c0_545, %c0_546] : memref<16x32xf32, #tpu.memory_space<vmem>>, vector<16x32xf32>
    tpu.vector_store %arg26[%c0_545, %c0_546], %1464 {strides = array<i32>} : memref<16x32xf32, #tpu.memory_space<vmem>>, vector<16x32xf32>,
    return
  }
}

</mosaic_0001>

<bundles_post_ra>
// kernel: transformer_forward.1
= control target key start
LH: loop header
LB: loop body
LE: loop exit
PB: predicated region body
PF: predicated region fallthrough
CT: control target
= control target key end

     0   :  { %s7007_s0 = inlined_call_operand.vmem [shape: f32[16,32], index: 0, kind: input, shape index: {}]   ;;  %s7008_s1 = inlined_call_operand.vmem [shape: f32[16,32], index: 1, kind: input, shape index: {}]   ;;  %s7009_s2 = inlined_call_operand.vmem [shape: f32[2,8,8], index: 2, kind: input, shape index: {}]   ;;  %s7010_s3 = inlined_call_operand.vmem [shape: f32[2,8,8], index: 3, kind: input, shape index: {}]   ;;  %s7011_s4 = inlined_call_operand.vmem [shape: f32[2,8,8], index: 4, kind: input, shape index: {}]   ;;  %s7012_s5 = inlined_call_operand.vmem [shape: f32[2,32,96], index: 5, kind: input, shape index: {}]   ;;  %s7013_s6 = inlined_call_operand.vmem [shape: f32[2,32,32], index: 6, kind: input, shape index: {}]   ;;  %s7014_s7 = inlined_call_operand.vmem [shape: f32[2,2,32], index: 7, kind: input, shape index: {}]   ;;  %s7015_s8 = inlined_call_operand.vmem [shape: f32[2,32,64], index: 8, kind: input, shape index: {}]   ;;  %s7016_s9 = inlined_call_operand.vmem [shape: f32[2,1,64], index: 9, kind: input, shape index: {}]   ;;  %s7017_s10 = inlined_call_operand.vmem [shape: f32[2,64,32], index: 10, kind: input, shape index: {}]   ;;  %s7018_s11 = inlined_call_operand.vmem [shape: f32[2,1,32], index: 11, kind: input, shape index: {}]   ;;  %s7019_s12 = inlined_call_operand.vmem [shape: f32[2,2,32], index: 12, kind: input, shape index: {}]   ;;  %s7020_s13 = inlined_call_operand.vmem [shape: f32[2,32,96], index: 13, kind: input, shape index: {}]   ;;  %s7021_s14 = inlined_call_operand.vmem [shape: f32[2,32,32], index: 14, kind: input, shape index: {}]   ;;  %s7022_s15 = inlined_call_operand.vmem [shape: f32[2,2,32], index: 15, kind: input, shape index: {}]   ;;  %s7023_s16 = inlined_call_operand.vmem [shape: f32[2,32,32], index: 16, kind: input, shape index: {}]   ;;  %s7024_s17 = inlined_call_operand.vmem [shape: f32[2,32,64], index: 17, kind: input, shape index: {}]   ;;  %s7025_s18 = inlined_call_operand.vmem [shape: f32[2,32,32], index: 18, kind: input, shape index: {}]   ;;  %s7026_s19 = inlined_call_operand.vmem [shape: f32[2,2,32], index: 19, kind: input, shape index: {}]   ;;  %s7027_s20 = inlined_call_operand.vmem [shape: f32[2,32,64], index: 20, kind: input, shape index: {}]   ;;  %s7028_s21 = inlined_call_operand.vmem [shape: f32[2,1,64], index: 21, kind: input, shape index: {}]   ;;  %s7029_s22 = inlined_call_operand.vmem [shape: f32[2,64,32], index: 22, kind: input, shape index: {}]   ;;  %s7030_s23 = inlined_call_operand.vmem [shape: f32[2,1,32], index: 23, kind: input, shape index: {}]   ;;  %s7031_s24 = inlined_call_operand.vmem [shape: f32[2,2,32], index: 24, kind: input, shape index: {}]   ;;  %s7032_s25 = inlined_call_operand.vmem [shape: f32[32,32], index: 25, kind: input, shape index: {}]   ;;  %s7033_s26 = inlined_call_operand.hbm [shape: f32[16,32], index: 26, kind: output, shape index: {}]  }
   0x1   :  { %7086 = sst [smem:[#allocation5_spill]] %s7007_s0 }
   0x2   :  { %7087 = sst [smem:[#allocation6_spill]] %s7008_s1 }
   0x3   :  { %7088 = sst [smem:[#allocation7_spill]] %s7009_s2 }
   0x4   :  { %7089 = sst [smem:[#allocation8_spill]] %s7010_s3 }
   0x5   :  { %7090 = sst [smem:[#allocation9_spill]] %s7011_s4 }
   0x6   :  { %7091 = sst [smem:[#allocation10_spill]] %s7012_s5 }
   0x7   :  { %7092 = sst [smem:[#allocation11_spill]] %s7013_s6 }
   0x8   :  { %7093 = sst [smem:[#allocation12_spill]] %s7014_s7 }
   0x9   :  { %7094 = sst [smem:[#allocation13_spill]] %s7015_s8 }
   0xa   :  { %7095 = sst [smem:[#allocation14_spill]] %s7016_s9 }
   0xb   :  { %7096 = sst [smem:[#allocation15_spill]] %s7017_s10 }
   0xc   :  { %7097 = sst [smem:[#allocation16_spill]] %s7019_s12 }
   0xd   :  { %7098 = sst [smem:[#allocation17_spill]] %s7020_s13 }
   0xe   :  { %7099 = sst [smem:[#allocation18_spill]] %s7022_s15 }
   0xf   :  { %7100 = sst [smem:[#allocation19_spill]] %s7023_s16 }
  0x10   :  { %7101 = sst [smem:[#allocation20_spill]] %s7025_s18 }
  0x11   :  { %7102 = sst [smem:[#allocation21_spill]] %s7026_s19 }
  0x12   :  { %7103 = sst [smem:[#allocation22_spill]] %s7027_s20 }
  0x13   :  { %7104 = sst [smem:[#allocation23_spill]] %s7028_s21 }
  0x14   :  { %7105 = sst [smem:[#allocation24_spill]] %s7029_s22 }
  0x15   :  { %7106 = sst [smem:[#allocation25_spill]] %s7030_s23 }
  0x16   :  { %7107 = sst [smem:[#allocation26_spill]] %s7031_s24 }
  0x17   :  { %7108 = sst [smem:[#allocation27_spill]] %s7032_s25 }
  0x18   :  { %7109 = sst [smem:[#allocation28_spill]] %s7033_s26 }
  0x19   :  { %s7110_s7 = sld [smem:[#allocation10_spill]] }
  0x1f   :  { %v91_v0 = vld [vmem:[%s7110_s7 + $0x18] sm:$0xff]  ;;  %v90_v1 = vld [vmem:[%s7110_s7 + $0x10] sm:$0xff]  ;;  %v89_v2 = vld [vmem:[%s7110_s7 + $0x8] sm:$0xff] }
  0x20   :  { %115 = vmatpush.msra.mxu0 %v91_v0  ;;  %v88_v3 = vld [vmem:[%s7110_s7] sm:$0xff] }
  0x22   :  { %116 = vmatpush.msra.mxu0 %v90_v1 }
  0x23   :  { %31 = vsyncpa [#allocation3], 0  ;;  %s7111_s5 = sld [smem:[#allocation5_spill]]  ;;  %vm96_vm0 = vcmask 261120   ;;  %s7059_s10 = smov 64   ;;  %vm129_vm1 = vcmask 64512  }
  0x24   :  { %117 = vmatpush.msra.mxu0 %v89_v2  ;;  %s7051_s6 = smov 120   ;;  %s7057_s1 = smov 96   ;;  %vm408_vm4 = vcmask 130048   ;;  %vm410_vm5 = vcmask 195584   ;;  %vm835_vm10 = vcmask 523264  }
  0x25   :  { %s7071_s27 = smov 56   ;;  %s7053_s3 = smov 88  }
  0x26   :  { %118 = vmatpush.msra.mxu0 %v88_v3  ;;  %s7112_s4 = sld [smem:[#allocation7_spill]]  ;;  %s7055_s29 = smov 72  }
  0x27   :  { %s7049_s0 = smov 80   ;;  %s7045_s9 = smov 112  }
  0x28   :  { %s7047_s30 = smov 104   ;;  %s7069_s8 = smov 40  }
  0x29   :  { %v5579_v4 = vld [vmem:[%s7111_s5] sm:$0xff]  ;;  %v5626_v32 = vld [vmem:[%s7111_s5 + $0x8] sm:$0xff]  ;;  %s7065_s5 = smov 48   ;;  %s7063_s2 = smov 8  }
  0x2a   :  { %4871 = vmatmul.msk.f32.vlgmr.msra.gmra.mxu0 %vm96_vm0, %v5579_v4  ;;  %s7067_s28 = smov 16   ;;  %s7120_s26 = smov 96  }
  0x2b   :  { %s7129_s25 = smov 48   ;;  %s7130_s24 = smov 8  }
  0x2c   :  { %v5603_v11 = vld [vmem:[%s7112_s4] sm:$0xff]  ;;  %s7132_s19 = smov 16   ;;  %s7135_s18 = sld [smem:[#allocation19_spill]] }
  0x2d   :  { %vm155_vm2 = vcmp.gt.f32.partialorder %v5603_v11, 0.0  ;;  %s7139_s21 = sld [smem:[#allocation22_spill]] }
  0x2e   :  { %s7141_s23 = sld [smem:[#allocation24_spill]] }
  0x2f   :  { %s7145_s15 = sld [smem:[#allocation26_spill]] }
  0x30   :  { %s7146_s22 = sld [smem:[#allocation21_spill]] }
  0x32   :  { %4872 = vmatmul.msk.f32.gmra.mxu0 %vm96_vm0, %v5626_v32 }
  0xa7   :  { %v5583_v5 = vpop.f32.mrf.mxu0 }
  0xa8   :  { %168 = vrot.lane.b32.xlu2 %v5583_v5, %s7059_s10  ;;  %194 = vrot.lane.b32.xlu1 %v5583_v5, %s7051_s6 }
  0xa9   :  { %127 = vrot.lane.b32.xlu0 %v5583_v5, %s7057_s1 }
  0xaf   :  { %v5645_v51 = vpop.f32.mrf.mxu0 }
  0xb0   :  { %235 = vrot.lane.b32.xlu2 %v5583_v5, %s7071_s27 }
  0xb1   :  { %196 = vrot.lane.b32.xlu0 %v5583_v5, %s7053_s3 }
 0x102   :  { %v169_v6 = vpop.permute.xlu2 %168 }
 0x103   :  { %189 = vmatpush.msra.mxu2 %v169_v6 }
 0x10a   :  { %v236_v7 = vpop.permute.xlu2 %235 }
 0x10b   :  { %256 = vmatpush.msrb.mxu2 %v236_v7 }
 0x11a   :  { %v195_v10 = vpop.permute.xlu1 %194 }
 0x11b   :  { %v128_v8 = vpop.permute.xlu0 %127 }
 0x11c   :  { %4873 = vmatpush.xpose.msk.msra.mxu1 %vm129_vm1, %v128_v8 }
 0x11f   :  { %4874 = vmatmul.msk.f32.vlgmr.msra.gmra.mxu1 %vm129_vm1, %v5583_v5 }
 0x123   :  { %v197_v9 = vpop.permute.xlu0 %196 }
 0x124   :  { %4876 = vmatpush.xpose.msk.msra.mxu3 %vm129_vm1, %v197_v9 }
 0x127   :  { %4877 = vmatmul.msk.f32.vlgmr.msra.gmra.mxu3 %vm129_vm1, %v195_v10 }
 0x19c   :  { %v151_v12 = vpop.f32.mrf.mxu1 }
 0x19d   :  { %v154_v13 = vmul.f32 0.35355338, %v151_v12 }
 0x19f   :  { %v156_v14 = vsel %vm155_vm2, %v154_v13, -1e+30 }
 0x1a0   :  { %v157_v15 = vsel %vm129_vm1, %v156_v14, -inf }
 0x1a1   :  { %158 = vmax.xlane.f32.xlu1 %v157_v15 }
 0x1aa   :  { %v219_v16 = vpop.f32.mrf.mxu3 }
 0x1ab   :  { %v222_v17 = vmul.f32 0.35355338, %v219_v16  ;;  %v5681_v16 = vld [vmem:[%s7112_s4 + $0x8] sm:$0xff]  ;;  %s7124_s4 = smov 80  }
 0x1ac   :  { %vm440_vm3 = vcmp.gt.f32.partialorder %v5681_v16, 0.0 }
 0x1ad   :  { %v223_v18 = vsel %vm155_vm2, %v222_v17, -1e+30 }
 0x1ae   :  { %v224_v19 = vsel %vm129_vm1, %v223_v18, -inf }
 0x1af   :  { %225 = vmax.xlane.f32.xlu2 %v224_v19 }
 0x1ba   :  { %330 = vrot.lane.b32.xlu1 %v5583_v5, %s7055_s29 }
 0x1c7   :  { %263 = vrot.lane.b32.xlu2 %v5583_v5, %s7049_s0 }
 0x214   :  { %v159_v20 = vpop.xlane.xlu1 %158 }
 0x215   :  { %v160_v21 = vsub.f32 %v156_v14, %v159_v20 }
 0x217   :  { %v161_v22 = vmul.f32 1.442695, %v160_v21 }
 0x219   :  { %5152 = vpow2.f32 %v161_v22 }
 0x21f   :  { %v5153_v23 = vpop.eup %5152 }
 0x220   :  { %v163_v24 = vsel %vm129_vm1, %v5153_v23, 0.0 }
 0x221   :  { %164 = vadd.xlane.f32.xlu2 %v163_v24 }
 0x222   :  { %v226_v25 = vpop.xlane.xlu2 %225 }
 0x223   :  { %v227_v26 = vsub.f32 %v223_v18, %v226_v25 }
 0x225   :  { %v228_v27 = vmul.f32 1.442695, %v227_v26 }
 0x227   :  { %5154 = vpow2.f32 %v228_v27 }
 0x22a   :  { %v264_v28 = vpop.permute.xlu2 %263 }
 0x22b   :  { %4879 = vmatpush.xpose.msk.msrb.mxu1 %vm129_vm1, %v264_v28 }
 0x22c   :  { %v331_v36 = vpop.permute.xlu1 %330 }
 0x22d   :  { %v5155_v29 = vpop.eup %5154 }
 0x22e   :  { %v230_v30 = vsel %vm129_vm1, %v5155_v29, 0.0 }
 0x22f   :  { %231 = vadd.xlane.f32.xlu0 %v230_v30 }
 0x239   :  { %261 = vrot.lane.b32.xlu2 %v5583_v5, %s7045_s9 }
 0x243   :  { %328 = vrot.lane.b32.xlu0 %v5583_v5, %s7047_s30 }
 0x294   :  { %v165_v31 = vpop.xlane.xlu2 %164 }
 0x295   :  { %5156 = vrcp.f32 %v165_v31 }
 0x29b   :  { %v5157_v33 = vpop.eup %5156 }
 0x29c   :  { %v262_v34 = vpop.permute.xlu2 %261  ;;  %v167_v35 = vmul.f32 %v5157_v33, %v5153_v23 }
 0x29d   :  { %4880 = vmatmul.msk.f32.vlgmr.msrb.gmra.mxu1 %vm129_vm1, %v262_v34 }
 0x29e   :  { %4875 = vmatmul.msk.f32.vlgmr.msra.gmra.mxu2 %vm129_vm1, %v167_v35 }
 0x29f   :  { %4882 = vmatpush.xpose.msk.msra.mxu2 %vm129_vm1, %v331_v36 }
 0x2a2   :  { %v232_v37 = vpop.xlane.xlu0 %231 }
 0x2a3   :  { %5158 = vrcp.f32 %v232_v37 }
 0x2a9   :  { %v5159_v38 = vpop.eup %5158 }
 0x2aa   :  { %v234_v39 = vmul.f32 %v5159_v38, %v5155_v29 }
 0x2ac   :  { %4878 = vmatmul.msk.f32.vlgmr.msrb.gmra.mxu2 %vm129_vm1, %v234_v39 }
 0x2b5   :  { %v329_v40 = vpop.permute.xlu0 %328 }
 0x2b6   :  { %4883 = vmatmul.msk.f32.vlgmr.msra.gmra.mxu2 %vm129_vm1, %v329_v40 }
 0x31a   :  { %v286_v41 = vpop.f32.mrf.mxu1 }
 0x31b   :  { %v289_v42 = vmul.f32 0.35355338, %v286_v41 }
 0x31d   :  { %v290_v43 = vsel %vm155_vm2, %v289_v42, -1e+30 }
 0x31e   :  { %v291_v44 = vsel %vm129_vm1, %v290_v43, -inf }
 0x31f   :  { %292 = vmax.xlane.f32.xlu2 %v291_v44 }
 0x321   :  { %v5638_v45 = vpop.f32.mrf.mxu2 }
 0x32f   :  { %v258_v46 = vpop.f32.mrf.mxu2 }
 0x337   :  { %302 = vrot.lane.b32.xlu2 %v5583_v5, %s7065_s5 }
 0x339   :  { %v353_v47 = vpop.f32.mrf.mxu2 }
 0x33a   :  { %v356_v48 = vmul.f32 0.35355338, %v353_v47 }
 0x33c   :  { %v357_v49 = vsel %vm155_vm2, %v356_v48, -1e+30 }
 0x33d   :  { %v358_v50 = vsel %vm129_vm1, %v357_v49, -inf }
 0x33e   :  { %359 = vmax.xlane.f32.xlu1 %v358_v50 }
 0x33f   :  { %481 = vrot.lane.b32.xlu2 %v5645_v51, %s7053_s3  ;;  %s7115_s3 = sld [smem:[#allocation13_spill]] }
 0x357   :  { %413 = vrot.lane.b32.xlu1 %v5645_v51, %s7057_s1  ;;  %s7126_s1 = smov 112  }
 0x35f   :  { %548 = vrot.lane.b32.xlu1 %v5645_v51, %s7049_s0  ;;  %s7061_s0 = smov 24  }
 0x367   :  { %613 = vrot.lane.b32.xlu1 %v5645_v51, %s7047_s30  ;;  %s7113_s30 = sld [smem:[#allocation11_spill]] }
 0x36d   :  { %v95_v35 = vld [vmem:[%s7113_s30 + $0x18] sm:$0xff]  ;;  %v94_v36 = vld [vmem:[%s7113_s30 + $0x10] sm:$0xff]  ;;  %v93_v37 = vld [vmem:[%s7113_s30 + $0x8] sm:$0xff] }
 0x36e   :  { %v92_v38 = vld [vmem:[%s7113_s30] sm:$0xff] }
 0x392   :  { %v293_v52 = vpop.xlane.xlu2 %292 }
 0x393   :  { %v294_v53 = vsub.f32 %v290_v43, %v293_v52 }
 0x395   :  { %v295_v54 = vmul.f32 1.442695, %v294_v53 }
 0x397   :  { %5160 = vpow2.f32 %v295_v54 }
 0x39a   :  { %v303_v55 = vpop.permute.xlu2 %302 }
 0x39b   :  { %323 = vmatpush.msrb.mxu3 %v303_v55 }
 0x39d   :  { %v5161_v56 = vpop.eup %5160 }
 0x39e   :  { %v297_v57 = vsel %vm129_vm1, %v5161_v56, 0.0 }
 0x39f   :  { %298 = vadd.xlane.f32.xlu0 %v297_v57 }
 0x3a2   :  { %v482_v63 = vpop.permute.xlu2 %481 }
 0x3a3   :  { %4888 = vmatpush.xpose.msk.msrb.mxu2 %vm129_vm1, %v482_v63 }
 0x3b1   :  { %v360_v58 = vpop.xlane.xlu1 %359 }
 0x3b2   :  { %v361_v59 = vsub.f32 %v357_v49, %v360_v58 }
 0x3b3   :  { %369 = vrot.lane.b32.xlu0 %v5583_v5, %s7069_s8 }
 0x3b4   :  { %v362_v60 = vmul.f32 1.442695, %v361_v59 }
 0x3b6   :  { %5162 = vpow2.f32 %v362_v60 }
 0x3bb   :  { %479 = vrot.lane.b32.xlu0 %v5645_v51, %s7051_s6  ;;  %s7118_s6 = sld [smem:[#allocation14_spill]] }
 0x3bc   :  { %v5163_v61 = vpop.eup %5162 }
 0x3bd   :  { %v364_v62 = vsel %vm129_vm1, %v5163_v61, 0.0 }
 0x3be   :  { %365 = vadd.xlane.f32.xlu2 %v364_v62 }
 0x3c3   :  { %546 = vrot.lane.b32.xlu0 %v5645_v51, %s7045_s9  ;;  %s7125_s9 = smov 104  }
 0x3c9   :  { %v414_v0 = vpop.permute.xlu1 %413 }
 0x3ca   :  { %4885 = vmatpush.xpose.msk.msra.mxu3 %vm129_vm1, %v414_v0 }
 0x3d1   :  { %v549_v5 = vpop.permute.xlu1 %548 }
 0x3d6   :  { %615 = vrot.lane.b32.xlu2 %v5645_v51, %s7055_s29  ;;  %s7116_s29 = sld [smem:[#allocation12_spill]] }
 0x3d9   :  { %v614_v14 = vpop.permute.xlu1 %613 }
 0x3de   :  { %396 = vrot.lane.b32.xlu2 %v258_v46, %s7063_s2 }
 0x412   :  { %v299_v1 = vpop.xlane.xlu0 %298 }
 0x413   :  { %5164 = vrcp.f32 %v299_v1 }
 0x419   :  { %v5165_v2 = vpop.eup %5164 }
 0x41a   :  { %v301_v3 = vmul.f32 %v5165_v2, %v5161_v56 }
 0x41c   :  { %4881 = vmatmul.msk.f32.vlgmr.msrb.gmra.mxu3 %vm129_vm1, %v301_v3 }
 0x41d   :  { %4891 = vmatpush.xpose.msk.msrb.mxu3 %vm129_vm1, %v549_v5 }
 0x424   :  { %4886 = vmatmul.msk.f32.vlgmr.msra.gmra.mxu3 %vm129_vm1, %v5645_v51 }
 0x425   :  { %v370_v6 = vpop.permute.xlu0 %369  ;;  %713 = vmatpush.msra.mxu3 %v95_v35 }
 0x426   :  { %390 = vmatpush.msra.mxu1 %v370_v6 }
 0x427   :  { %714 = vmatpush.msra.mxu3 %v94_v36 }
 0x429   :  { %715 = vmatpush.msra.mxu3 %v93_v37 }
 0x42b   :  { %716 = vmatpush.msra.mxu3 %v92_v38 }
 0x42d   :  { %v480_v7 = vpop.permute.xlu0 %479 }
 0x42e   :  { %4889 = vmatmul.msk.f32.vlgmr.msrb.gmra.mxu2 %vm129_vm1, %v480_v7 }
 0x431   :  { %v366_v8 = vpop.xlane.xlu2 %365 }
 0x432   :  { %5166 = vrcp.f32 %v366_v8 }
 0x435   :  { %v547_v9 = vpop.permute.xlu0 %546 }
 0x436   :  { %4892 = vmatmul.msk.f32.vlgmr.msrb.gmra.mxu3 %vm129_vm1, %v547_v9 }
 0x438   :  { %v5167_v10 = vpop.eup %5166 }
 0x439   :  { %v368_v12 = vmul.f32 %v5167_v10, %v5163_v61  ;;  %v616_v13 = vpop.permute.xlu2 %615 }
 0x43a   :  { %4894 = vmatpush.xpose.msk.msra.mxu2 %vm129_vm1, %v616_v13 }
 0x43b   :  { %4884 = vmatmul.msk.f32.vlgmr.msra.gmra.mxu1 %vm129_vm1, %v368_v12 }
 0x43d   :  { %4895 = vmatmul.msk.f32.vlgmr.msra.gmra.mxu2 %vm129_vm1, %v614_v14 }
 0x441   :  { %v397_v39 = vpop.permute.xlu2 %396 }
 0x442   :  { %v407_v46 = vsel %vm129_vm1, %v5638_v45, %v397_v39  ;;  %v787_v39 = vld [vmem:[%s7115_s3 + $0x18] sm:$0xff] }
 0x49f   :  { %v325_v15 = vpop.f32.mrf.mxu3 }
 0x4a0   :  { %400 = vrot.lane.b32.xlu0 %v325_v15, %s7067_s28 }
 0x4a7   :  { %v436_v17 = vpop.f32.mrf.mxu3 }
 0x4a8   :  { %v439_v18 = vmul.f32 0.35355338, %v436_v17 }
 0x4aa   :  { %v441_v19 = vsel %vm440_vm3, %v439_v18, -1e+30 }
 0x4ab   :  { %v442_v20 = vsel %vm129_vm1, %v441_v19, -inf }
 0x4ac   :  { %443 = vmax.xlane.f32.xlu2 %v442_v20 }
 0x4b1   :  { %v504_v21 = vpop.f32.mrf.mxu2 }
 0x4b2   :  { %v507_v25 = vmul.f32 0.35355338, %v504_v21 }
 0x4b4   :  { %v508_v28 = vsel %vm440_vm3, %v507_v25, -1e+30 }
 0x4b5   :  { %v509_v29 = vsel %vm129_vm1, %v508_v28, -inf }
 0x4b8   :  { %v392_v22 = vpop.f32.mrf.mxu1 }
 0x4b9   :  { %404 = vrot.lane.b32.xlu1 %v392_v22, %s7061_s0  ;;  %v571_v30 = vpop.f32.mrf.mxu3  ;;  %v5426_v22 = vmov 32.0   ;;  %s7117_s0 = sld [smem:[#allocation15_spill]] }
 0x4ba   :  { %v574_v31 = vmul.f32 0.35355338, %v571_v30 }
 0x4bc   :  { %v575_v33 = vsel %vm440_vm3, %v574_v31, -1e+30 }
 0x4bd   :  { %v576_v34 = vsel %vm129_vm1, %v575_v33, -inf }
 0x4c0   :  { %v638_v23 = vpop.f32.mrf.mxu2 }
 0x4c1   :  { %v641_v24 = vmul.f32 0.35355338, %v638_v23 }
 0x4c3   :  { %v642_v26 = vsel %vm440_vm3, %v641_v24, -1e+30 }
 0x4c4   :  { %v643_v27 = vsel %vm129_vm1, %v642_v26, -inf }
 0x4c5   :  { %644 = vmax.xlane.f32.xlu2 %v643_v27 }
 0x4ca   :  { %510 = vmax.xlane.f32.xlu0 %v509_v29 }
 0x4dd   :  { %453 = vrot.lane.b32.xlu2 %v5645_v51, %s7059_s10  ;;  %s7114_s10 = smov 24  }
 0x4e3   :  { %577 = vmax.xlane.f32.xlu1 %v576_v34 }
 0x4e5   :  { %654 = vrot.lane.b32.xlu2 %v5645_v51, %s7069_s8  ;;  %s7127_s8 = smov 56  }
 0x512   :  { %v401_v43 = vpop.permute.xlu0 %400 }
 0x513   :  { %v409_v47 = vsel %vm408_vm4, %v407_v46, %v401_v43 }
 0x51f   :  { %v444_v40 = vpop.xlane.xlu2 %443 }
 0x520   :  { %v445_v41 = vsub.f32 %v441_v19, %v444_v40  ;;  %v786_v40 = vld [vmem:[%s7115_s3 + $0x10] sm:$0xff] }
 0x522   :  { %v446_v42 = vmul.f32 1.442695, %v445_v41  ;;  %v785_v41 = vld [vmem:[%s7115_s3 + $0x8] sm:$0xff] }
 0x524   :  { %5168 = vpow2.f32 %v446_v42  ;;  %v784_v42 = vld [vmem:[%s7115_s3] sm:$0xff] }
 0x52a   :  { %v5169_v44 = vpop.eup %5168 }
 0x52b   :  { %v405_v48 = vpop.permute.xlu1 %404  ;;  %v448_v49 = vsel %vm129_vm1, %v5169_v44, 0.0 }
 0x52c   :  { %v411_v50 = vsel %vm410_vm5, %v409_v47, %v405_v48  ;;  %449 = vadd.xlane.f32.xlu0 %v448_v49 }
 0x52d   :  { %4897 = vmatmul.msk.f32.vlgmr.msra.gmra.mxu3 %vm96_vm0, %v411_v50 }
 0x538   :  { %v645_v52 = vpop.xlane.xlu2 %644 }
 0x539   :  { %v646_v55 = vsub.f32 %v642_v26, %v645_v52  ;;  %v5755_v52 = vld [vmem:[%s7116_s29] sm:$0x3] }
 0x53b   :  { %v647_v58 = vmul.f32 1.442695, %v646_v55  ;;  %v778_v55 = vperm.slane %v5755_v52, 0 }
 0x53d   :  { %v511_v53 = vpop.xlane.xlu0 %510 }
 0x53e   :  { %v512_v54 = vsub.f32 %v508_v28, %v511_v53 }
 0x540   :  { %v513_v56 = vmul.f32 1.442695, %v512_v54  ;;  %v454_v57 = vpop.permute.xlu2 %453 }
 0x541   :  { %474 = vmatpush.msrb.mxu1 %v454_v57 }
 0x542   :  { %5170 = vpow2.f32 %v513_v56 }
 0x543   :  { %5172 = vpow2.f32 %v647_v58  ;;  %v781_v58 = vperm.slane %v5755_v52, 1  ;;  %v4903_v52 = vld [vmem:[%s7110_s7 + $0x20] sm:$0xff] }
 0x548   :  { %v5171_v45 = vpop.eup %5170 }
 0x549   :  { %v515_v59 = vsel %vm129_vm1, %v5171_v45, 0.0  ;;  %v5173_v60 = vpop.eup %5172 }
 0x54a   :  { %516 = vadd.xlane.f32.xlu1 %v515_v59  ;;  %v649_v61 = vsel %vm129_vm1, %v5173_v60, 0.0 }
 0x552   :  { %650 = vadd.xlane.f32.xlu1 %v649_v61  ;;  %v795_v61 = vld [vmem:[%s7117_s0 + $0x30] sm:$0xff] }
 0x556   :  { %v578_v62 = vpop.xlane.xlu1 %577 }
 0x557   :  { %v579_v63 = vsub.f32 %v575_v33, %v578_v62  ;;  %v794_v62 = vld [vmem:[%s7117_s0 + $0x28] sm:$0xff] }
 0x559   :  { %v580_v0 = vmul.f32 1.442695, %v579_v63  ;;  %v793_v63 = vld [vmem:[%s7117_s0 + $0x20] sm:$0xff] }
 0x55b   :  { %5174 = vpow2.f32 %v580_v0  ;;  %v792_v0 = vld [vmem:[%s7117_s0 + $0x18] sm:$0xff] }
 0x561   :  { %v5175_v1 = vpop.eup %5174 }
 0x562   :  { %v582_v2 = vsel %vm129_vm1, %v5175_v1, 0.0 }
 0x563   :  { %583 = vadd.xlane.f32.xlu0 %v582_v2 }
 0x56b   :  { %587 = vrot.lane.b32.xlu1 %v5645_v51, %s7065_s5  ;;  %s7122_s5 = smov 88  }
 0x577   :  { %520 = vrot.lane.b32.xlu0 %v5645_v51, %s7071_s27  ;;  %s7121_s27 = smov 72  }
 0x59f   :  { %v450_v3 = vpop.xlane.xlu0 %449 }
 0x5a0   :  { %5176 = vrcp.f32 %v450_v3 }
 0x5a6   :  { %v5177_v5 = vpop.eup %5176 }
 0x5a7   :  { %v452_v6 = vmul.f32 %v5177_v5, %v5169_v44 }
 0x5a9   :  { %4887 = vmatmul.msk.f32.vlgmr.msrb.gmra.mxu1 %vm129_vm1, %v452_v6 }
 0x5b0   :  { %v718_v7 = vpop.f32.mrf.mxu3 }
 0x5b1   :  { %v725_v8 = vadd.f32 %v718_v7, %v5579_v4  ;;  %v655_v4 = vpop.permute.xlu2 %654 }
 0x5b3   :  { %v727_v9 = vsel %vm96_vm0, %v725_v8, 0.0 }
 0x5b4   :  { %728 = vadd.xlane.f32.xlu0 %v727_v9  ;;  %v790_v9 = vld [vmem:[%s7117_s0 + $0x8] sm:$0xff] }
 0x5bd   :  { %v517_v10 = vpop.xlane.xlu1 %516 }
 0x5c5   :  { %v651_v12 = vpop.xlane.xlu1 %650 }
 0x5d6   :  { %v584_v13 = vpop.xlane.xlu0 %583 }
 0x5d7   :  { %5178 = vrcp.f32 %v584_v13 }
 0x5d8   :  { %5180 = vrcp.f32 %v517_v10  ;;  %v789_v10 = vld [vmem:[%s7117_s0] sm:$0xff] }
 0x5d9   :  { %5182 = vrcp.f32 %v651_v12  ;;  %v5795_v12 = vld [vmem:[%s7118_s6] ss:$0 sm:$0xff] }
 0x5da   :  { %5184 = vrcp.f32 %v5426_v22 }
 0x5dd   :  { %v5179_v14 = vpop.eup %5178  ;;  %v588_v15 = vpop.permute.xlu1 %587 }
 0x5de   :  { %608 = vmatpush.msrb.mxu0 %v588_v15  ;;  %v586_v51 = vmul.f32 %v5179_v14, %v5175_v1  ;;  %v5181_v17 = vpop.eup %5180 }
 0x5df   :  { %v519_v18 = vmul.f32 %v5181_v17, %v5171_v45  ;;  %v5183_v20 = vpop.eup %5182 }
 0x5e0   :  { %4893 = vmatmul.msk.f32.vlgmr.msrb.gmra.mxu0 %vm129_vm1, %v586_v51  ;;  %v653_v21 = vmul.f32 %v5183_v20, %v5173_v60  ;;  %v5185_v23 = vpop.eup %5184  ;;  %v796_v60 = vld [vmem:[%s7117_s0 + $0x38] sm:$0xff] }
 0x5e1   :  { %v734_v24 = vmul.f32 32.0, %v5185_v23  ;;  %vm738_vm6 = vweird.f32 %v5185_v23  ;;  %819 = vmatpush.msra.mxu0 %v787_v39  ;;  %850 = vmatpush.msrb.mxu2 %v796_v60 }
 0x5e3   :  { %v735_v25 = vsub.f32 1.0, %v734_v24  ;;  %820 = vmatpush.msra.mxu0 %v786_v40  ;;  %851 = vmatpush.msrb.mxu2 %v795_v61 }
 0x5e5   :  { %v736_v26 = vmul.f32 %v5185_v23, %v735_v25  ;;  %821 = vmatpush.msra.mxu0 %v785_v41  ;;  %852 = vmatpush.msrb.mxu2 %v794_v62 }
 0x5e7   :  { %v737_v27 = vadd.f32 %v5185_v23, %v736_v26  ;;  %822 = vmatpush.msra.mxu0 %v784_v42  ;;  %853 = vmatpush.msrb.mxu2 %v793_v63 }
 0x5e9   :  { %v521_v19 = vpop.permute.xlu0 %520  ;;  %v5732_v28 = vsel %vm738_vm6, %v5185_v23, %v737_v27  ;;  %854 = vmatpush.msrb.mxu2 %v792_v0 }
 0x5ea   :  { %541 = vmatpush.msra.mxu1 %v521_v19  ;;  %v5804_v19 = vld [vmem:[%s7018_s11] ss:$0 sm:$0xff] }
 0x5eb   :  { %4890 = vmatmul.msk.f32.vlgmr.msra.gmra.mxu1 %vm129_vm1, %v519_v18 }
 0x5ec   :  { %675 = vmatpush.msrb.mxu1 %v655_v4 }
 0x5f3   :  { %4896 = vmatmul.msk.f32.vlgmr.msrb.gmra.mxu1 %vm129_vm1, %v653_v21 }
 0x626   :  { %v476_v35 = vpop.f32.mrf.mxu1 }
 0x627   :  { %v729_v29 = vpop.xlane.xlu0 %728 }
 0x628   :  { %v740_v30 = vmul.f32 %v5732_v28, %v729_v29 }
 0x62a   :  { %v742_v31 = vsub.f32 %v725_v8, %v740_v30  ;;  %v791_v8 = vld [vmem:[%s7117_s0 + $0x10] sm:$0xff] }
 0x62b   :  { %855 = vmatpush.msrb.mxu2 %v791_v8 }
 0x62c   :  { %v744_v33 = vmul.f32 %v742_v31, %v742_v31 }
 0x62d   :  { %856 = vmatpush.msrb.mxu2 %v790_v9 }
 0x62e   :  { %v746_v34 = vsel %vm96_vm0, %v744_v33, 0.0 }
 0x62f   :  { %747 = vadd.xlane.f32.xlu2 %v746_v34  ;;  %857 = vmatpush.msrb.mxu2 %v789_v10 }
 0x65d   :  { %v610_v37 = vpop.f32.mrf.mxu0 }
 0x668   :  { %v543_v36 = vpop.f32.mrf.mxu1 }
 0x669   :  { %681 = vrot.lane.b32.xlu1 %v543_v36, %s7063_s2  ;;  %s7123_s2 = smov 120  }
 0x670   :  { %v677_v38 = vpop.f32.mrf.mxu1 }
 0x671   :  { %685 = vrot.lane.b32.xlu1 %v610_v37, %s7067_s28  ;;  %s7128_s28 = smov 40  }
 0x679   :  { %689 = vrot.lane.b32.xlu1 %v677_v38, %s7114_s10 }
 0x6a2   :  { %v748_v43 = vpop.xlane.xlu2 %747 }
 0x6a3   :  { %v752_v44 = vmul.f32 %v748_v43, %v5732_v28 }
 0x6a5   :  { %v754_v46 = vadd.f32 1e-05, %v752_v44 }
 0x6a7   :  { %5186 = vrsqrt.f32 %v754_v46  ;;  %vm762_vm8 = vweird.f32 %v754_v46 }
 0x6ad   :  { %v5187_v47 = vpop.eup %5186 }
 0x6ae   :  { %v757_v48 = vmul.f32 %v5187_v47, %v754_v46  ;;  %vm763_vm7 = vweird.f32 %v5187_v47 }
 0x6af   :  { %vm764_vm9 = vmor %vm762_vm8, %vm763_vm7 }
 0x6b0   :  { %v758_v49 = vmul.f32 %v5187_v47, %v757_v48  ;;  %v4906_v48 = vld [vmem:[%s7110_s7 + $0x38] sm:$0xff] }
 0x6b1   :  { %946 = vmatpush.msra.mxu1 %v4906_v48 }
 0x6b2   :  { %v759_v50 = vmul.f32 0.5, %v758_v49  ;;  %v4905_v49 = vld [vmem:[%s7110_s7 + $0x30] sm:$0xff] }
 0x6b3   :  { %947 = vmatpush.msra.mxu1 %v4905_v49 }
 0x6b4   :  { %v760_v53 = vsub.f32 1.5, %v759_v50  ;;  %v4904_v50 = vld [vmem:[%s7110_s7 + $0x28] sm:$0xff]  ;;  %s7119_s7 = smov 64  }
 0x6b5   :  { %948 = vmatpush.msra.mxu1 %v4904_v50 }
 0x6b6   :  { %v761_v54 = vmul.f32 %v5187_v47, %v760_v53 }
 0x6b7   :  { %949 = vmatpush.msra.mxu1 %v4903_v52 }
 0x6b8   :  { %v765_v56 = vsel %vm764_vm9, %v5187_v47, %v761_v54 }
 0x6b9   :  { %v776_v57 = vmul.f32 %v765_v56, %v742_v31 }
 0x6bb   :  { %v779_v45 = vmul.f32 %v778_v55, %v776_v57 }
 0x6bd   :  { %v782_v59 = vadd.f32 %v781_v58, %v779_v45 }
 0x6bf   :  { %4899 = vmatmul.msk.f32.vlgmr.msra.gmra.mxu0 %vm96_vm0, %v782_v59 }
 0x6db   :  { %v682_v1 = vpop.permute.xlu1 %681 }
 0x6dc   :  { %v692_v3 = vsel %vm129_vm1, %v476_v35, %v682_v1 }
 0x6e3   :  { %v686_v2 = vpop.permute.xlu1 %685 }
 0x6e4   :  { %v693_v5 = vsel %vm408_vm4, %v692_v3, %v686_v2 }
 0x6eb   :  { %v690_v6 = vpop.permute.xlu1 %689 }
 0x6ec   :  { %v694_v7 = vsel %vm410_vm5, %v693_v5, %v690_v6 }
 0x6ed   :  { %4898 = vmatmul.msk.f32.gmra.mxu3 %vm96_vm0, %v694_v7 }
 0x73c   :  { %v824_v13 = vpop.f32.mrf.mxu0 }
 0x73d   :  { %v825_v14 = vadd.f32 %v5795_v12, %v824_v13 }
 0x73f   :  { %v830_v15 = vmax.f32 %v825_v14, 0.0 }
 0x741   :  { %4901 = vmatmul.msk.f32.vlgmr.msrb.gmra.mxu2 %vm835_vm10, %v830_v15 }
 0x770   :  { %v721_v51 = vpop.f32.mrf.mxu3 }
 0x771   :  { %v726_v17 = vadd.f32 %v721_v51, %v5626_v32 }
 0x773   :  { %v730_v18 = vsel %vm96_vm0, %v726_v17, 0.0 }
 0x774   :  { %731 = vadd.xlane.f32.xlu1 %v730_v18 }
 0x7c4   :  { %v859_v4 = vpop.f32.mrf.mxu2 }
 0x7c5   :  { %v860_v20 = vadd.f32 %v5804_v19, %v859_v4 }
 0x7c7   :  { %v866_v21 = vadd.f32 %v860_v20, %v782_v59  ;;  %v5834_v59 = vld [vmem:[%s7019_s12] sm:$0x3]  ;;  %s7131_s12 = sld [smem:[#allocation6_spill]] }
 0x7c8   :  { %v912_v62 = vperm.slane %v5834_v59, 0  ;;  %v915_v1 = vperm.slane %v5834_v59, 1 }
 0x7c9   :  { %v868_v22 = vsel %vm96_vm0, %v866_v21, 0.0 }
 0x7ca   :  { %869 = vadd.xlane.f32.xlu0 %v868_v22 }
 0x7e7   :  { %v732_v23 = vpop.xlane.xlu1 %731 }
 0x7e8   :  { %v741_v24 = vmul.f32 %v5732_v28, %v732_v23 }
 0x7ea   :  { %v743_v25 = vsub.f32 %v726_v17, %v741_v24 }
 0x7ec   :  { %v745_v32 = vmul.f32 %v743_v25, %v743_v25 }
 0x7ee   :  { %v749_v26 = vsel %vm96_vm0, %v745_v32, 0.0 }
 0x7ef   :  { %750 = vadd.xlane.f32.xlu2 %v749_v26 }
 0x83d   :  { %v870_v27 = vpop.xlane.xlu0 %869 }
 0x83e   :  { %v874_v29 = vmul.f32 %v870_v27, %v5732_v28 }
 0x840   :  { %v876_v30 = vsub.f32 %v866_v21, %v874_v29 }
 0x842   :  { %v878_v31 = vmul.f32 %v876_v30, %v876_v30 }
 0x844   :  { %v880_v33 = vsel %vm96_vm0, %v878_v31, 0.0 }
 0x845   :  { %881 = vadd.xlane.f32.xlu2 %v880_v33 }
 0x862   :  { %v751_v34 = vpop.xlane.xlu2 %750 }
 0x863   :  { %v753_v35 = vmul.f32 %v751_v34, %v5732_v28 }
 0x865   :  { %v755_v36 = vadd.f32 1e-05, %v753_v35 }
 0x867   :  { %5188 = vrsqrt.f32 %v755_v36  ;;  %vm772_vm12 = vweird.f32 %v755_v36 }
 0x86d   :  { %v5189_v37 = vpop.eup %5188 }
 0x86e   :  { %v767_v38 = vmul.f32 %v5189_v37, %v755_v36  ;;  %vm773_vm11 = vweird.f32 %v5189_v37 }
 0x86f   :  { %vm774_vm13 = vmor %vm772_vm12, %vm773_vm11 }
 0x870   :  { %v768_v39 = vmul.f32 %v5189_v37, %v767_v38 }
 0x872   :  { %v769_v40 = vmul.f32 0.5, %v768_v39 }
 0x874   :  { %v770_v41 = vsub.f32 1.5, %v769_v40 }
 0x876   :  { %v771_v42 = vmul.f32 %v5189_v37, %v770_v41 }
 0x878   :  { %v775_v43 = vsel %vm774_vm13, %v5189_v37, %v771_v42 }
 0x879   :  { %v777_v44 = vmul.f32 %v775_v43, %v743_v25 }
 0x87b   :  { %v780_v46 = vmul.f32 %v778_v55, %v777_v44 }
 0x87d   :  { %v783_v47 = vadd.f32 %v781_v58, %v780_v46 }
 0x87f   :  { %4900 = vmatmul.msk.f32.gmra.mxu0 %vm96_vm0, %v783_v47 }
 0x8b8   :  { %v882_v53 = vpop.xlane.xlu2 %881 }
 0x8b9   :  { %v886_v54 = vmul.f32 %v882_v53, %v5732_v28 }
 0x8bb   :  { %v888_v55 = vadd.f32 1e-05, %v886_v54 }
 0x8bd   :  { %5190 = vrsqrt.f32 %v888_v55  ;;  %vm896_vm15 = vweird.f32 %v888_v55 }
 0x8c3   :  { %v5191_v56 = vpop.eup %5190 }
 0x8c4   :  { %v891_v57 = vmul.f32 %v5191_v56, %v888_v55  ;;  %vm897_vm14 = vweird.f32 %v5191_v56 }
 0x8c5   :  { %vm898_vm6 = vmor %vm896_vm15, %vm897_vm14 }
 0x8c6   :  { %v892_v58 = vmul.f32 %v5191_v56, %v891_v57 }
 0x8c8   :  { %v893_v45 = vmul.f32 0.5, %v892_v58 }
 0x8ca   :  { %v894_v60 = vsub.f32 1.5, %v893_v45 }
 0x8cc   :  { %v895_v61 = vmul.f32 %v5191_v56, %v894_v60 }
 0x8ce   :  { %v899_v63 = vsel %vm898_vm6, %v5191_v56, %v895_v61 }
 0x8cf   :  { %v910_v0 = vmul.f32 %v899_v63, %v876_v30 }
 0x8d1   :  { %v913_v2 = vmul.f32 %v912_v62, %v910_v0 }
 0x8d3   :  { %v5840_v3 = vadd.f32 %v915_v1, %v913_v2 }
 0x8d5   :  { %4911 = vmatmul.msk.f32.vlgmr.msra.gmra.mxu1 %vm96_vm0, %v5840_v3 }
 0x8fc   :  { %v827_v5 = vpop.f32.mrf.mxu0 }
 0x8fd   :  { %v828_v6 = vadd.f32 %v5795_v12, %v827_v5 }
 0x8ff   :  { %v831_v7 = vmax.f32 %v828_v6, 0.0 }
 0x901   :  { %4902 = vmatmul.msk.f32.gmra.mxu2 %vm835_vm10, %v831_v7 }
 0x952   :  { %v5846_v8 = vpop.f32.mrf.mxu1 }
 0x953   :  { %997 = vrot.lane.b32.xlu1 %v5846_v8, %s7119_s7  ;;  %958 = vrot.lane.b32.xlu0 %v5846_v8, %s7120_s26 }
 0x95b   :  { %1159 = vrot.lane.b32.xlu1 %v5846_v8, %s7121_s27 }
 0x984   :  { %v862_v9 = vpop.f32.mrf.mxu2 }
 0x985   :  { %v863_v10 = vadd.f32 %v5804_v19, %v862_v9 }
 0x987   :  { %v867_v13 = vadd.f32 %v863_v10, %v783_v47 }
 0x989   :  { %v871_v12 = vsel %vm96_vm0, %v867_v13, 0.0 }
 0x98a   :  { %872 = vadd.xlane.f32.xlu2 %v871_v12 }
 0x9c5   :  { %v998_v14 = vpop.permute.xlu1 %997  ;;  %v959_v15 = vpop.permute.xlu0 %958 }
 0x9c6   :  { %4913 = vmatpush.xpose.msk.msrb.mxu3 %vm129_vm1, %v959_v15  ;;  %1018 = vmatpush.msrb.mxu0 %v998_v14 }
 0x9c9   :  { %4914 = vmatmul.msk.f32.vlgmr.msrb.gmra.mxu3 %vm129_vm1, %v5846_v8 }
 0x9cd   :  { %v1160_v27 = vpop.permute.xlu1 %1159 }
 0x9fd   :  { %v873_v51 = vpop.xlane.xlu2 %872 }
 0x9fe   :  { %v875_v17 = vmul.f32 %v873_v51, %v5732_v28 }
 0xa00   :  { %v877_v18 = vsub.f32 %v867_v13, %v875_v17 }
 0xa02   :  { %v879_v4 = vmul.f32 %v877_v18, %v877_v18 }
 0xa04   :  { %v883_v20 = vsel %vm96_vm0, %v879_v4, 0.0 }
 0xa05   :  { %884 = vadd.xlane.f32.xlu2 %v883_v20 }
 0xa1d   :  { %1025 = vrot.lane.b32.xlu2 %v5846_v8, %s7122_s5 }
 0xa25   :  { %1023 = vrot.lane.b32.xlu2 %v5846_v8, %s7123_s2 }
 0xa2d   :  { %1092 = vrot.lane.b32.xlu2 %v5846_v8, %s7124_s4 }
 0xa35   :  { %1157 = vrot.lane.b32.xlu2 %v5846_v8, %s7125_s9 }
 0xa4c   :  { %v981_v19 = vpop.f32.mrf.mxu3 }
 0xa4d   :  { %v984_v21 = vmul.f32 0.35355338, %v981_v19 }
 0xa4f   :  { %v985_v22 = vsel %vm155_vm2, %v984_v21, -1e+30 }
 0xa50   :  { %v986_v23 = vsel %vm129_vm1, %v985_v22, -inf }
 0xa51   :  { %987 = vmax.xlane.f32.xlu0 %v986_v23 }
 0xa65   :  { %1090 = vrot.lane.b32.xlu0 %v5846_v8, %s7126_s1 }
 0xa78   :  { %v885_v24 = vpop.xlane.xlu2 %884 }
 0xa79   :  { %v887_v25 = vmul.f32 %v885_v24, %v5732_v28 }
 0xa7b   :  { %v889_v32 = vadd.f32 1e-05, %v887_v25 }
 0xa7d   :  { %5192 = vrsqrt.f32 %v889_v32  ;;  %vm906_vm8 = vweird.f32 %v889_v32 }
 0xa80   :  { %v1026_v26 = vpop.permute.xlu2 %1025 }
 0xa81   :  { %4916 = vmatpush.xpose.msk.msrb.mxu1 %vm129_vm1, %v1026_v26 }
 0xa83   :  { %v5193_v29 = vpop.eup %5192 }
 0xa84   :  { %v901_v30 = vmul.f32 %v5193_v29, %v889_v32  ;;  %vm907_vm7 = vweird.f32 %v5193_v29 }
 0xa85   :  { %4922 = vmatpush.xpose.msk.msra.mxu1 %vm129_vm1, %v1160_v27  ;;  %vm908_vm9 = vmor %vm906_vm8, %vm907_vm7 }
 0xa86   :  { %v902_v31 = vmul.f32 %v5193_v29, %v901_v30 }
 0xa88   :  { %v903_v33 = vmul.f32 0.5, %v902_v31  ;;  %v1024_v34 = vpop.permute.xlu2 %1023 }
 0xa8a   :  { %v904_v35 = vsub.f32 1.5, %v903_v33 }
 0xa8c   :  { %v905_v36 = vmul.f32 %v5193_v29, %v904_v35 }
 0xa8e   :  { %v909_v37 = vsel %vm908_vm9, %v5193_v29, %v905_v36 }
 0xa8f   :  { %v911_v38 = vmul.f32 %v909_v37, %v877_v18 }
 0xa90   :  { %v1093_v39 = vpop.permute.xlu2 %1092 }
 0xa91   :  { %4919 = vmatpush.xpose.msk.msra.mxu0 %vm129_vm1, %v1093_v39  ;;  %v914_v40 = vmul.f32 %v912_v62, %v911_v38 }
 0xa93   :  { %v5880_v41 = vadd.f32 %v915_v1, %v914_v40 }
 0xa95   :  { %4912 = vmatmul.msk.f32.gmra.mxu1 %vm96_vm0, %v5880_v41 }
 0xa98   :  { %v1158_v42 = vpop.permute.xlu2 %1157 }
 0xa9d   :  { %4917 = vmatmul.msk.f32.vlgmr.msrb.gmra.mxu1 %vm129_vm1, %v1024_v34 }
 0xaa5   :  { %4923 = vmatmul.msk.f32.vlgmr.msra.gmra.mxu1 %vm129_vm1, %v1158_v42 }
 0xac4   :  { %v988_v44 = vpop.xlane.xlu0 %987 }
 0xac5   :  { %v989_v46 = vsub.f32 %v985_v22, %v988_v44 }
 0xac7   :  { %v990_v48 = vmul.f32 1.442695, %v989_v46 }
 0xac9   :  { %5194 = vpow2.f32 %v990_v48 }
 0xacf   :  { %v5195_v50 = vpop.eup %5194 }
 0xad0   :  { %v992_v53 = vsel %vm129_vm1, %v5195_v50, 0.0 }
 0xad7   :  { %v1091_v0 = vpop.permute.xlu0 %1090 }
 0xb12   :  { %v5886_v43 = vpop.f32.mrf.mxu1 }
 0xb13   :  { %1372 = vrot.lane.b32.xlu0 %v5886_v43, %s7126_s1  ;;  %1307 = vrot.lane.b32.xlu2 %v5886_v43, %s7122_s5 }
 0xb14   :  { %1240 = vrot.lane.b32.xlu1 %v5886_v43, %s7120_s26 }
 0xb1a   :  { %v1048_v47 = vpop.f32.mrf.mxu1 }
 0xb1b   :  { %1374 = vrot.lane.b32.xlu2 %v5886_v43, %s7124_s4  ;;  %v1051_v57 = vmul.f32 0.35355338, %v1048_v47 }
 0xb1c   :  { %1305 = vrot.lane.b32.xlu1 %v5886_v43, %s7123_s2 }
 0xb1d   :  { %v1052_v58 = vsel %vm155_vm2, %v1051_v57, -1e+30 }
 0xb1e   :  { %v1053_v59 = vsel %vm129_vm1, %v1052_v58, -inf }
 0xb22   :  { %v1182_v49 = vpop.f32.mrf.mxu1 }
 0xb23   :  { %1439 = vrot.lane.b32.xlu2 %v5886_v43, %s7125_s9  ;;  %v1185_v52 = vmul.f32 0.35355338, %v1182_v49 }
 0xb25   :  { %v1186_v54 = vsel %vm155_vm2, %v1185_v52, -1e+30 }
 0xb26   :  { %v1187_v55 = vsel %vm129_vm1, %v1186_v54, -inf }
 0xb46   :  { %993 = vadd.xlane.f32.xlu1 %v992_v53 }
 0xb4c   :  { %1188 = vmax.xlane.f32.xlu2 %v1187_v55 }
 0xb5f   :  { %1441 = vrot.lane.b32.xlu1 %v5886_v43, %s7121_s27 }
 0xb6d   :  { %v1308_v56 = vpop.permute.xlu2 %1307 }
 0xb6e   :  { %4928 = vmatpush.xpose.msk.msrb.mxu1 %vm129_vm1, %v1308_v56 }
 0xb75   :  { %v1375_v1 = vpop.permute.xlu2 %1374 }
 0xb7d   :  { %v1440_v5 = vpop.permute.xlu2 %1439 }
 0xb85   :  { %v1373_v6 = vpop.permute.xlu0 %1372 }
 0xb86   :  { %v1241_v45 = vpop.permute.xlu1 %1240 }
 0xb89   :  { %1054 = vmax.xlane.f32.xlu1 %v1053_v59 }
 0xb8e   :  { %v1306_v60 = vpop.permute.xlu1 %1305 }
 0xb8f   :  { %4929 = vmatmul.msk.f32.vlgmr.msrb.gmra.mxu1 %vm129_vm1, %v1306_v60 }
 0xbb9   :  { %v994_v61 = vpop.xlane.xlu1 %993 }
 0xbba   :  { %5196 = vrcp.f32 %v994_v61 }
 0xbbf   :  { %v1189_v4 = vpop.xlane.xlu2 %1188 }
 0xbc0   :  { %v5197_v62 = vpop.eup %5196  ;;  %v1190_v23 = vsub.f32 %v1186_v54, %v1189_v4 }
 0xbc1   :  { %v996_v63 = vmul.f32 %v5197_v62, %v5195_v50 }
 0xbc2   :  { %v1191_v26 = vmul.f32 1.442695, %v1190_v23 }
 0xbc3   :  { %4915 = vmatmul.msk.f32.vlgmr.msrb.gmra.mxu0 %vm129_vm1, %v996_v63 }
 0xbc4   :  { %4925 = vmatpush.xpose.msk.msrb.mxu0 %vm129_vm1, %v1241_v45 }
 0xbcb   :  { %4920 = vmatmul.msk.f32.vlgmr.msra.gmra.mxu0 %vm129_vm1, %v1091_v0 }
 0xbcc   :  { %4931 = vmatpush.xpose.msk.msra.mxu0 %vm129_vm1, %v1375_v1 }
 0xbd1   :  { %v1442_v2 = vpop.permute.xlu1 %1441 }
 0xbd2   :  { %4934 = vmatpush.xpose.msk.msra.mxu1 %vm129_vm1, %v1442_v2 }
 0xbd3   :  { %4926 = vmatmul.msk.f32.vlgmr.msrb.gmra.mxu0 %vm129_vm1, %v5886_v43 }
 0xbd5   :  { %4935 = vmatmul.msk.f32.vlgmr.msra.gmra.mxu1 %vm129_vm1, %v1440_v5 }
 0xbdb   :  { %4932 = vmatmul.msk.f32.vlgmr.msra.gmra.mxu0 %vm129_vm1, %v1373_v6 }
 0xbfc   :  { %v1055_v9 = vpop.xlane.xlu1 %1054 }
 0xbfd   :  { %v1056_v14 = vsub.f32 %v1052_v58, %v1055_v9 }
 0xbff   :  { %v1057_v18 = vmul.f32 1.442695, %v1056_v14 }
 0xc01   :  { %5198 = vpow2.f32 %v1057_v18 }
 0xc02   :  { %5200 = vpow2.f32 %v1191_v26 }
 0xc07   :  { %v5199_v27 = vpop.eup %5198 }
 0xc08   :  { %v1059_v30 = vsel %vm129_vm1, %v5199_v27, 0.0  ;;  %v5201_v33 = vpop.eup %5200 }
 0xc09   :  { %v1193_v34 = vsel %vm129_vm1, %v5201_v33, 0.0 }
 0xc0c   :  { %v1330_v12 = vpop.f32.mrf.mxu1 }
 0xc0d   :  { %v1333_v17 = vmul.f32 0.35355338, %v1330_v12 }
 0xc0f   :  { %v1334_v21 = vsel %vm440_vm3, %v1333_v17, -1e+30 }
 0xc10   :  { %v1335_v25 = vsel %vm129_vm1, %v1334_v21, -inf }
 0xc40   :  { %v5920_v7 = vpop.f32.mrf.mxu0 }
 0xc48   :  { %v1115_v10 = vpop.f32.mrf.mxu0 }
 0xc49   :  { %v1118_v13 = vmul.f32 0.35355338, %v1115_v10 }
 0xc4b   :  { %v1119_v15 = vsel %vm155_vm2, %v1118_v13, -1e+30 }
 0xc4c   :  { %v1120_v51 = vsel %vm129_vm1, %v1119_v15, -inf }
 0xc4d   :  { %1121 = vmax.xlane.f32.xlu0 %v1120_v51 }
 0xc50   :  { %v1263_v20 = vpop.f32.mrf.mxu0 }
 0xc51   :  { %v1266_v19 = vmul.f32 0.35355338, %v1263_v20 }
 0xc52   :  { %v1464_v22 = vpop.f32.mrf.mxu1 }
 0xc53   :  { %v1267_v24 = vsel %vm440_vm3, %v1266_v19, -1e+30  ;;  %v1467_v32 = vmul.f32 0.35355338, %v1464_v22 }
 0xc54   :  { %v1268_v11 = vsel %vm129_vm1, %v1267_v24, -inf }
 0xc55   :  { %1269 = vmax.xlane.f32.xlu1 %v1268_v11  ;;  %1336 = vmax.xlane.f32.xlu0 %v1335_v25  ;;  %v1468_v29 = vsel %vm440_vm3, %v1467_v32, -1e+30 }
 0xc56   :  { %v1469_v31 = vsel %vm129_vm1, %v1468_v29, -inf }
 0xc58   :  { %v1397_v49 = vpop.f32.mrf.mxu0 }
 0xc59   :  { %v1400_v53 = vmul.f32 0.35355338, %v1397_v49 }
 0xc5b   :  { %v1401_v57 = vsel %vm440_vm3, %v1400_v53, -1e+30 }
 0xc5c   :  { %v1402_v60 = vsel %vm129_vm1, %v1401_v57, -inf }
 0xc5d   :  { %1060 = vadd.xlane.f32.xlu0 %v1059_v30  ;;  %1470 = vmax.xlane.f32.xlu1 %v1469_v31  ;;  %v4909_v30 = vld [vmem:[%s7113_s30 + $0x30] sm:$0xff]  ;;  %v4908_v31 = vld [vmem:[%s7113_s30 + $0x28] sm:$0xff] }
 0xc65   :  { %1194 = vadd.xlane.f32.xlu1 %v1193_v34 }
 0xc71   :  { %1064 = vrot.lane.b32.xlu0 %v5846_v8, %s7127_s8 }
 0xc79   :  { %1198 = vrot.lane.b32.xlu0 %v5846_v8, %s7128_s28 }
 0xc7e   :  { %1131 = vrot.lane.b32.xlu1 %v5846_v8, %s7129_s25 }
 0xc81   :  { %1279 = vrot.lane.b32.xlu0 %v5886_v43, %s7119_s7 }
 0xc86   :  { %1346 = vrot.lane.b32.xlu1 %v5886_v43, %s7127_s8 }
 0xc89   :  { %1413 = vrot.lane.b32.xlu0 %v5886_v43, %s7129_s25 }
 0xcc0   :  { %v1122_v35 = vpop.xlane.xlu0 %1121 }
 0xcc1   :  { %v1123_v50 = vsub.f32 %v1119_v15, %v1122_v35 }
 0xcc3   :  { %v1124_v56 = vmul.f32 1.442695, %v1123_v50 }
 0xcc8   :  { %v1270_v36 = vpop.xlane.xlu1 %1269  ;;  %v1337_v37 = vpop.xlane.xlu0 %1336 }
 0xcc9   :  { %v1338_v38 = vsub.f32 %v1334_v21, %v1337_v37  ;;  %v1271_v59 = vsub.f32 %v1267_v24, %v1270_v36  ;;  %v1751_v37 = vld [vmem:[%s7020_s13 + $0x18] sm:$0xff] }
 0xccb   :  { %v1339_v39 = vmul.f32 1.442695, %v1338_v38  ;;  %v1272_v62 = vmul.f32 1.442695, %v1271_v59  ;;  %v1750_v38 = vld [vmem:[%s7020_s13 + $0x10] sm:$0xff] }
 0xccd   :  { %5202 = vpow2.f32 %v1339_v39  ;;  %v1749_v39 = vld [vmem:[%s7020_s13 + $0x8] sm:$0xff] }
 0xcd0   :  { %v1471_v40 = vpop.xlane.xlu1 %1470  ;;  %v1061_v47 = vpop.xlane.xlu0 %1060 }
 0xcd1   :  { %v1472_v42 = vsub.f32 %v1468_v29, %v1471_v40  ;;  %v1748_v40 = vld [vmem:[%s7020_s13] sm:$0xff]  ;;  %s7140_s13 = sld [smem:[#allocation21_spill]] }
 0xcd3   :  { %v1473_v44 = vmul.f32 1.442695, %v1472_v42  ;;  %v5203_v46 = vpop.eup %5202  ;;  %v5995_v42 = vld [vmem:[%s7131_s12] sm:$0xff] }
 0xcd4   :  { %v1341_v8 = vsel %vm129_vm1, %v5203_v46, 0.0 }
 0xcd5   :  { %5204 = vpow2.f32 %v1473_v44  ;;  %1342 = vadd.xlane.f32.xlu2 %v1341_v8  ;;  %v4907_v8 = vld [vmem:[%s7113_s30 + $0x20] sm:$0xff] }
 0xcd6   :  { %5206 = vrcp.f32 %v1061_v47 }
 0xcd8   :  { %v1195_v54 = vpop.xlane.xlu1 %1194 }
 0xcd9   :  { %5208 = vrcp.f32 %v1195_v54 }
 0xcda   :  { %5210 = vpow2.f32 %v1124_v56 }
 0xcdb   :  { %v5949_v48 = vpop.eup %5204  ;;  %5212 = vpow2.f32 %v1272_v62 }
 0xcdc   :  { %v1475_v52 = vsel %vm129_vm1, %v5949_v48, 0.0  ;;  %v5207_v55 = vpop.eup %5206 }
 0xcdd   :  { %1476 = vadd.xlane.f32.xlu2 %v1475_v52  ;;  %v1063_v58 = vmul.f32 %v5207_v55, %v5199_v27  ;;  %v4910_v27 = vld [vmem:[%s7113_s30 + $0x38] sm:$0xff]  ;;  %s7133_s30 = sld [smem:[#allocation8_spill]] }
 0xcde   :  { %1539 = vmatpush.msrb.mxu0 %v4910_v27 }
 0xcdf   :  { %v5209_v61 = vpop.eup %5208 }
 0xce0   :  { %v5211_v63 = vpop.eup %5210  ;;  %v1197_v0 = vmul.f32 %v5209_v61, %v5201_v33  ;;  %1540 = vmatpush.msrb.mxu0 %v4909_v30 }
 0xce1   :  { %v1126_v16 = vsel %vm129_vm1, %v5211_v63, 0.0  ;;  %v5213_v5 = vpop.eup %5212 }
 0xce2   :  { %v1274_v9 = vsel %vm129_vm1, %v5213_v5, 0.0  ;;  %1541 = vmatpush.msrb.mxu0 %v4908_v31 }
 0xce3   :  { %v1065_v45 = vpop.permute.xlu0 %1064 }
 0xce4   :  { %1085 = vmatpush.msra.mxu3 %v1065_v45  ;;  %1542 = vmatpush.msrb.mxu0 %v4907_v8 }
 0xce5   :  { %4918 = vmatmul.msk.f32.vlgmr.msra.gmra.mxu3 %vm129_vm1, %v1063_v58  ;;  %1403 = vmax.xlane.f32.xlu2 %v1402_v60 }
 0xceb   :  { %v1199_v1 = vpop.permute.xlu0 %1198 }
 0xcec   :  { %1219 = vmatpush.msrb.mxu3 %v1199_v1 }
 0xced   :  { %4924 = vmatmul.msk.f32.vlgmr.msrb.gmra.mxu3 %vm129_vm1, %v1197_v0  ;;  %1127 = vadd.xlane.f32.xlu2 %v1126_v16 }
 0xcf0   :  { %v1132_v2 = vpop.permute.xlu1 %1131 }
 0xcf1   :  { %1152 = vmatpush.msra.mxu2 %v1132_v2 }
 0xcf3   :  { %v1280_v6 = vpop.permute.xlu0 %1279 }
 0xcf4   :  { %1300 = vmatpush.msrb.mxu2 %v1280_v6 }
 0xcf5   :  { %1275 = vadd.xlane.f32.xlu2 %v1274_v9 }
 0xcf8   :  { %v1347_v10 = vpop.permute.xlu1 %1346 }
 0xcf9   :  { %1367 = vmatpush.msra.mxu3 %v1347_v10 }
 0xcfb   :  { %v1414_v11 = vpop.permute.xlu0 %1413 }
 0xd48   :  { %v1343_v13 = vpop.xlane.xlu2 %1342 }
 0xd49   :  { %5214 = vrcp.f32 %v1343_v13 }
 0xd4f   :  { %v5215_v12 = vpop.eup %5214 }
 0xd50   :  { %v1345_v14 = vmul.f32 %v5215_v12, %v5203_v46  ;;  %v1477_v15 = vpop.xlane.xlu2 %1476 }
 0xd52   :  { %4930 = vmatmul.msk.f32.vlgmr.msra.gmra.mxu3 %vm129_vm1, %v1345_v14 }
 0xd58   :  { %v1404_v51 = vpop.xlane.xlu2 %1403 }
 0xd59   :  { %v1405_v17 = vsub.f32 %v1401_v57, %v1404_v51 }
 0xd5b   :  { %v1406_v18 = vmul.f32 1.442695, %v1405_v17  ;;  %v6048_v17 = vld [vmem:[%s7131_s12 + $0x8] sm:$0xff]  ;;  %s7136_s12 = sld [smem:[#allocation18_spill]] }
 0xd5d   :  { %5216 = vpow2.f32 %v1406_v18  ;;  %v4943_v18 = vld [vmem:[%s7115_s3 + $0x38] sm:$0xff] }
 0xd60   :  { %v1128_v4 = vpop.xlane.xlu2 %1127 }
 0xd61   :  { %5218 = vrcp.f32 %v1128_v4  ;;  %v4942_v4 = vld [vmem:[%s7115_s3 + $0x30] sm:$0xff] }
 0xd63   :  { %v5217_v20 = vpop.eup %5216 }
 0xd64   :  { %v1408_v19 = vsel %vm129_vm1, %v5217_v20, 0.0 }
 0xd65   :  { %1409 = vadd.xlane.f32.xlu2 %v1408_v19  ;;  %v4940_v19 = vld [vmem:[%s7115_s3 + $0x20] sm:$0xff] }
 0xd67   :  { %v5219_v21 = vpop.eup %5218 }
 0xd68   :  { %v1087_v22 = vpop.f32.mrf.mxu3  ;;  %v1130_v23 = vmul.f32 %v5219_v21, %v5211_v63  ;;  %v1276_v24 = vpop.xlane.xlu2 %1275 }
 0xd69   :  { %1225 = vrot.lane.b32.xlu1 %v1087_v22, %s7130_s24  ;;  %5220 = vrcp.f32 %v1276_v24 }
 0xd6a   :  { %4921 = vmatmul.msk.f32.vlgmr.msra.gmra.mxu2 %vm129_vm1, %v1130_v23  ;;  %5222 = vrcp.f32 %v1477_v15 }
 0xd6b   :  { %1434 = vmatpush.msra.mxu2 %v1414_v11 }
 0xd6f   :  { %v5221_v25 = vpop.eup %5220 }
 0xd70   :  { %v1221_v32 = vpop.f32.mrf.mxu3  ;;  %v1278_v26 = vmul.f32 %v5221_v25, %v5213_v5  ;;  %v5223_v33 = vpop.eup %5222 }
 0xd71   :  { %1233 = vrot.lane.b32.xlu1 %v1221_v32, %s7114_s10  ;;  %v1479_v34 = vmul.f32 %v5223_v33, %v5949_v48 }
 0xd72   :  { %4927 = vmatmul.msk.f32.vlgmr.msrb.gmra.mxu2 %vm129_vm1, %v1278_v26 }
 0xd73   :  { %1643 = vmatpush.msrb.mxu2 %v4943_v18 }
 0xd75   :  { %1644 = vmatpush.msrb.mxu2 %v4942_v4 }
 0xd7d   :  { %1480 = vrot.lane.b32.xlu2 %v5886_v43, %s7128_s28 }
 0xdd5   :  { %v1369_v46 = vpop.f32.mrf.mxu3 }
 0xdd8   :  { %v1410_v29 = vpop.xlane.xlu2 %1409 }
 0xdd9   :  { %5224 = vrcp.f32 %v1410_v29 }
 0xddb   :  { %v1226_v47 = vpop.permute.xlu1 %1225 }
 0xddc   :  { %v1236_v49 = vsel %vm129_vm1, %v5920_v7, %v1226_v47 }
 0xddf   :  { %v5225_v43 = vpop.eup %5224 }
 0xde0   :  { %v1412_v35 = vmul.f32 %v5225_v43, %v5217_v20  ;;  %v1481_v36 = vpop.permute.xlu2 %1480  ;;  %v4941_v20 = vld [vmem:[%s7115_s3 + $0x28] sm:$0xff] }
 0xde1   :  { %1501 = vmatpush.msrb.mxu3 %v1481_v36  ;;  %1645 = vmatpush.msrb.mxu2 %v4941_v20  ;;  %v6076_v36 = vld [vmem:[%s7116_s29 + $0x2] sm:$0x3]  ;;  %s7134_s29 = sld [smem:[#allocation16_spill]] }
 0xde2   :  { %4933 = vmatmul.msk.f32.vlgmr.msra.gmra.mxu2 %vm129_vm1, %v1412_v35  ;;  %4936 = vmatmul.msk.f32.vlgmr.msrb.gmra.mxu3 %vm129_vm1, %v1479_v34  ;;  %v1601_v8 = vperm.slane %v6076_v36, 1 }
 0xde3   :  { %1774 = vmatpush.msra.mxu3 %v1751_v37  ;;  %v1234_v52 = vpop.permute.xlu1 %1233  ;;  %1646 = vmatpush.msrb.mxu2 %v4940_v19 }
 0xde5   :  { %1775 = vmatpush.msra.mxu3 %v1750_v38 }
 0xde7   :  { %1776 = vmatpush.msra.mxu3 %v1749_v39 }
 0xde9   :  { %1777 = vmatpush.msra.mxu3 %v1748_v40  ;;  %v1598_v40 = vperm.slane %v6076_v36, 0 }
 0xdea   :  { %4959 = vmatmul.msk.f32.vlgmr.msra.gmra.mxu3 %vm96_vm0, %v5995_v42 }
 0xded   :  { %v1154_v44 = vpop.f32.mrf.mxu2 }
 0xdee   :  { %1229 = vrot.lane.b32.xlu0 %v1154_v44, %s7132_s19 }
 0xdf2   :  { %4960 = vmatmul.msk.f32.gmra.mxu3 %vm96_vm0, %v6048_v17 }
 0xdf5   :  { %v1302_v48 = vpop.f32.mrf.mxu2 }
 0xdf6   :  { %1507 = vrot.lane.b32.xlu0 %v1369_v46, %s7130_s24 }
 0xe60   :  { %v1230_v50 = vpop.permute.xlu0 %1229 }
 0xe61   :  { %v1237_v53 = vsel %vm408_vm4, %v1236_v49, %v1230_v50 }
 0xe62   :  { %v1238_v54 = vsel %vm410_vm5, %v1237_v53, %v1234_v52  ;;  %v4952_v53 = vld [vmem:[%s7117_s0 + $0x78] sm:$0xff] }
 0xe63   :  { %4937 = vmatmul.msk.f32.vlgmr.msrb.gmra.mxu0 %vm96_vm0, %v1238_v54  ;;  %1673 = vmatpush.msrb.mxu1 %v4952_v53  ;;  %v4951_v54 = vld [vmem:[%s7117_s0 + $0x70] sm:$0xff] }
 0xe65   :  { %v1436_v55 = vpop.f32.mrf.mxu2  ;;  %v1503_v56 = vpop.f32.mrf.mxu3  ;;  %1674 = vmatpush.msrb.mxu1 %v4951_v54 }
 0xe66   :  { %1511 = vrot.lane.b32.xlu1 %v1436_v55, %s7132_s19  ;;  %1515 = vrot.lane.b32.xlu0 %v1503_v56, %s7114_s10  ;;  %v4950_v55 = vld [vmem:[%s7117_s0 + $0x68] sm:$0xff]  ;;  %v4949_v56 = vld [vmem:[%s7117_s0 + $0x60] sm:$0xff] }
 0xe67   :  { %1675 = vmatpush.msrb.mxu1 %v4950_v55 }
 0xe68   :  { %v1508_v58 = vpop.permute.xlu0 %1507 }
 0xe69   :  { %v1518_v45 = vsel %vm129_vm1, %v1302_v48, %v1508_v58  ;;  %1676 = vmatpush.msrb.mxu1 %v4949_v56  ;;  %v4947_v58 = vld [vmem:[%s7117_s0 + $0x50] sm:$0xff] }
 0xe6d   :  { %v6011_v57 = vpop.f32.mrf.mxu3 }
 0xe6e   :  { %1786 = vrot.lane.b32.xlu2 %v6011_v57, %s7120_s26 }
 0xe75   :  { %v6128_v18 = vpop.f32.mrf.mxu3 }
 0xec8   :  { %v1787_v7 = vpop.permute.xlu2 %1786 }
 0xec9   :  { %4961 = vmatpush.xpose.msk.msra.mxu0 %vm129_vm1, %v1787_v7  ;;  %v4948_v7 = vld [vmem:[%s7117_s0 + $0x58] sm:$0xff] }
 0xeca   :  { %1677 = vmatpush.msrb.mxu1 %v4948_v7 }
 0xecc   :  { %1678 = vmatpush.msrb.mxu1 %v4947_v58 }
 0xed8   :  { %v1512_v59 = vpop.permute.xlu1 %1511  ;;  %v1516_v60 = vpop.permute.xlu0 %1515 }
 0xed9   :  { %v1519_v61 = vsel %vm408_vm4, %v1518_v45, %v1512_v59  ;;  %v4946_v45 = vld [vmem:[%s7117_s0 + $0x48] sm:$0xff]  ;;  %v4945_v59 = vld [vmem:[%s7117_s0 + $0x40] sm:$0xff]  ;;  %s7138_s0 = sld [smem:[#allocation20_spill]] }
 0xeda   :  { %v1520_v62 = vsel %vm410_vm5, %v1519_v61, %v1516_v60  ;;  %1679 = vmatpush.msrb.mxu1 %v4946_v45 }
 0xedb   :  { %4938 = vmatmul.msk.f32.gmra.mxu0 %vm96_vm0, %v1520_v62 }
 0xedc   :  { %1680 = vmatpush.msrb.mxu1 %v4945_v59 }
 0xee0   :  { %v1544_v63 = vpop.f32.mrf.mxu0 }
 0xee1   :  { %v1552_v0 = vadd.f32 %v1544_v63, %v5840_v3  ;;  %v6030_v3 = vld [vmem:[%s7133_s30] sm:$0xff] }
 0xee2   :  { %vm1813_vm2 = vcmp.gt.f32.partialorder %v6030_v3, 0.0 }
 0xee3   :  { %4962 = vmatmul.msk.f32.vlgmr.msra.gmra.mxu0 %vm129_vm1, %v6011_v57  ;;  %v1554_v1 = vsel %vm96_vm0, %v1552_v0, 0.0 }
 0xee4   :  { %1555 = vadd.xlane.f32.xlu1 %v1554_v1 }
 0xf57   :  { %v1556_v16 = vpop.xlane.xlu1 %1555 }
 0xf58   :  { %v1560_v2 = vmul.f32 %v1556_v16, %v5732_v28  ;;  %v1547_v5 = vpop.f32.mrf.mxu0 }
 0xf59   :  { %v1553_v6 = vadd.f32 %v1547_v5, %v5880_v41 }
 0xf5a   :  { %v1562_v9 = vsub.f32 %v1552_v0, %v1560_v2 }
 0xf5b   :  { %v1557_v10 = vsel %vm96_vm0, %v1553_v6, 0.0 }
 0xf5c   :  { %1558 = vadd.xlane.f32.xlu0 %v1557_v10  ;;  %v1564_v13 = vmul.f32 %v1562_v9, %v1562_v9 }
 0xf5e   :  { %v1566_v12 = vsel %vm96_vm0, %v1564_v13, 0.0 }
 0xf5f   :  { %1567 = vadd.xlane.f32.xlu1 %v1566_v12 }
 0xf60   :  { %v1809_v14 = vpop.f32.mrf.mxu0 }
 0xf61   :  { %v1812_v15 = vmul.f32 0.35355338, %v1809_v14 }
 0xf63   :  { %v1814_v41 = vsel %vm1813_vm2, %v1812_v15, -1e+30 }
 0xf64   :  { %v1815_v51 = vsel %vm129_vm1, %v1814_v41, -inf }
 0xf65   :  { %1816 = vmax.xlane.f32.xlu2 %v1815_v51 }
 0xf70   :  { %1852 = vrot.lane.b32.xlu0 %v6011_v57, %s7123_s2 }
 0xf78   :  { %1921 = vrot.lane.b32.xlu0 %v6011_v57, %s7124_s4  ;;  %1854 = vrot.lane.b32.xlu1 %v6011_v57, %s7122_s5 }
 0xf80   :  { %1988 = vrot.lane.b32.xlu1 %v6011_v57, %s7121_s27 }
 0xfcf   :  { %v1559_v21 = vpop.xlane.xlu0 %1558 }
 0xfd0   :  { %v1561_v22 = vmul.f32 %v1559_v21, %v5732_v28  ;;  %v5146_v21 = vld [vmem:[%s7118_s6 + $0x1] ss:$0 sm:$0xff] }
 0xfd2   :  { %v6065_v23 = vsub.f32 %v1553_v6, %v1561_v22  ;;  %v1568_v24 = vpop.xlane.xlu1 %1567 }
 0xfd3   :  { %v1572_v11 = vmul.f32 %v1568_v24, %v5732_v28 }
 0xfd4   :  { %v1565_v25 = vmul.f32 %v6065_v23, %v6065_v23 }
 0xfd5   :  { %v1574_v32 = vadd.f32 1e-05, %v1572_v11 }
 0xfd6   :  { %v1569_v26 = vsel %vm96_vm0, %v1565_v25, 0.0 }
 0xfd7   :  { %5226 = vrsqrt.f32 %v1574_v32  ;;  %1570 = vadd.xlane.f32.xlu2 %v1569_v26  ;;  %vm1582_vm11 = vweird.f32 %v1574_v32 }
 0xfd8   :  { %v1817_v27 = vpop.xlane.xlu2 %1816 }
 0xfd9   :  { %v1818_v29 = vsub.f32 %v1814_v41, %v1817_v27 }
 0xfdb   :  { %v1819_v30 = vmul.f32 1.442695, %v1818_v29 }
 0xfdd   :  { %v5227_v31 = vpop.eup %5226  ;;  %5228 = vpow2.f32 %v1819_v30 }
 0xfde   :  { %v1577_v33 = vmul.f32 %v5227_v31, %v1574_v32  ;;  %vm1583_vm3 = vweird.f32 %v5227_v31 }
 0xfdf   :  { %vm1584_vm12 = vmor %vm1582_vm11, %vm1583_vm3 }
 0xfe0   :  { %v1578_v43 = vmul.f32 %v5227_v31, %v1577_v33 }
 0xfe2   :  { %v1579_v34 = vmul.f32 0.5, %v1578_v43  ;;  %v1853_v49 = vpop.permute.xlu0 %1852 }
 0xfe3   :  { %v6071_v35 = vpop.eup %5228 }
 0xfe4   :  { %v1580_v37 = vsub.f32 1.5, %v1579_v34  ;;  %v1821_v38 = vsel %vm129_vm1, %v6071_v35, 0.0 }
 0xfe5   :  { %1822 = vadd.xlane.f32.xlu0 %v1821_v38 }
 0xfe6   :  { %v1581_v39 = vmul.f32 %v5227_v31, %v1580_v37 }
 0xfe8   :  { %v1585_v44 = vsel %vm1584_vm12, %v5227_v31, %v1581_v39 }
 0xfe9   :  { %v1596_v46 = vmul.f32 %v1585_v44, %v1562_v9 }
 0xfea   :  { %v1855_v47 = vpop.permute.xlu1 %1854  ;;  %v1922_v0 = vpop.permute.xlu0 %1921 }
 0xfeb   :  { %v1599_v48 = vmul.f32 %v1598_v40, %v1596_v46  ;;  %4964 = vmatpush.xpose.msk.msrb.mxu3 %vm129_vm1, %v1855_v47 }
 0xfed   :  { %v6083_v50 = vadd.f32 %v1601_v8, %v1599_v48 }
 0xfee   :  { %4965 = vmatmul.msk.f32.vlgmr.msrb.gmra.mxu3 %vm129_vm1, %v1853_v49 }
 0xfef   :  { %4954 = vmatmul.msk.f32.vlgmr.msrb.gmra.mxu2 %vm96_vm0, %v6083_v50  ;;  %1826 = vrot.lane.b32.xlu2 %v6011_v57, %s7119_s7 }
 0xff2   :  { %v1989_v52 = vpop.permute.xlu1 %1988 }
 0xff3   :  { %4970 = vmatpush.xpose.msk.msra.mxu3 %vm129_vm1, %v1989_v52 }
 0xff7   :  { %1919 = vrot.lane.b32.xlu2 %v6011_v57, %s7126_s1 }
 0xff9   :  { %1986 = vrot.lane.b32.xlu0 %v6011_v57, %s7125_s9 }
 0xfff   :  { %1960 = vrot.lane.b32.xlu2 %v6011_v57, %s7129_s25 }
0x104a   :  { %v1571_v60 = vpop.xlane.xlu2 %1570 }
0x104b   :  { %v1573_v61 = vmul.f32 %v1571_v60, %v5732_v28 }
0x104d   :  { %v1575_v62 = vadd.f32 1e-05, %v1573_v61 }
0x104f   :  { %5230 = vrsqrt.f32 %v1575_v62  ;;  %vm1592_vm14 = vweird.f32 %v1575_v62 }
0x1052   :  { %v1827_v63 = vpop.permute.xlu2 %1826 }
0x1053   :  { %1847 = vmatpush.msra.mxu2 %v1827_v63 }
0x1055   :  { %4967 = vmatpush.xpose.msk.msrb.mxu2 %vm129_vm1, %v1922_v0  ;;  %v5231_v1 = vpop.eup %5230 }
0x1056   :  { %v1587_v16 = vmul.f32 %v5231_v1, %v1575_v62  ;;  %vm1593_vm13 = vweird.f32 %v5231_v1 }
0x1057   :  { %vm1594_vm15 = vmor %vm1592_vm14, %vm1593_vm13 }
0x1058   :  { %v1588_v2 = vmul.f32 %v5231_v1, %v1587_v16  ;;  %v1823_v12 = vpop.xlane.xlu0 %1822 }
0x1059   :  { %5232 = vrcp.f32 %v1823_v12 }
0x105a   :  { %v1589_v5 = vmul.f32 0.5, %v1588_v2  ;;  %v1920_v6 = vpop.permute.xlu2 %1919 }
0x105c   :  { %v1590_v9 = vsub.f32 1.5, %v1589_v5 }
0x105e   :  { %v1591_v10 = vmul.f32 %v5231_v1, %v1590_v9 }
0x105f   :  { %v5233_v4 = vpop.eup %5232 }
0x1060   :  { %v1595_v13 = vsel %vm1594_vm15, %v5231_v1, %v1591_v10  ;;  %v1825_v19 = vmul.f32 %v5233_v4, %v6071_v35 }
0x1061   :  { %v1597_v14 = vmul.f32 %v1595_v13, %v6065_v23 }
0x1062   :  { %v1961_v15 = vpop.permute.xlu2 %1960 }
0x1063   :  { %1981 = vmatpush.msra.mxu1 %v1961_v15  ;;  %v1600_v41 = vmul.f32 %v1598_v40, %v1597_v14 }
0x1065   :  { %v6124_v51 = vadd.f32 %v1601_v8, %v1600_v41 }
0x1067   :  { %4955 = vmatmul.msk.f32.gmra.mxu2 %vm96_vm0, %v6124_v51 }
0x106b   :  { %v1987_v20 = vpop.permute.xlu0 %1986 }
0x106c   :  { %4971 = vmatmul.msk.f32.vlgmr.msra.gmra.mxu3 %vm129_vm1, %v1987_v20  ;;  %v6187_v20 = vld [vmem:[%s7133_s30 + $0x8] sm:$0xff]  ;;  %s7142_s30 = sld [smem:[#allocation23_spill]] }
0x106d   :  { %vm2096_vm6 = vcmp.gt.f32.partialorder %v6187_v20, 0.0 }
0x106f   :  { %4963 = vmatmul.msk.f32.vlgmr.msra.gmra.mxu2 %vm129_vm1, %v1825_v19 }
0x1071   :  { %v1877_v22 = vpop.f32.mrf.mxu3 }
0x1072   :  { %v1880_v23 = vmul.f32 0.35355338, %v1877_v22  ;;  %v1648_v24 = vpop.f32.mrf.mxu2 }
0x1073   :  { %v1649_v11 = vadd.f32 %v5146_v21, %v1648_v24 }
0x1074   :  { %v1881_v25 = vsel %vm1813_vm2, %v1880_v23, -1e+30 }
0x1075   :  { %v1654_v32 = vmax.f32 %v1649_v11, 0.0  ;;  %v1882_v26 = vsel %vm129_vm1, %v1881_v25, -inf }
0x1076   :  { %1883 = vmax.xlane.f32.xlu1 %v1882_v26 }
0x1077   :  { %4956 = vmatmul.msk.f32.vlgmr.msrb.gmra.mxu1 %vm835_vm10, %v1654_v32  ;;  %4968 = vmatmul.msk.f32.vlgmr.msrb.gmra.mxu2 %vm129_vm1, %v1920_v6 }
0x10e9   :  { %v1884_v27 = vpop.xlane.xlu1 %1883 }
0x10ea   :  { %v1885_v29 = vsub.f32 %v1881_v25, %v1884_v27  ;;  %v1651_v30 = vpop.f32.mrf.mxu2 }
0x10eb   :  { %v1652_v31 = vadd.f32 %v5146_v21, %v1651_v30 }
0x10ec   :  { %v1886_v33 = vmul.f32 1.442695, %v1885_v29 }
0x10ed   :  { %v1655_v43 = vmax.f32 %v1652_v31, 0.0 }
0x10ee   :  { %5234 = vpow2.f32 %v1886_v33 }
0x10ef   :  { %4957 = vmatmul.msk.f32.gmra.mxu1 %vm835_vm10, %v1655_v43  ;;  %v2011_v34 = vpop.f32.mrf.mxu3 }
0x10f0   :  { %v2014_v35 = vmul.f32 0.35355338, %v2011_v34 }
0x10f2   :  { %v6142_v36 = vpop.f32.mrf.mxu2  ;;  %v2015_v37 = vsel %vm1813_vm2, %v2014_v35, -1e+30 }
0x10f3   :  { %v2016_v38 = vsel %vm129_vm1, %v2015_v37, -inf }
0x10f4   :  { %v5235_v39 = vpop.eup %5234  ;;  %2017 = vmax.xlane.f32.xlu0 %v2016_v38  ;;  %v1682_v23 = vpop.f32.mrf.mxu1 }
0x10f5   :  { %v1888_v40 = vsel %vm129_vm1, %v5235_v39, 0.0 }
0x10f6   :  { %1889 = vadd.xlane.f32.xlu1 %v1888_v40 }
0x10fa   :  { %v1944_v44 = vpop.f32.mrf.mxu2 }
0x10fb   :  { %v1947_v46 = vmul.f32 0.35355338, %v1944_v44 }
0x10fd   :  { %v1948_v8 = vsel %vm1813_vm2, %v1947_v46, -1e+30 }
0x10fe   :  { %v1949_v47 = vsel %vm129_vm1, %v1948_v8, -inf }
0x10ff   :  { %1950 = vmax.xlane.f32.xlu2 %v1949_v47  ;;  %v1755_v47 = vld [vmem:[%s7021_s14 + $0x18] sm:$0xff] }
0x110f   :  { %1893 = vrot.lane.b32.xlu1 %v6011_v57, %s7127_s8 }
0x1117   :  { %2137 = vrot.lane.b32.xlu2 %v6128_v18, %s7122_s5  ;;  %2069 = vrot.lane.b32.xlu1 %v6128_v18, %s7120_s26 }
0x111f   :  { %2204 = vrot.lane.b32.xlu1 %v6128_v18, %s7124_s4 }
0x1127   :  { %2269 = vrot.lane.b32.xlu1 %v6128_v18, %s7125_s9 }
0x1167   :  { %v2018_v48 = vpop.xlane.xlu0 %2017 }
0x1168   :  { %v2019_v49 = vsub.f32 %v2015_v37, %v2018_v48  ;;  %v1754_v48 = vld [vmem:[%s7021_s14 + $0x10] sm:$0xff] }
0x1169   :  { %v1890_v7 = vpop.xlane.xlu1 %1889 }
0x116a   :  { %v2020_v52 = vmul.f32 1.442695, %v2019_v49 }
0x116c   :  { %5236 = vpow2.f32 %v2020_v52  ;;  %v6193_v24 = vpop.f32.mrf.mxu1  ;;  %v1753_v52 = vld [vmem:[%s7021_s14 + $0x8] sm:$0xff] }
0x1172   :  { %v5237_v53 = vpop.eup %5236  ;;  %v1951_v54 = vpop.xlane.xlu2 %1950 }
0x1173   :  { %v1952_v55 = vsub.f32 %v1948_v8, %v1951_v54  ;;  %v2022_v56 = vsel %vm129_vm1, %v5237_v53, 0.0  ;;  %v6226_v54 = vld [vmem:[%s7018_s11 + $0x1] ss:$0 sm:$0xff]  ;;  %s7144_s11 = sld [smem:[#allocation17_spill]] }
0x1174   :  { %2023 = vadd.xlane.f32.xlu0 %v2022_v56 }
0x1175   :  { %v1953_v58 = vmul.f32 1.442695, %v1952_v55  ;;  %v1683_v55 = vadd.f32 %v6226_v54, %v1682_v23 }
0x1177   :  { %5238 = vpow2.f32 %v1953_v58 }
0x1178   :  { %5240 = vrcp.f32 %v1890_v7 }
0x117a   :  { %v2138_v45 = vpop.permute.xlu2 %2137 }
0x117b   :  { %4976 = vmatpush.xpose.msk.msrb.mxu3 %vm129_vm1, %v2138_v45 }
0x117d   :  { %v5239_v59 = vpop.eup %5238 }
0x117e   :  { %v5241_v60 = vpop.eup %5240  ;;  %v1955_v61 = vsel %vm129_vm1, %v5239_v59, 0.0 }
0x117f   :  { %1956 = vadd.xlane.f32.xlu2 %v1955_v61  ;;  %v1892_v62 = vmul.f32 %v5241_v60, %v5235_v39 }
0x1181   :  { %v1894_v63 = vpop.permute.xlu1 %1893 }
0x1182   :  { %1914 = vmatpush.msrb.mxu0 %v1894_v63 }
0x1183   :  { %4966 = vmatmul.msk.f32.vlgmr.msrb.gmra.mxu0 %vm129_vm1, %v1892_v62 }
0x1188   :  { %2027 = vrot.lane.b32.xlu0 %v6011_v57, %s7128_s28 }
0x1189   :  { %v2070_v0 = vpop.permute.xlu1 %2069 }
0x118a   :  { %4973 = vmatpush.xpose.msk.msra.mxu2 %vm129_vm1, %v2070_v0 }
0x118d   :  { %4974 = vmatmul.msk.f32.vlgmr.msra.gmra.mxu2 %vm129_vm1, %v6128_v18 }
0x1190   :  { %2135 = vrot.lane.b32.xlu0 %v6128_v18, %s7123_s2 }
0x1191   :  { %v2205_v1 = vpop.permute.xlu1 %2204 }
0x1192   :  { %4979 = vmatpush.xpose.msk.msrb.mxu2 %vm129_vm1, %v2205_v1 }
0x1196   :  { %2369 = vmatpush.msra.mxu2 %v1755_v47 }
0x1197   :  { %2271 = vrot.lane.b32.xlu2 %v6128_v18, %s7121_s27 }
0x1198   :  { %2202 = vrot.lane.b32.xlu0 %v6128_v18, %s7126_s1  ;;  %2370 = vmatpush.msra.mxu2 %v1754_v48 }
0x1199   :  { %v2270_v15 = vpop.permute.xlu1 %2269 }
0x119a   :  { %2371 = vmatpush.msra.mxu2 %v1753_v52 }
0x11e7   :  { %v2024_v16 = vpop.xlane.xlu0 %2023 }
0x11e8   :  { %5242 = vrcp.f32 %v2024_v16 }
0x11ee   :  { %v5243_v2 = vpop.eup %5242 }
0x11ef   :  { %v2026_v6 = vmul.f32 %v5243_v2, %v5237_v53  ;;  %v1752_v53 = vld [vmem:[%s7021_s14] sm:$0xff] }
0x11f0   :  { %2372 = vmatpush.msra.mxu2 %v1752_v53 }
0x11f2   :  { %v1957_v57 = vpop.xlane.xlu2 %1956 }
0x11f3   :  { %5244 = vrcp.f32 %v1957_v57 }
0x11f9   :  { %v5245_v5 = vpop.eup %5244 }
0x11fa   :  { %v1959_v9 = vmul.f32 %v5245_v5, %v5239_v59  ;;  %v2272_v10 = vpop.permute.xlu2 %2271  ;;  %v2028_v13 = vpop.permute.xlu0 %2027  ;;  %v1690_v59 = vadd.f32 %v1683_v55, %v6083_v50 }
0x11fb   :  { %2048 = vmatpush.msra.mxu0 %v2028_v13  ;;  %4982 = vmatpush.xpose.msk.msra.mxu3 %vm129_vm1, %v2272_v10 }
0x11fc   :  { %4969 = vmatmul.msk.f32.vlgmr.msra.gmra.mxu1 %vm129_vm1, %v1959_v9  ;;  %4972 = vmatmul.msk.f32.vlgmr.msra.gmra.mxu0 %vm129_vm1, %v2026_v6  ;;  %v1692_v61 = vsel %vm96_vm0, %v1690_v59, 0.0 }
0x1200   :  { %v1916_v12 = vpop.f32.mrf.mxu0 }
0x1201   :  { %2054 = vrot.lane.b32.xlu2 %v1916_v12, %s7130_s24 }
0x1202   :  { %v2136_v14 = vpop.permute.xlu0 %2135 }
0x1203   :  { %4977 = vmatmul.msk.f32.vlgmr.msrb.gmra.mxu3 %vm129_vm1, %v2136_v14 }
0x120a   :  { %v2203_v41 = vpop.permute.xlu0 %2202 }
0x120b   :  { %4980 = vmatmul.msk.f32.vlgmr.msrb.gmra.mxu2 %vm129_vm1, %v2203_v41  ;;  %4983 = vmatmul.msk.f32.vlgmr.msra.gmra.mxu3 %vm129_vm1, %v2270_v15 }
0x1210   :  { %v2092_v4 = vpop.f32.mrf.mxu2 }
0x1211   :  { %v2095_v19 = vmul.f32 0.35355338, %v2092_v4 }
0x1213   :  { %v2097_v21 = vsel %vm2096_vm6, %v2095_v19, -1e+30 }
0x1214   :  { %v2098_v22 = vsel %vm129_vm1, %v2097_v21, -inf }
0x122a   :  { %2099 = vmax.xlane.f32.xlu2 %v2098_v22 }
0x125b   :  { %v2055_v31 = vpop.permute.xlu2 %2054 }
0x125c   :  { %v2065_v56 = vsel %vm129_vm1, %v6142_v36, %v2055_v31 }
0x1279   :  { %v1983_v11 = vpop.f32.mrf.mxu1  ;;  %v2050_v25 = vpop.f32.mrf.mxu0 }
0x127a   :  { %2058 = vrot.lane.b32.xlu0 %v1983_v11, %s7132_s19  ;;  %2062 = vrot.lane.b32.xlu1 %v2050_v25, %s7114_s10 }
0x1286   :  { %v2160_v32 = vpop.f32.mrf.mxu3 }
0x1287   :  { %v2163_v43 = vmul.f32 0.35355338, %v2160_v32 }
0x1289   :  { %v2164_v39 = vsel %vm2096_vm6, %v2163_v43, -1e+30 }
0x128a   :  { %v2165_v44 = vsel %vm129_vm1, %v2164_v39, -inf }
0x128e   :  { %v2294_v26 = vpop.f32.mrf.mxu3  ;;  %v2227_v33 = vpop.f32.mrf.mxu2 }
0x128f   :  { %v2297_v27 = vmul.f32 0.35355338, %v2294_v26  ;;  %v2230_v34 = vmul.f32 0.35355338, %v2227_v33 }
0x1291   :  { %v2298_v29 = vsel %vm2096_vm6, %v2297_v27, -1e+30  ;;  %v2231_v40 = vsel %vm2096_vm6, %v2230_v34, -1e+30 }
0x1292   :  { %v2299_v30 = vsel %vm129_vm1, %v2298_v29, -inf  ;;  %v2232_v46 = vsel %vm129_vm1, %v2231_v40, -inf }
0x1293   :  { %2300 = vmax.xlane.f32.xlu2 %v2299_v30 }
0x129d   :  { %v2100_v35 = vpop.xlane.xlu2 %2099 }
0x129e   :  { %v2101_v37 = vsub.f32 %v2097_v21, %v2100_v35 }
0x12a0   :  { %v2102_v38 = vmul.f32 1.442695, %v2101_v37 }
0x12a2   :  { %5246 = vpow2.f32 %v2102_v38 }
0x12a4   :  { %2166 = vmax.xlane.f32.xlu0 %v2165_v44  ;;  %2233 = vmax.xlane.f32.xlu1 %v2232_v46  ;;  %v2467_v44 = vld [vmem:[%s7024_s17 + $0x8] sm:$0xff]  ;;  %v2466_v46 = vld [vmem:[%s7024_s17] sm:$0xff] }
0x12a8   :  { %v5247_v8 = vpop.eup %5246 }
0x12a9   :  { %v2104_v49 = vsel %vm129_vm1, %v5247_v8, 0.0 }
0x12ac   :  { %2105 = vadd.xlane.f32.xlu0 %v2104_v49 }
0x12c0   :  { %2109 = vrot.lane.b32.xlu0 %v6128_v18, %s7119_s7 }
0x12c8   :  { %2310 = vrot.lane.b32.xlu0 %v6128_v18, %s7128_s28 }
0x12ec   :  { %v2059_v7 = vpop.permute.xlu0 %2058  ;;  %v2063_v58 = vpop.permute.xlu1 %2062 }
0x12ed   :  { %v2066_v45 = vsel %vm408_vm4, %v2065_v56, %v2059_v7 }
0x12ee   :  { %v2067_v60 = vsel %vm410_vm5, %v2066_v45, %v2063_v58 }
0x12ef   :  { %4985 = vmatmul.msk.f32.vlgmr.msra.gmra.mxu2 %vm96_vm0, %v2067_v60  ;;  %v6269_v60 = vld [vmem:[%s7134_s29 + $0x2] sm:$0x3]  ;;  %s7137_s29 = sld [smem:[#allocation9_spill]] }
0x12f2   :  { %1693 = vadd.xlane.f32.xlu0 %v1692_v61 }
0x1306   :  { %v2301_v62 = vpop.xlane.xlu2 %2300 }
0x1307   :  { %v2302_v57 = vsub.f32 %v2298_v29, %v2301_v62 }
0x1309   :  { %v2303_v5 = vmul.f32 1.442695, %v2302_v57 }
0x1317   :  { %v2167_v63 = vpop.xlane.xlu0 %2166  ;;  %v2234_v0 = vpop.xlane.xlu1 %2233 }
0x1318   :  { %v2168_v1 = vsub.f32 %v2164_v39, %v2167_v63  ;;  %v2235_v16 = vsub.f32 %v2231_v40, %v2234_v0  ;;  %v2469_v39 = vld [vmem:[%s7024_s17 + $0x18] sm:$0xff]  ;;  %v2468_v40 = vld [vmem:[%s7024_s17 + $0x10] sm:$0xff]  ;;  %v1736_v63 = vperm.slane %v6269_v60, 0 }
0x1319   :  { %2488 = vmatpush.msrb.mxu3 %v2469_v39 }
0x131a   :  { %v2169_v36 = vmul.f32 1.442695, %v2168_v1  ;;  %v2236_v2 = vmul.f32 1.442695, %v2235_v16  ;;  %v1739_v16 = vperm.slane %v6269_v60, 1 }
0x131b   :  { %2489 = vmatpush.msrb.mxu3 %v2468_v40 }
0x131c   :  { %5248 = vpow2.f32 %v2169_v36 }
0x131d   :  { %5250 = vpow2.f32 %v2236_v2  ;;  %2490 = vmatpush.msrb.mxu3 %v2467_v44 }
0x131e   :  { %5252 = vpow2.f32 %v2303_v5 }
0x131f   :  { %v2106_v13 = vpop.xlane.xlu0 %2105  ;;  %2491 = vmatpush.msrb.mxu3 %v2466_v46 }
0x1320   :  { %5254 = vrcp.f32 %v2106_v13 }
0x1322   :  { %v5249_v6 = vpop.eup %5248 }
0x1323   :  { %v5251_v50 = vpop.eup %5250  ;;  %v2171_v9 = vsel %vm129_vm1, %v5249_v6, 0.0 }
0x1324   :  { %2172 = vadd.xlane.f32.xlu1 %v2171_v9  ;;  %v2238_v10 = vsel %vm129_vm1, %v5251_v50, 0.0  ;;  %v5253_v12 = vpop.eup %5252  ;;  %v1686_v9 = vadd.f32 %v6226_v54, %v6193_v24 }
0x1325   :  { %2239 = vadd.xlane.f32.xlu2 %v2238_v10  ;;  %v2305_v14 = vsel %vm129_vm1, %v5253_v12, 0.0 }
0x1326   :  { %v5255_v15 = vpop.eup %5254  ;;  %v1691_v10 = vadd.f32 %v1686_v9, %v6124_v51  ;;  %v2433_v51 = vld [vmem:[%s7135_s18] sm:$0xff] }
0x1327   :  { %v2108_v41 = vmul.f32 %v5255_v15, %v5247_v8  ;;  %v2434_v15 = vld [vmem:[%s7135_s18 + $0x8] sm:$0xff] }
0x1328   :  { %v1695_v13 = vsel %vm96_vm0, %v1691_v10, 0.0 }
0x132c   :  { %2306 = vadd.xlane.f32.xlu1 %v2305_v14  ;;  %v2435_v14 = vld [vmem:[%s7135_s18 + $0x10] sm:$0xff] }
0x1332   :  { %v2110_v4 = vpop.permute.xlu0 %2109 }
0x1333   :  { %2130 = vmatpush.msrb.mxu1 %v2110_v4 }
0x1334   :  { %4975 = vmatmul.msk.f32.vlgmr.msrb.gmra.mxu1 %vm129_vm1, %v2108_v41 }
0x133a   :  { %v2311_v19 = vpop.permute.xlu0 %2310 }
0x133d   :  { %2176 = vrot.lane.b32.xlu2 %v6128_v18, %s7127_s8 }
0x1345   :  { %2243 = vrot.lane.b32.xlu1 %v6128_v18, %s7129_s25 }
0x1365   :  { %v1694_v21 = vpop.xlane.xlu0 %1693 }
0x1366   :  { %v1698_v22 = vmul.f32 %v1694_v21, %v5732_v28 }
0x1368   :  { %v1700_v23 = vsub.f32 %v1690_v59, %v1698_v22 }
0x136a   :  { %v1702_v11 = vmul.f32 %v1700_v23, %v1700_v23 }
0x136c   :  { %v1704_v25 = vsel %vm96_vm0, %v1702_v11, 0.0 }
0x136f   :  { %1705 = vadd.xlane.f32.xlu1 %v1704_v25 }
0x1372   :  { %v2374_v32 = vpop.f32.mrf.mxu2 }
0x1373   :  { %v2381_v26 = vadd.f32 %v2374_v32, %v5995_v42 }
0x1375   :  { %v2383_v27 = vsel %vm96_vm0, %v2381_v26, 0.0 }
0x1376   :  { %2384 = vadd.xlane.f32.xlu2 %v2383_v27 }
0x1397   :  { %v2173_v29 = vpop.xlane.xlu1 %2172 }
0x1398   :  { %v2240_v30 = vpop.xlane.xlu2 %2239  ;;  %5256 = vrcp.f32 %v2173_v29 }
0x139e   :  { %v5257_v31 = vpop.eup %5256 }
0x139f   :  { %v2175_v18 = vmul.f32 %v5257_v31, %v5249_v6  ;;  %v2307_v33 = vpop.xlane.xlu1 %2306 }
0x13a0   :  { %v2177_v43 = vpop.permute.xlu2 %2176  ;;  %5258 = vrcp.f32 %v2307_v33 }
0x13a1   :  { %2197 = vmatpush.msrb.mxu0 %v2177_v43  ;;  %5260 = vrcp.f32 %v2240_v30 }
0x13a2   :  { %4978 = vmatmul.msk.f32.vlgmr.msrb.gmra.mxu0 %vm129_vm1, %v2175_v18 }
0x13a3   :  { %2331 = vmatpush.msra.mxu0 %v2311_v19 }
0x13a6   :  { %v5259_v34 = vpop.eup %5258 }
0x13a7   :  { %v2309_v35 = vmul.f32 %v5259_v34, %v5253_v12  ;;  %v5261_v42 = vpop.eup %5260  ;;  %v2436_v12 = vld [vmem:[%s7135_s18 + $0x18] sm:$0xff] }
0x13a8   :  { %v2242_v37 = vmul.f32 %v5261_v42, %v5251_v50 }
0x13aa   :  { %4984 = vmatmul.msk.f32.vlgmr.msra.gmra.mxu0 %vm129_vm1, %v2309_v35 }
0x13b1   :  { %v2132_v6 = vpop.f32.mrf.mxu1 }
0x13b7   :  { %v2244_v38 = vpop.permute.xlu1 %2243 }
0x13b8   :  { %2264 = vmatpush.msra.mxu1 %v2244_v38 }
0x13b9   :  { %4981 = vmatmul.msk.f32.vlgmr.msra.gmra.mxu1 %vm129_vm1, %v2242_v37 }
0x13ba   :  { %2455 = vmatpush.msrb.mxu1 %v2436_v12 }
0x13bc   :  { %2456 = vmatpush.msrb.mxu1 %v2435_v14 }
0x13be   :  { %2457 = vmatpush.msrb.mxu1 %v2434_v15 }
0x13c0   :  { %2458 = vmatpush.msrb.mxu1 %v2433_v51 }
0x13e2   :  { %v1706_v8 = vpop.xlane.xlu1 %1705 }
0x13e3   :  { %v1710_v47 = vmul.f32 %v1706_v8, %v5732_v28 }
0x13e5   :  { %v1712_v48 = vadd.f32 1e-05, %v1710_v47 }
0x13e7   :  { %5262 = vrsqrt.f32 %v1712_v48  ;;  %vm1720_vm8 = vweird.f32 %v1712_v48 }
0x13e9   :  { %v2385_v49 = vpop.xlane.xlu2 %2384 }
0x13ea   :  { %v2389_v52 = vmul.f32 %v2385_v49, %v5732_v28 }
0x13ec   :  { %v2391_v53 = vsub.f32 %v2381_v26, %v2389_v52 }
0x13ed   :  { %v5263_v55 = vpop.eup %5262 }
0x13ee   :  { %v1715_v56 = vmul.f32 %v5263_v55, %v1712_v48  ;;  %v2393_v7 = vmul.f32 %v2391_v53, %v2391_v53  ;;  %vm1721_vm7 = vweird.f32 %v5263_v55 }
0x13ef   :  { %vm1722_vm9 = vmor %vm1720_vm8, %vm1721_vm7 }
0x13f0   :  { %v1716_v58 = vmul.f32 %v5263_v55, %v1715_v56  ;;  %v2395_v45 = vsel %vm96_vm0, %v2393_v7, 0.0 }
0x13f1   :  { %2396 = vadd.xlane.f32.xlu0 %v2395_v45 }
0x13f2   :  { %v1717_v59 = vmul.f32 0.5, %v1716_v58 }
0x13f4   :  { %v1718_v61 = vsub.f32 1.5, %v1717_v59 }
0x13f6   :  { %v1719_v62 = vmul.f32 %v5263_v55, %v1718_v61 }
0x13f8   :  { %v1723_v0 = vsel %vm1722_vm9, %v5263_v55, %v1719_v62 }
0x13f9   :  { %v1734_v1 = vmul.f32 %v1723_v0, %v1700_v23  ;;  %v6304_v23 = vld [vmem:[%s7136_s12] sm:$0x3] }
0x13fa   :  { %v2427_v32 = vperm.slane %v6304_v23, 0  ;;  %v2430_v29 = vperm.slane %v6304_v23, 1 }
0x13fb   :  { %v1737_v57 = vmul.f32 %v1736_v63, %v1734_v1 }
0x13fd   :  { %v6277_v36 = vadd.f32 %v1739_v16, %v1737_v57 }
0x13ff   :  { %4989 = vmatmul.msk.f32.vlgmr.msrb.gmra.mxu3 %vm96_vm0, %v6277_v36 }
0x141f   :  { %v2199_v2 = vpop.f32.mrf.mxu0 }
0x1420   :  { %2337 = vrot.lane.b32.xlu2 %v2199_v2, %s7130_s24 }
0x1427   :  { %v2333_v5 = vpop.f32.mrf.mxu0 }
0x1428   :  { %2345 = vrot.lane.b32.xlu1 %v2333_v5, %s7114_s10 }
0x1436   :  { %v2266_v50 = vpop.f32.mrf.mxu1 }
0x1437   :  { %2341 = vrot.lane.b32.xlu0 %v2266_v50, %s7132_s19 }
0x1449   :  { %1696 = vadd.xlane.f32.xlu2 %v1695_v13 }
0x1464   :  { %v2397_v24 = vpop.xlane.xlu0 %2396 }
0x1465   :  { %v2401_v54 = vmul.f32 %v2397_v24, %v5732_v28 }
0x1467   :  { %v2403_v41 = vadd.f32 1e-05, %v2401_v54 }
0x1469   :  { %5264 = vrsqrt.f32 %v2403_v41  ;;  %vm2411_vm11 = vweird.f32 %v2403_v41 }
0x146f   :  { %v5265_v4 = vpop.eup %5264 }
0x1470   :  { %v2406_v19 = vmul.f32 %v5265_v4, %v2403_v41  ;;  %vm2412_vm3 = vweird.f32 %v5265_v4 }
0x1471   :  { %vm2413_vm12 = vmor %vm2411_vm11, %vm2412_vm3 }
0x1472   :  { %v2407_v21 = vmul.f32 %v5265_v4, %v2406_v19 }
0x1474   :  { %v2408_v22 = vmul.f32 0.5, %v2407_v21 }
0x1476   :  { %v2409_v11 = vsub.f32 1.5, %v2408_v22 }
0x1478   :  { %v2410_v25 = vmul.f32 %v5265_v4, %v2409_v11 }
0x147a   :  { %v2414_v26 = vsel %vm2413_vm12, %v5265_v4, %v2410_v25  ;;  %v2338_v33 = vpop.permute.xlu2 %2337 }
0x147b   :  { %v2425_v27 = vmul.f32 %v2414_v26, %v2391_v53  ;;  %v2348_v43 = vsel %vm129_vm1, %v2132_v6, %v2338_v33 }
0x147d   :  { %v2428_v30 = vmul.f32 %v2427_v32, %v2425_v27 }
0x147f   :  { %v6312_v31 = vadd.f32 %v2430_v29, %v2428_v30 }
0x1481   :  { %4987 = vmatmul.msk.f32.vlgmr.msrb.gmra.mxu1 %vm96_vm0, %v6312_v31 }
0x1482   :  { %v6316_v18 = vpop.f32.mrf.mxu3 }
0x1483   :  { %2571 = vrot.lane.b32.xlu1 %v6316_v18, %s7123_s2  ;;  %4991 = vmatpush.xpose.msk.msrb.mxu0 %vm129_vm1, %v6316_v18 }
0x148b   :  { %2638 = vrot.lane.b32.xlu1 %v6316_v18, %s7126_s1 }
0x1493   :  { %2705 = vrot.lane.b32.xlu1 %v6316_v18, %s7125_s9 }
0x149a   :  { %v2346_v35 = vpop.permute.xlu1 %2345 }
0x14a9   :  { %v2342_v34 = vpop.permute.xlu0 %2341 }
0x14aa   :  { %v2349_v42 = vsel %vm408_vm4, %v2348_v43, %v2342_v34 }
0x14ab   :  { %v2350_v37 = vsel %vm410_vm5, %v2349_v42, %v2346_v35 }
0x14ac   :  { %4986 = vmatmul.msk.f32.gmra.mxu2 %vm96_vm0, %v2350_v37 }
0x14bc   :  { %v1697_v38 = vpop.xlane.xlu2 %1696 }
0x14bd   :  { %v1699_v39 = vmul.f32 %v1697_v38, %v5732_v28 }
0x14bf   :  { %v1701_v40 = vsub.f32 %v1691_v10, %v1699_v39 }
0x14c1   :  { %v1703_v44 = vmul.f32 %v1701_v40, %v1701_v40 }
0x14c3   :  { %v1707_v46 = vsel %vm96_vm0, %v1703_v44, 0.0 }
0x14c4   :  { %1708 = vadd.xlane.f32.xlu0 %v1707_v46 }
0x14f5   :  { %v2572_v8 = vpop.permute.xlu1 %2571 }
0x14f6   :  { %4994 = vmatpush.xpose.msk.msrb.mxu2 %vm129_vm1, %v2572_v8 }
0x14fd   :  { %v2639_v47 = vpop.permute.xlu1 %2638 }
0x14fe   :  { %v2460_v48 = vpop.f32.mrf.mxu1  ;;  %4997 = vmatpush.xpose.msk.msra.mxu3 %vm129_vm1, %v2639_v47 }
0x14ff   :  { %2636 = vrot.lane.b32.xlu2 %v2460_v48, %s7126_s1  ;;  %2569 = vrot.lane.b32.xlu1 %v2460_v48, %s7123_s2 }
0x1500   :  { %4992 = vmatmul.msk.f32.vlgmr.msrb.gmra.mxu0 %vm129_vm1, %v2460_v48 }
0x1505   :  { %v2706_v49 = vpop.permute.xlu1 %2705 }
0x1506   :  { %5000 = vmatpush.xpose.msk.msra.mxu2 %vm129_vm1, %v2706_v49 }
0x1507   :  { %2703 = vrot.lane.b32.xlu1 %v2460_v48, %s7125_s9 }
0x152f   :  { %v2377_v52 = vpop.f32.mrf.mxu2 }
0x1530   :  { %v2382_v53 = vadd.f32 %v2377_v52, %v6048_v17 }
0x1532   :  { %v2386_v55 = vsel %vm96_vm0, %v2382_v53, 0.0 }
0x1533   :  { %2387 = vadd.xlane.f32.xlu0 %v2386_v55 }
0x1537   :  { %v1709_v56 = vpop.xlane.xlu0 %1708 }
0x1538   :  { %v1711_v7 = vmul.f32 %v1709_v56, %v5732_v28 }
0x153a   :  { %v1713_v58 = vadd.f32 1e-05, %v1711_v7 }
0x153c   :  { %5266 = vrsqrt.f32 %v1713_v58  ;;  %vm1730_vm14 = vweird.f32 %v1713_v58 }
0x1542   :  { %v5267_v45 = vpop.eup %5266 }
0x1543   :  { %v1725_v59 = vmul.f32 %v5267_v45, %v1713_v58  ;;  %vm1731_vm13 = vweird.f32 %v5267_v45 }
0x1544   :  { %vm1732_vm15 = vmor %vm1730_vm14, %vm1731_vm13 }
0x1545   :  { %v1726_v61 = vmul.f32 %v5267_v45, %v1725_v59 }
0x1547   :  { %v1727_v62 = vmul.f32 0.5, %v1726_v61 }
0x1549   :  { %v1728_v0 = vsub.f32 1.5, %v1727_v62 }
0x154b   :  { %v1729_v1 = vmul.f32 %v5267_v45, %v1728_v0 }
0x154d   :  { %v1733_v57 = vsel %vm1732_vm15, %v5267_v45, %v1729_v1 }
0x154e   :  { %v1735_v2 = vmul.f32 %v1733_v57, %v1701_v40 }
0x1550   :  { %v1738_v17 = vmul.f32 %v1736_v63, %v1735_v2  ;;  %v6356_v63 = vld [vmem:[%s7137_s29] sm:$0xff] }
0x1551   :  { %vm2530_vm7 = vcmp.gt.f32.partialorder %v6356_v63, 0.0 }
0x1552   :  { %v6346_v5 = vadd.f32 %v1739_v16, %v1738_v17 }
0x1554   :  { %4990 = vmatmul.msk.f32.gmra.mxu3 %vm96_vm0, %v6346_v5 }
0x1559   :  { %v2637_v6 = vpop.permute.xlu2 %2636 }
0x155c   :  { %4998 = vmatmul.msk.f32.vlgmr.msra.gmra.mxu3 %vm129_vm1, %v2637_v6 }
0x1571   :  { %v2570_v50 = vpop.permute.xlu1 %2569 }
0x1572   :  { %4995 = vmatmul.msk.f32.vlgmr.msrb.gmra.mxu2 %vm129_vm1, %v2570_v50 }
0x1579   :  { %v2704_v9 = vpop.permute.xlu1 %2703 }
0x157a   :  { %5001 = vmatmul.msk.f32.vlgmr.msra.gmra.mxu2 %vm129_vm1, %v2704_v9 }
0x157d   :  { %v2526_v60 = vpop.f32.mrf.mxu0 }
0x157e   :  { %v2529_v16 = vmul.f32 0.35355338, %v2526_v60 }
0x1580   :  { %v2531_v10 = vsel %vm2530_vm7, %v2529_v16, -1e+30 }
0x1581   :  { %v2532_v13 = vsel %vm129_vm1, %v2531_v10, -inf }
0x1582   :  { %2533 = vmax.xlane.f32.xlu0 %v2532_v13 }
0x15a6   :  { %v2388_v12 = vpop.xlane.xlu0 %2387 }
0x15a7   :  { %v2390_v14 = vmul.f32 %v2388_v12, %v5732_v28 }
0x15a9   :  { %v2392_v15 = vsub.f32 %v2382_v53, %v2390_v14 }
0x15ab   :  { %v2394_v51 = vmul.f32 %v2392_v15, %v2392_v15 }
0x15ad   :  { %v2398_v24 = vsel %vm96_vm0, %v2394_v51, 0.0 }
0x15ae   :  { %2399 = vadd.xlane.f32.xlu1 %v2398_v24 }
0x15c7   :  { %2677 = vrot.lane.b32.xlu1 %v6316_v18, %s7124_s4 }
0x15d7   :  { %v6366_v54 = vpop.f32.mrf.mxu3 }
0x15d8   :  { %5003 = vmatpush.xpose.msk.msrb.mxu3 %vm129_vm1, %v6366_v54 }
0x15df   :  { %v2661_v41 = vpop.f32.mrf.mxu3 }
0x15e0   :  { %v2664_v4 = vmul.f32 0.35355338, %v2661_v41 }
0x15e2   :  { %v2665_v19 = vsel %vm2530_vm7, %v2664_v4, -1e+30 }
0x15e3   :  { %v2666_v21 = vsel %vm129_vm1, %v2665_v19, -inf }
0x15e4   :  { %2667 = vmax.xlane.f32.xlu2 %v2666_v21 }
0x15f5   :  { %v2594_v22 = vpop.f32.mrf.mxu2  ;;  %v2534_v37 = vpop.xlane.xlu0 %2533 }
0x15f6   :  { %v2597_v11 = vmul.f32 0.35355338, %v2594_v22  ;;  %v2535_v40 = vsub.f32 %v2531_v10, %v2534_v37 }
0x15f8   :  { %v6375_v25 = vsel %vm2530_vm7, %v2597_v11, -1e+30  ;;  %v2536_v46 = vmul.f32 1.442695, %v2535_v40 }
0x15f9   :  { %v2599_v26 = vsel %vm129_vm1, %v6375_v25, -inf }
0x15fa   :  { %2600 = vmax.xlane.f32.xlu0 %v2599_v26 }
0x15fc   :  { %2610 = vrot.lane.b32.xlu2 %v6316_v18, %s7122_s5 }
0x15fd   :  { %v2728_v49 = vpop.f32.mrf.mxu2 }
0x15fe   :  { %v2731_v53 = vmul.f32 0.35355338, %v2728_v49 }
0x1600   :  { %v2732_v55 = vsel %vm2530_vm7, %v2731_v53, -1e+30 }
0x1601   :  { %v2733_v56 = vsel %vm129_vm1, %v2732_v55, -inf }
0x1604   :  { %2920 = vrot.lane.b32.xlu2 %v6366_v54, %s7126_s1 }
0x160e   :  { %2543 = vrot.lane.b32.xlu0 %v6316_v18, %s7120_s26 }
0x1616   :  { %2744 = vrot.lane.b32.xlu0 %v6316_v18, %s7121_s27 }
0x161e   :  { %2853 = vrot.lane.b32.xlu0 %v6366_v54, %s7123_s2 }
0x1621   :  { %v2400_v27 = vpop.xlane.xlu1 %2399 }
0x1622   :  { %v2402_v30 = vmul.f32 %v2400_v27, %v5732_v28 }
0x1624   :  { %v2404_v33 = vadd.f32 1e-05, %v2402_v30 }
0x1626   :  { %5268 = vrsqrt.f32 %v2404_v33  ;;  %vm2421_vm9 = vweird.f32 %v2404_v33 }
0x1627   :  { %5270 = vpow2.f32 %v2536_v46 }
0x162c   :  { %v5269_v43 = vpop.eup %5268 }
0x162d   :  { %v2416_v34 = vmul.f32 %v5269_v43, %v2404_v33  ;;  %vm2422_vm8 = vweird.f32 %v5269_v43  ;;  %v5271_v48 = vpop.eup %5270 }
0x162e   :  { %vm2423_vm3 = vmor %vm2421_vm9, %vm2422_vm8  ;;  %v2538_v52 = vsel %vm129_vm1, %v5271_v48, 0.0 }
0x162f   :  { %v2417_v35 = vmul.f32 %v5269_v43, %v2416_v34 }
0x1631   :  { %v2418_v42 = vmul.f32 0.5, %v2417_v35 }
0x1633   :  { %v2419_v38 = vsub.f32 1.5, %v2418_v42  ;;  %v6426_v42 = vld [vmem:[%s7137_s29 + $0x8] sm:$0xff]  ;;  %s7143_s29 = sld [smem:[#allocation25_spill]] }
0x1634   :  { %vm2812_vm11 = vcmp.gt.f32.partialorder %v6426_v42, 0.0 }
0x1635   :  { %v2420_v39 = vmul.f32 %v5269_v43, %v2419_v38 }
0x1637   :  { %v2424_v18 = vsel %vm2423_vm3, %v5269_v43, %v2420_v39 }
0x1638   :  { %v2426_v44 = vmul.f32 %v2424_v18, %v2392_v15 }
0x1639   :  { %v2678_v0 = vpop.permute.xlu1 %2677 }
0x163a   :  { %v2429_v8 = vmul.f32 %v2427_v32, %v2426_v44 }
0x163c   :  { %v6394_v47 = vadd.f32 %v2430_v29, %v2429_v8 }
0x163e   :  { %4988 = vmatmul.msk.f32.gmra.mxu1 %vm96_vm0, %v6394_v47 }
0x1648   :  { %2539 = vadd.xlane.f32.xlu0 %v2538_v52 }
0x1650   :  { %2734 = vmax.xlane.f32.xlu0 %v2733_v56 }
0x1657   :  { %v2668_v32 = vpop.xlane.xlu2 %2667 }
0x1658   :  { %v2669_v23 = vsub.f32 %v2665_v19, %v2668_v32 }
0x165a   :  { %v2670_v29 = vmul.f32 1.442695, %v2669_v23 }
0x165c   :  { %5272 = vpow2.f32 %v2670_v29 }
0x165f   :  { %v2611_v7 = vpop.permute.xlu2 %2610 }
0x1660   :  { %2631 = vmatpush.msra.mxu1 %v2611_v7 }
0x1662   :  { %v5273_v58 = vpop.eup %5272 }
0x1663   :  { %v2672_v45 = vsel %vm129_vm1, %v5273_v58, 0.0 }
0x1664   :  { %2673 = vadd.xlane.f32.xlu1 %v2672_v45  ;;  %v2502_v45 = vld [vmem:[%s7138_s0 + $0x18] sm:$0xff] }
0x1667   :  { %v2921_v59 = vpop.permute.xlu2 %2920 }
0x1668   :  { %5009 = vmatpush.xpose.msk.msra.mxu3 %vm129_vm1, %v2921_v59  ;;  %v2501_v59 = vld [vmem:[%s7138_s0 + $0x10] sm:$0xff] }
0x166d   :  { %v2601_v61 = vpop.xlane.xlu0 %2600 }
0x166e   :  { %v2602_v12 = vsub.f32 %v6375_v25, %v2601_v61 }
0x1670   :  { %v2603_v15 = vmul.f32 1.442695, %v2602_v12 }
0x1680   :  { %v2544_v62 = vpop.permute.xlu0 %2543 }
0x1681   :  { %2564 = vmatpush.msra.mxu0 %v2544_v62 }
0x1683   :  { %2698 = vmatpush.msrb.mxu0 %v2678_v0 }
0x1688   :  { %v2745_v1 = vpop.permute.xlu0 %2744 }
0x1689   :  { %2765 = vmatpush.msrb.mxu1 %v2745_v1 }
0x1690   :  { %v2854_v57 = vpop.permute.xlu0 %2853 }
0x1691   :  { %5006 = vmatpush.xpose.msk.msrb.mxu2 %vm129_vm1, %v2854_v57  ;;  %v2500_v57 = vld [vmem:[%s7138_s0 + $0x8] sm:$0xff] }
0x16bb   :  { %v2540_v2 = vpop.xlane.xlu0 %2539  ;;  %v2463_v17 = vpop.f32.mrf.mxu1 }
0x16bc   :  { %5274 = vrcp.f32 %v2540_v2  ;;  %2985 = vrot.lane.b32.xlu2 %v2463_v17, %s7125_s9  ;;  %2851 = vrot.lane.b32.xlu0 %v2463_v17, %s7123_s2  ;;  %v2499_v2 = vld [vmem:[%s7138_s0] sm:$0xff] }
0x16bd   :  { %5004 = vmatmul.msk.f32.vlgmr.msrb.gmra.mxu3 %vm129_vm1, %v2463_v17 }
0x16be   :  { %3085 = vmatpush.msrb.mxu3 %v2502_v45 }
0x16c0   :  { %3086 = vmatpush.msrb.mxu3 %v2501_v59  ;;  %v3152_v59 = vld [vmem:[%s7139_s21 + $0x18] sm:$0xff] }
0x16c2   :  { %v5275_v6 = vpop.eup %5274  ;;  %3087 = vmatpush.msrb.mxu3 %v2500_v57 }
0x16c3   :  { %v2542_v50 = vmul.f32 %v5275_v6, %v5271_v48  ;;  %v2735_v9 = vpop.xlane.xlu0 %2734 }
0x16c4   :  { %v2736_v60 = vsub.f32 %v2732_v55, %v2735_v9  ;;  %3088 = vmatpush.msrb.mxu3 %v2499_v2 }
0x16c5   :  { %4993 = vmatmul.msk.f32.vlgmr.msra.gmra.mxu0 %vm129_vm1, %v2542_v50 }
0x16c6   :  { %v2737_v16 = vmul.f32 1.442695, %v2736_v60 }
0x16c8   :  { %5276 = vpow2.f32 %v2737_v16 }
0x16ce   :  { %v5277_v10 = vpop.eup %5276 }
0x16cf   :  { %v2739_v13 = vsel %vm129_vm1, %v5277_v10, 0.0 }
0x16d0   :  { %2740 = vadd.xlane.f32.xlu1 %v2739_v13 }
0x16d7   :  { %v2674_v14 = vpop.xlane.xlu1 %2673 }
0x16d8   :  { %5278 = vrcp.f32 %v2674_v14 }
0x16d9   :  { %5280 = vpow2.f32 %v2603_v15 }
0x16de   :  { %v5279_v51 = vpop.eup %5278 }
0x16df   :  { %v2676_v24 = vmul.f32 %v5279_v51, %v5273_v58  ;;  %v5281_v41 = vpop.eup %5280 }
0x16e0   :  { %v2605_v4 = vsel %vm129_vm1, %v5281_v41, 0.0 }
0x16e1   :  { %4999 = vmatmul.msk.f32.vlgmr.msrb.gmra.mxu0 %vm129_vm1, %v2676_v24 }
0x16e6   :  { %2606 = vadd.xlane.f32.xlu0 %v2605_v4 }
0x16e9   :  { %2987 = vrot.lane.b32.xlu1 %v6366_v54, %s7125_s9 }
0x16fa   :  { %2918 = vrot.lane.b32.xlu0 %v2463_v17, %s7126_s1 }
0x1716   :  { %v2986_v26 = vpop.permute.xlu2 %2985 }
0x172e   :  { %v2852_v19 = vpop.permute.xlu0 %2851 }
0x172f   :  { %5007 = vmatmul.msk.f32.vlgmr.msrb.gmra.mxu2 %vm129_vm1, %v2852_v19 }
0x1740   :  { %v2808_v46 = vpop.f32.mrf.mxu3 }
0x1741   :  { %v2811_v8 = vmul.f32 0.35355338, %v2808_v46 }
0x1742   :  { %v2566_v22 = vpop.f32.mrf.mxu0 }
0x1743   :  { %v2741_v21 = vpop.xlane.xlu1 %2740  ;;  %v2813_v48 = vsel %vm2812_vm11, %v2811_v8, -1e+30 }
0x1744   :  { %v2814_v55 = vsel %vm129_vm1, %v2813_v48, -inf }
0x1759   :  { %v2607_v11 = vpop.xlane.xlu0 %2606 }
0x175a   :  { %5282 = vrcp.f32 %v2607_v11 }
0x175b   :  { %v2988_v25 = vpop.permute.xlu1 %2987  ;;  %5284 = vrcp.f32 %v2741_v21 }
0x175c   :  { %5012 = vmatpush.xpose.msk.msra.mxu2 %vm129_vm1, %v2988_v25 }
0x175e   :  { %v2700_v27 = vpop.f32.mrf.mxu0 }
0x175f   :  { %2775 = vrot.lane.b32.xlu0 %v2700_v27, %s7132_s19  ;;  %5013 = vmatmul.msk.f32.vlgmr.msra.gmra.mxu2 %vm129_vm1, %v2986_v26 }
0x1760   :  { %v5283_v30 = vpop.eup %5282 }
0x1761   :  { %v2609_v33 = vmul.f32 %v5283_v30, %v5281_v41  ;;  %v5285_v43 = vpop.eup %5284 }
0x1762   :  { %v2743_v34 = vmul.f32 %v5285_v43, %v5277_v10 }
0x1763   :  { %4996 = vmatmul.msk.f32.vlgmr.msra.gmra.mxu1 %vm129_vm1, %v2609_v33 }
0x176b   :  { %5002 = vmatmul.msk.f32.vlgmr.msrb.gmra.mxu1 %vm129_vm1, %v2743_v34 }
0x176c   :  { %v2919_v35 = vpop.permute.xlu0 %2918 }
0x176d   :  { %5010 = vmatmul.msk.f32.vlgmr.msra.gmra.mxu3 %vm129_vm1, %v2919_v35 }
0x17b2   :  { %v2876_v37 = vpop.f32.mrf.mxu2 }
0x17b3   :  { %v2879_v38 = vmul.f32 0.35355338, %v2876_v37 }
0x17b5   :  { %v2880_v39 = vsel %vm2812_vm11, %v2879_v38, -1e+30 }
0x17b6   :  { %v2881_v40 = vsel %vm129_vm1, %v2880_v39, -inf }
0x17b7   :  { %2882 = vmax.xlane.f32.xlu0 %v2881_v40 }
0x17d1   :  { %v2776_v58 = vpop.permute.xlu0 %2775 }
0x17e0   :  { %v2633_v18 = vpop.f32.mrf.mxu1 }
0x17e1   :  { %2771 = vrot.lane.b32.xlu1 %v2633_v18, %s7130_s24 }
0x17e2   :  { %v3010_v52 = vpop.f32.mrf.mxu2 }
0x17e3   :  { %v3013_v56 = vmul.f32 0.35355338, %v3010_v52 }
0x17e5   :  { %v3014_v23 = vsel %vm2812_vm11, %v3013_v56, -1e+30 }
0x17e6   :  { %v3015_v7 = vsel %vm129_vm1, %v3014_v23, -inf }
0x17e8   :  { %v2767_v44 = vpop.f32.mrf.mxu1 }
0x17e9   :  { %2779 = vrot.lane.b32.xlu2 %v2767_v44, %s7114_s10 }
0x17f0   :  { %v2943_v49 = vpop.f32.mrf.mxu3 }
0x17f1   :  { %v2946_v53 = vmul.f32 0.35355338, %v2943_v49 }
0x17f3   :  { %v2947_v32 = vsel %vm2812_vm11, %v2946_v53, -1e+30 }
0x17f4   :  { %v2948_v29 = vsel %vm129_vm1, %v2947_v32, -inf }
0x180b   :  { %2815 = vmax.xlane.f32.xlu1 %v2814_v55 }
0x1812   :  { %2949 = vmax.xlane.f32.xlu2 %v2948_v29 }
0x1813   :  { %3016 = vmax.xlane.f32.xlu1 %v3015_v7 }
0x182a   :  { %v2883_v61 = vpop.xlane.xlu0 %2882 }
0x182b   :  { %v2884_v62 = vsub.f32 %v2880_v39, %v2883_v61  ;;  %v3151_v61 = vld [vmem:[%s7139_s21 + $0x10] sm:$0xff] }
0x182d   :  { %v2885_v0 = vmul.f32 1.442695, %v2884_v62  ;;  %v3150_v62 = vld [vmem:[%s7139_s21 + $0x8] sm:$0xff] }
0x182f   :  { %5286 = vpow2.f32 %v2885_v0  ;;  %v3149_v0 = vld [vmem:[%s7139_s21] sm:$0xff] }
0x1835   :  { %v5287_v1 = vpop.eup %5286 }
0x1836   :  { %v2887_v17 = vsel %vm129_vm1, %v5287_v1, 0.0 }
0x1837   :  { %2888 = vadd.xlane.f32.xlu0 %v2887_v17 }
0x1843   :  { %v2780_v9 = vpop.permute.xlu2 %2779 }
0x1853   :  { %v2772_v6 = vpop.permute.xlu1 %2771 }
0x1854   :  { %v2782_v50 = vsel %vm129_vm1, %v2566_v22, %v2772_v6 }
0x1855   :  { %v2783_v60 = vsel %vm408_vm4, %v2782_v50, %v2776_v58 }
0x1856   :  { %v2784_v16 = vsel %vm410_vm5, %v2783_v60, %v2780_v9  ;;  %v6498_v60 = vld [vmem:[%s7140_s13] sm:$0x3] }
0x1857   :  { %5015 = vmatmul.msk.f32.vlgmr.msrb.gmra.mxu3 %vm96_vm0, %v2784_v16 }
0x187e   :  { %v2816_v10 = vpop.xlane.xlu1 %2815 }
0x187f   :  { %v2817_v13 = vsub.f32 %v2813_v48, %v2816_v10 }
0x1881   :  { %v2818_v12 = vmul.f32 1.442695, %v2817_v13  ;;  %v3143_v13 = vperm.slane %v6498_v60, 0 }
0x1883   :  { %5288 = vpow2.f32 %v2818_v12 }
0x1885   :  { %v2950_v14 = vpop.xlane.xlu2 %2949 }
0x1886   :  { %v2951_v15 = vsub.f32 %v2947_v32, %v2950_v14  ;;  %v3017_v51 = vpop.xlane.xlu1 %3016 }
0x1887   :  { %v3018_v24 = vsub.f32 %v3014_v23, %v3017_v51 }
0x1888   :  { %v2952_v41 = vmul.f32 1.442695, %v2951_v15  ;;  %v3146_v15 = vperm.slane %v6498_v60, 1  ;;  %v5021_v60 = vld [vmem:[%s7144_s11 + $0x20] sm:$0xff] }
0x1889   :  { %v5289_v4 = vpop.eup %5288  ;;  %v3019_v19 = vmul.f32 1.442695, %v3018_v24 }
0x188a   :  { %5290 = vpow2.f32 %v2952_v41  ;;  %v2820_v21 = vsel %vm129_vm1, %v5289_v4, 0.0  ;;  %v3161_v41 = vld [vmem:[%s7141_s23 + $0x38] sm:$0xff] }
0x188b   :  { %5292 = vpow2.f32 %v3019_v19  ;;  %2821 = vadd.xlane.f32.xlu2 %v2820_v21  ;;  %3214 = vmatpush.msrb.mxu2 %v3161_v41  ;;  %v3159_v19 = vld [vmem:[%s7141_s23 + $0x28] sm:$0xff]  ;;  %v3158_v21 = vld [vmem:[%s7141_s23 + $0x20] sm:$0xff] }
0x1890   :  { %v5291_v22 = vpop.eup %5290 }
0x1891   :  { %v5293_v11 = vpop.eup %5292  ;;  %v2954_v25 = vsel %vm129_vm1, %v5291_v22, 0.0 }
0x1892   :  { %2955 = vadd.xlane.f32.xlu1 %v2954_v25  ;;  %v3021_v26 = vsel %vm129_vm1, %v5293_v11, 0.0 }
0x1893   :  { %3022 = vadd.xlane.f32.xlu0 %v3021_v26 }
0x18a3   :  { %2825 = vrot.lane.b32.xlu2 %v6366_v54, %s7120_s26 }
0x18a7   :  { %2959 = vrot.lane.b32.xlu0 %v6366_v54, %s7124_s4 }
0x18aa   :  { %v2889_v38 = vpop.xlane.xlu0 %2888 }
0x18ab   :  { %2892 = vrot.lane.b32.xlu1 %v6366_v54, %s7122_s5  ;;  %3026 = vrot.lane.b32.xlu2 %v6366_v54, %s7121_s27 }
0x18da   :  { %v3090_v27 = vpop.f32.mrf.mxu3 }
0x18db   :  { %v3097_v30 = vadd.f32 %v3090_v27, %v6312_v31 }
0x18dd   :  { %v3099_v33 = vsel %vm96_vm0, %v3097_v30, 0.0 }
0x18de   :  { %3100 = vadd.xlane.f32.xlu0 %v3099_v33 }
0x18fe   :  { %v2822_v43 = vpop.xlane.xlu2 %2821 }
0x18ff   :  { %5294 = vrcp.f32 %v2822_v43  ;;  %v3156_v43 = vld [vmem:[%s7141_s23 + $0x10] sm:$0xff] }
0x1905   :  { %v5295_v34 = vpop.eup %5294  ;;  %v2956_v39 = vpop.xlane.xlu1 %2955 }
0x1906   :  { %v2824_v35 = vmul.f32 %v5295_v34, %v5289_v4  ;;  %v2826_v37 = vpop.permute.xlu2 %2825  ;;  %5296 = vrcp.f32 %v2956_v39  ;;  %v3023_v40 = vpop.xlane.xlu0 %3022  ;;  %v3160_v4 = vld [vmem:[%s7141_s23 + $0x30] sm:$0xff]  ;;  %v3155_v34 = vld [vmem:[%s7141_s23 + $0x8] sm:$0xff] }
0x1907   :  { %2846 = vmatpush.msra.mxu0 %v2826_v37  ;;  %5298 = vrcp.f32 %v2889_v38  ;;  %3215 = vmatpush.msrb.mxu2 %v3160_v4  ;;  %v6538_v37 = vld [vmem:[%s7142_s30] ss:$0 sm:$0xff] }
0x1908   :  { %5005 = vmatmul.msk.f32.vlgmr.msra.gmra.mxu0 %vm129_vm1, %v2824_v35  ;;  %5300 = vrcp.f32 %v3023_v40  ;;  %v3154_v35 = vld [vmem:[%s7141_s23] sm:$0xff] }
0x1909   :  { %3216 = vmatpush.msrb.mxu2 %v3159_v19 }
0x190b   :  { %3217 = vmatpush.msrb.mxu2 %v3158_v21  ;;  %v6577_v21 = vld [vmem:[%s7145_s15] sm:$0x3] }
0x190c   :  { %v5297_v54 = vpop.eup %5296 }
0x190d   :  { %v2958_v18 = vmul.f32 %v5297_v54, %v5291_v22  ;;  %v5299_v31 = vpop.eup %5298  ;;  %v3157_v22 = vld [vmem:[%s7141_s23 + $0x18] sm:$0xff] }
0x190e   :  { %v2891_v46 = vmul.f32 %v5299_v31, %v5287_v1  ;;  %v3027_v48 = vpop.permute.xlu2 %3026  ;;  %v5301_v49 = vpop.eup %5300  ;;  %3218 = vmatpush.msrb.mxu2 %v3157_v22  ;;  %v6547_v31 = vld [vmem:[%s7143_s29] ss:$0 sm:$0xff]  ;;  %s7148_s29 = sld [smem:[#allocation27_spill]] }
0x190f   :  { %v3025_v52 = vmul.f32 %v5301_v49, %v5293_v11 }
0x1910   :  { %3219 = vmatpush.msrb.mxu2 %v3156_v43 }
0x1912   :  { %3220 = vmatpush.msrb.mxu2 %v3155_v34 }
0x1914   :  { %3221 = vmatpush.msrb.mxu2 %v3154_v35 }
0x1919   :  { %v2960_v44 = vpop.permute.xlu0 %2959 }
0x191a   :  { %2980 = vmatpush.msrb.mxu0 %v2960_v44 }
0x191b   :  { %5011 = vmatmul.msk.f32.vlgmr.msrb.gmra.mxu0 %vm129_vm1, %v2958_v18 }
0x191c   :  { %3184 = vmatpush.msra.mxu0 %v3152_v59 }
0x191d   :  { %v2893_v8 = vpop.permute.xlu1 %2892 }
0x191e   :  { %2913 = vmatpush.msra.mxu1 %v2893_v8  ;;  %3185 = vmatpush.msra.mxu0 %v3151_v61 }
0x191f   :  { %5008 = vmatmul.msk.f32.vlgmr.msra.gmra.mxu1 %vm129_vm1, %v2891_v46 }
0x1920   :  { %3047 = vmatpush.msrb.mxu1 %v3027_v48  ;;  %3186 = vmatpush.msra.mxu0 %v3150_v62 }
0x1922   :  { %3187 = vmatpush.msra.mxu0 %v3149_v0 }
0x1927   :  { %5014 = vmatmul.msk.f32.vlgmr.msrb.gmra.mxu1 %vm129_vm1, %v3025_v52 }
0x1951   :  { %v3101_v53 = vpop.xlane.xlu0 %3100 }
0x1952   :  { %v3105_v55 = vmul.f32 %v3101_v53, %v5732_v28 }
0x1954   :  { %v3107_v56 = vsub.f32 %v3097_v30, %v3105_v55 }
0x1956   :  { %v3109_v32 = vmul.f32 %v3107_v56, %v3107_v56 }
0x1958   :  { %v3111_v23 = vsel %vm96_vm0, %v3109_v32, 0.0 }
0x1959   :  { %3112 = vadd.xlane.f32.xlu1 %v3111_v23 }
0x1985   :  { %v2848_v29 = vpop.f32.mrf.mxu0 }
0x1998   :  { %v2982_v58 = vpop.f32.mrf.mxu0 }
0x199c   :  { %v2915_v7 = vpop.f32.mrf.mxu1 }
0x199d   :  { %3053 = vrot.lane.b32.xlu2 %v2915_v7, %s7130_s24 }
0x19a4   :  { %v3049_v45 = vpop.f32.mrf.mxu1 }
0x19a5   :  { %3057 = vrot.lane.b32.xlu2 %v2982_v58, %s7132_s19 }
0x19ad   :  { %3061 = vrot.lane.b32.xlu2 %v3049_v45, %s7114_s10 }
0x19cc   :  { %v3113_v1 = vpop.xlane.xlu1 %3112 }
0x19cd   :  { %v3117_v57 = vmul.f32 %v3113_v1, %v5732_v28 }
0x19cf   :  { %v3119_v2 = vadd.f32 1e-05, %v3117_v57 }
0x19d1   :  { %5302 = vrsqrt.f32 %v3119_v2  ;;  %vm3127_vm13 = vweird.f32 %v3119_v2 }
0x19d7   :  { %v5303_v17 = vpop.eup %5302 }
0x19d8   :  { %v3122_v6 = vmul.f32 %v5303_v17, %v3119_v2  ;;  %vm3128_vm12 = vweird.f32 %v5303_v17 }
0x19d9   :  { %vm3129_vm14 = vmor %vm3127_vm13, %vm3128_vm12 }
0x19da   :  { %v3123_v50 = vmul.f32 %v5303_v17, %v3122_v6 }
0x19dc   :  { %v3124_v9 = vmul.f32 0.5, %v3123_v50 }
0x19de   :  { %v3125_v16 = vsub.f32 1.5, %v3124_v9 }
0x19e0   :  { %v3126_v10 = vmul.f32 %v5303_v17, %v3125_v16 }
0x19e2   :  { %v3130_v12 = vsel %vm3129_vm14, %v5303_v17, %v3126_v10  ;;  %v5024_v10 = vld [vmem:[%s7144_s11 + $0x38] sm:$0xff] }
0x19e3   :  { %v3141_v14 = vmul.f32 %v3130_v12, %v3107_v56  ;;  %3310 = vmatpush.msra.mxu1 %v5024_v10  ;;  %v5023_v12 = vld [vmem:[%s7144_s11 + $0x30] sm:$0xff] }
0x19e5   :  { %v3144_v51 = vmul.f32 %v3143_v13, %v3141_v14  ;;  %v5022_v14 = vld [vmem:[%s7144_s11 + $0x28] sm:$0xff]  ;;  %3311 = vmatpush.msra.mxu1 %v5023_v12 }
0x19e7   :  { %v3147_v24 = vadd.f32 %v3146_v15, %v3144_v51  ;;  %3312 = vmatpush.msra.mxu1 %v5022_v14 }
0x19e9   :  { %5017 = vmatmul.msk.f32.vlgmr.msra.gmra.mxu0 %vm96_vm0, %v3147_v24  ;;  %3313 = vmatpush.msra.mxu1 %v5021_v60 }
0x19f7   :  { %v3054_v11 = vpop.permute.xlu2 %3053 }
0x19f8   :  { %v3064_v26 = vsel %vm129_vm1, %v2848_v29, %v3054_v11 }
0x19ff   :  { %v3058_v25 = vpop.permute.xlu2 %3057 }
0x1a00   :  { %v3065_v27 = vsel %vm408_vm4, %v3064_v26, %v3058_v25  ;;  %v3276_v25 = vperm.slane %v6577_v21, 0 }
0x1a07   :  { %v3062_v30 = vpop.permute.xlu2 %3061 }
0x1a08   :  { %v3066_v33 = vsel %vm410_vm5, %v3065_v27, %v3062_v30  ;;  %v3279_v30 = vperm.slane %v6577_v21, 1 }
0x1a09   :  { %5016 = vmatmul.msk.f32.gmra.mxu3 %vm96_vm0, %v3066_v33 }
0x1a66   :  { %v3189_v38 = vpop.f32.mrf.mxu0 }
0x1a67   :  { %v3190_v39 = vadd.f32 %v6538_v37, %v3189_v38 }
0x1a69   :  { %v3195_v40 = vmax.f32 %v3190_v39, 0.0 }
0x1a6b   :  { %5019 = vmatmul.msk.f32.vlgmr.msrb.gmra.mxu2 %vm835_vm10, %v3195_v40 }
0x1a8c   :  { %v3093_v54 = vpop.f32.mrf.mxu3 }
0x1a8d   :  { %v3098_v18 = vadd.f32 %v3093_v54, %v6394_v47 }
0x1a8f   :  { %v3102_v44 = vsel %vm96_vm0, %v3098_v18, 0.0 }
0x1a90   :  { %3103 = vadd.xlane.f32.xlu2 %v3102_v44 }
0x1aee   :  { %v3223_v46 = vpop.f32.mrf.mxu2 }
0x1aef   :  { %v3224_v8 = vadd.f32 %v6547_v31, %v3223_v46 }
0x1af1   :  { %v3230_v48 = vadd.f32 %v3224_v8, %v3147_v24 }
0x1af3   :  { %v3232_v49 = vsel %vm96_vm0, %v3230_v48, 0.0 }
0x1af4   :  { %3233 = vadd.xlane.f32.xlu1 %v3232_v49 }
0x1b03   :  { %v3104_v52 = vpop.xlane.xlu2 %3103 }
0x1b04   :  { %v3106_v53 = vmul.f32 %v3104_v52, %v5732_v28 }
0x1b06   :  { %v3108_v55 = vsub.f32 %v3098_v18, %v3106_v53 }
0x1b08   :  { %v3110_v47 = vmul.f32 %v3108_v55, %v3108_v55 }
0x1b0a   :  { %v3114_v56 = vsel %vm96_vm0, %v3110_v47, 0.0 }
0x1b0b   :  { %3115 = vadd.xlane.f32.xlu0 %v3114_v56 }
0x1b67   :  { %v3234_v32 = vpop.xlane.xlu1 %3233 }
0x1b68   :  { %v3238_v23 = vmul.f32 %v3234_v32, %v5732_v28 }
0x1b6a   :  { %v3240_v29 = vsub.f32 %v3230_v48, %v3238_v23 }
0x1b6c   :  { %v3242_v7 = vmul.f32 %v3240_v29, %v3240_v29 }
0x1b6e   :  { %v3244_v58 = vsel %vm96_vm0, %v3242_v7, 0.0 }
0x1b6f   :  { %3245 = vadd.xlane.f32.xlu0 %v3244_v58 }
0x1b7e   :  { %v3116_v45 = vpop.xlane.xlu0 %3115 }
0x1b7f   :  { %v3118_v59 = vmul.f32 %v3116_v45, %v5732_v28 }
0x1b81   :  { %v3120_v61 = vadd.f32 1e-05, %v3118_v59 }
0x1b83   :  { %5304 = vrsqrt.f32 %v3120_v61  ;;  %vm3137_vm8 = vweird.f32 %v3120_v61 }
0x1b89   :  { %v5305_v62 = vpop.eup %5304 }
0x1b8a   :  { %v3132_v0 = vmul.f32 %v5305_v62, %v3120_v61  ;;  %vm3138_vm15 = vweird.f32 %v5305_v62 }
0x1b8b   :  { %vm3139_vm9 = vmor %vm3137_vm8, %vm3138_vm15 }
0x1b8c   :  { %v3133_v1 = vmul.f32 %v5305_v62, %v3132_v0 }
0x1b8e   :  { %v3134_v57 = vmul.f32 0.5, %v3133_v1 }
0x1b90   :  { %v3135_v2 = vsub.f32 1.5, %v3134_v57 }
0x1b92   :  { %v3136_v17 = vmul.f32 %v5305_v62, %v3135_v2 }
0x1b94   :  { %v3140_v6 = vsel %vm3139_vm9, %v5305_v62, %v3136_v17 }
0x1b95   :  { %v3142_v50 = vmul.f32 %v3140_v6, %v3108_v55 }
0x1b97   :  { %v3145_v9 = vmul.f32 %v3143_v13, %v3142_v50 }
0x1b99   :  { %v3148_v16 = vadd.f32 %v3146_v15, %v3145_v9 }
0x1b9b   :  { %5018 = vmatmul.msk.f32.gmra.mxu0 %vm96_vm0, %v3148_v16 }
0x1be2   :  { %v3246_v13 = vpop.xlane.xlu0 %3245 }
0x1be3   :  { %v3250_v15 = vmul.f32 %v3246_v13, %v5732_v28 }
0x1be5   :  { %v3252_v51 = vadd.f32 1e-05, %v3250_v15 }
0x1be7   :  { %5306 = vrsqrt.f32 %v3252_v51  ;;  %vm3260_vm12 = vweird.f32 %v3252_v51 }
0x1bed   :  { %v5307_v24 = vpop.eup %5306 }
0x1bee   :  { %v3255_v41 = vmul.f32 %v5307_v24, %v3252_v51  ;;  %vm3261_vm3 = vweird.f32 %v5307_v24 }
0x1bef   :  { %vm3262_vm13 = vmor %vm3260_vm12, %vm3261_vm3 }
0x1bf0   :  { %v3256_v4 = vmul.f32 %v5307_v24, %v3255_v41 }
0x1bf2   :  { %v3257_v19 = vmul.f32 0.5, %v3256_v4 }
0x1bf4   :  { %v3258_v22 = vsub.f32 1.5, %v3257_v19 }
0x1bf6   :  { %v3259_v11 = vmul.f32 %v5307_v24, %v3258_v22 }
0x1bf8   :  { %v3263_v26 = vsel %vm3262_vm13, %v5307_v24, %v3259_v11 }
0x1bf9   :  { %v3274_v27 = vmul.f32 %v3263_v26, %v3240_v29 }
0x1bfb   :  { %v3277_v33 = vmul.f32 %v3276_v25, %v3274_v27 }
0x1bfd   :  { %v6581_v43 = vadd.f32 %v3279_v30, %v3277_v33 }
0x1bff   :  { %5029 = vmatmul.msk.f32.vlgmr.msra.gmra.mxu1 %vm96_vm0, %v6581_v43 }
0x1c18   :  { %v3192_v34 = vpop.f32.mrf.mxu0 }
0x1c19   :  { %v3193_v35 = vadd.f32 %v6538_v37, %v3192_v34  ;;  %v5067_v34 = vld [vmem:[%s7024_s17 + $0x38] sm:$0xff] }
0x1c1b   :  { %v3196_v38 = vmax.f32 %v3193_v35, 0.0  ;;  %v5066_v35 = vld [vmem:[%s7024_s17 + $0x30] sm:$0xff] }
0x1c1d   :  { %5020 = vmatmul.msk.f32.gmra.mxu2 %vm835_vm10, %v3196_v38  ;;  %v5065_v38 = vld [vmem:[%s7024_s17 + $0x28] sm:$0xff] }
0x1c7c   :  { %v6587_v39 = vpop.f32.mrf.mxu1 }
0x1c7d   :  { %3322 = vrot.lane.b32.xlu1 %v6587_v39, %s7120_s26 }
0x1c85   :  { %3389 = vrot.lane.b32.xlu1 %v6587_v39, %s7122_s5 }
0x1c8d   :  { %3456 = vrot.lane.b32.xlu1 %v6587_v39, %s7124_s4 }
0x1c95   :  { %3523 = vrot.lane.b32.xlu1 %v6587_v39, %s7121_s27 }
0x1c9d   :  { %3454 = vrot.lane.b32.xlu1 %v6587_v39, %s7126_s1 }
0x1ca0   :  { %v3226_v37 = vpop.f32.mrf.mxu2 }
0x1ca1   :  { %v3227_v40 = vadd.f32 %v6547_v31, %v3226_v37 }
0x1ca3   :  { %v3231_v54 = vadd.f32 %v3227_v40, %v3148_v16  ;;  %v5064_v40 = vld [vmem:[%s7024_s17 + $0x20] sm:$0xff]  ;;  %s7149_s17 = sld [smem:[#allocation28_spill]] }
0x1ca5   :  { %v3235_v18 = vsel %vm96_vm0, %v3231_v54, 0.0 }
0x1ca6   :  { %3236 = vadd.xlane.f32.xlu0 %v3235_v18 }
0x1cef   :  { %v3323_v44 = vpop.permute.xlu1 %3322 }
0x1cf0   :  { %5031 = vmatpush.xpose.msk.msra.mxu3 %vm129_vm1, %v3323_v44 }
0x1cf3   :  { %5032 = vmatmul.msk.f32.vlgmr.msra.gmra.mxu3 %vm129_vm1, %v6587_v39 }
0x1cf7   :  { %v3390_v46 = vpop.permute.xlu1 %3389 }
0x1cf8   :  { %5034 = vmatpush.xpose.msk.msrb.mxu1 %vm129_vm1, %v3390_v46 }
0x1cff   :  { %v3457_v8 = vpop.permute.xlu1 %3456 }
0x1d07   :  { %v3524_v48 = vpop.permute.xlu1 %3523 }
0x1d08   :  { %5040 = vmatpush.xpose.msk.msra.mxu1 %vm129_vm1, %v3524_v48 }
0x1d0f   :  { %v3455_v22 = vpop.permute.xlu1 %3454 }
0x1d19   :  { %v3237_v49 = vpop.xlane.xlu0 %3236 }
0x1d1a   :  { %v3239_v31 = vmul.f32 %v3237_v49, %v5732_v28 }
0x1d1c   :  { %v3241_v52 = vsub.f32 %v3231_v54, %v3239_v31 }
0x1d1e   :  { %v3243_v53 = vmul.f32 %v3241_v52, %v3241_v52 }
0x1d20   :  { %v3247_v55 = vsel %vm96_vm0, %v3243_v53, 0.0 }
0x1d21   :  { %3248 = vadd.xlane.f32.xlu0 %v3247_v55 }
0x1d35   :  { %3387 = vrot.lane.b32.xlu0 %v6587_v39, %s7123_s2 }
0x1d76   :  { %v3345_v47 = vpop.f32.mrf.mxu3 }
0x1d77   :  { %v3348_v56 = vmul.f32 0.35355338, %v3345_v47 }
0x1d79   :  { %v3349_v32 = vsel %vm1813_vm2, %v3348_v56, -1e+30 }
0x1d7a   :  { %v3350_v23 = vsel %vm129_vm1, %v3349_v32, -inf }
0x1d7b   :  { %3351 = vmax.xlane.f32.xlu2 %v3350_v23 }
0x1d93   :  { %3361 = vrot.lane.b32.xlu2 %v6587_v39, %s7119_s7 }
0x1d94   :  { %v3249_v29 = vpop.xlane.xlu0 %3248 }
0x1d95   :  { %v3251_v7 = vmul.f32 %v3249_v29, %v5732_v28 }
0x1d97   :  { %v3253_v58 = vadd.f32 1e-05, %v3251_v7 }
0x1d99   :  { %5308 = vrsqrt.f32 %v3253_v58  ;;  %vm3270_vm15 = vweird.f32 %v3253_v58 }
0x1d9b   :  { %3521 = vrot.lane.b32.xlu2 %v6587_v39, %s7125_s9 }
0x1d9f   :  { %v5309_v45 = vpop.eup %5308 }
0x1da0   :  { %v3265_v59 = vmul.f32 %v5309_v45, %v3253_v58  ;;  %vm3271_vm14 = vweird.f32 %v5309_v45 }
0x1da1   :  { %vm3272_vm8 = vmor %vm3270_vm15, %vm3271_vm14 }
0x1da2   :  { %v3266_v61 = vmul.f32 %v5309_v45, %v3265_v59 }
0x1da4   :  { %v3267_v62 = vmul.f32 0.5, %v3266_v61 }
0x1da6   :  { %v3268_v0 = vsub.f32 1.5, %v3267_v62 }
0x1da7   :  { %v3388_v50 = vpop.permute.xlu0 %3387 }
0x1da8   :  { %v3269_v1 = vmul.f32 %v5309_v45, %v3268_v0 }
0x1daa   :  { %v3273_v57 = vsel %vm3272_vm8, %v5309_v45, %v3269_v1 }
0x1dab   :  { %v3275_v2 = vmul.f32 %v3273_v57, %v3241_v52 }
0x1dad   :  { %v3278_v17 = vmul.f32 %v3276_v25, %v3275_v2 }
0x1daf   :  { %v6618_v6 = vadd.f32 %v3279_v30, %v3278_v17 }
0x1db1   :  { %5030 = vmatmul.msk.f32.gmra.mxu1 %vm96_vm0, %v6618_v6 }
0x1db9   :  { %5035 = vmatmul.msk.f32.vlgmr.msrb.gmra.mxu1 %vm129_vm1, %v3388_v50 }
0x1dee   :  { %v3352_v9 = vpop.xlane.xlu2 %3351 }
0x1def   :  { %v3353_v14 = vsub.f32 %v3349_v32, %v3352_v9 }
0x1df1   :  { %v3354_v60 = vmul.f32 1.442695, %v3353_v14 }
0x1df3   :  { %5310 = vpow2.f32 %v3354_v60 }
0x1df6   :  { %v3362_v16 = vpop.permute.xlu2 %3361 }
0x1df7   :  { %3382 = vmatpush.msrb.mxu0 %v3362_v16 }
0x1df9   :  { %5037 = vmatpush.xpose.msk.msra.mxu0 %vm129_vm1, %v3457_v8  ;;  %v5311_v24 = vpop.eup %5310 }
0x1dfa   :  { %v3356_v4 = vsel %vm129_vm1, %v5311_v24, 0.0 }
0x1dfe   :  { %v3522_v10 = vpop.permute.xlu2 %3521 }
0x1dff   :  { %5041 = vmatmul.msk.f32.vlgmr.msra.gmra.mxu1 %vm129_vm1, %v3522_v10 }
0x1e2e   :  { %v6625_v12 = vpop.f32.mrf.mxu1 }
0x1e2f   :  { %3669 = vrot.lane.b32.xlu2 %v6625_v12, %s7123_s2  ;;  %3671 = vrot.lane.b32.xlu1 %v6625_v12, %s7122_s5 }
0x1e30   :  { %3604 = vrot.lane.b32.xlu0 %v6625_v12, %s7120_s26 }
0x1e36   :  { %v3412_v13 = vpop.f32.mrf.mxu1 }
0x1e37   :  { %3736 = vrot.lane.b32.xlu2 %v6625_v12, %s7126_s1  ;;  %3805 = vrot.lane.b32.xlu1 %v6625_v12, %s7121_s27  ;;  %v3415_v15 = vmul.f32 0.35355338, %v3412_v13 }
0x1e38   :  { %3738 = vrot.lane.b32.xlu0 %v6625_v12, %s7124_s4 }
0x1e39   :  { %v3416_v51 = vsel %vm1813_vm2, %v3415_v15, -1e+30 }
0x1e3a   :  { %v3417_v41 = vsel %vm129_vm1, %v3416_v51, -inf }
0x1e61   :  { %3418 = vmax.xlane.f32.xlu1 %v3417_v41 }
0x1e62   :  { %3357 = vadd.xlane.f32.xlu0 %v3356_v4 }
0x1e76   :  { %3803 = vrot.lane.b32.xlu0 %v6625_v12, %s7125_s9 }
0x1e7c   :  { %v3546_v19 = vpop.f32.mrf.mxu1 }
0x1e7d   :  { %v3549_v21 = vmul.f32 0.35355338, %v3546_v19 }
0x1e7f   :  { %v3550_v11 = vsel %vm1813_vm2, %v3549_v21, -1e+30 }
0x1e80   :  { %v3551_v25 = vsel %vm129_vm1, %v3550_v11, -inf }
0x1e89   :  { %v3670_v27 = vpop.permute.xlu2 %3669 }
0x1e91   :  { %v3737_v8 = vpop.permute.xlu2 %3736 }
0x1ea0   :  { %3552 = vmax.xlane.f32.xlu0 %v3551_v25 }
0x1ea1   :  { %v3672_v26 = vpop.permute.xlu1 %3671 }
0x1ea2   :  { %5046 = vmatpush.xpose.msk.msrb.mxu1 %vm129_vm1, %v3672_v26  ;;  %v3605_v33 = vpop.permute.xlu0 %3604 }
0x1ea5   :  { %5047 = vmatmul.msk.f32.vlgmr.msrb.gmra.mxu1 %vm129_vm1, %v3670_v27 }
0x1ea9   :  { %v3806_v30 = vpop.permute.xlu1 %3805 }
0x1eaa   :  { %5052 = vmatpush.xpose.msk.msra.mxu1 %vm129_vm1, %v3806_v30  ;;  %v3739_v37 = vpop.permute.xlu0 %3738 }
0x1eae   :  { %4019 = vmatpush.msrb.mxu1 %v5067_v34 }
0x1eb0   :  { %4020 = vmatpush.msrb.mxu1 %v5066_v35 }
0x1eb2   :  { %4021 = vmatpush.msrb.mxu1 %v5065_v38 }
0x1eb4   :  { %4022 = vmatpush.msrb.mxu1 %v5064_v40 }
0x1ed4   :  { %v3419_v48 = vpop.xlane.xlu1 %3418 }
0x1ed5   :  { %v3358_v54 = vpop.xlane.xlu0 %3357  ;;  %v3420_v49 = vsub.f32 %v3416_v51, %v3419_v48 }
0x1ed6   :  { %5312 = vrcp.f32 %v3358_v54 }
0x1ed7   :  { %v3421_v31 = vmul.f32 1.442695, %v3420_v49 }
0x1ed9   :  { %5314 = vpow2.f32 %v3421_v31 }
0x1edc   :  { %v5313_v18 = vpop.eup %5312 }
0x1edd   :  { %v3360_v44 = vmul.f32 %v5313_v18, %v5311_v24 }
0x1edf   :  { %5033 = vmatmul.msk.f32.vlgmr.msrb.gmra.mxu0 %vm129_vm1, %v3360_v44  ;;  %v5315_v56 = vpop.eup %5314 }
0x1ee0   :  { %5043 = vmatpush.xpose.msk.msrb.mxu0 %vm129_vm1, %v3605_v33 }
0x1ee7   :  { %5038 = vmatmul.msk.f32.vlgmr.msra.gmra.mxu0 %vm129_vm1, %v3455_v22 }
0x1ee8   :  { %5049 = vmatpush.xpose.msk.msra.mxu0 %vm129_vm1, %v3739_v37  ;;  %v3804_v46 = vpop.permute.xlu0 %3803 }
0x1ee9   :  { %5053 = vmatmul.msk.f32.vlgmr.msra.gmra.mxu1 %vm129_vm1, %v3804_v46 }
0x1eef   :  { %5044 = vmatmul.msk.f32.vlgmr.msrb.gmra.mxu0 %vm129_vm1, %v6625_v12 }
0x1ef1   :  { %5068 = vmatmul.msk.f32.vlgmr.msrb.gmra.mxu1 %vm96_vm0, %v6277_v36  ;;  %v3423_v36 = vsel %vm129_vm1, %v5315_v56, 0.0 }
0x1ef7   :  { %5050 = vmatmul.msk.f32.vlgmr.msra.gmra.mxu0 %vm129_vm1, %v3737_v8 }
0x1ef9   :  { %5069 = vmatmul.msk.f32.gmra.mxu1 %vm96_vm0, %v6346_v5 }
0x1f13   :  { %v3553_v5 = vpop.xlane.xlu0 %3552 }
0x1f14   :  { %v3554_v32 = vsub.f32 %v3550_v11, %v3553_v5 }
0x1f16   :  { %v3555_v29 = vmul.f32 1.442695, %v3554_v32 }
0x1f18   :  { %5316 = vpow2.f32 %v3555_v29 }
0x1f1e   :  { %v6689_v62 = vpop.eup %5316 }
0x1f1f   :  { %v3557_v0 = vsel %vm129_vm1, %v6689_v62, 0.0 }
0x1f22   :  { %v3694_v52 = vpop.f32.mrf.mxu1 }
0x1f23   :  { %v3697_v53 = vmul.f32 0.35355338, %v3694_v52 }
0x1f25   :  { %v3698_v55 = vsel %vm2096_vm6, %v3697_v53, -1e+30 }
0x1f26   :  { %v3699_v47 = vsel %vm129_vm1, %v3698_v55, -inf }
0x1f27   :  { %3700 = vmax.xlane.f32.xlu1 %v3699_v47 }
0x1f2f   :  { %3424 = vadd.xlane.f32.xlu1 %v3423_v36 }
0x1f48   :  { %3428 = vrot.lane.b32.xlu1 %v6587_v39, %s7127_s8 }
0x1f5c   :  { %v6681_v23 = vpop.f32.mrf.mxu0 }
0x1f64   :  { %v3479_v61 = vpop.f32.mrf.mxu0 }
0x1f65   :  { %v3482_v1 = vmul.f32 0.35355338, %v3479_v61 }
0x1f66   :  { %v3828_v7 = vpop.f32.mrf.mxu1 }
0x1f67   :  { %v3831_v58 = vmul.f32 0.35355338, %v3828_v7  ;;  %v3483_v57 = vsel %vm1813_vm2, %v3482_v1, -1e+30 }
0x1f68   :  { %v3484_v17 = vsel %vm129_vm1, %v3483_v57, -inf }
0x1f69   :  { %v6685_v45 = vsel %vm2096_vm6, %v3831_v58, -1e+30 }
0x1f6a   :  { %v3833_v59 = vsel %vm129_vm1, %v6685_v45, -inf }
0x1f6b   :  { %3834 = vmax.xlane.f32.xlu2 %v3833_v59 }
0x1f6c   :  { %v3627_v2 = vpop.f32.mrf.mxu0 }
0x1f6d   :  { %v3630_v50 = vmul.f32 0.35355338, %v3627_v2 }
0x1f6e   :  { %v6730_v2 = vpop.f32.mrf.mxu1 }
0x1f6f   :  { %v3631_v9 = vsel %vm2096_vm6, %v3630_v50, -1e+30 }
0x1f70   :  { %v3632_v16 = vsel %vm129_vm1, %v3631_v9, -inf }
0x1f73   :  { %3558 = vadd.xlane.f32.xlu2 %v3557_v0 }
0x1f74   :  { %v3761_v3 = vpop.f32.mrf.mxu0 }
0x1f75   :  { %v3764_v51 = vmul.f32 0.35355338, %v3761_v3 }
0x1f77   :  { %v3765_v24 = vsel %vm2096_vm6, %v3764_v51, -1e+30 }
0x1f78   :  { %v3766_v4 = vsel %vm129_vm1, %v3765_v24, -inf }
0x1f7b   :  { %3485 = vmax.xlane.f32.xlu2 %v3484_v17 }
0x1f83   :  { %3633 = vmax.xlane.f32.xlu2 %v3632_v16 }
0x1f9a   :  { %v3701_v10 = vpop.xlane.xlu1 %3700 }
0x1f9b   :  { %v3702_v14 = vsub.f32 %v3698_v55, %v3701_v10  ;;  %3495 = vrot.lane.b32.xlu2 %v6587_v39, %s7129_s25 }
0x1f9d   :  { %v3703_v60 = vmul.f32 1.442695, %v3702_v14 }
0x1f9f   :  { %5318 = vpow2.f32 %v3703_v60 }
0x1fa2   :  { %v3425_v41 = vpop.xlane.xlu1 %3424 }
0x1fa3   :  { %3643 = vrot.lane.b32.xlu2 %v6625_v12, %s7119_s7  ;;  %5320 = vrcp.f32 %v3425_v41  ;;  %v5027_v41 = vld [vmem:[%s7021_s14 + $0x30] sm:$0xff]  ;;  %s5427_s7 = smov [#allocation2]  }
0x1fa5   :  { %v6703_v13 = vpop.eup %5318 }
0x1fa6   :  { %v3705_v15 = vsel %vm129_vm1, %v6703_v13, 0.0 }
0x1fa7   :  { %3706 = vadd.xlane.f32.xlu0 %v3705_v15 }
0x1fa9   :  { %v5321_v19 = vpop.eup %5320 }
0x1faa   :  { %v3427_v21 = vmul.f32 %v5321_v19, %v5315_v56  ;;  %v5025_v19 = vld [vmem:[%s7021_s14 + $0x20] sm:$0xff] }
0x1fab   :  { %3710 = vrot.lane.b32.xlu2 %v6625_v12, %s7127_s8  ;;  %s4857_s8 = sshll.u32 %s5427_s7, 4  ;;  %s4858_s8 = int_to_ptr.vmem [resolvable:$true] %s4857_s8 }
0x1faf   :  { %3767 = vmax.xlane.f32.xlu0 %v3766_v4  ;;  %v5026_v4 = vld [vmem:[%s7021_s14 + $0x28] sm:$0xff] }
0x1fb3   :  { %3777 = vrot.lane.b32.xlu2 %v6625_v12, %s7129_s25  ;;  %s4859_s25 = sshll.u32 %s7149_s17, 4  ;;  %s4860_s25 = int_to_ptr.hbm [resolvable:$true] %s4859_s25 }
0x1fba   :  { %v3429_v22 = vpop.permute.xlu1 %3428 }
0x1fbb   :  { %3844 = vrot.lane.b32.xlu2 %v6625_v12, %s7128_s28  ;;  %3449 = vmatpush.msrb.mxu3 %v3429_v22 }
0x1fbc   :  { %5036 = vmatmul.msk.f32.vlgmr.msrb.gmra.mxu3 %vm129_vm1, %v3427_v21 }
0x1fde   :  { %v3835_v20 = vpop.xlane.xlu2 %3834 }
0x1fdf   :  { %v3836_v31 = vsub.f32 %v6685_v45, %v3835_v20 }
0x1fe1   :  { %v3837_v52 = vmul.f32 1.442695, %v3836_v31 }
0x1fe6   :  { %v3559_v11 = vpop.xlane.xlu2 %3558 }
0x1fee   :  { %v3486_v25 = vpop.xlane.xlu2 %3485 }
0x1fef   :  { %v3487_v26 = vsub.f32 %v3483_v57, %v3486_v25 }
0x1ff1   :  { %v3488_v27 = vmul.f32 1.442695, %v3487_v26 }
0x1ff3   :  { %5322 = vpow2.f32 %v3488_v27 }
0x1ff6   :  { %v3634_v30 = vpop.xlane.xlu2 %3633 }
0x1ff7   :  { %v3635_v33 = vsub.f32 %v3631_v9, %v3634_v30 }
0x1ff9   :  { %v5323_v34 = vpop.eup %5322  ;;  %v3636_v35 = vmul.f32 1.442695, %v3635_v33 }
0x1ffa   :  { %v3490_v38 = vsel %vm129_vm1, %v5323_v34, 0.0 }
0x1ffb   :  { %5324 = vpow2.f32 %v3636_v35  ;;  %3491 = vadd.xlane.f32.xlu0 %v3490_v38 }
0x1ffe   :  { %v3496_v37 = vpop.permute.xlu2 %3495 }
0x1fff   :  { %3516 = vmatpush.msra.mxu2 %v3496_v37 }
0x2001   :  { %v5325_v12 = vpop.eup %5324 }
0x2002   :  { %v3638_v40 = vsel %vm129_vm1, %v5325_v12, 0.0 }
0x2003   :  { %3639 = vadd.xlane.f32.xlu0 %v3638_v40 }
0x2006   :  { %v3644_v54 = vpop.permute.xlu2 %3643 }
0x2007   :  { %3664 = vmatpush.msrb.mxu2 %v3644_v54 }
0x2017   :  { %3562 = vrot.lane.b32.xlu0 %v6587_v39, %s7128_s28  ;;  %v3711_v39 = vpop.permute.xlu2 %3710  ;;  %s7147_s28 = sld [smem:[#allocation25_spill]] }
0x201a   :  { %v3707_v18 = vpop.xlane.xlu0 %3706 }
0x201f   :  { %v3778_v29 = vpop.permute.xlu2 %3777 }
0x2022   :  { %v3768_v44 = vpop.xlane.xlu0 %3767 }
0x2023   :  { %v3769_v46 = vsub.f32 %v3765_v24, %v3768_v44  ;;  %v5028_v24 = vld [vmem:[%s7021_s14 + $0x38] sm:$0xff]  ;;  %v6771_v44 = vpop.f32.mrf.mxu1 }
0x2024   :  { %3903 = vmatpush.msrb.mxu0 %v5028_v24 }
0x2025   :  { %v3770_v8 = vmul.f32 1.442695, %v3769_v46 }
0x2026   :  { %3904 = vmatpush.msrb.mxu0 %v5027_v41 }
0x2027   :  { %5326 = vpow2.f32 %v3770_v8  ;;  %v3845_v0 = vpop.permute.xlu2 %3844 }
0x2028   :  { %5328 = vpow2.f32 %v3837_v52  ;;  %3905 = vmatpush.msrb.mxu0 %v5026_v4 }
0x202a   :  { %3906 = vmatpush.msrb.mxu0 %v5025_v19 }
0x202d   :  { %v5327_v48 = vpop.eup %5326 }
0x202e   :  { %v3772_v49 = vsel %vm129_vm1, %v5327_v48, 0.0  ;;  %v5329_v53 = vpop.eup %5328 }
0x202f   :  { %3773 = vadd.xlane.f32.xlu1 %v3772_v49  ;;  %v3839_v47 = vsel %vm129_vm1, %v5329_v53, 0.0 }
0x203f   :  { %v3451_v55 = vpop.f32.mrf.mxu3 }
0x2040   :  { %3589 = vrot.lane.b32.xlu2 %v3451_v55, %s7130_s24 }
0x2041   :  { %3840 = vadd.xlane.f32.xlu0 %v3839_v47 }
0x206e   :  { %v3492_v56 = vpop.xlane.xlu0 %3491 }
0x206f   :  { %5330 = vrcp.f32 %v3492_v56  ;;  %v5061_v56 = vld [vmem:[%s7135_s18 + $0x38] sm:$0xff] }
0x2075   :  { %v5331_v36 = vpop.eup %5330 }
0x2076   :  { %v3494_v5 = vmul.f32 %v5331_v36, %v5323_v34  ;;  %v3640_v32 = vpop.xlane.xlu0 %3639  ;;  %v5060_v36 = vld [vmem:[%s7135_s18 + $0x30] sm:$0xff] }
0x2077   :  { %5332 = vrcp.f32 %v3640_v32  ;;  %v5058_v32 = vld [vmem:[%s7135_s18 + $0x20] sm:$0xff] }
0x2078   :  { %5039 = vmatmul.msk.f32.vlgmr.msra.gmra.mxu2 %vm129_vm1, %v3494_v5  ;;  %5334 = vrcp.f32 %v3559_v11  ;;  %v5059_v5 = vld [vmem:[%s7135_s18 + $0x28] sm:$0xff] }
0x2079   :  { %3798 = vmatpush.msra.mxu2 %v3778_v29  ;;  %5336 = vrcp.f32 %v3707_v18 }
0x207d   :  { %v5333_v7 = vpop.eup %5332 }
0x207e   :  { %v3642_v58 = vmul.f32 %v5333_v7, %v5325_v12  ;;  %v5335_v45 = vpop.eup %5334 }
0x207f   :  { %v3561_v59 = vmul.f32 %v5335_v45, %v6689_v62  ;;  %v5337_v1 = vpop.eup %5336 }
0x2080   :  { %5045 = vmatmul.msk.f32.vlgmr.msrb.gmra.mxu2 %vm129_vm1, %v3642_v58  ;;  %v3709_v57 = vmul.f32 %v5337_v1, %v6703_v13  ;;  %v5057_v1 = vld [vmem:[%s7136_s12 + $0x2] sm:$0x3] }
0x2081   :  { %3991 = vmatpush.msrb.mxu2 %v5061_v56 }
0x2083   :  { %3992 = vmatpush.msrb.mxu2 %v5060_v36 }
0x2085   :  { %3993 = vmatpush.msrb.mxu2 %v5059_v5 }
0x2087   :  { %3994 = vmatpush.msrb.mxu2 %v5058_v32 }
0x2089   :  { %v3563_v61 = vpop.permute.xlu0 %3562 }
0x208a   :  { %3583 = vmatpush.msra.mxu3 %v3563_v61 }
0x208b   :  { %5042 = vmatmul.msk.f32.vlgmr.msra.gmra.mxu3 %vm129_vm1, %v3561_v59 }
0x208c   :  { %3731 = vmatpush.msrb.mxu3 %v3711_v39 }
0x208e   :  { %3865 = vmatpush.msra.mxu3 %v3845_v0 }
0x2093   :  { %5048 = vmatmul.msk.f32.vlgmr.msrb.gmra.mxu3 %vm129_vm1, %v3709_v57 }
0x2094   :  { %5074 = vmatpush.xpose.msk.msrb.mxu3 %vm129_vm1, %v6730_v2 }
0x209a   :  { %v3590_v21 = vpop.permute.xlu2 %3589 }
0x209b   :  { %v3600_v22 = vsel %vm129_vm1, %v6681_v23, %v3590_v21 }
0x20a2   :  { %v3774_v17 = vpop.xlane.xlu1 %3773 }
0x20a3   :  { %5338 = vrcp.f32 %v3774_v17 }
0x20a9   :  { %v5339_v62 = vpop.eup %5338 }
0x20aa   :  { %v3776_v50 = vmul.f32 %v5339_v62, %v5327_v48  ;;  %v3962_v62 = vperm.slane %v5057_v1, 0 }
0x20ac   :  { %5051 = vmatmul.msk.f32.vlgmr.msra.gmra.mxu2 %vm129_vm1, %v3776_v50 }
0x20b4   :  { %v3841_v9 = vpop.xlane.xlu0 %3840 }
0x20b5   :  { %5340 = vrcp.f32 %v3841_v9  ;;  %v3965_v9 = vperm.slane %v5057_v1, 1 }
0x20bb   :  { %v5341_v16 = vpop.eup %5340 }
0x20bc   :  { %v3843_v10 = vmul.f32 %v5341_v16, %v5329_v53 }
0x20be   :  { %5054 = vmatmul.msk.f32.vlgmr.msra.gmra.mxu3 %vm129_vm1, %v3843_v10 }
0x20fb   :  { %v3518_v14 = vpop.f32.mrf.mxu2 }
0x20fc   :  { %3593 = vrot.lane.b32.xlu1 %v3518_v14, %s7132_s19 }
0x2103   :  { %v3666_v13 = vpop.f32.mrf.mxu2 }
0x210e   :  { %v3585_v60 = vpop.f32.mrf.mxu3 }
0x210f   :  { %3597 = vrot.lane.b32.xlu2 %v3585_v60, %s7114_s10 }
0x2116   :  { %v3733_v3 = vpop.f32.mrf.mxu3 }
0x2117   :  { %3871 = vrot.lane.b32.xlu2 %v3733_v3, %s7130_s24 }
0x212f   :  { %v3800_v15 = vpop.f32.mrf.mxu2 }
0x2130   :  { %3875 = vrot.lane.b32.xlu0 %v3800_v15, %s7132_s19 }
0x2141   :  { %v3867_v51 = vpop.f32.mrf.mxu3 }
0x2142   :  { %3879 = vrot.lane.b32.xlu2 %v3867_v51, %s7114_s10 }
0x2169   :  { %v3598_v11 = vpop.permute.xlu2 %3597 }
0x216e   :  { %v3594_v20 = vpop.permute.xlu1 %3593 }
0x216f   :  { %v3601_v25 = vsel %vm408_vm4, %v3600_v22, %v3594_v20 }
0x2170   :  { %v3602_v26 = vsel %vm410_vm5, %v3601_v25, %v3598_v11 }
0x2171   :  { %5055 = vmatmul.msk.f32.vlgmr.msrb.gmra.mxu0 %vm96_vm0, %v3602_v26  ;;  %v3872_v27 = vpop.permute.xlu2 %3871 }
0x2172   :  { %v3882_v30 = vsel %vm129_vm1, %v3666_v13, %v3872_v27 }
0x219c   :  { %v3880_v34 = vpop.permute.xlu2 %3879 }
0x21a2   :  { %v3876_v33 = vpop.permute.xlu0 %3875 }
0x21a3   :  { %v3883_v35 = vsel %vm408_vm4, %v3882_v30, %v3876_v33  ;;  %v5139_v30 = vpack.i.bf16 %v6771_v44, %v6730_v2 }
0x21a4   :  { %v3884_v38 = vsel %vm410_vm5, %v3883_v35, %v3880_v34 }
0x21a5   :  { %5056 = vmatmul.msk.f32.gmra.mxu0 %vm96_vm0, %v3884_v38 }
0x21ee   :  { %v3908_v23 = vpop.f32.mrf.mxu0 }
0x21ef   :  { %v3916_v37 = vadd.f32 %v3908_v23, %v6581_v43 }
0x21f1   :  { %v3918_v12 = vsel %vm96_vm0, %v3916_v37, 0.0 }
0x21f2   :  { %3919 = vadd.xlane.f32.xlu1 %v3918_v12 }
0x2222   :  { %v3911_v40 = vpop.f32.mrf.mxu0 }
0x2223   :  { %v3917_v54 = vadd.f32 %v3911_v40, %v6618_v6 }
0x2225   :  { %v3921_v18 = vsel %vm96_vm0, %v3917_v54, 0.0 }
0x2226   :  { %3922 = vadd.xlane.f32.xlu2 %v3921_v18 }
0x223e   :  { %4102 = vrot.lane.b32.xlu2 %v6730_v2, %s7123_s2 }
0x2246   :  { %4236 = vrot.lane.b32.xlu2 %v6730_v2, %s7125_s9 }
0x224e   :  { %4383 = vrot.lane.b32.xlu2 %v6771_v44, %s7123_s2 }
0x2256   :  { %4517 = vrot.lane.b32.xlu2 %v6771_v44, %s7125_s9 }
0x2265   :  { %v3920_v43 = vpop.xlane.xlu1 %3919 }
0x2266   :  { %v3924_v6 = vmul.f32 %v3920_v43, %v5732_v28 }
0x2268   :  { %v3926_v46 = vsub.f32 %v3916_v37, %v3924_v6 }
0x226a   :  { %v3928_v8 = vmul.f32 %v3926_v46, %v3926_v46 }
0x226c   :  { %v3930_v48 = vsel %vm96_vm0, %v3928_v8, 0.0 }
0x226d   :  { %3931 = vadd.xlane.f32.xlu0 %v3930_v48 }
0x2299   :  { %v3923_v49 = vpop.xlane.xlu2 %3922 }
0x229a   :  { %v3925_v31 = vmul.f32 %v3923_v49, %v5732_v28 }
0x229c   :  { %v3927_v52 = vsub.f32 %v3917_v54, %v3925_v31 }
0x229e   :  { %v3929_v53 = vmul.f32 %v3927_v52, %v3927_v52 }
0x22a0   :  { %v3933_v55 = vsel %vm96_vm0, %v3929_v53, 0.0 }
0x22a1   :  { %3934 = vadd.xlane.f32.xlu1 %v3933_v55  ;;  %v4103_v47 = vpop.permute.xlu2 %4102 }
0x22a2   :  { %5077 = vmatpush.xpose.msk.msra.mxu0 %vm129_vm1, %v4103_v47 }
0x22a9   :  { %v4237_v39 = vpop.permute.xlu2 %4236 }
0x22aa   :  { %5083 = vmatpush.xpose.msk.msrb.mxu0 %vm129_vm1, %v4237_v39 }
0x22b1   :  { %v4384_v33 = vpop.permute.xlu2 %4383 }
0x22b9   :  { %v4518_v37 = vpop.permute.xlu2 %4517 }
0x22ba   :  { %4169 = vrot.lane.b32.xlu1 %v6730_v2, %s7126_s1 }
0x22e0   :  { %v3932_v29 = vpop.xlane.xlu0 %3931 }
0x22e1   :  { %v3936_v7 = vmul.f32 %v3932_v29, %v5732_v28 }
0x22e3   :  { %v3938_v58 = vadd.f32 1e-05, %v3936_v7 }
0x22e5   :  { %5342 = vrsqrt.f32 %v3938_v58  ;;  %vm3946_vm6 = vweird.f32 %v3938_v58 }
0x22eb   :  { %v5343_v45 = vpop.eup %5342 }
0x22ec   :  { %v3941_v59 = vmul.f32 %v5343_v45, %v3938_v58  ;;  %vm3947_vm2 = vweird.f32 %v5343_v45 }
0x22ed   :  { %vm3948_vm9 = vmor %vm3946_vm6, %vm3947_vm2 }
0x22ee   :  { %v3942_v61 = vmul.f32 %v5343_v45, %v3941_v59 }
0x22f0   :  { %v3943_v0 = vmul.f32 0.5, %v3942_v61 }
0x22f2   :  { %v3944_v57 = vsub.f32 1.5, %v3943_v0 }
0x22f4   :  { %v3945_v17 = vmul.f32 %v5343_v45, %v3944_v57 }
0x22f6   :  { %v3949_v50 = vsel %vm3948_vm9, %v5343_v45, %v3945_v17 }
0x22f7   :  { %v3960_v16 = vmul.f32 %v3949_v50, %v3926_v46 }
0x22f9   :  { %v3963_v10 = vmul.f32 %v3962_v62, %v3960_v16 }
0x22fb   :  { %v6801_v14 = vadd.f32 %v3965_v9, %v3963_v10 }
0x22fd   :  { %5062 = vmatmul.msk.f32.vlgmr.msrb.gmra.mxu2 %vm96_vm0, %v6801_v14 }
0x2314   :  { %v3935_v60 = vpop.xlane.xlu1 %3934 }
0x2315   :  { %v3937_v3 = vmul.f32 %v3935_v60, %v5732_v28 }
0x2317   :  { %v3939_v13 = vadd.f32 1e-05, %v3937_v3 }
0x2319   :  { %5344 = vrsqrt.f32 %v3939_v13  ;;  %vm3956_vm12 = vweird.f32 %v3939_v13 }
0x231f   :  { %v5345_v15 = vpop.eup %5344 }
0x2320   :  { %v3951_v51 = vmul.f32 %v5345_v15, %v3939_v13  ;;  %vm3957_vm3 = vweird.f32 %v5345_v15 }
0x2321   :  { %vm3958_vm13 = vmor %vm3956_vm12, %vm3957_vm3 }
0x2322   :  { %v3952_v24 = vmul.f32 %v5345_v15, %v3951_v51 }
0x2324   :  { %v3953_v41 = vmul.f32 0.5, %v3952_v24 }
0x2326   :  { %v3954_v4 = vsub.f32 1.5, %v3953_v41 }
0x2328   :  { %v3955_v19 = vmul.f32 %v5345_v15, %v3954_v4 }
0x232a   :  { %v3959_v21 = vsel %vm3958_vm13, %v5345_v15, %v3955_v19 }
0x232b   :  { %v3961_v22 = vmul.f32 %v3959_v21, %v3927_v52 }
0x232c   :  { %v4170_v20 = vpop.permute.xlu1 %4169 }
0x232d   :  { %5080 = vmatpush.xpose.msk.msra.mxu1 %vm129_vm1, %v4170_v20  ;;  %v3964_v11 = vmul.f32 %v3962_v62, %v3961_v22 }
0x232f   :  { %v6809_v25 = vadd.f32 %v3965_v9, %v3964_v11 }
0x2331   :  { %5086 = vmatpush.xpose.msk.msrb.mxu1 %vm129_vm1, %v6771_v44  ;;  %5063 = vmatmul.msk.f32.gmra.mxu2 %vm96_vm0, %v6809_v25 }
0x2380   :  { %v3996_v26 = vpop.f32.mrf.mxu2 }
0x2381   :  { %4234 = vrot.lane.b32.xlu1 %v3996_v26, %s7125_s9  ;;  %4100 = vrot.lane.b32.xlu0 %v3996_v26, %s7123_s2 }
0x2382   :  { %5075 = vmatmul.msk.f32.vlgmr.msrb.gmra.mxu3 %vm129_vm1, %v3996_v26 }
0x2389   :  { %4450 = vrot.lane.b32.xlu1 %v6771_v44, %s7126_s1  ;;  %4167 = vrot.lane.b32.xlu0 %v3996_v26, %s7126_s1 }
0x23b4   :  { %v3999_v27 = vpop.f32.mrf.mxu2 }
0x23b5   :  { %4515 = vrot.lane.b32.xlu1 %v3999_v27, %s7125_s9  ;;  %4381 = vrot.lane.b32.xlu0 %v3999_v27, %s7123_s2 }
0x23bd   :  { %5140 = vrot.lane.b32.xlu1 %v5139_v30, %s7120_s26  ;;  %4448 = vrot.lane.b32.xlu0 %v3999_v27, %s7126_s1  ;;  %s5428_s26 = smov 128  }
0x23f3   :  { %v4235_v34 = vpop.permute.xlu1 %4234  ;;  %v4101_v35 = vpop.permute.xlu0 %4100 }
0x23f4   :  { %5078 = vmatmul.msk.f32.vlgmr.msra.gmra.mxu0 %vm129_vm1, %v4101_v35 }
0x23f5   :  { %5089 = vmatpush.xpose.msk.msra.mxu0 %vm129_vm1, %v4384_v33 }
0x23fb   :  { %v4451_v38 = vpop.permute.xlu1 %4450  ;;  %v4168_v23 = vpop.permute.xlu0 %4167 }
0x23fc   :  { %5081 = vmatmul.msk.f32.vlgmr.msra.gmra.mxu1 %vm129_vm1, %v4168_v23  ;;  %5084 = vmatmul.msk.f32.vlgmr.msrb.gmra.mxu0 %vm129_vm1, %v4235_v34 }
0x23fd   :  { %5092 = vmatpush.xpose.msk.msra.mxu1 %vm129_vm1, %v4451_v38  ;;  %5095 = vmatpush.xpose.msk.msrb.mxu0 %vm129_vm1, %v4518_v37 }
0x2404   :  { %5087 = vmatmul.msk.f32.vlgmr.msrb.gmra.mxu1 %vm129_vm1, %v3999_v27 }
0x2405   :  { %v4058_v12 = vpop.f32.mrf.mxu3 }
0x2406   :  { %v4061_v40 = vmul.f32 0.35355338, %v4058_v12 }
0x2408   :  { %v4062_v54 = vsel %vm2530_vm7, %v4061_v40, -1e+30 }
0x2409   :  { %v4063_v18 = vsel %vm129_vm1, %v4062_v54, -inf }
0x240a   :  { %4064 = vmax.xlane.f32.xlu2 %v4063_v18 }
0x2422   :  { %4208 = vrot.lane.b32.xlu2 %v6730_v2, %s7124_s4 }
0x2427   :  { %v4516_v43 = vpop.permute.xlu1 %4515  ;;  %v4382_v6 = vpop.permute.xlu0 %4381 }
0x2428   :  { %5090 = vmatmul.msk.f32.vlgmr.msra.gmra.mxu0 %vm129_vm1, %v4382_v6 }
0x242f   :  { %v6838_v46 = vpop.permute.xlu1 %5140  ;;  %v4449_v8 = vpop.permute.xlu0 %4448 }
0x2430   :  { %v5142_v48 = vunpack.i.l.bf16 %v6838_v46  ;;  %5093 = vmatmul.msk.f32.vlgmr.msra.gmra.mxu1 %vm129_vm1, %v4449_v8  ;;  %5096 = vmatmul.msk.f32.vlgmr.msrb.gmra.mxu0 %vm129_vm1, %v4516_v43 }
0x2432   :  { %4095 = vmatpush.msra.mxu3 %v5142_v48 }
0x2471   :  { %v4125_v49 = vpop.f32.mrf.mxu0 }
0x2472   :  { %v4128_v31 = vmul.f32 0.35355338, %v4125_v49 }
0x2474   :  { %v4129_v52 = vsel %vm2530_vm7, %v4128_v31, -1e+30 }
0x2475   :  { %v4130_v53 = vsel %vm129_vm1, %v4129_v52, -inf }
0x2476   :  { %4131 = vmax.xlane.f32.xlu0 %v4130_v53 }
0x2479   :  { %v4192_v55 = vpop.f32.mrf.mxu1  ;;  %v4259_v47 = vpop.f32.mrf.mxu0 }
0x247a   :  { %v4195_v39 = vmul.f32 0.35355338, %v4192_v55  ;;  %v4262_v56 = vmul.f32 0.35355338, %v4259_v47 }
0x247c   :  { %v4196_v36 = vsel %vm2530_vm7, %v4195_v39, -1e+30  ;;  %v4263_v5 = vsel %vm2530_vm7, %v4262_v56, -1e+30 }
0x247d   :  { %v4065_v32 = vpop.xlane.xlu2 %4064  ;;  %v4264_v29 = vsel %vm129_vm1, %v4263_v5, -inf  ;;  %v4197_v7 = vsel %vm129_vm1, %v4196_v36, -inf }
0x247e   :  { %4265 = vmax.xlane.f32.xlu2 %v4264_v29  ;;  %4198 = vmax.xlane.f32.xlu1 %v4197_v7  ;;  %v4066_v15 = vsub.f32 %v4062_v54, %v4065_v32 }
0x2480   :  { %v4067_v51 = vmul.f32 1.442695, %v4066_v15 }
0x2481   :  { %v4339_v45 = vpop.f32.mrf.mxu1 }
0x2482   :  { %v4342_v1 = vmul.f32 0.35355338, %v4339_v45  ;;  %5346 = vpow2.f32 %v4067_v51 }
0x2484   :  { %v4343_v62 = vsel %vm2812_vm11, %v4342_v1, -1e+30 }
0x2485   :  { %v4209_v58 = vpop.permute.xlu2 %4208  ;;  %v4344_v10 = vsel %vm129_vm1, %v4343_v62, -inf }
0x2486   :  { %4229 = vmatpush.msrb.mxu3 %v4209_v58 }
0x2488   :  { %v5347_v24 = vpop.eup %5346 }
0x2489   :  { %v4069_v21 = vsel %vm129_vm1, %v5347_v24, 0.0 }
0x248a   :  { %4141 = vrot.lane.b32.xlu0 %v6730_v2, %s7122_s5 }
0x24a5   :  { %v4406_v59 = vpop.f32.mrf.mxu0 }
0x24a6   :  { %v4409_v61 = vmul.f32 0.35355338, %v4406_v59  ;;  %v5143_v59 = vunpack.i.h.bf16 %v6838_v46 }
0x24a8   :  { %v4410_v0 = vsel %vm2812_vm11, %v4409_v61, -1e+30 }
0x24a9   :  { %v4411_v63 = vsel %vm129_vm1, %v4410_v0, -inf }
0x24aa   :  { %4412 = vmax.xlane.f32.xlu1 %v4411_v63 }
0x24ad   :  { %v4473_v57 = vpop.f32.mrf.mxu1  ;;  %v4540_v9 = vpop.f32.mrf.mxu0 }
0x24ae   :  { %v4476_v17 = vmul.f32 0.35355338, %v4473_v57  ;;  %v4543_v60 = vmul.f32 0.35355338, %v4540_v9 }
0x24b0   :  { %v4477_v50 = vsel %vm2812_vm11, %v4476_v17, -1e+30  ;;  %v4544_v3 = vsel %vm2812_vm11, %v4543_v60, -1e+30 }
0x24b1   :  { %v4478_v16 = vsel %vm129_vm1, %v4477_v50, -inf  ;;  %v4545_v13 = vsel %vm129_vm1, %v4544_v3, -inf }
0x24b2   :  { %4479 = vmax.xlane.f32.xlu2 %v4478_v16 }
0x24b4   :  { %4345 = vmax.xlane.f32.xlu0 %v4344_v10 }
0x24bc   :  { %4546 = vmax.xlane.f32.xlu0 %v4545_v13 }
0x24c3   :  { %4275 = vrot.lane.b32.xlu1 %v6730_v2, %s7121_s27 }
0x24e9   :  { %v4132_v41 = vpop.xlane.xlu0 %4131 }
0x24ea   :  { %v4133_v4 = vsub.f32 %v4129_v52, %v4132_v41 }
0x24ec   :  { %v4134_v19 = vmul.f32 1.442695, %v4133_v4 }
0x24ed   :  { %4070 = vadd.xlane.f32.xlu1 %v4069_v21 }
0x24ee   :  { %5348 = vpow2.f32 %v4134_v19 }
0x24f1   :  { %v4266_v22 = vpop.xlane.xlu2 %4265  ;;  %v4199_v42 = vpop.xlane.xlu1 %4198 }
0x24f2   :  { %v4267_v20 = vsub.f32 %v4263_v5, %v4266_v22  ;;  %v4200_v11 = vsub.f32 %v4196_v36, %v4199_v42 }
0x24f4   :  { %v5349_v26 = vpop.eup %5348  ;;  %v4268_v27 = vmul.f32 1.442695, %v4267_v20  ;;  %v4201_v30 = vmul.f32 1.442695, %v4200_v11 }
0x24f5   :  { %v4136_v2 = vsel %vm129_vm1, %v5349_v26, 0.0 }
0x24f6   :  { %5350 = vpow2.f32 %v4268_v27  ;;  %4137 = vadd.xlane.f32.xlu2 %v4136_v2 }
0x24f7   :  { %5352 = vpow2.f32 %v4201_v30 }
0x24fc   :  { %v5351_v33 = vpop.eup %5350  ;;  %v4142_v34 = vpop.permute.xlu0 %4141 }
0x24fd   :  { %v5353_v35 = vpop.eup %5352  ;;  %4162 = vmatpush.msra.mxu2 %v4142_v34  ;;  %v4270_v38 = vsel %vm129_vm1, %v5351_v33, 0.0  ;;  %v5073_v34 = vld [vmem:[%s7138_s0 + $0x38] sm:$0xff] }
0x24fe   :  { %4271 = vadd.xlane.f32.xlu2 %v4270_v38  ;;  %v4203_v23 = vsel %vm129_vm1, %v5353_v35, 0.0  ;;  %4615 = vmatpush.msrb.mxu1 %v5073_v34  ;;  %v5071_v38 = vld [vmem:[%s7138_s0 + $0x28] sm:$0xff] }
0x24ff   :  { %4204 = vadd.xlane.f32.xlu0 %v4203_v23  ;;  %v5070_v23 = vld [vmem:[%s7138_s0 + $0x20] sm:$0xff] }
0x251d   :  { %v4413_v37 = vpop.xlane.xlu1 %4412 }
0x251e   :  { %v4414_v12 = vsub.f32 %v4410_v0, %v4413_v37 }
0x2520   :  { %v4415_v40 = vmul.f32 1.442695, %v4414_v12 }
0x2522   :  { %5354 = vpow2.f32 %v4415_v40 }
0x2525   :  { %v4480_v54 = vpop.xlane.xlu2 %4479 }
0x2526   :  { %v4481_v18 = vsub.f32 %v4477_v50, %v4480_v54 }
0x2527   :  { %v4346_v43 = vpop.xlane.xlu0 %4345 }
0x2528   :  { %v5355_v6 = vpop.eup %5354  ;;  %v4482_v8 = vmul.f32 1.442695, %v4481_v18  ;;  %v4347_v48 = vsub.f32 %v4343_v62, %v4346_v43 }
0x2529   :  { %v4417_v49 = vsel %vm129_vm1, %v5355_v6, 0.0 }
0x252a   :  { %5356 = vpow2.f32 %v4482_v8  ;;  %v4348_v31 = vmul.f32 1.442695, %v4347_v48  ;;  %4418 = vadd.xlane.f32.xlu0 %v4417_v49 }
0x252c   :  { %5358 = vpow2.f32 %v4348_v31 }
0x252f   :  { %v4547_v52 = vpop.xlane.xlu0 %4546 }
0x2530   :  { %v5357_v53 = vpop.eup %5356  ;;  %v4548_v55 = vsub.f32 %v4544_v3, %v4547_v52 }
0x2531   :  { %v4484_v47 = vsel %vm129_vm1, %v5357_v53, 0.0 }
0x2532   :  { %v5359_v39 = vpop.eup %5358  ;;  %v4549_v56 = vmul.f32 1.442695, %v4548_v55  ;;  %4485 = vadd.xlane.f32.xlu1 %v4484_v47 }
0x2533   :  { %v4350_v36 = vsel %vm129_vm1, %v5359_v39, 0.0 }
0x2534   :  { %5360 = vpow2.f32 %v4549_v56  ;;  %4351 = vadd.xlane.f32.xlu2 %v4350_v36 }
0x2535   :  { %v4276_v5 = vpop.permute.xlu1 %4275 }
0x2536   :  { %4296 = vmatpush.msrb.mxu2 %v4276_v5 }
0x253a   :  { %v5361_v32 = vpop.eup %5360 }
0x253b   :  { %v4551_v29 = vsel %vm129_vm1, %v5361_v32, 0.0 }
0x253c   :  { %4552 = vadd.xlane.f32.xlu2 %v4551_v29 }
0x253e   :  { %4422 = vrot.lane.b32.xlu0 %v6771_v44, %s7122_s5 }
0x254b   :  { %4489 = vrot.lane.b32.xlu1 %v6771_v44, %s7124_s4 }
0x2554   :  { %4556 = vrot.lane.b32.xlu2 %v6771_v44, %s7121_s27 }
0x2560   :  { %v4071_v7 = vpop.xlane.xlu1 %4070 }
0x2561   :  { %5362 = vrcp.f32 %v4071_v7 }
0x2567   :  { %v5363_v58 = vpop.eup %5362 }
0x2568   :  { %v4073_v45 = vmul.f32 %v5363_v58, %v5347_v24 }
0x2569   :  { %v4138_v61 = vpop.xlane.xlu2 %4137 }
0x256a   :  { %5364 = vrcp.f32 %v4138_v61  ;;  %5076 = vmatmul.msk.f32.vlgmr.msra.gmra.mxu3 %vm129_vm1, %v4073_v45 }
0x256b   :  { %4376 = vmatpush.msra.mxu3 %v5143_v59 }
0x2570   :  { %v5365_v0 = vpop.eup %5364 }
0x2571   :  { %v4140_v63 = vmul.f32 %v5365_v0, %v5349_v26  ;;  %v4272_v1 = vpop.xlane.xlu2 %4271 }
0x2572   :  { %5366 = vrcp.f32 %v4272_v1  ;;  %v4205_v57 = vpop.xlane.xlu0 %4204  ;;  %v5102_v1 = vld [vmem:[%s7139_s21 + $0x28] sm:$0xff] }
0x2573   :  { %5368 = vrcp.f32 %v4205_v57  ;;  %5079 = vmatmul.msk.f32.vlgmr.msra.gmra.mxu2 %vm129_vm1, %v4140_v63  ;;  %v5103_v63 = vld [vmem:[%s7139_s21 + $0x30] sm:$0xff]  ;;  %v5101_v57 = vld [vmem:[%s7139_s21 + $0x20] sm:$0xff] }
0x2578   :  { %v5367_v44 = vpop.eup %5366 }
0x2579   :  { %v5369_v17 = vpop.eup %5368  ;;  %v4274_v62 = vmul.f32 %v5367_v44, %v5351_v33 }
0x257a   :  { %v4207_v50 = vmul.f32 %v5369_v17, %v5353_v35  ;;  %v5072_v35 = vld [vmem:[%s7138_s0 + $0x30] sm:$0xff] }
0x257b   :  { %5085 = vmatmul.msk.f32.vlgmr.msrb.gmra.mxu2 %vm129_vm1, %v4274_v62  ;;  %4616 = vmatpush.msrb.mxu1 %v5072_v35 }
0x257c   :  { %5082 = vmatmul.msk.f32.vlgmr.msrb.gmra.mxu3 %vm129_vm1, %v4207_v50 }
0x257d   :  { %4617 = vmatpush.msrb.mxu1 %v5071_v38 }
0x257f   :  { %4618 = vmatpush.msrb.mxu1 %v5070_v23 }
0x259d   :  { %v4419_v46 = vpop.xlane.xlu0 %4418 }
0x259e   :  { %5370 = vrcp.f32 %v4419_v46 }
0x25a4   :  { %v5371_v16 = vpop.eup %5370 }
0x25a5   :  { %v4421_v13 = vmul.f32 %v5371_v16, %v5355_v6  ;;  %v4486_v51 = vpop.xlane.xlu1 %4485 }
0x25a7   :  { %v4352_v9 = vpop.xlane.xlu2 %4351 }
0x25a8   :  { %5372 = vrcp.f32 %v4352_v9 }
0x25ae   :  { %v5373_v10 = vpop.eup %5372 }
0x25af   :  { %v4354_v60 = vmul.f32 %v5373_v10, %v5359_v39  ;;  %v4553_v3 = vpop.xlane.xlu2 %4552  ;;  %v5100_v10 = vld [vmem:[%s7146_s22 + $0x2] sm:$0x3] }
0x25b0   :  { %5374 = vrcp.f32 %v4553_v3  ;;  %v4423_v15 = vpop.permute.xlu0 %4422 }
0x25b1   :  { %5088 = vmatmul.msk.f32.vlgmr.msra.gmra.mxu3 %vm129_vm1, %v4354_v60  ;;  %4443 = vmatpush.msra.mxu2 %v4423_v15  ;;  %5376 = vrcp.f32 %v4486_v51  ;;  %v4677_v51 = vperm.slane %v5100_v10, 1 }
0x25b2   :  { %5091 = vmatmul.msk.f32.vlgmr.msra.gmra.mxu2 %vm129_vm1, %v4421_v13  ;;  %v4674_v13 = vperm.slane %v5100_v10, 0 }
0x25b6   :  { %v5375_v24 = vpop.eup %5374 }
0x25b7   :  { %v4557_v41 = vpop.permute.xlu2 %4556  ;;  %v4555_v4 = vmul.f32 %v5375_v24, %v5361_v32  ;;  %v5377_v19 = vpop.eup %5376 }
0x25b8   :  { %4577 = vmatpush.msrb.mxu2 %v4557_v41  ;;  %v4488_v21 = vmul.f32 %v5377_v19, %v5357_v53  ;;  %v5113_v19 = vld [vmem:[%s7141_s23 + $0x78] sm:$0xff] }
0x25b9   :  { %4749 = vmatpush.msra.mxu0 %v5113_v19 }
0x25ba   :  { %5097 = vmatmul.msk.f32.vlgmr.msrb.gmra.mxu2 %vm129_vm1, %v4555_v4 }
0x25bd   :  { %v4490_v22 = vpop.permute.xlu1 %4489 }
0x25be   :  { %4510 = vmatpush.msrb.mxu3 %v4490_v22  ;;  %v5111_v22 = vld [vmem:[%s7141_s23 + $0x68] sm:$0xff] }
0x25bf   :  { %5094 = vmatmul.msk.f32.vlgmr.msrb.gmra.mxu3 %vm129_vm1, %v4488_v21  ;;  %v5112_v21 = vld [vmem:[%s7141_s23 + $0x70] sm:$0xff] }
0x25c0   :  { %4750 = vmatpush.msra.mxu0 %v5112_v21 }
0x25c2   :  { %4751 = vmatpush.msra.mxu0 %v5111_v22 }
0x25ed   :  { %v4097_v20 = vpop.f32.mrf.mxu3 }
0x25f6   :  { %v4164_v42 = vpop.f32.mrf.mxu2 }
0x25f7   :  { %4302 = vrot.lane.b32.xlu0 %v4164_v42, %s7130_s24 }
0x25fe   :  { %v4298_v11 = vpop.f32.mrf.mxu2 }
0x25ff   :  { %v4231_v26 = vpop.f32.mrf.mxu3  ;;  %4310 = vrot.lane.b32.xlu1 %v4298_v11, %s7114_s10  ;;  %v5110_v11 = vld [vmem:[%s7141_s23 + $0x60] sm:$0xff] }
0x2600   :  { %4306 = vrot.lane.b32.xlu0 %v4231_v26, %s7132_s19  ;;  %4752 = vmatpush.msra.mxu0 %v5110_v11 }
0x2634   :  { %v4378_v30 = vpop.f32.mrf.mxu3 }
0x2635   :  { %v4445_v27 = vpop.f32.mrf.mxu2 }
0x2636   :  { %4583 = vrot.lane.b32.xlu0 %v4445_v27, %s7130_s24  ;;  %v5109_v27 = vld [vmem:[%s7141_s23 + $0x58] sm:$0xff] }
0x2637   :  { %4753 = vmatpush.msra.mxu0 %v5109_v27 }
0x263d   :  { %v4579_v2 = vpop.f32.mrf.mxu2 }
0x263e   :  { %4591 = vrot.lane.b32.xlu1 %v4579_v2, %s7114_s10 }
0x2642   :  { %v4512_v33 = vpop.f32.mrf.mxu3 }
0x2643   :  { %4587 = vrot.lane.b32.xlu2 %v4512_v33, %s7132_s19 }
0x2669   :  { %v4303_v37 = vpop.permute.xlu0 %4302 }
0x266a   :  { %v4313_v40 = vsel %vm129_vm1, %v4097_v20, %v4303_v37 }
0x2671   :  { %v4311_v12 = vpop.permute.xlu1 %4310 }
0x2672   :  { %v4307_v54 = vpop.permute.xlu0 %4306 }
0x2673   :  { %v4314_v18 = vsel %vm408_vm4, %v4313_v40, %v4307_v54  ;;  %v5108_v54 = vld [vmem:[%s7141_s23 + $0x50] sm:$0xff] }
0x2674   :  { %v4315_v43 = vsel %vm410_vm5, %v4314_v18, %v4311_v12  ;;  %4754 = vmatpush.msra.mxu0 %v5108_v54  ;;  %v5107_v18 = vld [vmem:[%s7141_s23 + $0x48] sm:$0xff] }
0x2675   :  { %5098 = vmatmul.msk.f32.vlgmr.msrb.gmra.mxu1 %vm96_vm0, %v4315_v43  ;;  %v5106_v43 = vld [vmem:[%s7141_s23 + $0x40] sm:$0xff] }
0x2676   :  { %4755 = vmatpush.msra.mxu0 %v5107_v18 }
0x2678   :  { %4756 = vmatpush.msra.mxu0 %v5106_v43 }
0x269d   :  { %v4588_v48 = vpop.permute.xlu2 %4587 }
0x26a8   :  { %v4584_v6 = vpop.permute.xlu0 %4583 }
0x26a9   :  { %v4594_v8 = vsel %vm129_vm1, %v4378_v30, %v4584_v6  ;;  %v5150_v6 = vld [vmem:[%s7142_s30 + $0x1] ss:$0 sm:$0xff] }
0x26aa   :  { %v4595_v31 = vsel %vm408_vm4, %v4594_v8, %v4588_v48 }
0x26b0   :  { %v4592_v49 = vpop.permute.xlu1 %4591 }
0x26b1   :  { %v4596_v52 = vsel %vm410_vm5, %v4595_v31, %v4592_v49 }
0x26b2   :  { %5099 = vmatmul.msk.f32.gmra.mxu1 %vm96_vm0, %v4596_v52 }
0x26f2   :  { %v4620_v53 = vpop.f32.mrf.mxu1 }
0x26f3   :  { %v4628_v55 = vadd.f32 %v4620_v53, %v6801_v14 }
0x26f5   :  { %v4630_v47 = vsel %vm96_vm0, %v4628_v55, 0.0 }
0x26f6   :  { %4631 = vadd.xlane.f32.xlu0 %v4630_v47 }
0x272f   :  { %v4623_v39 = vpop.f32.mrf.mxu1 }
0x2730   :  { %v4629_v56 = vadd.f32 %v4623_v39, %v6809_v25  ;;  %v5104_v25 = vld [vmem:[%s7139_s21 + $0x38] sm:$0xff] }
0x2731   :  { %4719 = vmatpush.msra.mxu3 %v5104_v25 }
0x2732   :  { %v4633_v36 = vsel %vm96_vm0, %v4629_v56, 0.0 }
0x2733   :  { %4634 = vadd.xlane.f32.xlu2 %v4633_v36  ;;  %4720 = vmatpush.msra.mxu3 %v5103_v63 }
0x2735   :  { %4721 = vmatpush.msra.mxu3 %v5102_v1 }
0x2737   :  { %4722 = vmatpush.msra.mxu3 %v5101_v57 }
0x2769   :  { %v4632_v5 = vpop.xlane.xlu0 %4631 }
0x276a   :  { %v4636_v32 = vmul.f32 %v4632_v5, %v5732_v28 }
0x276c   :  { %v4638_v29 = vsub.f32 %v4628_v55, %v4636_v32  ;;  %v5151_v55 = vld [vmem:[%s7147_s28 + $0x1] ss:$0 sm:$0xff] }
0x276e   :  { %v4640_v7 = vmul.f32 %v4638_v29, %v4638_v29 }
0x2770   :  { %v4642_v58 = vsel %vm96_vm0, %v4640_v7, 0.0 }
0x2771   :  { %4643 = vadd.xlane.f32.xlu1 %v4642_v58 }
0x27a6   :  { %v4635_v45 = vpop.xlane.xlu2 %4634 }
0x27a7   :  { %v4637_v14 = vmul.f32 %v4635_v45, %v5732_v28 }
0x27a9   :  { %v4639_v59 = vsub.f32 %v4629_v56, %v4637_v14 }
0x27ab   :  { %v4641_v61 = vmul.f32 %v4639_v59, %v4639_v59 }
0x27ad   :  { %v4645_v0 = vsel %vm96_vm0, %v4641_v61, 0.0 }
0x27ae   :  { %4646 = vadd.xlane.f32.xlu0 %v4645_v0 }
0x27e4   :  { %v4644_v44 = vpop.xlane.xlu1 %4643 }
0x27e5   :  { %v4648_v17 = vmul.f32 %v4644_v44, %v5732_v28  ;;  %v4821_v44 = vld [vmem:[%s7148_s29 + $0x18] sm:$0xff] }
0x27e6   :  { %4840 = vmatpush.msra.mxu2 %v4821_v44 }
0x27e7   :  { %v4650_v62 = vadd.f32 1e-05, %v4648_v17  ;;  %v4820_v17 = vld [vmem:[%s7148_s29 + $0x10] sm:$0xff] }
0x27e8   :  { %4841 = vmatpush.msra.mxu2 %v4820_v17 }
0x27e9   :  { %5378 = vrsqrt.f32 %v4650_v62  ;;  %vm4658_vm4 = vweird.f32 %v4650_v62 }
0x27ef   :  { %v5379_v50 = vpop.eup %5378 }
0x27f0   :  { %v4653_v46 = vmul.f32 %v5379_v50, %v4650_v62  ;;  %vm4659_vm1 = vweird.f32 %v5379_v50  ;;  %v4819_v62 = vld [vmem:[%s7148_s29 + $0x8] sm:$0xff] }
0x27f1   :  { %vm4660_vm5 = vmor %vm4658_vm4, %vm4659_vm1  ;;  %4842 = vmatpush.msra.mxu2 %v4819_v62 }
0x27f2   :  { %v4654_v9 = vmul.f32 %v5379_v50, %v4653_v46 }
0x27f4   :  { %v4655_v16 = vmul.f32 0.5, %v4654_v9 }
0x27f6   :  { %v4656_v60 = vsub.f32 1.5, %v4655_v16 }
0x27f8   :  { %v4657_v3 = vmul.f32 %v5379_v50, %v4656_v60 }
0x27fa   :  { %v4661_v15 = vsel %vm4660_vm5, %v5379_v50, %v4657_v3  ;;  %v4818_v50 = vld [vmem:[%s7148_s29] sm:$0xff] }
0x27fb   :  { %v4672_v24 = vmul.f32 %v4661_v15, %v4638_v29  ;;  %4843 = vmatpush.msra.mxu2 %v4818_v50  ;;  %v5119_v15 = vld [vmem:[%s7145_s15 + $0x2] sm:$0x3] }
0x27fc   :  { %v4815_v19 = vperm.slane %v5119_v15, 1 }
0x27fd   :  { %v4675_v41 = vmul.f32 %v4674_v13, %v4672_v24 }
0x27ff   :  { %v4678_v4 = vadd.f32 %v4677_v51, %v4675_v41  ;;  %v4812_v41 = vperm.slane %v5119_v15, 0 }
0x2801   :  { %5115 = vmatmul.msk.f32.vlgmr.msra.gmra.mxu3 %vm96_vm0, %v4678_v4 }
0x2821   :  { %v4647_v42 = vpop.xlane.xlu0 %4646 }
0x2822   :  { %v4649_v20 = vmul.f32 %v4647_v42, %v5732_v28 }
0x2824   :  { %v4651_v26 = vadd.f32 1e-05, %v4649_v20 }
0x2826   :  { %5380 = vrsqrt.f32 %v4651_v26  ;;  %vm4668_vm11 = vweird.f32 %v4651_v26 }
0x282c   :  { %v5381_v30 = vpop.eup %5380 }
0x282d   :  { %v4663_v2 = vmul.f32 %v5381_v30, %v4651_v26  ;;  %vm4669_vm7 = vweird.f32 %v5381_v30 }
0x282e   :  { %vm4670_vm14 = vmor %vm4668_vm11, %vm4669_vm7 }
0x282f   :  { %v4664_v33 = vmul.f32 %v5381_v30, %v4663_v2 }
0x2831   :  { %v4665_v34 = vmul.f32 0.5, %v4664_v33 }
0x2833   :  { %v4666_v35 = vsub.f32 1.5, %v4665_v34 }
0x2835   :  { %v4667_v38 = vmul.f32 %v5381_v30, %v4666_v35 }
0x2837   :  { %v4671_v23 = vsel %vm4670_vm14, %v5381_v30, %v4667_v38 }
0x2838   :  { %v4673_v37 = vmul.f32 %v4671_v23, %v4639_v59 }
0x283a   :  { %v4676_v12 = vmul.f32 %v4674_v13, %v4673_v37 }
0x283c   :  { %v4679_v40 = vadd.f32 %v4677_v51, %v4676_v12 }
0x283e   :  { %5116 = vmatmul.msk.f32.gmra.mxu3 %vm96_vm0, %v4679_v40 }
0x2884   :  { %v4724_v8 = vpop.f32.mrf.mxu3 }
0x2885   :  { %v4725_v48 = vadd.f32 %v5150_v6, %v4724_v8 }
0x2887   :  { %v4730_v49 = vmax.f32 %v4725_v48, 0.0 }
0x2889   :  { %5117 = vmatmul.msk.f32.vlgmr.msra.gmra.mxu0 %vm835_vm10, %v4730_v49 }
0x28c1   :  { %v4727_v31 = vpop.f32.mrf.mxu3 }
0x28c2   :  { %v4728_v52 = vadd.f32 %v5150_v6, %v4727_v31 }
0x28c4   :  { %v4731_v53 = vmax.f32 %v4728_v52, 0.0 }
0x28c6   :  { %5118 = vmatmul.msk.f32.gmra.mxu0 %vm835_vm10, %v4731_v53 }
0x2906   :  { %v4758_v47 = vpop.f32.mrf.mxu0 }
0x2907   :  { %v4759_v39 = vadd.f32 %v5151_v55, %v4758_v47 }
0x2909   :  { %v4766_v56 = vadd.f32 %v4759_v39, %v4678_v4 }
0x290b   :  { %v4768_v36 = vsel %vm96_vm0, %v4766_v56, 0.0 }
0x290c   :  { %4769 = vadd.xlane.f32.xlu2 %v4768_v36 }
0x2943   :  { %v4761_v5 = vpop.f32.mrf.mxu0 }
0x2944   :  { %v4762_v32 = vadd.f32 %v5151_v55, %v4761_v5 }
0x2946   :  { %v4767_v29 = vadd.f32 %v4762_v32, %v4679_v40 }
0x2948   :  { %v4771_v7 = vsel %vm96_vm0, %v4767_v29, 0.0 }
0x2949   :  { %4772 = vadd.xlane.f32.xlu1 %v4771_v7 }
0x297f   :  { %v4770_v58 = vpop.xlane.xlu2 %4769 }
0x2980   :  { %v4774_v45 = vmul.f32 %v4770_v58, %v5732_v28 }
0x2982   :  { %v4776_v14 = vsub.f32 %v4766_v56, %v4774_v45 }
0x2984   :  { %v4778_v59 = vmul.f32 %v4776_v14, %v4776_v14 }
0x2986   :  { %v4780_v61 = vsel %vm96_vm0, %v4778_v59, 0.0 }
0x2987   :  { %4781 = vadd.xlane.f32.xlu0 %v4780_v61 }
0x29bc   :  { %v4773_v0 = vpop.xlane.xlu1 %4772 }
0x29bd   :  { %v4775_v25 = vmul.f32 %v4773_v0, %v5732_v28 }
0x29bf   :  { %v4777_v63 = vsub.f32 %v4767_v29, %v4775_v25 }
0x29c1   :  { %v4779_v1 = vmul.f32 %v4777_v63, %v4777_v63 }
0x29c3   :  { %v4783_v57 = vsel %vm96_vm0, %v4779_v1, 0.0 }
0x29c4   :  { %4784 = vadd.xlane.f32.xlu2 %v4783_v57 }
0x29fa   :  { %v4782_v46 = vpop.xlane.xlu0 %4781 }
0x29fb   :  { %v4786_v9 = vmul.f32 %v4782_v46, %v5732_v28 }
0x29fd   :  { %v4788_v16 = vadd.f32 1e-05, %v4786_v9 }
0x29ff   :  { %5382 = vrsqrt.f32 %v4788_v16  ;;  %vm4796_vm15 = vweird.f32 %v4788_v16 }
0x2a05   :  { %v5383_v10 = vpop.eup %5382 }
0x2a06   :  { %v4791_v60 = vmul.f32 %v5383_v10, %v4788_v16  ;;  %vm4797_vm10 = vweird.f32 %v5383_v10 }
0x2a07   :  { %vm4798_vm8 = vmor %vm4796_vm15, %vm4797_vm10 }
0x2a08   :  { %v4792_v3 = vmul.f32 %v5383_v10, %v4791_v60 }
0x2a0a   :  { %v4793_v13 = vmul.f32 0.5, %v4792_v3 }
0x2a0c   :  { %v4794_v51 = vsub.f32 1.5, %v4793_v13 }
0x2a0e   :  { %v4795_v24 = vmul.f32 %v5383_v10, %v4794_v51 }
0x2a10   :  { %v4799_v4 = vsel %vm4798_vm8, %v5383_v10, %v4795_v24 }
0x2a11   :  { %v4810_v21 = vmul.f32 %v4799_v4, %v4776_v14 }
0x2a13   :  { %v4813_v22 = vmul.f32 %v4812_v41, %v4810_v21 }
0x2a15   :  { %v4816_v42 = vadd.f32 %v4815_v19, %v4813_v22 }
0x2a17   :  { %5120 = vmatmul.msk.f32.vlgmr.msra.gmra.mxu2 %vm96_vm0, %v4816_v42 }
0x2a37   :  { %v4785_v20 = vpop.xlane.xlu2 %4784 }
0x2a38   :  { %v4787_v11 = vmul.f32 %v4785_v20, %v5732_v28 }
0x2a3a   :  { %v4789_v26 = vadd.f32 1e-05, %v4787_v11 }
0x2a3c   :  { %5384 = vrsqrt.f32 %v4789_v26  ;;  %vm4806_vm6 = vweird.f32 %v4789_v26 }
0x2a42   :  { %v5385_v27 = vpop.eup %5384 }
0x2a43   :  { %v4801_v30 = vmul.f32 %v5385_v27, %v4789_v26  ;;  %vm4807_vm2 = vweird.f32 %v5385_v27 }
0x2a44   :  { %vm4808_vm9 = vmor %vm4806_vm6, %vm4807_vm2 }
0x2a45   :  { %v4802_v2 = vmul.f32 %v5385_v27, %v4801_v30 }
0x2a47   :  { %v4803_v33 = vmul.f32 0.5, %v4802_v2 }
0x2a49   :  { %v4804_v34 = vsub.f32 1.5, %v4803_v33 }
0x2a4b   :  { %v4805_v35 = vmul.f32 %v5385_v27, %v4804_v34 }
0x2a4d   :  { %v4809_v38 = vsel %vm4808_vm9, %v5385_v27, %v4805_v35 }
0x2a4e   :  { %v4811_v23 = vmul.f32 %v4809_v38, %v4777_v63 }
0x2a50   :  { %v4814_v37 = vmul.f32 %v4812_v41, %v4811_v23 }
0x2a52   :  { %v4817_v12 = vadd.f32 %v4815_v19, %v4814_v37 }
0x2a54   :  { %5121 = vmatmul.msk.f32.gmra.mxu2 %vm96_vm0, %v4817_v12 }
0x2a9a   :  { %v4845_v40 = vpop.f32.mrf.mxu2 }
0x2a9b   :  { %4851 = vst.msk [vmem:[#allocation2] sm:$0xff] %vm96_vm0, %v4845_v40 }
0x2ad7   :  { %v4848_v28 = vpop.f32.mrf.mxu2 }
0x2ad8   :  { %4852 = vst.msk [vmem:[#allocation2 + $0x8] sm:$0xff] %vm96_vm0, %v4848_v28 }
0x2ad9   :  { %4865 = dma.vmem_to_hbm [thread:$0]  %s4858_s8, 256, %s4860_s25, [#allocation3], %s5428_s26, %s5428_s26, %s7130_s24  }
0x2ada   :  { %5410 = dma.done.wait [#allocation3], 256  }
0x2adb   :  { %5411 = vsyncadd [#allocation3], 4294967040 }
0x2adc   :  { %4870 = vsyncpa [#allocation3], 1 }

</bundles_post_ra>
